<compile_context>
chip_gen: v5e
topology: v5e:2x2
jax: 0.10.0
libtpu: 0.0.40
codegen_flags: <defaults>
</compile_context>

<pallas_src>
from functools import partial

import numpy as np
import jax
import jax.numpy as jnp
from jax import lax
from jax.experimental import pallas as pl
from jax.experimental.pallas import tpu as pltpu

HIDDEN = 50        # hidden_size in the PyTorch module
HP = 128           # padded per-gate hidden width (lane-aligned)
INPUT_SIZE = 1
NUM_LAYERS = 2
OUTPUT_SIZE = 4    # y_train.shape[1] (synthetic)
OP = 128           # padded output lanes
BT = 8             # batch tile (sublane-aligned) per grid step


def lstm_kernel(tlast_ref, x_ref, mask_ref,
                wih1_ref, b1_ref, whh1_ref, whh2_ref,
                wih2_ref, b2_ref, wfc_ref, bfc_ref,
                out_ref):
    """One batch tile, whole sequence, fully VMEM-resident.

    tlast_ref: (1,)   SMEM int32, index of the last valid time step
    x_ref:     (T, BT, 1)    time-major padded input (T = bucketed length)
    mask_ref:  (BT, 1)       1.0 where lengths[b] == lengths.max() else 0.0
    wih1_ref:  (1, 4*HP)     layer-1 input weights, gate order [i, f, o, g]
    b1_ref:    (1, 4*HP)     layer-1 combined bias (b_ih + b_hh)
    whh1_ref:  (HP, 4*HP)    layer-1 recurrent weights (right-multiply form)
    whh2_ref:  (HP, 4*HP)    layer-2 recurrent weights
    wih2_ref:  (HP, 4*HP)    layer-2 input weights
    b2_ref:    (1, 4*HP)     layer-2 combined bias
    wfc_ref:   (HP, OP)      fc weights (transposed, zero-padded)
    bfc_ref:   (1, OP)       fc bias (zero-padded)
    out_ref:   (BT, OP)
    """
    T, B, _ = x_ref.shape
    t_last = tlast_ref[0]

    wih1 = wih1_ref[...]
    b1 = b1_ref[...]
    whh1 = whh1_ref[...]
    whh2 = whh2_ref[...]
    wih2 = wih2_ref[...]
    b2 = b2_ref[...]

    def cell_gates(g, c):
        # Gate order [i, f, o, g]: push sigmoid(i,f) and tanh(g) to the EUP
        # first, form c_new, then sigmoid(o) overlaps with tanh(c_new).
        sif = jax.nn.sigmoid(g[:, :2 * HP])
        gg = jnp.tanh(g[:, 3 * HP:])
        cn = sif[:, HP:] * c + sif[:, :HP] * gg
        o = jax.nn.sigmoid(g[:, 2 * HP:3 * HP])
        hn = o * jnp.tanh(cn)
        return hn, cn

    def step(t, carry):
        h1, c1, h2, c2, h2_cap = carry
        # Carry-independent input projection (input_size == 1 -> lane
        # broadcast); issued first so it never sits between the recurrent
        # matmuls and the gate EUP pushes.
        xb = x_ref[t] * wih1 + b1
        # Two independent recurrent matmuls (no concat, no block-diag zeros):
        # step t+1's r1 depends only on h1n(t); layer-2 of step t runs in its
        # shadow under unroll.
        # TODO(synk): keep whh1/whh2/wih2 resident in the MXU across unrolled
        # steps via pltpu.matmul_push_rhs/matmul_acc_lhs/matmul_pop once the
        # bundle dump confirms Mosaic re-streams the weights per step.
        r1 = jnp.dot(h1, whh1, preferred_element_type=jnp.float32)
        r2 = jnp.dot(h2, whh2, preferred_element_type=jnp.float32)
        # ---- layer 1 ----
        h1n, c1n = cell_gates(xb + r1, c1)
        # ---- layer 2: only this matmul is on the intra-step dependent path ----
        g2 = jnp.dot(h1n, wih2, preferred_element_type=jnp.float32) + r2 + b2
        h2n, c2n = cell_gates(g2, c2)
        # Bucketed time loop: capture h2 at the last valid step.
        h2_cap = jnp.where(t == t_last, h2n, h2_cap)
        return h1n, c1n, h2n, c2n, h2_cap

    # Padded lanes stay exactly zero through the recurrence: their gate
    # pre-activations are 0, so c_pad = 0.5*c_pad + 0.5*tanh(0) = 0, h_pad = 0.
    zero = jnp.zeros((B, HP), jnp.float32)
    _, _, _, _, h2 = lax.fori_loop(0, T, step,
                                   (zero, zero, zero, zero, zero),
                                   unroll=8)

    # pad_packed_sequence zero-pads beyond each sequence length, so the
    # "last timestep" feature is zero for sequences shorter than the max.
    masked = h2 * mask_ref[...]
    out_ref[...] = (jnp.dot(masked, wfc_ref[...],
                            preferred_element_type=jnp.float32)
                    + bfc_ref[...])


# ---------------------------------------------------------------------------
# Weight packing (done ONCE, at init — not on the per-call path)
# ---------------------------------------------------------------------------
def _pack_gate_w(w, in_pad):
    """w: (4H, in) PyTorch row blocks [i; f; g; o] -> (in_pad, 4*HP) in
    right-multiply form, column gate order [i, f, o, g], each gate H -> HP."""
    H = HIDDEN
    w = np.asarray(w, np.float32)
    in_dim = w.shape[1]
    blocks = [w[0:H], w[H:2 * H], w[3 * H:4 * H], w[2 * H:3 * H]]  # i, f, o, g
    out = np.zeros((in_pad, 4 * HP), np.float32)
    for k, blk in enumerate(blocks):
        out[:in_dim, k * HP:k * HP + H] = blk.T
    return out


def _pack_gate_b(b_ih, b_hh):
    H = HIDDEN
    b = np.asarray(b_ih, np.float32) + np.asarray(b_hh, np.float32)
    blocks = [b[0:H], b[H:2 * H], b[3 * H:4 * H], b[2 * H:3 * H]]  # i, f, o, g
    out = np.zeros((1, 4 * HP), np.float32)
    for k, blk in enumerate(blocks):
        out[0, k * HP:k * HP + H] = blk
    return out


def pack_params(params):
    """One-time packing into device-resident arrays (gate order [i,f,o,g])."""
    wfc = np.zeros((HP, OP), np.float32)
    wfc[:HIDDEN, :OUTPUT_SIZE] = np.asarray(params["w_fc"], np.float32).T
    bfc = np.zeros((1, OP), np.float32)
    bfc[0, :OUTPUT_SIZE] = np.asarray(params["b_fc"], np.float32)
    packed = {
        "wih1": _pack_gate_w(params["w_ih_l0"], INPUT_SIZE),   # (1, 4HP)
        "b1":   _pack_gate_b(params["b_ih_l0"], params["b_hh_l0"]),
        "whh1": _pack_gate_w(params["w_hh_l0"], HP),            # (HP, 4HP)
        "whh2": _pack_gate_w(params["w_hh_l1"], HP),            # (HP, 4HP)
        "wih2": _pack_gate_w(params["w_ih_l1"], HP),            # (HP, 4HP)
        "b2":   _pack_gate_b(params["b_ih_l1"], params["b_hh_l1"]),
        "wfc":  wfc,
        "bfc":  bfc,
    }
    return {k: jnp.asarray(v) for k, v in packed.items()}


# ---------------------------------------------------------------------------
# Forward (per-call prep is jnp under jit; kernel loop length is bucketed)
# ---------------------------------------------------------------------------
@partial(jax.jit, static_argnames=("t_bucket", "b_pad"))
def _forward_jit(packed, x, lengths, *, t_bucket, b_pad):
    B, T = x.shape
    H4 = 4 * HP

    # time-major input, padded to (t_bucket, b_pad, 1)
    xt = jnp.zeros((t_bucket, b_pad, 1), jnp.float32)
    xt = xt.at[:T, :B, 0].set(x.astype(jnp.float32).T)

    t_max = jnp.max(lengths).astype(jnp.int32)
    lens_pad = jnp.zeros((b_pad,), jnp.int32).at[:B].set(lengths)
    mask = (lens_pad == t_max).astype(jnp.float32)[:, None]        # (b_pad, 1)
    t_last = jnp.reshape(t_max - 1, (1,)).astype(jnp.int32)        # SMEM scalar

    grid_spec = pltpu.PrefetchScalarGridSpec(
        num_scalar_prefetch=1,
        grid=(b_pad // BT,),
        in_specs=[
            pl.BlockSpec((t_bucket, BT, 1), lambda b, tl: (0, b, 0)),  # x
            pl.BlockSpec((BT, 1), lambda b, tl: (b, 0)),               # mask
            pl.BlockSpec((1, H4), lambda b, tl: (0, 0)),               # wih1
            pl.BlockSpec((1, H4), lambda b, tl: (0, 0)),               # b1
            pl.BlockSpec((HP, H4), lambda b, tl: (0, 0)),              # whh1
            pl.BlockSpec((HP, H4), lambda b, tl: (0, 0)),              # whh2
            pl.BlockSpec((HP, H4), lambda b, tl: (0, 0)),              # wih2
            pl.BlockSpec((1, H4), lambda b, tl: (0, 0)),               # b2
            pl.BlockSpec((HP, OP), lambda b, tl: (0, 0)),              # wfc
            pl.BlockSpec((1, OP), lambda b, tl: (0, 0)),               # bfc
        ],
        out_specs=pl.BlockSpec((BT, OP), lambda b, tl: (b, 0)),
    )

    return pl.pallas_call(
        lstm_kernel,
        out_shape=jax.ShapeDtypeStruct((b_pad, OP), jnp.float32),
        grid_spec=grid_spec,
        compiler_params=pltpu.CompilerParams(
            dimension_semantics=("parallel",)),   # batch tiles -> both TCs on v7x
    )(t_last, xt, mask,
      packed["wih1"], packed["b1"], packed["whh1"], packed["whh2"],
      packed["wih2"], packed["b2"], packed["wfc"], packed["bfc"])


def lstm_model_forward(packed, x, lengths):
    """packed: pack_params(...) output; x: (B, T) float; lengths: (B,) int."""
    B, T = x.shape
    t_bucket = max(8, int(pl.next_power_of_2(T)))   # bucketed -> no recompile per max-length
    b_pad = max(BT, -(-B // BT) * BT)               # fill f32 sublanes / batch tiles
    out = _forward_jit(packed, jnp.asarray(x, jnp.float32),
                       jnp.asarray(lengths, jnp.int32),
                       t_bucket=t_bucket, b_pad=b_pad)
    return out[:B, :OUTPUT_SIZE]


# ---------------------------------------------------------------------------
# Pure-JAX reference (reproduces the PyTorch forward) + init
# ---------------------------------------------------------------------------
def lstm_model_ref(params, x, lengths):
    lengths = np.asarray(lengths)
    t_max = int(lengths.max())
    xs = x[:, :t_max].astype(jnp.float32)[:, :, None]      # (B, T, 1)
    B = xs.shape[0]
    H = HIDDEN

    def cell(w_ih, w_hh, b_ih, b_hh, x_t, h, c):
        g = x_t @ w_ih.T + h @ w_hh.T + b_ih + b_hh
        i, f, gg, o = jnp.split(g, 4, axis=-1)
        c = jax.nn.sigmoid(f) * c + jax.nn.sigmoid(i) * jnp.tanh(gg)
        h = jax.nn.sigmoid(o) * jnp.tanh(c)
        return h, c

    def step(carry, x_t):
        h1, c1, h2, c2 = carry
        h1, c1 = cell(params["w_ih_l0"], params["w_hh_l0"],
                      params["b_ih_l0"], params["b_hh_l0"], x_t, h1, c1)
        h2, c2 = cell(params["w_ih_l1"], params["w_hh_l1"],
                      params["b_ih_l1"], params["b_hh_l1"], h1, h2, c2)
        return (h1, c1, h2, c2), h2

    zero = jnp.zeros((B, H), jnp.float32)
    _, outs = lax.scan(step, (zero, zero, zero, zero), jnp.transpose(xs, (1, 0, 2)))
    outs = jnp.transpose(outs, (1, 0, 2))                   # (B, T, H)
    t_idx = jnp.arange(t_max)[None, :, None]
    padded = outs * (t_idx < jnp.asarray(lengths)[:, None, None]).astype(jnp.float32)
    last = padded[:, -1, :]
    return last @ params["w_fc"].T + params["b_fc"]


def init_params(key):
    H, I, O = HIDDEN, INPUT_SIZE, OUTPUT_SIZE
    k = 1.0 / np.sqrt(H)
    keys = jax.random.split(key, 10)

    def u(kk, shape, bound):
        return jax.random.uniform(kk, shape, jnp.float32, -bound, bound)

    return {
        "w_ih_l0": u(keys[0], (4 * H, I), k),
        "w_hh_l0": u(keys[1], (4 * H, H), k),
        "b_ih_l0": u(keys[2], (4 * H,), k),
        "b_hh_l0": u(keys[3], (4 * H,), k),
        "w_ih_l1": u(keys[4], (4 * H, H), k),
        "w_hh_l1": u(keys[5], (4 * H, H), k),
        "b_ih_l1": u(keys[6], (4 * H,), k),
        "b_hh_l1": u(keys[7], (4 * H,), k),
        "w_fc":    u(keys[8], (O, H), k),
        "b_fc":    u(keys[9], (O,), k),
    }


if __name__ == "__main__":
    key = jax.random.PRNGKey(0)
    pkey, xkey = jax.random.split(key)
    params = init_params(pkey)
    packed = pack_params(params)        # one-time, device-resident packing

    B, T = 4, 8
    x = jax.random.normal(xkey, (B, T), jnp.float32)   # module unsqueezes to (B, T, 1)
    lengths = np.array([8, 5, 8, 3], dtype=np.int32)

    out = lstm_model_forward(packed, x, lengths)
    out = jax.block_until_ready(out)

    ref = lstm_model_ref(params, x, lengths)
    np.testing.assert_allclose(np.asarray(out), np.asarray(ref), rtol=5e-5, atol=5e-5)
    print("KERNEL_OK")
</pallas_src>

<mosaic_0001>
module attributes {stable_mosaic.version = 11 : i64} {
  func.func @lstm_kernel(%arg0: i32, %arg1: memref<1xi32, #tpu.memory_space<smem>>, %arg2: memref<8x8x1xf32, #tpu.memory_space<vmem>>, %arg3: memref<8x1xf32, #tpu.memory_space<vmem>>, %arg4: memref<1x512xf32, #tpu.memory_space<vmem>>, %arg5: memref<1x512xf32, #tpu.memory_space<vmem>>, %arg6: memref<128x512xf32, #tpu.memory_space<vmem>>, %arg7: memref<128x512xf32, #tpu.memory_space<vmem>>, %arg8: memref<128x512xf32, #tpu.memory_space<vmem>>, %arg9: memref<1x512xf32, #tpu.memory_space<vmem>>, %arg10: memref<128x128xf32, #tpu.memory_space<vmem>>, %arg11: memref<1x128xf32, #tpu.memory_space<vmem>>, %arg12: memref<8x128xf32, #tpu.memory_space<vmem>>) attributes {dimension_semantics = [#tpu.dimension_semantics<parallel>], iteration_bounds = array<i64: 1>, scalar_prefetch = 1 : i64, scratch_operands = 0 : i64, tpu.core_type = #tpu.core_type<tc>, window_params = [{transform_indices = @transform_0, window_bounds = array<i64: 8, 8, 1>}, {transform_indices = @transform_1, window_bounds = array<i64: 8, 1>}, {pipeline_mode = #tpu.pipeline_mode<synchronous>, transform_indices = @transform_2, window_bounds = array<i64: 1, 512>}, {pipeline_mode = #tpu.pipeline_mode<synchronous>, transform_indices = @transform_3, window_bounds = array<i64: 1, 512>}, {pipeline_mode = #tpu.pipeline_mode<synchronous>, transform_indices = @transform_4, window_bounds = array<i64: 128, 512>}, {pipeline_mode = #tpu.pipeline_mode<synchronous>, transform_indices = @transform_5, window_bounds = array<i64: 128, 512>}, {pipeline_mode = #tpu.pipeline_mode<synchronous>, transform_indices = @transform_6, window_bounds = array<i64: 128, 512>}, {pipeline_mode = #tpu.pipeline_mode<synchronous>, transform_indices = @transform_7, window_bounds = array<i64: 1, 512>}, {pipeline_mode = #tpu.pipeline_mode<synchronous>, transform_indices = @transform_8, window_bounds = array<i64: 128, 128>}, {pipeline_mode = #tpu.pipeline_mode<synchronous>, transform_indices = @transform_9, window_bounds = array<i64: 1, 128>}, {transform_indices = @transform_10, window_bounds = array<i64: 8, 128>}]} {
    %c0 = arith.constant 0 : index
    %0 = memref.load %arg1[%c0] : memref<1xi32, #tpu.memory_space<smem>>
    %c0_0 = arith.constant 0 : index
    %c0_1 = arith.constant 0 : index
    %1 = vector.load %arg4[%c0_0, %c0_1] : memref<1x512xf32, #tpu.memory_space<vmem>>, vector<1x512xf32>
    %c0_2 = arith.constant 0 : index
    %c0_3 = arith.constant 0 : index
    %2 = vector.load %arg5[%c0_2, %c0_3] : memref<1x512xf32, #tpu.memory_space<vmem>>, vector<1x512xf32>
    %c0_4 = arith.constant 0 : index
    %c0_5 = arith.constant 0 : index
    %3 = vector.load %arg6[%c0_4, %c0_5] : memref<128x512xf32, #tpu.memory_space<vmem>>, vector<128x512xf32>
    %c0_6 = arith.constant 0 : index
    %c0_7 = arith.constant 0 : index
    %4 = vector.load %arg7[%c0_6, %c0_7] : memref<128x512xf32, #tpu.memory_space<vmem>>, vector<128x512xf32>
    %c0_8 = arith.constant 0 : index
    %c0_9 = arith.constant 0 : index
    %5 = vector.load %arg8[%c0_8, %c0_9] : memref<128x512xf32, #tpu.memory_space<vmem>>, vector<128x512xf32>
    %c0_10 = arith.constant 0 : index
    %c0_11 = arith.constant 0 : index
    %6 = vector.load %arg9[%c0_10, %c0_11] : memref<1x512xf32, #tpu.memory_space<vmem>>, vector<1x512xf32>
    %cst = arith.constant 0.000000e+00 : f32
    %7 = vector.broadcast %cst : f32 to vector<8x128xf32>
    %c0_i32 = arith.constant 0 : i32
    %8 = arith.index_cast %c0_i32 : i32 to index
    %c0_12 = arith.constant 0 : index
    %c0_13 = arith.constant 0 : index
    %9 = vector.load %arg2[%8, %c0_12, %c0_13] : memref<8x8x1xf32, #tpu.memory_space<vmem>>, vector<1x8x1xf32>
    %10 = vector.shape_cast %9 : vector<1x8x1xf32> to vector<8x1xf32>
    %11 = vector.broadcast %10 : vector<8x1xf32> to vector<8x512xf32>
    %12 = vector.broadcast %1 : vector<1x512xf32> to vector<8x512xf32>
    %13 = arith.mulf %11, %12 : vector<8x512xf32>
    %14 = vector.broadcast %2 : vector<1x512xf32> to vector<8x512xf32>
    %15 = arith.addf %13, %14 : vector<8x512xf32>
    %cst_14 = arith.constant dense<0.000000e+00> : vector<8x512xf32>
    %16 = tpu.matmul %7, %3, %cst_14 {dimension_numbers = #tpu.dot_dimension_numbers<[1], [0], [0], [1], [0, 0, 1, 1], [], []>} : vector<8x128xf32>, vector<128x512xf32>, vector<8x512xf32> -> vector<8x512xf32>
    %cst_15 = arith.constant dense<0.000000e+00> : vector<8x512xf32>
    %17 = tpu.matmul %7, %4, %cst_15 {dimension_numbers = #tpu.dot_dimension_numbers<[1], [0], [0], [1], [0, 0, 1, 1], [], []>} : vector<8x128xf32>, vector<128x512xf32>, vector<8x512xf32> -> vector<8x512xf32>
    %18 = arith.addf %15, %16 : vector<8x512xf32>
    %19 = vector.extract_strided_slice %18 {offsets = [0, 0], sizes = [8, 256], strides = [1, 1]} : vector<8x512xf32> to vector<8x256xf32>
    %20 = arith.negf %19 : vector<8x256xf32>
    %21 = math.exp %20 : vector<8x256xf32>
    %cst_16 = arith.constant 1.000000e+00 : f32
    %22 = vector.broadcast %cst_16 : f32 to vector<8x256xf32>
    %23 = arith.addf %22, %21 : vector<8x256xf32>
    %24 = arith.divf %22, %23 : vector<8x256xf32>
    %25 = vector.extract_strided_slice %18 {offsets = [0, 384], sizes = [8, 128], strides = [1, 1]} : vector<8x512xf32> to vector<8x128xf32>
    %26 = math.tanh %25 : vector<8x128xf32>
    %27 = vector.extract_strided_slice %24 {offsets = [0, 128], sizes = [8, 128], strides = [1, 1]} : vector<8x256xf32> to vector<8x128xf32>
    %28 = arith.mulf %27, %7 : vector<8x128xf32>
    %29 = vector.extract_strided_slice %24 {offsets = [0, 0], sizes = [8, 128], strides = [1, 1]} : vector<8x256xf32> to vector<8x128xf32>
    %30 = arith.mulf %29, %26 : vector<8x128xf32>
    %31 = arith.addf %28, %30 : vector<8x128xf32>
    %32 = vector.extract_strided_slice %18 {offsets = [0, 256], sizes = [8, 128], strides = [1, 1]} : vector<8x512xf32> to vector<8x128xf32>
    %33 = arith.negf %32 : vector<8x128xf32>
    %34 = math.exp %33 : vector<8x128xf32>
    %cst_17 = arith.constant 1.000000e+00 : f32
    %35 = vector.broadcast %cst_17 : f32 to vector<8x128xf32>
    %36 = arith.addf %35, %34 : vector<8x128xf32>
    %37 = arith.divf %35, %36 : vector<8x128xf32>
    %38 = math.tanh %31 : vector<8x128xf32>
    %39 = arith.mulf %37, %38 : vector<8x128xf32>
    %cst_18 = arith.constant dense<0.000000e+00> : vector<8x512xf32>
    %40 = tpu.matmul %39, %5, %cst_18 {dimension_numbers = #tpu.dot_dimension_numbers<[1], [0], [0], [1], [0, 0, 1, 1], [], []>} : vector<8x128xf32>, vector<128x512xf32>, vector<8x512xf32> -> vector<8x512xf32>
    %41 = arith.addf %40, %17 : vector<8x512xf32>
    %42 = vector.broadcast %6 : vector<1x512xf32> to vector<8x512xf32>
    %43 = arith.addf %41, %42 : vector<8x512xf32>
    %44 = vector.extract_strided_slice %43 {offsets = [0, 0], sizes = [8, 256], strides = [1, 1]} : vector<8x512xf32> to vector<8x256xf32>
    %45 = arith.negf %44 : vector<8x256xf32>
    %46 = math.exp %45 : vector<8x256xf32>
    %cst_19 = arith.constant 1.000000e+00 : f32
    %47 = vector.broadcast %cst_19 : f32 to vector<8x256xf32>
    %48 = arith.addf %47, %46 : vector<8x256xf32>
    %49 = arith.divf %47, %48 : vector<8x256xf32>
    %50 = vector.extract_strided_slice %43 {offsets = [0, 384], sizes = [8, 128], strides = [1, 1]} : vector<8x512xf32> to vector<8x128xf32>
    %51 = math.tanh %50 : vector<8x128xf32>
    %52 = vector.extract_strided_slice %49 {offsets = [0, 128], sizes = [8, 128], strides = [1, 1]} : vector<8x256xf32> to vector<8x128xf32>
    %53 = arith.mulf %52, %7 : vector<8x128xf32>
    %54 = vector.extract_strided_slice %49 {offsets = [0, 0], sizes = [8, 128], strides = [1, 1]} : vector<8x256xf32> to vector<8x128xf32>
    %55 = arith.mulf %54, %51 : vector<8x128xf32>
    %56 = arith.addf %53, %55 : vector<8x128xf32>
    %57 = vector.extract_strided_slice %43 {offsets = [0, 256], sizes = [8, 128], strides = [1, 1]} : vector<8x512xf32> to vector<8x128xf32>
    %58 = arith.negf %57 : vector<8x128xf32>
    %59 = math.exp %58 : vector<8x128xf32>
    %cst_20 = arith.constant 1.000000e+00 : f32
    %60 = vector.broadcast %cst_20 : f32 to vector<8x128xf32>
    %61 = arith.addf %60, %59 : vector<8x128xf32>
    %62 = arith.divf %60, %61 : vector<8x128xf32>
    %63 = math.tanh %56 : vector<8x128xf32>
    %64 = arith.mulf %62, %63 : vector<8x128xf32>
    %65 = arith.cmpi eq, %c0_i32, %0 : i32
    %66 = arith.select %65, %64, %7 : vector<8x128xf32>
    %c1_i32 = arith.constant 1 : i32
    %67 = arith.index_cast %c1_i32 : i32 to index
    %c0_21 = arith.constant 0 : index
    %c0_22 = arith.constant 0 : index
    %68 = vector.load %arg2[%67, %c0_21, %c0_22] : memref<8x8x1xf32, #tpu.memory_space<vmem>>, vector<1x8x1xf32>
    %69 = vector.shape_cast %68 : vector<1x8x1xf32> to vector<8x1xf32>
    %70 = vector.broadcast %69 : vector<8x1xf32> to vector<8x512xf32>
    %71 = vector.broadcast %1 : vector<1x512xf32> to vector<8x512xf32>
    %72 = arith.mulf %70, %71 : vector<8x512xf32>
    %73 = vector.broadcast %2 : vector<1x512xf32> to vector<8x512xf32>
    %74 = arith.addf %72, %73 : vector<8x512xf32>
    %cst_23 = arith.constant dense<0.000000e+00> : vector<8x512xf32>
    %75 = tpu.matmul %39, %3, %cst_23 {dimension_numbers = #tpu.dot_dimension_numbers<[1], [0], [0], [1], [0, 0, 1, 1], [], []>} : vector<8x128xf32>, vector<128x512xf32>, vector<8x512xf32> -> vector<8x512xf32>
    %cst_24 = arith.constant dense<0.000000e+00> : vector<8x512xf32>
    %76 = tpu.matmul %64, %4, %cst_24 {dimension_numbers = #tpu.dot_dimension_numbers<[1], [0], [0], [1], [0, 0, 1, 1], [], []>} : vector<8x128xf32>, vector<128x512xf32>, vector<8x512xf32> -> vector<8x512xf32>
    %77 = arith.addf %74, %75 : vector<8x512xf32>
    %78 = vector.extract_strided_slice %77 {offsets = [0, 0], sizes = [8, 256], strides = [1, 1]} : vector<8x512xf32> to vector<8x256xf32>
    %79 = arith.negf %78 : vector<8x256xf32>
    %80 = math.exp %79 : vector<8x256xf32>
    %cst_25 = arith.constant 1.000000e+00 : f32
    %81 = vector.broadcast %cst_25 : f32 to vector<8x256xf32>
    %82 = arith.addf %81, %80 : vector<8x256xf32>
    %83 = arith.divf %81, %82 : vector<8x256xf32>
    %84 = vector.extract_strided_slice %77 {offsets = [0, 384], sizes = [8, 128], strides = [1, 1]} : vector<8x512xf32> to vector<8x128xf32>
    %85 = math.tanh %84 : vector<8x128xf32>
    %86 = vector.extract_strided_slice %83 {offsets = [0, 128], sizes = [8, 128], strides = [1, 1]} : vector<8x256xf32> to vector<8x128xf32>
    %87 = arith.mulf %86, %31 : vector<8x128xf32>
    %88 = vector.extract_strided_slice %83 {offsets = [0, 0], sizes = [8, 128], strides = [1, 1]} : vector<8x256xf32> to vector<8x128xf32>
    %89 = arith.mulf %88, %85 : vector<8x128xf32>
    %90 = arith.addf %87, %89 : vector<8x128xf32>
    %91 = vector.extract_strided_slice %77 {offsets = [0, 256], sizes = [8, 128], strides = [1, 1]} : vector<8x512xf32> to vector<8x128xf32>
    %92 = arith.negf %91 : vector<8x128xf32>
    %93 = math.exp %92 : vector<8x128xf32>
    %cst_26 = arith.constant 1.000000e+00 : f32
    %94 = vector.broadcast %cst_26 : f32 to vector<8x128xf32>
    %95 = arith.addf %94, %93 : vector<8x128xf32>
    %96 = arith.divf %94, %95 : vector<8x128xf32>
    %97 = math.tanh %90 : vector<8x128xf32>
    %98 = arith.mulf %96, %97 : vector<8x128xf32>
    %cst_27 = arith.constant dense<0.000000e+00> : vector<8x512xf32>
    %99 = tpu.matmul %98, %5, %cst_27 {dimension_numbers = #tpu.dot_dimension_numbers<[1], [0], [0], [1], [0, 0, 1, 1], [], []>} : vector<8x128xf32>, vector<128x512xf32>, vector<8x512xf32> -> vector<8x512xf32>
    %100 = arith.addf %99, %76 : vector<8x512xf32>
    %101 = vector.broadcast %6 : vector<1x512xf32> to vector<8x512xf32>
    %102 = arith.addf %100, %101 : vector<8x512xf32>
    %103 = vector.extract_strided_slice %102 {offsets = [0, 0], sizes = [8, 256], strides = [1, 1]} : vector<8x512xf32> to vector<8x256xf32>
    %104 = arith.negf %103 : vector<8x256xf32>
    %105 = math.exp %104 : vector<8x256xf32>
    %cst_28 = arith.constant 1.000000e+00 : f32
    %106 = vector.broadcast %cst_28 : f32 to vector<8x256xf32>
    %107 = arith.addf %106, %105 : vector<8x256xf32>
    %108 = arith.divf %106, %107 : vector<8x256xf32>
    %109 = vector.extract_strided_slice %102 {offsets = [0, 384], sizes = [8, 128], strides = [1, 1]} : vector<8x512xf32> to vector<8x128xf32>
    %110 = math.tanh %109 : vector<8x128xf32>
    %111 = vector.extract_strided_slice %108 {offsets = [0, 128], sizes = [8, 128], strides = [1, 1]} : vector<8x256xf32> to vector<8x128xf32>
    %112 = arith.mulf %111, %56 : vector<8x128xf32>
    %113 = vector.extract_strided_slice %108 {offsets = [0, 0], sizes = [8, 128], strides = [1, 1]} : vector<8x256xf32> to vector<8x128xf32>
    %114 = arith.mulf %113, %110 : vector<8x128xf32>
    %115 = arith.addf %112, %114 : vector<8x128xf32>
    %116 = vector.extract_strided_slice %102 {offsets = [0, 256], sizes = [8, 128], strides = [1, 1]} : vector<8x512xf32> to vector<8x128xf32>
    %117 = arith.negf %116 : vector<8x128xf32>
    %118 = math.exp %117 : vector<8x128xf32>
    %cst_29 = arith.constant 1.000000e+00 : f32
    %119 = vector.broadcast %cst_29 : f32 to vector<8x128xf32>
    %120 = arith.addf %119, %118 : vector<8x128xf32>
    %121 = arith.divf %119, %120 : vector<8x128xf32>
    %122 = math.tanh %115 : vector<8x128xf32>
    %123 = arith.mulf %121, %122 : vector<8x128xf32>
    %124 = arith.cmpi eq, %c1_i32, %0 : i32
    %125 = arith.select %124, %123, %66 : vector<8x128xf32>
    %c2_i32 = arith.constant 2 : i32
    %126 = arith.index_cast %c2_i32 : i32 to index
    %c0_30 = arith.constant 0 : index
    %c0_31 = arith.constant 0 : index
    %127 = vector.load %arg2[%126, %c0_30, %c0_31] : memref<8x8x1xf32, #tpu.memory_space<vmem>>, vector<1x8x1xf32>
    %128 = vector.shape_cast %127 : vector<1x8x1xf32> to vector<8x1xf32>
    %129 = vector.broadcast %128 : vector<8x1xf32> to vector<8x512xf32>
    %130 = vector.broadcast %1 : vector<1x512xf32> to vector<8x512xf32>
    %131 = arith.mulf %129, %130 : vector<8x512xf32>
    %132 = vector.broadcast %2 : vector<1x512xf32> to vector<8x512xf32>
    %133 = arith.addf %131, %132 : vector<8x512xf32>
    %cst_32 = arith.constant dense<0.000000e+00> : vector<8x512xf32>
    %134 = tpu.matmul %98, %3, %cst_32 {dimension_numbers = #tpu.dot_dimension_numbers<[1], [0], [0], [1], [0, 0, 1, 1], [], []>} : vector<8x128xf32>, vector<128x512xf32>, vector<8x512xf32> -> vector<8x512xf32>
    %cst_33 = arith.constant dense<0.000000e+00> : vector<8x512xf32>
    %135 = tpu.matmul %123, %4, %cst_33 {dimension_numbers = #tpu.dot_dimension_numbers<[1], [0], [0], [1], [0, 0, 1, 1], [], []>} : vector<8x128xf32>, vector<128x512xf32>, vector<8x512xf32> -> vector<8x512xf32>
    %136 = arith.addf %133, %134 : vector<8x512xf32>
    %137 = vector.extract_strided_slice %136 {offsets = [0, 0], sizes = [8, 256], strides = [1, 1]} : vector<8x512xf32> to vector<8x256xf32>
    %138 = arith.negf %137 : vector<8x256xf32>
    %139 = math.exp %138 : vector<8x256xf32>
    %cst_34 = arith.constant 1.000000e+00 : f32
    %140 = vector.broadcast %cst_34 : f32 to vector<8x256xf32>
    %141 = arith.addf %140, %139 : vector<8x256xf32>
    %142 = arith.divf %140, %141 : vector<8x256xf32>
    %143 = vector.extract_strided_slice %136 {offsets = [0, 384], sizes = [8, 128], strides = [1, 1]} : vector<8x512xf32> to vector<8x128xf32>
    %144 = math.tanh %143 : vector<8x128xf32>
    %145 = vector.extract_strided_slice %142 {offsets = [0, 128], sizes = [8, 128], strides = [1, 1]} : vector<8x256xf32> to vector<8x128xf32>
    %146 = arith.mulf %145, %90 : vector<8x128xf32>
    %147 = vector.extract_strided_slice %142 {offsets = [0, 0], sizes = [8, 128], strides = [1, 1]} : vector<8x256xf32> to vector<8x128xf32>
    %148 = arith.mulf %147, %144 : vector<8x128xf32>
    %149 = arith.addf %146, %148 : vector<8x128xf32>
    %150 = vector.extract_strided_slice %136 {offsets = [0, 256], sizes = [8, 128], strides = [1, 1]} : vector<8x512xf32> to vector<8x128xf32>
    %151 = arith.negf %150 : vector<8x128xf32>
    %152 = math.exp %151 : vector<8x128xf32>
    %cst_35 = arith.constant 1.000000e+00 : f32
    %153 = vector.broadcast %cst_35 : f32 to vector<8x128xf32>
    %154 = arith.addf %153, %152 : vector<8x128xf32>
    %155 = arith.divf %153, %154 : vector<8x128xf32>
    %156 = math.tanh %149 : vector<8x128xf32>
    %157 = arith.mulf %155, %156 : vector<8x128xf32>
    %cst_36 = arith.constant dense<0.000000e+00> : vector<8x512xf32>
    %158 = tpu.matmul %157, %5, %cst_36 {dimension_numbers = #tpu.dot_dimension_numbers<[1], [0], [0], [1], [0, 0, 1, 1], [], []>} : vector<8x128xf32>, vector<128x512xf32>, vector<8x512xf32> -> vector<8x512xf32>
    %159 = arith.addf %158, %135 : vector<8x512xf32>
    %160 = vector.broadcast %6 : vector<1x512xf32> to vector<8x512xf32>
    %161 = arith.addf %159, %160 : vector<8x512xf32>
    %162 = vector.extract_strided_slice %161 {offsets = [0, 0], sizes = [8, 256], strides = [1, 1]} : vector<8x512xf32> to vector<8x256xf32>
    %163 = arith.negf %162 : vector<8x256xf32>
    %164 = math.exp %163 : vector<8x256xf32>
    %cst_37 = arith.constant 1.000000e+00 : f32
    %165 = vector.broadcast %cst_37 : f32 to vector<8x256xf32>
    %166 = arith.addf %165, %164 : vector<8x256xf32>
    %167 = arith.divf %165, %166 : vector<8x256xf32>
    %168 = vector.extract_strided_slice %161 {offsets = [0, 384], sizes = [8, 128], strides = [1, 1]} : vector<8x512xf32> to vector<8x128xf32>
    %169 = math.tanh %168 : vector<8x128xf32>
    %170 = vector.extract_strided_slice %167 {offsets = [0, 128], sizes = [8, 128], strides = [1, 1]} : vector<8x256xf32> to vector<8x128xf32>
    %171 = arith.mulf %170, %115 : vector<8x128xf32>
    %172 = vector.extract_strided_slice %167 {offsets = [0, 0], sizes = [8, 128], strides = [1, 1]} : vector<8x256xf32> to vector<8x128xf32>
    %173 = arith.mulf %172, %169 : vector<8x128xf32>
    %174 = arith.addf %171, %173 : vector<8x128xf32>
    %175 = vector.extract_strided_slice %161 {offsets = [0, 256], sizes = [8, 128], strides = [1, 1]} : vector<8x512xf32> to vector<8x128xf32>
    %176 = arith.negf %175 : vector<8x128xf32>
    %177 = math.exp %176 : vector<8x128xf32>
    %cst_38 = arith.constant 1.000000e+00 : f32
    %178 = vector.broadcast %cst_38 : f32 to vector<8x128xf32>
    %179 = arith.addf %178, %177 : vector<8x128xf32>
    %180 = arith.divf %178, %179 : vector<8x128xf32>
    %181 = math.tanh %174 : vector<8x128xf32>
    %182 = arith.mulf %180, %181 : vector<8x128xf32>
    %183 = arith.cmpi eq, %c2_i32, %0 : i32
    %184 = arith.select %183, %182, %125 : vector<8x128xf32>
    %c3_i32 = arith.constant 3 : i32
    %185 = arith.index_cast %c3_i32 : i32 to index
    %c0_39 = arith.constant 0 : index
    %c0_40 = arith.constant 0 : index
    %186 = vector.load %arg2[%185, %c0_39, %c0_40] : memref<8x8x1xf32, #tpu.memory_space<vmem>>, vector<1x8x1xf32>
    %187 = vector.shape_cast %186 : vector<1x8x1xf32> to vector<8x1xf32>
    %188 = vector.broadcast %187 : vector<8x1xf32> to vector<8x512xf32>
    %189 = vector.broadcast %1 : vector<1x512xf32> to vector<8x512xf32>
    %190 = arith.mulf %188, %189 : vector<8x512xf32>
    %191 = vector.broadcast %2 : vector<1x512xf32> to vector<8x512xf32>
    %192 = arith.addf %190, %191 : vector<8x512xf32>
    %cst_41 = arith.constant dense<0.000000e+00> : vector<8x512xf32>
    %193 = tpu.matmul %157, %3, %cst_41 {dimension_numbers = #tpu.dot_dimension_numbers<[1], [0], [0], [1], [0, 0, 1, 1], [], []>} : vector<8x128xf32>, vector<128x512xf32>, vector<8x512xf32> -> vector<8x512xf32>
    %cst_42 = arith.constant dense<0.000000e+00> : vector<8x512xf32>
    %194 = tpu.matmul %182, %4, %cst_42 {dimension_numbers = #tpu.dot_dimension_numbers<[1], [0], [0], [1], [0, 0, 1, 1], [], []>} : vector<8x128xf32>, vector<128x512xf32>, vector<8x512xf32> -> vector<8x512xf32>
    %195 = arith.addf %192, %193 : vector<8x512xf32>
    %196 = vector.extract_strided_slice %195 {offsets = [0, 0], sizes = [8, 256], strides = [1, 1]} : vector<8x512xf32> to vector<8x256xf32>
    %197 = arith.negf %196 : vector<8x256xf32>
    %198 = math.exp %197 : vector<8x256xf32>
    %cst_43 = arith.constant 1.000000e+00 : f32
    %199 = vector.broadcast %cst_43 : f32 to vector<8x256xf32>
    %200 = arith.addf %199, %198 : vector<8x256xf32>
    %201 = arith.divf %199, %200 : vector<8x256xf32>
    %202 = vector.extract_strided_slice %195 {offsets = [0, 384], sizes = [8, 128], strides = [1, 1]} : vector<8x512xf32> to vector<8x128xf32>
    %203 = math.tanh %202 : vector<8x128xf32>
    %204 = vector.extract_strided_slice %201 {offsets = [0, 128], sizes = [8, 128], strides = [1, 1]} : vector<8x256xf32> to vector<8x128xf32>
    %205 = arith.mulf %204, %149 : vector<8x128xf32>
    %206 = vector.extract_strided_slice %201 {offsets = [0, 0], sizes = [8, 128], strides = [1, 1]} : vector<8x256xf32> to vector<8x128xf32>
    %207 = arith.mulf %206, %203 : vector<8x128xf32>
    %208 = arith.addf %205, %207 : vector<8x128xf32>
    %209 = vector.extract_strided_slice %195 {offsets = [0, 256], sizes = [8, 128], strides = [1, 1]} : vector<8x512xf32> to vector<8x128xf32>
    %210 = arith.negf %209 : vector<8x128xf32>
    %211 = math.exp %210 : vector<8x128xf32>
    %cst_44 = arith.constant 1.000000e+00 : f32
    %212 = vector.broadcast %cst_44 : f32 to vector<8x128xf32>
    %213 = arith.addf %212, %211 : vector<8x128xf32>
    %214 = arith.divf %212, %213 : vector<8x128xf32>
    %215 = math.tanh %208 : vector<8x128xf32>
    %216 = arith.mulf %214, %215 : vector<8x128xf32>
    %cst_45 = arith.constant dense<0.000000e+00> : vector<8x512xf32>
    %217 = tpu.matmul %216, %5, %cst_45 {dimension_numbers = #tpu.dot_dimension_numbers<[1], [0], [0], [1], [0, 0, 1, 1], [], []>} : vector<8x128xf32>, vector<128x512xf32>, vector<8x512xf32> -> vector<8x512xf32>
    %218 = arith.addf %217, %194 : vector<8x512xf32>
    %219 = vector.broadcast %6 : vector<1x512xf32> to vector<8x512xf32>
    %220 = arith.addf %218, %219 : vector<8x512xf32>
    %221 = vector.extract_strided_slice %220 {offsets = [0, 0], sizes = [8, 256], strides = [1, 1]} : vector<8x512xf32> to vector<8x256xf32>
    %222 = arith.negf %221 : vector<8x256xf32>
    %223 = math.exp %222 : vector<8x256xf32>
    %cst_46 = arith.constant 1.000000e+00 : f32
    %224 = vector.broadcast %cst_46 : f32 to vector<8x256xf32>
    %225 = arith.addf %224, %223 : vector<8x256xf32>
    %226 = arith.divf %224, %225 : vector<8x256xf32>
    %227 = vector.extract_strided_slice %220 {offsets = [0, 384], sizes = [8, 128], strides = [1, 1]} : vector<8x512xf32> to vector<8x128xf32>
    %228 = math.tanh %227 : vector<8x128xf32>
    %229 = vector.extract_strided_slice %226 {offsets = [0, 128], sizes = [8, 128], strides = [1, 1]} : vector<8x256xf32> to vector<8x128xf32>
    %230 = arith.mulf %229, %174 : vector<8x128xf32>
    %231 = vector.extract_strided_slice %226 {offsets = [0, 0], sizes = [8, 128], strides = [1, 1]} : vector<8x256xf32> to vector<8x128xf32>
    %232 = arith.mulf %231, %228 : vector<8x128xf32>
    %233 = arith.addf %230, %232 : vector<8x128xf32>
    %234 = vector.extract_strided_slice %220 {offsets = [0, 256], sizes = [8, 128], strides = [1, 1]} : vector<8x512xf32> to vector<8x128xf32>
    %235 = arith.negf %234 : vector<8x128xf32>
    %236 = math.exp %235 : vector<8x128xf32>
    %cst_47 = arith.constant 1.000000e+00 : f32
    %237 = vector.broadcast %cst_47 : f32 to vector<8x128xf32>
    %238 = arith.addf %237, %236 : vector<8x128xf32>
    %239 = arith.divf %237, %238 : vector<8x128xf32>
    %240 = math.tanh %233 : vector<8x128xf32>
    %241 = arith.mulf %239, %240 : vector<8x128xf32>
    %242 = arith.cmpi eq, %c3_i32, %0 : i32
    %243 = arith.select %242, %241, %184 : vector<8x128xf32>
    %c4_i32 = arith.constant 4 : i32
    %244 = arith.index_cast %c4_i32 : i32 to index
    %c0_48 = arith.constant 0 : index
    %c0_49 = arith.constant 0 : index
    %245 = vector.load %arg2[%244, %c0_48, %c0_49] : memref<8x8x1xf32, #tpu.memory_space<vmem>>, vector<1x8x1xf32>
    %246 = vector.shape_cast %245 : vector<1x8x1xf32> to vector<8x1xf32>
    %247 = vector.broadcast %246 : vector<8x1xf32> to vector<8x512xf32>
    %248 = vector.broadcast %1 : vector<1x512xf32> to vector<8x512xf32>
    %249 = arith.mulf %247, %248 : vector<8x512xf32>
    %250 = vector.broadcast %2 : vector<1x512xf32> to vector<8x512xf32>
    %251 = arith.addf %249, %250 : vector<8x512xf32>
    %cst_50 = arith.constant dense<0.000000e+00> : vector<8x512xf32>
    %252 = tpu.matmul %216, %3, %cst_50 {dimension_numbers = #tpu.dot_dimension_numbers<[1], [0], [0], [1], [0, 0, 1, 1], [], []>} : vector<8x128xf32>, vector<128x512xf32>, vector<8x512xf32> -> vector<8x512xf32>
    %cst_51 = arith.constant dense<0.000000e+00> : vector<8x512xf32>
    %253 = tpu.matmul %241, %4, %cst_51 {dimension_numbers = #tpu.dot_dimension_numbers<[1], [0], [0], [1], [0, 0, 1, 1], [], []>} : vector<8x128xf32>, vector<128x512xf32>, vector<8x512xf32> -> vector<8x512xf32>
    %254 = arith.addf %251, %252 : vector<8x512xf32>
    %255 = vector.extract_strided_slice %254 {offsets = [0, 0], sizes = [8, 256], strides = [1, 1]} : vector<8x512xf32> to vector<8x256xf32>
    %256 = arith.negf %255 : vector<8x256xf32>
    %257 = math.exp %256 : vector<8x256xf32>
    %cst_52 = arith.constant 1.000000e+00 : f32
    %258 = vector.broadcast %cst_52 : f32 to vector<8x256xf32>
    %259 = arith.addf %258, %257 : vector<8x256xf32>
    %260 = arith.divf %258, %259 : vector<8x256xf32>
    %261 = vector.extract_strided_slice %254 {offsets = [0, 384], sizes = [8, 128], strides = [1, 1]} : vector<8x512xf32> to vector<8x128xf32>
    %262 = math.tanh %261 : vector<8x128xf32>
    %263 = vector.extract_strided_slice %260 {offsets = [0, 128], sizes = [8, 128], strides = [1, 1]} : vector<8x256xf32> to vector<8x128xf32>
    %264 = arith.mulf %263, %208 : vector<8x128xf32>
    %265 = vector.extract_strided_slice %260 {offsets = [0, 0], sizes = [8, 128], strides = [1, 1]} : vector<8x256xf32> to vector<8x128xf32>
    %266 = arith.mulf %265, %262 : vector<8x128xf32>
    %267 = arith.addf %264, %266 : vector<8x128xf32>
    %268 = vector.extract_strided_slice %254 {offsets = [0, 256], sizes = [8, 128], strides = [1, 1]} : vector<8x512xf32> to vector<8x128xf32>
    %269 = arith.negf %268 : vector<8x128xf32>
    %270 = math.exp %269 : vector<8x128xf32>
    %cst_53 = arith.constant 1.000000e+00 : f32
    %271 = vector.broadcast %cst_53 : f32 to vector<8x128xf32>
    %272 = arith.addf %271, %270 : vector<8x128xf32>
    %273 = arith.divf %271, %272 : vector<8x128xf32>
    %274 = math.tanh %267 : vector<8x128xf32>
    %275 = arith.mulf %273, %274 : vector<8x128xf32>
    %cst_54 = arith.constant dense<0.000000e+00> : vector<8x512xf32>
    %276 = tpu.matmul %275, %5, %cst_54 {dimension_numbers = #tpu.dot_dimension_numbers<[1], [0], [0], [1], [0, 0, 1, 1], [], []>} : vector<8x128xf32>, vector<128x512xf32>, vector<8x512xf32> -> vector<8x512xf32>
    %277 = arith.addf %276, %253 : vector<8x512xf32>
    %278 = vector.broadcast %6 : vector<1x512xf32> to vector<8x512xf32>
    %279 = arith.addf %277, %278 : vector<8x512xf32>
    %280 = vector.extract_strided_slice %279 {offsets = [0, 0], sizes = [8, 256], strides = [1, 1]} : vector<8x512xf32> to vector<8x256xf32>
    %281 = arith.negf %280 : vector<8x256xf32>
    %282 = math.exp %281 : vector<8x256xf32>
    %cst_55 = arith.constant 1.000000e+00 : f32
    %283 = vector.broadcast %cst_55 : f32 to vector<8x256xf32>
    %284 = arith.addf %283, %282 : vector<8x256xf32>
    %285 = arith.divf %283, %284 : vector<8x256xf32>
    %286 = vector.extract_strided_slice %279 {offsets = [0, 384], sizes = [8, 128], strides = [1, 1]} : vector<8x512xf32> to vector<8x128xf32>
    %287 = math.tanh %286 : vector<8x128xf32>
    %288 = vector.extract_strided_slice %285 {offsets = [0, 128], sizes = [8, 128], strides = [1, 1]} : vector<8x256xf32> to vector<8x128xf32>
    %289 = arith.mulf %288, %233 : vector<8x128xf32>
    %290 = vector.extract_strided_slice %285 {offsets = [0, 0], sizes = [8, 128], strides = [1, 1]} : vector<8x256xf32> to vector<8x128xf32>
    %291 = arith.mulf %290, %287 : vector<8x128xf32>
    %292 = arith.addf %289, %291 : vector<8x128xf32>
    %293 = vector.extract_strided_slice %279 {offsets = [0, 256], sizes = [8, 128], strides = [1, 1]} : vector<8x512xf32> to vector<8x128xf32>
    %294 = arith.negf %293 : vector<8x128xf32>
    %295 = math.exp %294 : vector<8x128xf32>
    %cst_56 = arith.constant 1.000000e+00 : f32
    %296 = vector.broadcast %cst_56 : f32 to vector<8x128xf32>
    %297 = arith.addf %296, %295 : vector<8x128xf32>
    %298 = arith.divf %296, %297 : vector<8x128xf32>
    %299 = math.tanh %292 : vector<8x128xf32>
    %300 = arith.mulf %298, %299 : vector<8x128xf32>
    %301 = arith.cmpi eq, %c4_i32, %0 : i32
    %302 = arith.select %301, %300, %243 : vector<8x128xf32>
    %c5_i32 = arith.constant 5 : i32
    %303 = arith.index_cast %c5_i32 : i32 to index
    %c0_57 = arith.constant 0 : index
    %c0_58 = arith.constant 0 : index
    %304 = vector.load %arg2[%303, %c0_57, %c0_58] : memref<8x8x1xf32, #tpu.memory_space<vmem>>, vector<1x8x1xf32>
    %305 = vector.shape_cast %304 : vector<1x8x1xf32> to vector<8x1xf32>
    %306 = vector.broadcast %305 : vector<8x1xf32> to vector<8x512xf32>
    %307 = vector.broadcast %1 : vector<1x512xf32> to vector<8x512xf32>
    %308 = arith.mulf %306, %307 : vector<8x512xf32>
    %309 = vector.broadcast %2 : vector<1x512xf32> to vector<8x512xf32>
    %310 = arith.addf %308, %309 : vector<8x512xf32>
    %cst_59 = arith.constant dense<0.000000e+00> : vector<8x512xf32>
    %311 = tpu.matmul %275, %3, %cst_59 {dimension_numbers = #tpu.dot_dimension_numbers<[1], [0], [0], [1], [0, 0, 1, 1], [], []>} : vector<8x128xf32>, vector<128x512xf32>, vector<8x512xf32> -> vector<8x512xf32>
    %cst_60 = arith.constant dense<0.000000e+00> : vector<8x512xf32>
    %312 = tpu.matmul %300, %4, %cst_60 {dimension_numbers = #tpu.dot_dimension_numbers<[1], [0], [0], [1], [0, 0, 1, 1], [], []>} : vector<8x128xf32>, vector<128x512xf32>, vector<8x512xf32> -> vector<8x512xf32>
    %313 = arith.addf %310, %311 : vector<8x512xf32>
    %314 = vector.extract_strided_slice %313 {offsets = [0, 0], sizes = [8, 256], strides = [1, 1]} : vector<8x512xf32> to vector<8x256xf32>
    %315 = arith.negf %314 : vector<8x256xf32>
    %316 = math.exp %315 : vector<8x256xf32>
    %cst_61 = arith.constant 1.000000e+00 : f32
    %317 = vector.broadcast %cst_61 : f32 to vector<8x256xf32>
    %318 = arith.addf %317, %316 : vector<8x256xf32>
    %319 = arith.divf %317, %318 : vector<8x256xf32>
    %320 = vector.extract_strided_slice %313 {offsets = [0, 384], sizes = [8, 128], strides = [1, 1]} : vector<8x512xf32> to vector<8x128xf32>
    %321 = math.tanh %320 : vector<8x128xf32>
    %322 = vector.extract_strided_slice %319 {offsets = [0, 128], sizes = [8, 128], strides = [1, 1]} : vector<8x256xf32> to vector<8x128xf32>
    %323 = arith.mulf %322, %267 : vector<8x128xf32>
    %324 = vector.extract_strided_slice %319 {offsets = [0, 0], sizes = [8, 128], strides = [1, 1]} : vector<8x256xf32> to vector<8x128xf32>
    %325 = arith.mulf %324, %321 : vector<8x128xf32>
    %326 = arith.addf %323, %325 : vector<8x128xf32>
    %327 = vector.extract_strided_slice %313 {offsets = [0, 256], sizes = [8, 128], strides = [1, 1]} : vector<8x512xf32> to vector<8x128xf32>
    %328 = arith.negf %327 : vector<8x128xf32>
    %329 = math.exp %328 : vector<8x128xf32>
    %cst_62 = arith.constant 1.000000e+00 : f32
    %330 = vector.broadcast %cst_62 : f32 to vector<8x128xf32>
    %331 = arith.addf %330, %329 : vector<8x128xf32>
    %332 = arith.divf %330, %331 : vector<8x128xf32>
    %333 = math.tanh %326 : vector<8x128xf32>
    %334 = arith.mulf %332, %333 : vector<8x128xf32>
    %cst_63 = arith.constant dense<0.000000e+00> : vector<8x512xf32>
    %335 = tpu.matmul %334, %5, %cst_63 {dimension_numbers = #tpu.dot_dimension_numbers<[1], [0], [0], [1], [0, 0, 1, 1], [], []>} : vector<8x128xf32>, vector<128x512xf32>, vector<8x512xf32> -> vector<8x512xf32>
    %336 = arith.addf %335, %312 : vector<8x512xf32>
    %337 = vector.broadcast %6 : vector<1x512xf32> to vector<8x512xf32>
    %338 = arith.addf %336, %337 : vector<8x512xf32>
    %339 = vector.extract_strided_slice %338 {offsets = [0, 0], sizes = [8, 256], strides = [1, 1]} : vector<8x512xf32> to vector<8x256xf32>
    %340 = arith.negf %339 : vector<8x256xf32>
    %341 = math.exp %340 : vector<8x256xf32>
    %cst_64 = arith.constant 1.000000e+00 : f32
    %342 = vector.broadcast %cst_64 : f32 to vector<8x256xf32>
    %343 = arith.addf %342, %341 : vector<8x256xf32>
    %344 = arith.divf %342, %343 : vector<8x256xf32>
    %345 = vector.extract_strided_slice %338 {offsets = [0, 384], sizes = [8, 128], strides = [1, 1]} : vector<8x512xf32> to vector<8x128xf32>
    %346 = math.tanh %345 : vector<8x128xf32>
    %347 = vector.extract_strided_slice %344 {offsets = [0, 128], sizes = [8, 128], strides = [1, 1]} : vector<8x256xf32> to vector<8x128xf32>
    %348 = arith.mulf %347, %292 : vector<8x128xf32>
    %349 = vector.extract_strided_slice %344 {offsets = [0, 0], sizes = [8, 128], strides = [1, 1]} : vector<8x256xf32> to vector<8x128xf32>
    %350 = arith.mulf %349, %346 : vector<8x128xf32>
    %351 = arith.addf %348, %350 : vector<8x128xf32>
    %352 = vector.extract_strided_slice %338 {offsets = [0, 256], sizes = [8, 128], strides = [1, 1]} : vector<8x512xf32> to vector<8x128xf32>
    %353 = arith.negf %352 : vector<8x128xf32>
    %354 = math.exp %353 : vector<8x128xf32>
    %cst_65 = arith.constant 1.000000e+00 : f32
    %355 = vector.broadcast %cst_65 : f32 to vector<8x128xf32>
    %356 = arith.addf %355, %354 : vector<8x128xf32>
    %357 = arith.divf %355, %356 : vector<8x128xf32>
    %358 = math.tanh %351 : vector<8x128xf32>
    %359 = arith.mulf %357, %358 : vector<8x128xf32>
    %360 = arith.cmpi eq, %c5_i32, %0 : i32
    %361 = arith.select %360, %359, %302 : vector<8x128xf32>
    %c6_i32 = arith.constant 6 : i32
    %362 = arith.index_cast %c6_i32 : i32 to index
    %c0_66 = arith.constant 0 : index
    %c0_67 = arith.constant 0 : index
    %363 = vector.load %arg2[%362, %c0_66, %c0_67] : memref<8x8x1xf32, #tpu.memory_space<vmem>>, vector<1x8x1xf32>
    %364 = vector.shape_cast %363 : vector<1x8x1xf32> to vector<8x1xf32>
    %365 = vector.broadcast %364 : vector<8x1xf32> to vector<8x512xf32>
    %366 = vector.broadcast %1 : vector<1x512xf32> to vector<8x512xf32>
    %367 = arith.mulf %365, %366 : vector<8x512xf32>
    %368 = vector.broadcast %2 : vector<1x512xf32> to vector<8x512xf32>
    %369 = arith.addf %367, %368 : vector<8x512xf32>
    %cst_68 = arith.constant dense<0.000000e+00> : vector<8x512xf32>
    %370 = tpu.matmul %334, %3, %cst_68 {dimension_numbers = #tpu.dot_dimension_numbers<[1], [0], [0], [1], [0, 0, 1, 1], [], []>} : vector<8x128xf32>, vector<128x512xf32>, vector<8x512xf32> -> vector<8x512xf32>
    %cst_69 = arith.constant dense<0.000000e+00> : vector<8x512xf32>
    %371 = tpu.matmul %359, %4, %cst_69 {dimension_numbers = #tpu.dot_dimension_numbers<[1], [0], [0], [1], [0, 0, 1, 1], [], []>} : vector<8x128xf32>, vector<128x512xf32>, vector<8x512xf32> -> vector<8x512xf32>
    %372 = arith.addf %369, %370 : vector<8x512xf32>
    %373 = vector.extract_strided_slice %372 {offsets = [0, 0], sizes = [8, 256], strides = [1, 1]} : vector<8x512xf32> to vector<8x256xf32>
    %374 = arith.negf %373 : vector<8x256xf32>
    %375 = math.exp %374 : vector<8x256xf32>
    %cst_70 = arith.constant 1.000000e+00 : f32
    %376 = vector.broadcast %cst_70 : f32 to vector<8x256xf32>
    %377 = arith.addf %376, %375 : vector<8x256xf32>
    %378 = arith.divf %376, %377 : vector<8x256xf32>
    %379 = vector.extract_strided_slice %372 {offsets = [0, 384], sizes = [8, 128], strides = [1, 1]} : vector<8x512xf32> to vector<8x128xf32>
    %380 = math.tanh %379 : vector<8x128xf32>
    %381 = vector.extract_strided_slice %378 {offsets = [0, 128], sizes = [8, 128], strides = [1, 1]} : vector<8x256xf32> to vector<8x128xf32>
    %382 = arith.mulf %381, %326 : vector<8x128xf32>
    %383 = vector.extract_strided_slice %378 {offsets = [0, 0], sizes = [8, 128], strides = [1, 1]} : vector<8x256xf32> to vector<8x128xf32>
    %384 = arith.mulf %383, %380 : vector<8x128xf32>
    %385 = arith.addf %382, %384 : vector<8x128xf32>
    %386 = vector.extract_strided_slice %372 {offsets = [0, 256], sizes = [8, 128], strides = [1, 1]} : vector<8x512xf32> to vector<8x128xf32>
    %387 = arith.negf %386 : vector<8x128xf32>
    %388 = math.exp %387 : vector<8x128xf32>
    %cst_71 = arith.constant 1.000000e+00 : f32
    %389 = vector.broadcast %cst_71 : f32 to vector<8x128xf32>
    %390 = arith.addf %389, %388 : vector<8x128xf32>
    %391 = arith.divf %389, %390 : vector<8x128xf32>
    %392 = math.tanh %385 : vector<8x128xf32>
    %393 = arith.mulf %391, %392 : vector<8x128xf32>
    %cst_72 = arith.constant dense<0.000000e+00> : vector<8x512xf32>
    %394 = tpu.matmul %393, %5, %cst_72 {dimension_numbers = #tpu.dot_dimension_numbers<[1], [0], [0], [1], [0, 0, 1, 1], [], []>} : vector<8x128xf32>, vector<128x512xf32>, vector<8x512xf32> -> vector<8x512xf32>
    %395 = arith.addf %394, %371 : vector<8x512xf32>
    %396 = vector.broadcast %6 : vector<1x512xf32> to vector<8x512xf32>
    %397 = arith.addf %395, %396 : vector<8x512xf32>
    %398 = vector.extract_strided_slice %397 {offsets = [0, 0], sizes = [8, 256], strides = [1, 1]} : vector<8x512xf32> to vector<8x256xf32>
    %399 = arith.negf %398 : vector<8x256xf32>
    %400 = math.exp %399 : vector<8x256xf32>
    %cst_73 = arith.constant 1.000000e+00 : f32
    %401 = vector.broadcast %cst_73 : f32 to vector<8x256xf32>
    %402 = arith.addf %401, %400 : vector<8x256xf32>
    %403 = arith.divf %401, %402 : vector<8x256xf32>
    %404 = vector.extract_strided_slice %397 {offsets = [0, 384], sizes = [8, 128], strides = [1, 1]} : vector<8x512xf32> to vector<8x128xf32>
    %405 = math.tanh %404 : vector<8x128xf32>
    %406 = vector.extract_strided_slice %403 {offsets = [0, 128], sizes = [8, 128], strides = [1, 1]} : vector<8x256xf32> to vector<8x128xf32>
    %407 = arith.mulf %406, %351 : vector<8x128xf32>
    %408 = vector.extract_strided_slice %403 {offsets = [0, 0], sizes = [8, 128], strides = [1, 1]} : vector<8x256xf32> to vector<8x128xf32>
    %409 = arith.mulf %408, %405 : vector<8x128xf32>
    %410 = arith.addf %407, %409 : vector<8x128xf32>
    %411 = vector.extract_strided_slice %397 {offsets = [0, 256], sizes = [8, 128], strides = [1, 1]} : vector<8x512xf32> to vector<8x128xf32>
    %412 = arith.negf %411 : vector<8x128xf32>
    %413 = math.exp %412 : vector<8x128xf32>
    %cst_74 = arith.constant 1.000000e+00 : f32
    %414 = vector.broadcast %cst_74 : f32 to vector<8x128xf32>
    %415 = arith.addf %414, %413 : vector<8x128xf32>
    %416 = arith.divf %414, %415 : vector<8x128xf32>
    %417 = math.tanh %410 : vector<8x128xf32>
    %418 = arith.mulf %416, %417 : vector<8x128xf32>
    %419 = arith.cmpi eq, %c6_i32, %0 : i32
    %420 = arith.select %419, %418, %361 : vector<8x128xf32>
    %c7_i32 = arith.constant 7 : i32
    %421 = arith.index_cast %c7_i32 : i32 to index
    %c0_75 = arith.constant 0 : index
    %c0_76 = arith.constant 0 : index
    %422 = vector.load %arg2[%421, %c0_75, %c0_76] : memref<8x8x1xf32, #tpu.memory_space<vmem>>, vector<1x8x1xf32>
    %423 = vector.shape_cast %422 : vector<1x8x1xf32> to vector<8x1xf32>
    %424 = vector.broadcast %423 : vector<8x1xf32> to vector<8x512xf32>
    %425 = vector.broadcast %1 : vector<1x512xf32> to vector<8x512xf32>
    %426 = arith.mulf %424, %425 : vector<8x512xf32>
    %427 = vector.broadcast %2 : vector<1x512xf32> to vector<8x512xf32>
    %428 = arith.addf %426, %427 : vector<8x512xf32>
    %cst_77 = arith.constant dense<0.000000e+00> : vector<8x512xf32>
    %429 = tpu.matmul %393, %3, %cst_77 {dimension_numbers = #tpu.dot_dimension_numbers<[1], [0], [0], [1], [0, 0, 1, 1], [], []>} : vector<8x128xf32>, vector<128x512xf32>, vector<8x512xf32> -> vector<8x512xf32>
    %cst_78 = arith.constant dense<0.000000e+00> : vector<8x512xf32>
    %430 = tpu.matmul %418, %4, %cst_78 {dimension_numbers = #tpu.dot_dimension_numbers<[1], [0], [0], [1], [0, 0, 1, 1], [], []>} : vector<8x128xf32>, vector<128x512xf32>, vector<8x512xf32> -> vector<8x512xf32>
    %431 = arith.addf %428, %429 : vector<8x512xf32>
    %432 = vector.extract_strided_slice %431 {offsets = [0, 0], sizes = [8, 256], strides = [1, 1]} : vector<8x512xf32> to vector<8x256xf32>
    %433 = arith.negf %432 : vector<8x256xf32>
    %434 = math.exp %433 : vector<8x256xf32>
    %cst_79 = arith.constant 1.000000e+00 : f32
    %435 = vector.broadcast %cst_79 : f32 to vector<8x256xf32>
    %436 = arith.addf %435, %434 : vector<8x256xf32>
    %437 = arith.divf %435, %436 : vector<8x256xf32>
    %438 = vector.extract_strided_slice %431 {offsets = [0, 384], sizes = [8, 128], strides = [1, 1]} : vector<8x512xf32> to vector<8x128xf32>
    %439 = math.tanh %438 : vector<8x128xf32>
    %440 = vector.extract_strided_slice %437 {offsets = [0, 128], sizes = [8, 128], strides = [1, 1]} : vector<8x256xf32> to vector<8x128xf32>
    %441 = arith.mulf %440, %385 : vector<8x128xf32>
    %442 = vector.extract_strided_slice %437 {offsets = [0, 0], sizes = [8, 128], strides = [1, 1]} : vector<8x256xf32> to vector<8x128xf32>
    %443 = arith.mulf %442, %439 : vector<8x128xf32>
    %444 = arith.addf %441, %443 : vector<8x128xf32>
    %445 = vector.extract_strided_slice %431 {offsets = [0, 256], sizes = [8, 128], strides = [1, 1]} : vector<8x512xf32> to vector<8x128xf32>
    %446 = arith.negf %445 : vector<8x128xf32>
    %447 = math.exp %446 : vector<8x128xf32>
    %cst_80 = arith.constant 1.000000e+00 : f32
    %448 = vector.broadcast %cst_80 : f32 to vector<8x128xf32>
    %449 = arith.addf %448, %447 : vector<8x128xf32>
    %450 = arith.divf %448, %449 : vector<8x128xf32>
    %451 = math.tanh %444 : vector<8x128xf32>
    %452 = arith.mulf %450, %451 : vector<8x128xf32>
    %cst_81 = arith.constant dense<0.000000e+00> : vector<8x512xf32>
    %453 = tpu.matmul %452, %5, %cst_81 {dimension_numbers = #tpu.dot_dimension_numbers<[1], [0], [0], [1], [0, 0, 1, 1], [], []>} : vector<8x128xf32>, vector<128x512xf32>, vector<8x512xf32> -> vector<8x512xf32>
    %454 = arith.addf %453, %430 : vector<8x512xf32>
    %455 = vector.broadcast %6 : vector<1x512xf32> to vector<8x512xf32>
    %456 = arith.addf %454, %455 : vector<8x512xf32>
    %457 = vector.extract_strided_slice %456 {offsets = [0, 0], sizes = [8, 256], strides = [1, 1]} : vector<8x512xf32> to vector<8x256xf32>
    %458 = arith.negf %457 : vector<8x256xf32>
    %459 = math.exp %458 : vector<8x256xf32>
    %cst_82 = arith.constant 1.000000e+00 : f32
    %460 = vector.broadcast %cst_82 : f32 to vector<8x256xf32>
    %461 = arith.addf %460, %459 : vector<8x256xf32>
    %462 = arith.divf %460, %461 : vector<8x256xf32>
    %463 = vector.extract_strided_slice %456 {offsets = [0, 384], sizes = [8, 128], strides = [1, 1]} : vector<8x512xf32> to vector<8x128xf32>
    %464 = math.tanh %463 : vector<8x128xf32>
    %465 = vector.extract_strided_slice %462 {offsets = [0, 128], sizes = [8, 128], strides = [1, 1]} : vector<8x256xf32> to vector<8x128xf32>
    %466 = arith.mulf %465, %410 : vector<8x128xf32>
    %467 = vector.extract_strided_slice %462 {offsets = [0, 0], sizes = [8, 128], strides = [1, 1]} : vector<8x256xf32> to vector<8x128xf32>
    %468 = arith.mulf %467, %464 : vector<8x128xf32>
    %469 = arith.addf %466, %468 : vector<8x128xf32>
    %470 = vector.extract_strided_slice %456 {offsets = [0, 256], sizes = [8, 128], strides = [1, 1]} : vector<8x512xf32> to vector<8x128xf32>
    %471 = arith.negf %470 : vector<8x128xf32>
    %472 = math.exp %471 : vector<8x128xf32>
    %cst_83 = arith.constant 1.000000e+00 : f32
    %473 = vector.broadcast %cst_83 : f32 to vector<8x128xf32>
    %474 = arith.addf %473, %472 : vector<8x128xf32>
    %475 = arith.divf %473, %474 : vector<8x128xf32>
    %476 = math.tanh %469 : vector<8x128xf32>
    %477 = arith.mulf %475, %476 : vector<8x128xf32>
    %478 = arith.cmpi eq, %c7_i32, %0 : i32
    %479 = arith.select %478, %477, %420 : vector<8x128xf32>
    %c8_i32 = arith.constant 8 : i32
    %c0_84 = arith.constant 0 : index
    %c0_85 = arith.constant 0 : index
    %480 = vector.load %arg3[%c0_84, %c0_85] : memref<8x1xf32, #tpu.memory_space<vmem>>, vector<8x1xf32>
    %481 = vector.broadcast %480 : vector<8x1xf32> to vector<8x128xf32>
    %482 = arith.mulf %479, %481 : vector<8x128xf32>
    %c0_86 = arith.constant 0 : index
    %c0_87 = arith.constant 0 : index
    %483 = vector.load %arg10[%c0_86, %c0_87] : memref<128x128xf32, #tpu.memory_space<vmem>>, vector<128x128xf32>
    %cst_88 = arith.constant dense<0.000000e+00> : vector<8x128xf32>
    %484 = tpu.matmul %482, %483, %cst_88 {dimension_numbers = #tpu.dot_dimension_numbers<[1], [0], [0], [1], [0, 0, 1, 1], [], []>} : vector<8x128xf32>, vector<128x128xf32>, vector<8x128xf32> -> vector<8x128xf32>
    %c0_89 = arith.constant 0 : index
    %c0_90 = arith.constant 0 : index
    %485 = vector.load %arg11[%c0_89, %c0_90] : memref<1x128xf32, #tpu.memory_space<vmem>>, vector<1x128xf32>
    %486 = vector.broadcast %485 : vector<1x128xf32> to vector<8x128xf32>
    %487 = arith.addf %484, %486 : vector<8x128xf32>
    %c0_91 = arith.constant 0 : index
    %c0_92 = arith.constant 0 : index
    %488 = vector.load %arg12[%c0_91, %c0_92] : memref<8x128xf32, #tpu.memory_space<vmem>>, vector<8x128xf32>
    tpu.vector_store %arg12[%c0_91, %c0_92], %487 {strides = array<i32>} : memref<8x128xf32, #tpu.memory_space<vmem>>, vector<8x128xf32>,
    return
  }
  func.func @transform_0(%arg0: i32, %arg1: memref<1xi32, #tpu.memory_space<smem>>) -> (i32, i32, i32) {
    %c0_i32 = arith.constant 0 : i32
    %c0_i32_0 = arith.constant 0 : i32
    %c0_i32_1 = arith.constant 0 : i32
    return %c0_i32, %arg0, %c0_i32_0 : i32, i32, i32
  }
  func.func @transform_1(%arg0: i32, %arg1: memref<1xi32, #tpu.memory_space<smem>>) -> (i32, i32) {
    %c0_i32 = arith.constant 0 : i32
    %c0_i32_0 = arith.constant 0 : i32
    return %arg0, %c0_i32 : i32, i32
  }
  func.func @transform_2(%arg0: i32, %arg1: memref<1xi32, #tpu.memory_space<smem>>) -> (i32, i32) {
    %c0_i32 = arith.constant 0 : i32
    %c0_i32_0 = arith.constant 0 : i32
    %c0_i32_1 = arith.constant 0 : i32
    return %c0_i32, %c0_i32_0 : i32, i32
  }
  func.func @transform_3(%arg0: i32, %arg1: memref<1xi32, #tpu.memory_space<smem>>) -> (i32, i32) {
    %c0_i32 = arith.constant 0 : i32
    %c0_i32_0 = arith.constant 0 : i32
    %c0_i32_1 = arith.constant 0 : i32
    return %c0_i32, %c0_i32_0 : i32, i32
  }
  func.func @transform_4(%arg0: i32, %arg1: memref<1xi32, #tpu.memory_space<smem>>) -> (i32, i32) {
    %c0_i32 = arith.constant 0 : i32
    %c0_i32_0 = arith.constant 0 : i32
    %c0_i32_1 = arith.constant 0 : i32
    return %c0_i32, %c0_i32_0 : i32, i32
  }
  func.func @transform_5(%arg0: i32, %arg1: memref<1xi32, #tpu.memory_space<smem>>) -> (i32, i32) {
    %c0_i32 = arith.constant 0 : i32
    %c0_i32_0 = arith.constant 0 : i32
    %c0_i32_1 = arith.constant 0 : i32
    return %c0_i32, %c0_i32_0 : i32, i32
  }
  func.func @transform_6(%arg0: i32, %arg1: memref<1xi32, #tpu.memory_space<smem>>) -> (i32, i32) {
    %c0_i32 = arith.constant 0 : i32
    %c0_i32_0 = arith.constant 0 : i32
    %c0_i32_1 = arith.constant 0 : i32
    return %c0_i32, %c0_i32_0 : i32, i32
  }
  func.func @transform_7(%arg0: i32, %arg1: memref<1xi32, #tpu.memory_space<smem>>) -> (i32, i32) {
    %c0_i32 = arith.constant 0 : i32
    %c0_i32_0 = arith.constant 0 : i32
    %c0_i32_1 = arith.constant 0 : i32
    return %c0_i32, %c0_i32_0 : i32, i32
  }
  func.func @transform_8(%arg0: i32, %arg1: memref<1xi32, #tpu.memory_space<smem>>) -> (i32, i32) {
    %c0_i32 = arith.constant 0 : i32
    %c0_i32_0 = arith.constant 0 : i32
    %c0_i32_1 = arith.constant 0 : i32
    return %c0_i32, %c0_i32_0 : i32, i32
  }
  func.func @transform_9(%arg0: i32, %arg1: memref<1xi32, #tpu.memory_space<smem>>) -> (i32, i32) {
    %c0_i32 = arith.constant 0 : i32
    %c0_i32_0 = arith.constant 0 : i32
    %c0_i32_1 = arith.constant 0 : i32
    return %c0_i32, %c0_i32_0 : i32, i32
  }
  func.func @transform_10(%arg0: i32, %arg1: memref<1xi32, #tpu.memory_space<smem>>) -> (i32, i32) {
    %c0_i32 = arith.constant 0 : i32
    %c0_i32_0 = arith.constant 0 : i32
    return %arg0, %c0_i32 : i32, i32
  }
}

</mosaic_0001>

<bundles_post_ra>
// kernel: _forward_jit.1
= control target key start
LH: loop header
LB: loop body
LE: loop exit
PB: predicated region body
PF: predicated region fallthrough
CT: control target
= control target key end

     0   :  { %17 = vsyncpa [#allocation5], 0  ;;  %s8484_s0 = inlined_call_operand.<no memory space> [shape: s32[1], index: 0, kind: input, shape index: {}]   ;;  %s8485_s1 = inlined_call_operand.vmem [shape: f32[8,8,1], index: 1, kind: input, shape index: {}]   ;;  %s8486_s2 = inlined_call_operand.vmem [shape: f32[8,1], index: 2, kind: input, shape index: {}]   ;;  %s8487_s3 = inlined_call_operand.vmem [shape: f32[1,512], index: 3, kind: input, shape index: {}]   ;;  %s8488_s4 = inlined_call_operand.vmem [shape: f32[1,512], index: 4, kind: input, shape index: {}]   ;;  %s8489_s5 = inlined_call_operand.hbm [shape: f32[128,512], index: 5, kind: input, shape index: {}]   ;;  %s8490_s6 = inlined_call_operand.hbm [shape: f32[128,512], index: 6, kind: input, shape index: {}]   ;;  %s8491_s7 = inlined_call_operand.hbm [shape: f32[128,512], index: 7, kind: input, shape index: {}]   ;;  %s8492_s8 = inlined_call_operand.vmem [shape: f32[1,512], index: 8, kind: input, shape index: {}]   ;;  %s8493_s9 = inlined_call_operand.vmem [shape: f32[128,128], index: 9, kind: input, shape index: {}]   ;;  %s8494_s10 = inlined_call_operand.vmem [shape: f32[1,128], index: 10, kind: input, shape index: {}]   ;;  %s8495_s11 = inlined_call_operand.hbm [shape: f32[8,128], index: 11, kind: output, shape index: {}]  }
   0x1   :  { %18 = vsyncpa [#allocation8], 0 }
   0x2   :  { %19 = vsyncpa [#allocation6], 0  ;;  %s45_s19 = sshll.u32 %s8490_s6, 4  ;;  %s4526_s20 = smov [#allocation7]   ;;  %s46_s19 = int_to_ptr.hbm [resolvable:$true] %s45_s19 }
   0x3   :  { %s47_s21 = sshll.u32 %s4526_s20, 4  ;;  %s32_s24 = sshll.u32 %s8489_s5, 4  ;;  %s48_s21 = int_to_ptr.vmem [resolvable:$true] %s47_s21  ;;  %s33_s24 = int_to_ptr.hbm [resolvable:$true] %s32_s24 }
   0x4   :  { %s4527_s25 = smov 512   ;;  %s4528_s26 = smov 32  }
   0x5   :  { %53 = dma.hbm_to_vmem [thread:$0]  %s46_s19, 8192, %s48_s21, [#allocation8], %s4527_s25, %s4527_s25, %s4528_s26  }
   0x6   :  { %s4529_s27 = smov [#allocation4]   ;;  %s58_s12 = sshll.u32 %s8491_s7, 4  ;;  %s59_s12 = int_to_ptr.hbm [resolvable:$true] %s58_s12 }
   0x7   :  { %s34_s28 = sshll.u32 %s4529_s27, 4  ;;  %s4530_s6 = smov [#allocation9]   ;;  %s35_s28 = int_to_ptr.vmem [resolvable:$true] %s34_s28 }
   0x8   :  { %40 = dma.hbm_to_vmem [thread:$0]  %s33_s24, 8192, %s35_s28, [#allocation5], %s4527_s25, %s4527_s25, %s4528_s26  }
   0x9   :  { %s60_s13 = sshll.u32 %s4530_s6, 4  ;;  %s61_s13 = int_to_ptr.vmem [resolvable:$true] %s60_s13 }
   0xa   :  { %66 = dma.hbm_to_vmem [thread:$0]  %s59_s12, 8192, %s61_s13, [#allocation8], %s4527_s25, %s4527_s25, %s4528_s26  }
   0xb   :  { %4520 = dma.done.wait [#allocation5], 8192  }
   0xc   :  { %4521 = vsyncadd [#allocation5], 4294959104 }
   0xd   :  { %4522 = dma.done.wait [#allocation8], 16384  }
   0xe   :  { %4523 = vsyncadd [#allocation8], 4294950912  ;;  %v4531_v0 = vmov 0   ;;  %v4603_v1 = vld [vmem:[#allocation4 + $0x1e0] sm:$0xff]  ;;  %v4605_v2 = vld [vmem:[#allocation4 + $0x1e8] sm:$0xff]  ;;  %p696_p0 = scmp.eq.s32.totalorder %s8484_s0, 0 }
   0xf   :  { %3588 = vset.pattern.permute.xlu0 %v4531_v0  ;;  %3589 = vset.pattern.permute.xlu1 %v4531_v0  ;;  %v4607_v3 = vld [vmem:[#allocation4 + $0x1f0] sm:$0xff]  ;;  %v4611_v4 = vld [vmem:[#allocation4 + $0x1f8] sm:$0xff]  ;;  %v4613_v5 = vld [vmem:[#allocation4 + $0x1c0] sm:$0xff]  ;;  %p1090_p1 = scmp.eq.s32.totalorder %s8484_s0, 1  ;;  %p1484_p2 = scmp.eq.s32.totalorder %s8484_s0, 2 }
  0x10   :  { %3590 = vset.pattern.permute.xlu2 %v4531_v0  ;;  %313 = vmatpush.msra.mxu0 %v4603_v1  ;;  %v4615_v6 = vld [vmem:[#allocation4 + $0x1c8] sm:$0xff]  ;;  %v4619_v7 = vld [vmem:[#allocation4 + $0x1d0] sm:$0xff]  ;;  %v4621_v8 = vld [vmem:[#allocation4 + $0x1d8] sm:$0xff]  ;;  %s697_s12 = scalar_select %p696_p0, 1, 0 }
  0x11   :  { %333 = vmatpush.msra.mxu1 %v4605_v2  ;;  %353 = vmatpush.msra.mxu2 %v4607_v3  ;;  %v4623_v9 = vld [vmem:[#allocation4 + $0x1a0] sm:$0xff]  ;;  %v4627_v10 = vld [vmem:[#allocation4 + $0x1a8] sm:$0xff]  ;;  %v4629_v11 = vld [vmem:[#allocation4 + $0x1b0] sm:$0xff]  ;;  %s1091_s6 = scalar_select %p1090_p1, 1, 0 }
  0x12   :  { %373 = vmatpush.msra.mxu3 %v4611_v4  ;;  %314 = vmatpush.msra.mxu0 %v4613_v5  ;;  %v4631_v12 = vld [vmem:[#allocation4 + $0x1b8] sm:$0xff]  ;;  %v4635_v13 = vld [vmem:[#allocation4 + $0x180] sm:$0xff]  ;;  %v4637_v14 = vld [vmem:[#allocation4 + $0x188] sm:$0xff]  ;;  %s6455_s15 = scalar_select %p1484_p2, 1, 0 }
  0x13   :  { %334 = vmatpush.msra.mxu1 %v4615_v6  ;;  %354 = vmatpush.msra.mxu2 %v4619_v7  ;;  %v4641_v15 = vld [vmem:[#allocation4 + $0x190] sm:$0xff]  ;;  %v4643_v16 = vld [vmem:[#allocation4 + $0x198] sm:$0xff]  ;;  %v4647_v17 = vld [vmem:[#allocation4 + $0x160] sm:$0xff]  ;;  %p1878_p3 = scmp.eq.s32.totalorder %s8484_s0, 3  ;;  %p2272_p4 = scmp.eq.s32.totalorder %s8484_s0, 4 }
  0x14   :  { %374 = vmatpush.msra.mxu3 %v4621_v8  ;;  %315 = vmatpush.msra.mxu0 %v4623_v9  ;;  %v4649_v18 = vld [vmem:[#allocation4 + $0x168] sm:$0xff]  ;;  %v4653_v19 = vld [vmem:[#allocation4 + $0x170] sm:$0xff]  ;;  %v4655_v20 = vld [vmem:[#allocation4 + $0x178] sm:$0xff]  ;;  %p2666_p5 = scmp.eq.s32.totalorder %s8484_s0, 5  ;;  %p3060_p6 = scmp.eq.s32.totalorder %s8484_s0, 6 }
  0x15   :  { %335 = vmatpush.msra.mxu1 %v4627_v10  ;;  %355 = vmatpush.msra.mxu2 %v4629_v11  ;;  %v4659_v21 = vld [vmem:[#allocation4 + $0x140] sm:$0xff]  ;;  %v4661_v22 = vld [vmem:[#allocation4 + $0x148] sm:$0xff]  ;;  %v4665_v23 = vld [vmem:[#allocation4 + $0x150] sm:$0xff]  ;;  %s7417_s24 = scalar_select %p2272_p4, 1, 0 }
  0x16   :  { %375 = vmatpush.msra.mxu3 %v4631_v12  ;;  %316 = vmatpush.msra.mxu0 %v4635_v13  ;;  %v4667_v24 = vld [vmem:[#allocation4 + $0x158] sm:$0xff]  ;;  %v4671_v25 = vld [vmem:[#allocation4 + $0x120] sm:$0xff]  ;;  %v4673_v26 = vld [vmem:[#allocation4 + $0x128] sm:$0xff]  ;;  %s2667_s27 = scalar_select %p2666_p5, 1, 0 }
  0x17   :  { %336 = vmatpush.msra.mxu1 %v4637_v14  ;;  %356 = vmatpush.msra.mxu2 %v4641_v15  ;;  %v4677_v27 = vld [vmem:[#allocation4 + $0x130] sm:$0xff]  ;;  %v4679_v28 = vld [vmem:[#allocation4 + $0x138] sm:$0xff]  ;;  %v4683_v29 = vld [vmem:[#allocation4 + $0x100] sm:$0xff]  ;;  %p3454_p7 = scmp.eq.s32.totalorder %s8484_s0, 7  ;;  %s4533_s19 = smov [#allocation10]  }
  0x18   :  { %376 = vmatpush.msra.mxu3 %v4643_v16  ;;  %317 = vmatpush.msra.mxu0 %v4647_v17  ;;  %v4685_v30 = vld [vmem:[#allocation4 + $0x108] sm:$0xff]  ;;  %v4689_v31 = vld [vmem:[#allocation4 + $0x110] sm:$0xff]  ;;  %v4691_v32 = vld [vmem:[#allocation4 + $0x118] sm:$0xff]  ;;  %s3514_s20 = sshll.u32 %s8495_s11, 4  ;;  %s3515_s20 = int_to_ptr.hbm [resolvable:$true] %s3514_s20 }
  0x19   :  { %337 = vmatpush.msra.mxu1 %v4649_v18  ;;  %357 = vmatpush.msra.mxu2 %v4653_v19  ;;  %v4695_v33 = vld [vmem:[#allocation4 + $0xe0] sm:$0xff]  ;;  %v4697_v34 = vld [vmem:[#allocation4 + $0xe8] sm:$0xff]  ;;  %v4701_v35 = vld [vmem:[#allocation4 + $0xf0] sm:$0xff]  ;;  %s3455_s17 = scalar_select %p3454_p7, 1, 0 }
  0x1a   :  { %377 = vmatpush.msra.mxu3 %v4655_v20  ;;  %318 = vmatpush.msra.mxu0 %v4659_v21  ;;  %v4703_v36 = vld [vmem:[#allocation4 + $0xf8] sm:$0xff]  ;;  %v4707_v37 = vld [vmem:[#allocation4 + $0xc0] sm:$0xff]  ;;  %v4709_v38 = vld [vmem:[#allocation4 + $0xc8] sm:$0xff] }
  0x1b   :  { %338 = vmatpush.msra.mxu1 %v4661_v22  ;;  %358 = vmatpush.msra.mxu2 %v4665_v23  ;;  %v4713_v39 = vld [vmem:[#allocation4 + $0xd0] sm:$0xff]  ;;  %v4715_v40 = vld [vmem:[#allocation4 + $0xd8] sm:$0xff]  ;;  %v4719_v41 = vld [vmem:[#allocation4 + $0xa0] sm:$0xff] }
  0x1c   :  { %378 = vmatpush.msra.mxu3 %v4667_v24  ;;  %319 = vmatpush.msra.mxu0 %v4671_v25  ;;  %v4721_v42 = vld [vmem:[#allocation4 + $0xa8] sm:$0xff]  ;;  %v4725_v43 = vld [vmem:[#allocation4 + $0xb0] sm:$0xff]  ;;  %v4727_v44 = vld [vmem:[#allocation4 + $0xb8] sm:$0xff] }
  0x1d   :  { %339 = vmatpush.msra.mxu1 %v4673_v26  ;;  %359 = vmatpush.msra.mxu2 %v4677_v27  ;;  %v281_v45 = vld [vmem:[%s8485_s1] sm:$0xff]  ;;  %v4738_v47 = vld [vmem:[#allocation4 + $0x88] sm:$0xff]  ;;  %v4740_v48 = vld [vmem:[#allocation4 + $0x90] sm:$0xff] }
  0x1e   :  { %379 = vmatpush.msra.mxu3 %v4679_v28  ;;  %320 = vmatpush.msra.mxu0 %v4683_v29  ;;  %v4734_v46 = vld [vmem:[#allocation4 + $0x80] sm:$0xff]  ;;  %v4744_v49 = vld [vmem:[#allocation4 + $0x98] sm:$0xff]  ;;  %v4749_v51 = vld [vmem:[#allocation4 + $0x68] sm:$0xff] }
  0x1f   :  { %340 = vmatpush.msra.mxu1 %v4685_v30  ;;  %360 = vmatpush.msra.mxu2 %v4689_v31  ;;  %v4746_v50 = vld [vmem:[#allocation4 + $0x60] sm:$0xff]  ;;  %v4751_v52 = vld [vmem:[#allocation4 + $0x70] sm:$0xff]  ;;  %v4755_v53 = vld [vmem:[#allocation4 + $0x78] sm:$0xff] }
  0x20   :  { %380 = vmatpush.msra.mxu3 %v4691_v32  ;;  %321 = vmatpush.msra.mxu0 %v4695_v33  ;;  %9167 = vst [vmem:[#allocation14_spill] sm:$0xff] %v4755_v53  ;;  %v4757_v54 = vld [vmem:[#allocation4 + $0x40] sm:$0xff]  ;;  %v4761_v55 = vld [vmem:[#allocation4 + $0x48] sm:$0xff]  ;;  %v4763_v56 = vld [vmem:[#allocation4 + $0x50] sm:$0xff] }
  0x21   :  { %341 = vmatpush.msra.mxu1 %v4697_v34  ;;  %361 = vmatpush.msra.mxu2 %v4701_v35  ;;  %9168 = vst [vmem:[#allocation15_spill] sm:$0xff] %v4757_v54  ;;  %v4767_v57 = vld [vmem:[#allocation4 + $0x58] sm:$0xff]  ;;  %v4769_v58 = vld [vmem:[#allocation4 + $0x20] sm:$0xff]  ;;  %v4773_v59 = vld [vmem:[#allocation4 + $0x28] sm:$0xff] }
  0x22   :  { %381 = vmatpush.msra.mxu3 %v4703_v36  ;;  %322 = vmatpush.msra.mxu0 %v4707_v37  ;;  %9169 = vst [vmem:[#allocation16_spill] sm:$0xff] %v4761_v55  ;;  %v4775_v60 = vld [vmem:[#allocation4 + $0x30] sm:$0xff]  ;;  %v4779_v61 = vld [vmem:[#allocation4 + $0x38] sm:$0xff]  ;;  %v3531_v62 = vld [vmem:[%s8485_s1 + $0x8] sm:$0xff] }
  0x23   :  { %342 = vmatpush.msra.mxu1 %v4709_v38  ;;  %362 = vmatpush.msra.mxu2 %v4713_v39  ;;  %9170 = vst [vmem:[#allocation17_spill] sm:$0xff] %v4763_v56  ;;  %v4786_v63 = vld [vmem:[#allocation4] sm:$0xff]  ;;  %v4788_v0 = vld [vmem:[#allocation4 + $0x8] sm:$0xff] }
  0x24   :  { %382 = vmatpush.msra.mxu3 %v4715_v40  ;;  %323 = vmatpush.msra.mxu0 %v4719_v41  ;;  %9171 = vst [vmem:[#allocation18_spill] sm:$0xff] %v4767_v57 }
  0x25   :  { %343 = vmatpush.msra.mxu1 %v4721_v42  ;;  %363 = vmatpush.msra.mxu2 %v4725_v43  ;;  %9172 = vst [vmem:[#allocation19_spill] sm:$0xff] %v4769_v58 }
  0x26   :  { %383 = vmatpush.msra.mxu3 %v4727_v44  ;;  %284 = vperm.xlu0 %3588, %v281_v45   ;;  %9173 = vst [vmem:[#allocation20_spill] sm:$0xff] %v4773_v59  ;;  %v4792_v45 = vld [vmem:[#allocation4 + $0x10] sm:$0xff] }
  0x27   :  { %324 = vmatpush.msra.mxu0 %v4734_v46  ;;  %344 = vmatpush.msra.mxu1 %v4738_v47  ;;  %9174 = vst [vmem:[#allocation21_spill] sm:$0xff] %v4775_v60 }
  0x28   :  { %364 = vmatpush.msra.mxu2 %v4740_v48  ;;  %384 = vmatpush.msra.mxu3 %v4744_v49  ;;  %9175 = vst [vmem:[#allocation22_spill] sm:$0xff] %v4779_v61 }
  0x29   :  { %325 = vmatpush.msra.mxu0 %v4746_v50  ;;  %345 = vmatpush.msra.mxu1 %v4749_v51  ;;  %9176 = vst [vmem:[#allocation23_spill] sm:$0xff] %v4786_v63 }
  0x2a   :  { %365 = vmatpush.msra.mxu2 %v4751_v52  ;;  %385 = vmatpush.msra.mxu3 %v4755_v53  ;;  %9177 = vst [vmem:[#allocation24_spill] sm:$0xff] %v4788_v0 }
  0x2b   :  { %326 = vmatpush.msra.mxu0 %v4757_v54  ;;  %346 = vmatpush.msra.mxu1 %v4761_v55  ;;  %9178 = vst [vmem:[#allocation25_spill] sm:$0xff] %v4792_v45  ;;  %v4832_v55 = vld [vmem:[#allocation7 + $0x1a8] sm:$0xff]  ;;  %v4834_v54 = vld [vmem:[#allocation7 + $0x1b0] sm:$0xff] }
  0x2c   :  { %366 = vmatpush.msra.mxu2 %v4763_v56  ;;  %386 = vmatpush.msra.mxu3 %v4767_v57  ;;  %v4794_v56 = vld [vmem:[#allocation4 + $0x18] sm:$0xff]  ;;  %v4807_v57 = vld [vmem:[#allocation7 + $0x1f0] sm:$0xff]  ;;  %9189 = vst [vmem:[#allocation36_spill] sm:$0xff] %v4832_v55 }
  0x2d   :  { %327 = vmatpush.msra.mxu0 %v4769_v58  ;;  %347 = vmatpush.msra.mxu1 %v4773_v59  ;;  %9179 = vst [vmem:[#allocation26_spill] sm:$0xff] %v4794_v56  ;;  %v4801_v58 = vld [vmem:[#allocation7 + $0x1e0] sm:$0xff]  ;;  %v4803_v59 = vld [vmem:[#allocation7 + $0x1e8] sm:$0xff] }
  0x2e   :  { %367 = vmatpush.msra.mxu2 %v4775_v60  ;;  %387 = vmatpush.msra.mxu3 %v4779_v61  ;;  %9180 = vst [vmem:[#allocation27_spill] sm:$0xff] %v4801_v58  ;;  %v8506_v60 = vmov 0.0   ;;  %v4826_v61 = vld [vmem:[#allocation7 + $0x1d8] sm:$0xff] }
  0x2f   :  { %705 = vperm.xlu0 %3588, %v3531_v62   ;;  %328 = vmatpush.msra.mxu0 %v4786_v63  ;;  %9181 = vst [vmem:[#allocation28_spill] sm:$0xff] %v4803_v59  ;;  %v4809_v62 = vld [vmem:[#allocation7 + $0x1f8] sm:$0xff]  ;;  %v4822_v63 = vld [vmem:[#allocation7 + $0x1d0] sm:$0xff] }
  0x30   :  { %348 = vmatpush.msra.mxu1 %v4788_v0  ;;  %368 = vmatpush.msra.mxu2 %v4792_v45  ;;  %9182 = vst [vmem:[#allocation29_spill] sm:$0xff] %v4807_v57  ;;  %v4813_v45 = vld [vmem:[#allocation7 + $0x1c0] sm:$0xff]  ;;  %v3566_v0 = vld [vmem:[%s8485_s1 + $0x30] sm:$0xff] }
  0x31   :  { %388 = vmatpush.msra.mxu3 %v4794_v56  ;;  %329 = vmatmul.f32.vlgmr.msra.gmra.mxu0 %v8506_v60  ;;  %9183 = vst [vmem:[#allocation30_spill] sm:$0xff] %v4809_v62  ;;  %v4815_v56 = vld [vmem:[#allocation7 + $0x1c8] sm:$0xff] }
  0x32   :  { %349 = vmatmul.f32.vlgmr.msra.gmra.mxu1 %v8506_v60  ;;  %369 = vmatmul.f32.vlgmr.msra.gmra.mxu2 %v8506_v60  ;;  %9184 = vst [vmem:[#allocation31_spill] sm:$0xff] %v4813_v45 }
  0x33   :  { %389 = vmatmul.f32.vlgmr.msra.gmra.mxu3 %v8506_v60  ;;  %9185 = vst [vmem:[#allocation32_spill] sm:$0xff] %v4815_v56  ;;  %393 = vmatpush.msrb.mxu0 %v4801_v58  ;;  %v4828_v60 = vld [vmem:[#allocation7 + $0x1a0] sm:$0xff]  ;;  %v5197_v58 = vld [vmem:[#allocation9 + $0x10] sm:$0xff] }
  0x34   :  { %413 = vmatpush.msrb.mxu1 %v4803_v59  ;;  %9186 = vst [vmem:[#allocation33_spill] sm:$0xff] %v4822_v63  ;;  %433 = vmatpush.msrb.mxu2 %v4807_v57  ;;  %v4837_v59 = vld [vmem:[#allocation7 + $0x1b8] sm:$0xff]  ;;  %v4839_v57 = vld [vmem:[#allocation7 + $0x180] sm:$0xff] }
  0x35   :  { %453 = vmatpush.msrb.mxu3 %v4809_v62  ;;  %9187 = vst [vmem:[#allocation34_spill] sm:$0xff] %v4826_v61  ;;  %394 = vmatpush.msrb.mxu0 %v4813_v45  ;;  %v4843_v62 = vld [vmem:[#allocation7 + $0x188] sm:$0xff]  ;;  %v4845_v45 = vld [vmem:[#allocation7 + $0x190] sm:$0xff] }
  0x36   :  { %9188 = vst [vmem:[#allocation35_spill] sm:$0xff] %v4828_v60  ;;  %414 = vmatpush.msrb.mxu1 %v4815_v56  ;;  %434 = vmatpush.msrb.mxu2 %v4822_v63  ;;  %v4849_v56 = vld [vmem:[#allocation7 + $0x198] sm:$0xff]  ;;  %v4855_v63 = vld [vmem:[#allocation7 + $0x168] sm:$0xff] }
  0x37   :  { %9190 = vst [vmem:[#allocation37_spill] sm:$0xff] %v4834_v54  ;;  %2675 = vperm.xlu0 %3588, %v3566_v0   ;;  %454 = vmatpush.msrb.mxu3 %v4826_v61  ;;  %v4851_v0 = vld [vmem:[#allocation7 + $0x160] sm:$0xff]  ;;  %v4857_v61 = vld [vmem:[#allocation7 + $0x170] sm:$0xff] }
  0x38   :  { %9191 = vst [vmem:[#allocation38_spill] sm:$0xff] %v4837_v59  ;;  %395 = vmatpush.msrb.mxu0 %v4828_v60  ;;  %415 = vmatpush.msrb.mxu1 %v4832_v55  ;;  %v4861_v60 = vld [vmem:[#allocation7 + $0x178] sm:$0xff]  ;;  %v4863_v55 = vld [vmem:[#allocation7 + $0x140] sm:$0xff] }
  0x39   :  { %9192 = vst [vmem:[#allocation39_spill] sm:$0xff] %v4839_v57  ;;  %435 = vmatpush.msrb.mxu2 %v4834_v54  ;;  %455 = vmatpush.msrb.mxu3 %v4837_v59  ;;  %v4867_v54 = vld [vmem:[#allocation7 + $0x148] sm:$0xff]  ;;  %v4869_v59 = vld [vmem:[#allocation7 + $0x150] sm:$0xff] }
  0x3a   :  { %9193 = vst [vmem:[#allocation40_spill] sm:$0xff] %v4843_v62  ;;  %396 = vmatpush.msrb.mxu0 %v4839_v57  ;;  %416 = vmatpush.msrb.mxu1 %v4843_v62  ;;  %v4873_v57 = vld [vmem:[#allocation7 + $0x158] sm:$0xff]  ;;  %v4875_v62 = vld [vmem:[#allocation7 + $0x120] sm:$0xff] }
  0x3b   :  { %9194 = vst [vmem:[#allocation41_spill] sm:$0xff] %v4845_v45  ;;  %436 = vmatpush.msrb.mxu2 %v4845_v45  ;;  %456 = vmatpush.msrb.mxu3 %v4849_v56  ;;  %v4879_v45 = vld [vmem:[#allocation7 + $0x128] sm:$0xff] }
  0x3c   :  { %9195 = vst [vmem:[#allocation42_spill] sm:$0xff] %v4849_v56  ;;  %397 = vmatpush.msrb.mxu0 %v4851_v0  ;;  %417 = vmatpush.msrb.mxu1 %v4855_v63  ;;  %v4881_v56 = vld [vmem:[#allocation7 + $0x130] sm:$0xff] }
  0x3d   :  { %9196 = vst [vmem:[#allocation43_spill] sm:$0xff] %v4851_v0  ;;  %437 = vmatpush.msrb.mxu2 %v4857_v61  ;;  %457 = vmatpush.msrb.mxu3 %v4861_v60  ;;  %v4885_v0 = vld [vmem:[#allocation7 + $0x138] sm:$0xff] }
  0x3e   :  { %9197 = vst [vmem:[#allocation44_spill] sm:$0xff] %v4855_v63  ;;  %398 = vmatpush.msrb.mxu0 %v4863_v55  ;;  %418 = vmatpush.msrb.mxu1 %v4867_v54  ;;  %v4887_v63 = vld [vmem:[#allocation7 + $0x100] sm:$0xff] }
  0x3f   :  { %9198 = vst [vmem:[#allocation45_spill] sm:$0xff] %v4857_v61  ;;  %438 = vmatpush.msrb.mxu2 %v4869_v59  ;;  %458 = vmatpush.msrb.mxu3 %v4873_v57  ;;  %v4891_v61 = vld [vmem:[#allocation7 + $0x108] sm:$0xff] }
  0x40   :  { %9199 = vst [vmem:[#allocation46_spill] sm:$0xff] %v4861_v60  ;;  %399 = vmatpush.msrb.mxu0 %v4875_v62  ;;  %v4893_v60 = vld [vmem:[#allocation7 + $0x110] sm:$0xff]  ;;  %419 = vmatpush.msrb.mxu1 %v4879_v45 }
  0x41   :  { %9200 = vst [vmem:[#allocation47_spill] sm:$0xff] %v4863_v55  ;;  %439 = vmatpush.msrb.mxu2 %v4881_v56  ;;  %v4897_v55 = vld [vmem:[#allocation7 + $0x118] sm:$0xff]  ;;  %459 = vmatpush.msrb.mxu3 %v4885_v0 }
  0x42   :  { %9201 = vst [vmem:[#allocation48_spill] sm:$0xff] %v4867_v54  ;;  %v4899_v54 = vld [vmem:[#allocation7 + $0xe0] sm:$0xff]  ;;  %400 = vmatpush.msrb.mxu0 %v4887_v63  ;;  %420 = vmatpush.msrb.mxu1 %v4891_v61 }
  0x43   :  { %9202 = vst [vmem:[#allocation49_spill] sm:$0xff] %v4869_v59  ;;  %v4903_v59 = vld [vmem:[#allocation7 + $0xe8] sm:$0xff]  ;;  %440 = vmatpush.msrb.mxu2 %v4893_v60  ;;  %460 = vmatpush.msrb.mxu3 %v4897_v55 }
  0x44   :  { %9203 = vst [vmem:[#allocation50_spill] sm:$0xff] %v4873_v57  ;;  %v4905_v57 = vld [vmem:[#allocation7 + $0xf0] sm:$0xff]  ;;  %401 = vmatpush.msrb.mxu0 %v4899_v54  ;;  %421 = vmatpush.msrb.mxu1 %v4903_v59 }
  0x45   :  { %9204 = vst [vmem:[#allocation51_spill] sm:$0xff] %v4875_v62  ;;  %v4909_v62 = vld [vmem:[#allocation7 + $0xf8] sm:$0xff]  ;;  %441 = vmatpush.msrb.mxu2 %v4905_v57 }
  0x46   :  { %9205 = vst [vmem:[#allocation52_spill] sm:$0xff] %v4879_v45  ;;  %v4911_v45 = vld [vmem:[#allocation7 + $0xc0] sm:$0xff]  ;;  %461 = vmatpush.msrb.mxu3 %v4909_v62 }
  0x47   :  { %9206 = vst [vmem:[#allocation53_spill] sm:$0xff] %v4881_v56  ;;  %v4915_v56 = vld [vmem:[#allocation7 + $0xc8] sm:$0xff]  ;;  %402 = vmatpush.msrb.mxu0 %v4911_v45 }
  0x48   :  { %9207 = vst [vmem:[#allocation54_spill] sm:$0xff] %v4885_v0  ;;  %v4917_v0 = vld [vmem:[#allocation7 + $0xd0] sm:$0xff]  ;;  %422 = vmatpush.msrb.mxu1 %v4915_v56 }
  0x49   :  { %9208 = vst [vmem:[#allocation55_spill] sm:$0xff] %v4887_v63  ;;  %v4921_v63 = vld [vmem:[#allocation7 + $0xd8] sm:$0xff]  ;;  %442 = vmatpush.msrb.mxu2 %v4917_v0 }
  0x4a   :  { %9209 = vst [vmem:[#allocation56_spill] sm:$0xff] %v4891_v61  ;;  %v4923_v61 = vld [vmem:[#allocation7 + $0xa0] sm:$0xff]  ;;  %462 = vmatpush.msrb.mxu3 %v4921_v63 }
  0x4b   :  { %9210 = vst [vmem:[#allocation57_spill] sm:$0xff] %v4893_v60  ;;  %v4927_v60 = vld [vmem:[#allocation7 + $0xa8] sm:$0xff]  ;;  %403 = vmatpush.msrb.mxu0 %v4923_v61 }
  0x4c   :  { %9211 = vst [vmem:[#allocation58_spill] sm:$0xff] %v4897_v55  ;;  %v4929_v55 = vld [vmem:[#allocation7 + $0xb0] sm:$0xff]  ;;  %423 = vmatpush.msrb.mxu1 %v4927_v60 }
  0x4d   :  { %9212 = vst [vmem:[#allocation59_spill] sm:$0xff] %v4899_v54  ;;  %v4933_v54 = vld [vmem:[#allocation7 + $0xb8] sm:$0xff]  ;;  %443 = vmatpush.msrb.mxu2 %v4929_v55 }
  0x4e   :  { %9213 = vst [vmem:[#allocation60_spill] sm:$0xff] %v4903_v59  ;;  %463 = vmatpush.msrb.mxu3 %v4933_v54  ;;  %v5183_v59 = vld [vmem:[#allocation9 + $0x38] sm:$0xff] }
  0x4f   :  { %9214 = vst [vmem:[#allocation61_spill] sm:$0xff] %v4905_v57  ;;  %v4944_v57 = vld [vmem:[#allocation7 + $0x90] sm:$0xff] }
  0x50   :  { %9215 = vst [vmem:[#allocation62_spill] sm:$0xff] %v4909_v62  ;;  %v4942_v62 = vld [vmem:[#allocation7 + $0x88] sm:$0xff]  ;;  %444 = vmatpush.msrb.mxu2 %v4944_v57 }
  0x51   :  { %9216 = vst [vmem:[#allocation63_spill] sm:$0xff] %v4911_v45  ;;  %v4940_v45 = vld [vmem:[#allocation7 + $0x80] sm:$0xff]  ;;  %424 = vmatpush.msrb.mxu1 %v4942_v62 }
  0x52   :  { %9217 = vst [vmem:[#allocation64_spill] sm:$0xff] %v4915_v56  ;;  %404 = vmatpush.msrb.mxu0 %v4940_v45  ;;  %v4968_v56 = vld [vmem:[#allocation7 + $0x58] sm:$0xff] }
  0x53   :  { %9218 = vst [vmem:[#allocation65_spill] sm:$0xff] %v4917_v0  ;;  %v4948_v0 = vld [vmem:[#allocation7 + $0x98] sm:$0xff] }
  0x54   :  { %9219 = vst [vmem:[#allocation66_spill] sm:$0xff] %v4921_v63  ;;  %v4950_v63 = vld [vmem:[#allocation7 + $0x60] sm:$0xff]  ;;  %464 = vmatpush.msrb.mxu3 %v4948_v0 }
  0x55   :  { %9220 = vst [vmem:[#allocation67_spill] sm:$0xff] %v4923_v61  ;;  %v4952_v61 = vld [vmem:[#allocation7 + $0x68] sm:$0xff]  ;;  %405 = vmatpush.msrb.mxu0 %v4950_v63 }
  0x56   :  { %9221 = vst [vmem:[#allocation68_spill] sm:$0xff] %v4927_v60  ;;  %v4960_v60 = vld [vmem:[#allocation7 + $0x40] sm:$0xff]  ;;  %425 = vmatpush.msrb.mxu1 %v4952_v61 }
  0x57   :  { %9222 = vst [vmem:[#allocation69_spill] sm:$0xff] %v4929_v55  ;;  %v4958_v55 = vld [vmem:[#allocation7 + $0x78] sm:$0xff]  ;;  %406 = vmatpush.msrb.mxu0 %v4960_v60 }
  0x58   :  { %9223 = vst [vmem:[#allocation70_spill] sm:$0xff] %v4933_v54  ;;  %v4956_v54 = vld [vmem:[#allocation7 + $0x70] sm:$0xff]  ;;  %465 = vmatpush.msrb.mxu3 %v4958_v55 }
  0x59   :  { %9224 = vst [vmem:[#allocation71_spill] sm:$0xff] %v4940_v45  ;;  %v4966_v45 = vld [vmem:[#allocation7 + $0x50] sm:$0xff]  ;;  %445 = vmatpush.msrb.mxu2 %v4956_v54 }
  0x5a   :  { %9225 = vst [vmem:[#allocation72_spill] sm:$0xff] %v4942_v62  ;;  %v4964_v62 = vld [vmem:[#allocation7 + $0x48] sm:$0xff]  ;;  %466 = vmatpush.msrb.mxu3 %v4968_v56 }
  0x5b   :  { %9226 = vst [vmem:[#allocation73_spill] sm:$0xff] %v4944_v57  ;;  %v4974_v57 = vld [vmem:[#allocation7 + $0x28] sm:$0xff]  ;;  %426 = vmatpush.msrb.mxu1 %v4964_v62  ;;  %446 = vmatpush.msrb.mxu2 %v4966_v45 }
  0x5c   :  { %9227 = vst [vmem:[#allocation74_spill] sm:$0xff] %v4948_v0  ;;  %v4972_v0 = vld [vmem:[#allocation7 + $0x20] sm:$0xff] }
  0x5d   :  { %9228 = vst [vmem:[#allocation75_spill] sm:$0xff] %v4950_v63  ;;  %v4978_v63 = vld [vmem:[#allocation7 + $0x30] sm:$0xff]  ;;  %407 = vmatpush.msrb.mxu0 %v4972_v0  ;;  %427 = vmatpush.msrb.mxu1 %v4974_v57 }
  0x5e   :  { %9229 = vst [vmem:[#allocation76_spill] sm:$0xff] %v4952_v61  ;;  %v4980_v61 = vld [vmem:[#allocation7 + $0x38] sm:$0xff]  ;;  %447 = vmatpush.msrb.mxu2 %v4978_v63 }
  0x5f   :  { %9230 = vst [vmem:[#allocation77_spill] sm:$0xff] %v4956_v54  ;;  %467 = vmatpush.msrb.mxu3 %v4980_v61  ;;  %v5016_v54 = vld [vmem:[#allocation9 + $0x1d8] sm:$0xff] }
  0x60   :  { %9231 = vst [vmem:[#allocation78_spill] sm:$0xff] %v4958_v55  ;;  %v4988_v55 = vld [vmem:[#allocation7] sm:$0xff] }
  0x61   :  { %9232 = vst [vmem:[#allocation79_spill] sm:$0xff] %v4960_v60  ;;  %v4990_v60 = vld [vmem:[#allocation7 + $0x8] sm:$0xff]  ;;  %408 = vmatpush.msrb.mxu0 %v4988_v55 }
  0x62   :  { %9233 = vst [vmem:[#allocation80_spill] sm:$0xff] %v4964_v62  ;;  %v4992_v62 = vld [vmem:[#allocation7 + $0x10] sm:$0xff]  ;;  %428 = vmatpush.msrb.mxu1 %v4990_v60 }
  0x63   :  { %9234 = vst [vmem:[#allocation81_spill] sm:$0xff] %v4966_v45  ;;  %v4996_v45 = vld [vmem:[#allocation7 + $0x18] sm:$0xff]  ;;  %448 = vmatpush.msrb.mxu2 %v4992_v62 }
  0x64   :  { %9235 = vst [vmem:[#allocation82_spill] sm:$0xff] %v4968_v56  ;;  %v4998_v56 = vld [vmem:[#allocation9 + $0x1e0] sm:$0xff]  ;;  %468 = vmatpush.msrb.mxu3 %v4996_v45 }
  0x65   :  { %9236 = vst [vmem:[#allocation83_spill] sm:$0xff] %v4972_v0  ;;  %v5000_v0 = vld [vmem:[#allocation9 + $0x1e8] sm:$0xff]  ;;  %540 = vmatpush.msra.mxu0 %v4998_v56 }
  0x66   :  { %9237 = vst [vmem:[#allocation84_spill] sm:$0xff] %v4974_v57  ;;  %v5008_v57 = vld [vmem:[#allocation9 + $0x1c0] sm:$0xff]  ;;  %560 = vmatpush.msra.mxu1 %v5000_v0 }
  0x67   :  { %9238 = vst [vmem:[#allocation85_spill] sm:$0xff] %v4978_v63  ;;  %v5006_v63 = vld [vmem:[#allocation9 + $0x1f8] sm:$0xff]  ;;  %541 = vmatpush.msra.mxu0 %v5008_v57 }
  0x68   :  { %9239 = vst [vmem:[#allocation86_spill] sm:$0xff] %v4980_v61  ;;  %v5004_v61 = vld [vmem:[#allocation9 + $0x1f0] sm:$0xff]  ;;  %600 = vmatpush.msra.mxu3 %v5006_v63 }
  0x69   :  { %9240 = vst [vmem:[#allocation87_spill] sm:$0xff] %v4988_v55  ;;  %v5014_v55 = vld [vmem:[#allocation9 + $0x1d0] sm:$0xff]  ;;  %580 = vmatpush.msra.mxu2 %v5004_v61 }
  0x6a   :  { %9241 = vst [vmem:[#allocation88_spill] sm:$0xff] %v4990_v60  ;;  %v5012_v60 = vld [vmem:[#allocation9 + $0x1c8] sm:$0xff]  ;;  %601 = vmatpush.msra.mxu3 %v5016_v54 }
  0x6b   :  { %9242 = vst [vmem:[#allocation89_spill] sm:$0xff] %v4992_v62  ;;  %v5022_v62 = vld [vmem:[#allocation9 + $0x1a8] sm:$0xff]  ;;  %561 = vmatpush.msra.mxu1 %v5012_v60  ;;  %581 = vmatpush.msra.mxu2 %v5014_v55 }
  0x6c   :  { %9243 = vst [vmem:[#allocation90_spill] sm:$0xff] %v4996_v45  ;;  %v5020_v45 = vld [vmem:[#allocation9 + $0x1a0] sm:$0xff] }
  0x6d   :  { %9244 = vst [vmem:[#allocation91_spill] sm:$0xff] %v4998_v56  ;;  %v5026_v56 = vld [vmem:[#allocation9 + $0x1b0] sm:$0xff]  ;;  %542 = vmatpush.msra.mxu0 %v5020_v45  ;;  %562 = vmatpush.msra.mxu1 %v5022_v62 }
  0x6e   :  { %9245 = vst [vmem:[#allocation92_spill] sm:$0xff] %v5000_v0  ;;  %v5028_v0 = vld [vmem:[#allocation9 + $0x1b8] sm:$0xff]  ;;  %582 = vmatpush.msra.mxu2 %v5026_v56 }
  0x6f   :  { %9246 = vst [vmem:[#allocation93_spill] sm:$0xff] %v5004_v61  ;;  %602 = vmatpush.msra.mxu3 %v5028_v0  ;;  %v5154_v61 = vld [vmem:[#allocation9 + $0x78] sm:$0xff] }
  0x70   :  { %9247 = vst [vmem:[#allocation94_spill] sm:$0xff] %v5006_v63  ;;  %v5036_v63 = vld [vmem:[#allocation9 + $0x180] sm:$0xff] }
  0x71   :  { %9248 = vst [vmem:[#allocation95_spill] sm:$0xff] %v5008_v57  ;;  %v5038_v57 = vld [vmem:[#allocation9 + $0x188] sm:$0xff]  ;;  %543 = vmatpush.msra.mxu0 %v5036_v63 }
  0x72   :  { %9249 = vst [vmem:[#allocation96_spill] sm:$0xff] %v5012_v60  ;;  %v9258_v60 = vmov 0.0   ;;  %563 = vmatpush.msra.mxu1 %v5038_v57 }
  0x73   :  { %9250 = vst [vmem:[#allocation97_spill] sm:$0xff] %v5014_v55  ;;  %409 = vmatmul.f32.vlgmr.msrb.gmra.mxu0 %v9258_v60  ;;  %429 = vmatmul.f32.vlgmr.msrb.gmra.mxu1 %v9258_v60  ;;  %v5056_v55 = vld [vmem:[#allocation9 + $0x178] sm:$0xff] }
  0x74   :  { %9251 = vst [vmem:[#allocation98_spill] sm:$0xff] %v5016_v54  ;;  %v5044_v54 = vld [vmem:[#allocation9 + $0x190] sm:$0xff]  ;;  %449 = vmatmul.f32.vlgmr.msrb.gmra.mxu2 %v9258_v60  ;;  %469 = vmatmul.f32.vlgmr.msrb.gmra.mxu3 %v9258_v60  ;;  %v5084_v60 = vld [vmem:[#allocation9 + $0x138] sm:$0xff] }
  0x75   :  { %9252 = vst [vmem:[#allocation99_spill] sm:$0xff] %v5020_v45  ;;  %v5046_v45 = vld [vmem:[#allocation9 + $0x198] sm:$0xff]  ;;  %583 = vmatpush.msra.mxu2 %v5044_v54 }
  0x76   :  { %9253 = vst [vmem:[#allocation100_spill] sm:$0xff] %v5022_v62  ;;  %v5048_v62 = vld [vmem:[#allocation9 + $0x160] sm:$0xff]  ;;  %603 = vmatpush.msra.mxu3 %v5046_v45 }
  0x77   :  { %9254 = vst [vmem:[#allocation101_spill] sm:$0xff] %v5026_v56  ;;  %v5054_v56 = vld [vmem:[#allocation9 + $0x170] sm:$0xff]  ;;  %544 = vmatpush.msra.mxu0 %v5048_v62 }
  0x78   :  { %9255 = vst [vmem:[#allocation102_spill] sm:$0xff] %v5028_v0  ;;  %v5052_v0 = vld [vmem:[#allocation9 + $0x168] sm:$0xff]  ;;  %584 = vmatpush.msra.mxu2 %v5054_v56  ;;  %604 = vmatpush.msra.mxu3 %v5056_v55 }
  0x79   :  { %9256 = vst [vmem:[#allocation103_spill] sm:$0xff] %v5036_v63  ;;  %564 = vmatpush.msra.mxu1 %v5052_v0  ;;  %v5064_v63 = vld [vmem:[#allocation9 + $0x148] sm:$0xff] }
  0x7a   :  { %9257 = vst [vmem:[#allocation104_spill] sm:$0xff] %v5038_v57  ;;  %v5062_v57 = vld [vmem:[#allocation9 + $0x140] sm:$0xff] }
  0x7b   :  { %9259 = vst [vmem:[#allocation105_spill] sm:$0xff] %v5044_v54  ;;  %v5066_v54 = vld [vmem:[#allocation9 + $0x150] sm:$0xff]  ;;  %545 = vmatpush.msra.mxu0 %v5062_v57  ;;  %565 = vmatpush.msra.mxu1 %v5064_v63 }
  0x7c   :  { %9260 = vst [vmem:[#allocation106_spill] sm:$0xff] %v5046_v45  ;;  %585 = vmatpush.msra.mxu2 %v5066_v54  ;;  %v5138_v45 = vld [vmem:[#allocation9 + $0x90] sm:$0xff] }
  0x7d   :  { %9261 = vst [vmem:[#allocation107_spill] sm:$0xff] %v5048_v62  ;;  %v5072_v62 = vld [vmem:[#allocation9 + $0x158] sm:$0xff] }
  0x7e   :  { %9262 = vst [vmem:[#allocation108_spill] sm:$0xff] %v5052_v0  ;;  %605 = vmatpush.msra.mxu3 %v5072_v62  ;;  %v5080_v0 = vld [vmem:[#allocation9 + $0x130] sm:$0xff] }
  0x7f   :  { %9263 = vst [vmem:[#allocation109_spill] sm:$0xff] %v5054_v56  ;;  %v5078_v56 = vld [vmem:[#allocation9 + $0x128] sm:$0xff]  ;;  %586 = vmatpush.msra.mxu2 %v5080_v0 }
  0x80   :  { %9264 = vst [vmem:[#allocation110_spill] sm:$0xff] %v5056_v55  ;;  %v5076_v55 = vld [vmem:[#allocation9 + $0x120] sm:$0xff]  ;;  %566 = vmatpush.msra.mxu1 %v5078_v56  ;;  %606 = vmatpush.msra.mxu3 %v5084_v60 }
  0x81   :  { %9265 = vst [vmem:[#allocation111_spill] sm:$0xff] %v5062_v57  ;;  %546 = vmatpush.msra.mxu0 %v5076_v55  ;;  %v5096_v57 = vld [vmem:[#allocation9 + $0x118] sm:$0xff] }
  0x82   :  { %9266 = vst [vmem:[#allocation112_spill] sm:$0xff] %v5064_v63  ;;  %v5088_v63 = vld [vmem:[#allocation9 + $0x100] sm:$0xff]  ;;  %607 = vmatpush.msra.mxu3 %v5096_v57 }
  0x83   :  { %9267 = vst [vmem:[#allocation113_spill] sm:$0xff] %v5066_v54  ;;  %v5090_v54 = vld [vmem:[#allocation9 + $0x108] sm:$0xff]  ;;  %547 = vmatpush.msra.mxu0 %v5088_v63 }
  0x84   :  { %9268 = vst [vmem:[#allocation114_spill] sm:$0xff] %v5072_v62  ;;  %v5092_v62 = vld [vmem:[#allocation9 + $0x110] sm:$0xff]  ;;  %567 = vmatpush.msra.mxu1 %v5090_v54 }
  0x85   :  { %9269 = vst [vmem:[#allocation115_spill] sm:$0xff] %v5076_v55  ;;  %587 = vmatpush.msra.mxu2 %v5092_v62  ;;  %v5108_v55 = vld [vmem:[#allocation9 + $0xf8] sm:$0xff] }
  0x86   :  { %9270 = vst [vmem:[#allocation116_spill] sm:$0xff] %v5078_v56  ;;  %v5100_v56 = vld [vmem:[#allocation9 + $0xe0] sm:$0xff]  ;;  %608 = vmatpush.msra.mxu3 %v5108_v55 }
  0x87   :  { %9271 = vst [vmem:[#allocation117_spill] sm:$0xff] %v5080_v0  ;;  %v5102_v0 = vld [vmem:[#allocation9 + $0xe8] sm:$0xff]  ;;  %548 = vmatpush.msra.mxu0 %v5100_v56 }
  0x88   :  { %9272 = vst [vmem:[#allocation118_spill] sm:$0xff] %v5084_v60  ;;  %v5104_v60 = vld [vmem:[#allocation9 + $0xf0] sm:$0xff]  ;;  %568 = vmatpush.msra.mxu1 %v5102_v0 }
  0x89   :  { %9273 = vst [vmem:[#allocation119_spill] sm:$0xff] %v5088_v63  ;;  %588 = vmatpush.msra.mxu2 %v5104_v60  ;;  %v5120_v63 = vld [vmem:[#allocation9 + $0xd8] sm:$0xff] }
  0x8a   :  { %9274 = vst [vmem:[#allocation120_spill] sm:$0xff] %v5090_v54  ;;  %v5112_v54 = vld [vmem:[#allocation9 + $0xc0] sm:$0xff]  ;;  %609 = vmatpush.msra.mxu3 %v5120_v63 }
  0x8b   :  { %9275 = vst [vmem:[#allocation121_spill] sm:$0xff] %v5092_v62  ;;  %v5114_v62 = vld [vmem:[#allocation9 + $0xc8] sm:$0xff]  ;;  %549 = vmatpush.msra.mxu0 %v5112_v54 }
  0x8c   :  { %9276 = vst [vmem:[#allocation122_spill] sm:$0xff] %v5096_v57  ;;  %v5116_v57 = vld [vmem:[#allocation9 + $0xd0] sm:$0xff]  ;;  %569 = vmatpush.msra.mxu1 %v5114_v62 }
  0x8d   :  { %9277 = vst [vmem:[#allocation123_spill] sm:$0xff] %v5100_v56  ;;  %589 = vmatpush.msra.mxu2 %v5116_v57  ;;  %v5125_v56 = vld [vmem:[#allocation9 + $0xa8] sm:$0xff] }
  0x8e   :  { %9278 = vst [vmem:[#allocation124_spill] sm:$0xff] %v5102_v0  ;;  %v5123_v0 = vld [vmem:[#allocation9 + $0xa0] sm:$0xff]  ;;  %570 = vmatpush.msra.mxu1 %v5125_v56 }
  0x8f   :  { %9279 = vst [vmem:[#allocation125_spill] sm:$0xff] %v5104_v60  ;;  %v5127_v60 = vld [vmem:[#allocation9 + $0xb0] sm:$0xff]  ;;  %550 = vmatpush.msra.mxu0 %v5123_v0 }
  0x90   :  { %9280 = vst [vmem:[#allocation126_spill] sm:$0xff] %v5108_v55  ;;  %v5131_v55 = vld [vmem:[#allocation9 + $0xb8] sm:$0xff]  ;;  %590 = vmatpush.msra.mxu2 %v5127_v60 }
  0x91   :  { %9281 = vst [vmem:[#allocation127_spill] sm:$0xff] %v5112_v54  ;;  %v5134_v54 = vld [vmem:[#allocation9 + $0x80] sm:$0xff]  ;;  %610 = vmatpush.msra.mxu3 %v5131_v55 }
  0x92   :  { %9282 = vst [vmem:[#allocation128_spill] sm:$0xff] %v5114_v62  ;;  %v5136_v62 = vld [vmem:[#allocation9 + $0x88] sm:$0xff]  ;;  %551 = vmatpush.msra.mxu0 %v5134_v54  ;;  %591 = vmatpush.msra.mxu2 %v5138_v45 }
  0x93   :  { %9283 = vst [vmem:[#allocation129_spill] sm:$0xff] %v5116_v57  ;;  %v5142_v57 = vld [vmem:[#allocation9 + $0x98] sm:$0xff]  ;;  %571 = vmatpush.msra.mxu1 %v5136_v62 }
  0x94   :  { %9284 = vst [vmem:[#allocation130_spill] sm:$0xff] %v5120_v63  ;;  %v5148_v63 = vld [vmem:[#allocation9 + $0x68] sm:$0xff]  ;;  %611 = vmatpush.msra.mxu3 %v5142_v57 }
  0x95   :  { %9285 = vst [vmem:[#allocation131_spill] sm:$0xff] %v5123_v0  ;;  %v5146_v0 = vld [vmem:[#allocation9 + $0x60] sm:$0xff]  ;;  %572 = vmatpush.msra.mxu1 %v5148_v63 }
  0x96   :  { %9286 = vst [vmem:[#allocation132_spill] sm:$0xff] %v5125_v56  ;;  %v5150_v56 = vld [vmem:[#allocation9 + $0x70] sm:$0xff]  ;;  %552 = vmatpush.msra.mxu0 %v5146_v0  ;;  %612 = vmatpush.msra.mxu3 %v5154_v61 }
  0x97   :  { %9287 = vst [vmem:[#allocation133_spill] sm:$0xff] %v5127_v60  ;;  %v5167_v60 = vld [vmem:[%s8487_s3] sm:$0xf]  ;;  %592 = vmatpush.msra.mxu2 %v5150_v56 }
  0x98   :  { %9288 = vst [vmem:[#allocation134_spill] sm:$0xff] %v5131_v55  ;;  %v5158_v55 = vld [vmem:[#allocation9 + $0x40] sm:$0xff] }
  0x99   :  { %9289 = vst [vmem:[#allocation135_spill] sm:$0xff] %v5134_v54  ;;  %v5160_v54 = vld [vmem:[#allocation9 + $0x48] sm:$0xff]  ;;  %553 = vmatpush.msra.mxu0 %v5158_v55 }
  0x9a   :  { %9290 = vst [vmem:[#allocation136_spill] sm:$0xff] %v5136_v62  ;;  %v5162_v62 = vld [vmem:[#allocation9 + $0x50] sm:$0xff]  ;;  %573 = vmatpush.msra.mxu1 %v5160_v54 }
  0x9b   :  { %9291 = vst [vmem:[#allocation137_spill] sm:$0xff] %v5138_v45  ;;  %v5179_v45 = vld [vmem:[#allocation9 + $0x30] sm:$0xff]  ;;  %593 = vmatpush.msra.mxu2 %v5162_v62 }
  0x9c   :  { %9292 = vst [vmem:[#allocation138_spill] sm:$0xff] %v5142_v57  ;;  %v5171_v57 = vld [vmem:[#allocation9 + $0x58] sm:$0xff] }
  0x9d   :  { %9293 = vst [vmem:[#allocation139_spill] sm:$0xff] %v5146_v0  ;;  %v5177_v0 = vld [vmem:[#allocation9 + $0x28] sm:$0xff]  ;;  %613 = vmatpush.msra.mxu3 %v5171_v57  ;;  %594 = vmatpush.msra.mxu2 %v5179_v45 }
  0x9e   :  { %9294 = vst [vmem:[#allocation140_spill] sm:$0xff] %v5148_v63  ;;  %v5175_v63 = vld [vmem:[#allocation9 + $0x20] sm:$0xff]  ;;  %574 = vmatpush.msra.mxu1 %v5177_v0 }
  0x9f   :  { %9295 = vst [vmem:[#allocation141_spill] sm:$0xff] %v5150_v56  ;;  %v5189_v56 = vperm.slane %v5167_v60, 1  ;;  %554 = vmatpush.msra.mxu0 %v5175_v63  ;;  %614 = vmatpush.msra.mxu3 %v5183_v59 }
  0xa0   :  { %9296 = vst [vmem:[#allocation142_spill] sm:$0xff] %v5154_v61  ;;  %v5186_v61 = vperm.slane %v5167_v60, 0  ;;  %595 = vmatpush.msra.mxu2 %v5197_v58 }
  0xa1   :  { %9297 = vst [vmem:[#allocation143_spill] sm:$0xff] %v5158_v55  ;;  %v5195_v55 = vld [vmem:[#allocation9 + $0x8] sm:$0xff] }
  0xa2   :  { %9298 = vst [vmem:[#allocation144_spill] sm:$0xff] %v5160_v54  ;;  %v5193_v54 = vld [vmem:[#allocation9] sm:$0xff]  ;;  %575 = vmatpush.msra.mxu1 %v5195_v55  ;;  %756 = vmatpush.msrb.mxu2 %v4607_v3 }
  0xa3   :  { %9299 = vst [vmem:[#allocation145_spill] sm:$0xff] %v5162_v62  ;;  %v5206_v62 = vld [vmem:[#allocation9 + $0x18] sm:$0xff]  ;;  %555 = vmatpush.msra.mxu0 %v5193_v54 }
  0xa4   :  { %9300 = vst [vmem:[#allocation146_spill] sm:$0xff] %v5171_v57  ;;  %v5202_v57 = vld [vmem:[%s8488_s4] sm:$0xf]  ;;  %615 = vmatpush.msra.mxu3 %v5206_v62  ;;  %736 = vmatpush.msrb.mxu1 %v4605_v2  ;;  %s1879_s4 = scalar_select %p1878_p3, 1, 0 }
  0xa5   :  { %9301 = vst [vmem:[#allocation147_spill] sm:$0xff] %v5175_v63  ;;  %v5217_v53 = vperm.slane %v5202_v57, 0  ;;  %716 = vmatpush.msrb.mxu0 %v4603_v1  ;;  %757 = vmatpush.msrb.mxu2 %v4619_v7  ;;  %v5236_v1 = vperm.slane %v5167_v60, 2  ;;  %v5249_v7 = vperm.slane %v5202_v57, 2 }
  0xa6   :  { %9302 = vst [vmem:[#allocation148_spill] sm:$0xff] %v5177_v0  ;;  %v5210_v0 = vpop.permute.xlu0 %284  ;;  %776 = vmatpush.msrb.mxu3 %v4611_v4  ;;  %737 = vmatpush.msrb.mxu1 %v4615_v6 }
  0xa7   :  { %9303 = vst [vmem:[#allocation149_spill] sm:$0xff] %v5179_v45  ;;  %v296_v63 = vmul.f32 %v5186_v61, %v5210_v0  ;;  %v5222_v45 = vperm.slane %v5202_v57, 1  ;;  %717 = vmatpush.msrb.mxu0 %v4613_v5  ;;  %758 = vmatpush.msrb.mxu2 %v4629_v11  ;;  %v298_v6 = vmul.f32 %v5236_v1, %v5210_v0 }
  0xa8   :  { %9304 = vst [vmem:[#allocation150_spill] sm:$0xff] %v5183_v59  ;;  %v297_v59 = vmul.f32 %v5189_v56, %v5210_v0  ;;  %777 = vmatpush.msrb.mxu3 %v4621_v8  ;;  %738 = vmatpush.msrb.mxu1 %v4627_v10 }
  0xa9   :  { %9305 = vst [vmem:[#allocation151_spill] sm:$0xff] %v5186_v61  ;;  %v309_v61 = vadd.f32 %v5217_v53, %v296_v63  ;;  %718 = vmatpush.msrb.mxu0 %v4623_v9  ;;  %759 = vmatpush.msrb.mxu2 %v4641_v15  ;;  %v311_v10 = vadd.f32 %v5249_v7, %v298_v6 }
  0xaa   :  { %9306 = vst [vmem:[#allocation152_spill] sm:$0xff] %v5189_v56  ;;  %v310_v56 = vadd.f32 %v5222_v45, %v297_v59  ;;  %778 = vmatpush.msrb.mxu3 %v4631_v12  ;;  %739 = vmatpush.msrb.mxu1 %v4637_v14 }
  0xab   :  { %9307 = vst [vmem:[#allocation153_spill] sm:$0xff] %v5217_v53  ;;  %719 = vmatpush.msrb.mxu0 %v4635_v13  ;;  %760 = vmatpush.msrb.mxu2 %v4653_v19  ;;  %v5269_v13 = vperm.slane %v5167_v60, 3 }
  0xac   :  { %9308 = vst [vmem:[#allocation154_spill] sm:$0xff] %v5222_v45  ;;  %779 = vmatpush.msrb.mxu3 %v4643_v16  ;;  %740 = vmatpush.msrb.mxu1 %v4649_v18 }
  0xad   :  { %9309 = vst [vmem:[#allocation155_spill] sm:$0xff] %v5236_v1  ;;  %720 = vmatpush.msrb.mxu0 %v4647_v17  ;;  %761 = vmatpush.msrb.mxu2 %v4665_v23  ;;  %v299_v19 = vmul.f32 %v5269_v13, %v5210_v0 }
  0xae   :  { %v330_v2 = vpop.f32.mrf.mxu0  ;;  %9310 = vst [vmem:[#allocation156_spill] sm:$0xff] %v5249_v7  ;;  %780 = vmatpush.msrb.mxu3 %v4655_v20  ;;  %741 = vmatpush.msrb.mxu1 %v4661_v22  ;;  %v5287_v20 = vperm.slane %v5202_v57, 3 }
  0xaf   :  { %v350_v3 = vpop.f32.mrf.mxu1  ;;  %v473_v4 = vadd.f32 %v330_v2, %v309_v61  ;;  %721 = vmatpush.msrb.mxu0 %v4659_v21  ;;  %762 = vmatpush.msrb.mxu2 %v4677_v27 }
  0xb0   :  { %v474_v5 = vadd.f32 %v350_v3, %v310_v56  ;;  %781 = vmatpush.msrb.mxu3 %v4667_v24  ;;  %742 = vmatpush.msrb.mxu1 %v4673_v26  ;;  %v312_v23 = vadd.f32 %v5287_v20, %v299_v19  ;;  %v9312_v26 = vld [vmem:[#allocation15_spill] sm:$0xff] }
  0xb1   :  { %v3525_v8 = vmul.f32 -1.442695, %v473_v4  ;;  %722 = vmatpush.msrb.mxu0 %v4671_v25  ;;  %763 = vmatpush.msrb.mxu2 %v4689_v31  ;;  %v9311_v25 = vld [vmem:[#allocation14_spill] sm:$0xff] }
  0xb2   :  { %v3526_v9 = vmul.f32 -1.442695, %v474_v5  ;;  %782 = vmatpush.msrb.mxu3 %v4679_v28  ;;  %743 = vmatpush.msrb.mxu1 %v4685_v30  ;;  %v9314_v30 = vld [vmem:[#allocation17_spill] sm:$0xff] }
  0xb3   :  { %3592 = vpow2.f32 %v3525_v8  ;;  %723 = vmatpush.msrb.mxu0 %v4683_v29  ;;  %764 = vmatpush.msrb.mxu2 %v4701_v35  ;;  %v9313_v29 = vld [vmem:[#allocation16_spill] sm:$0xff] }
  0xb4   :  { %3594 = vpow2.f32 %v3526_v9  ;;  %783 = vmatpush.msrb.mxu3 %v4691_v32  ;;  %744 = vmatpush.msrb.mxu1 %v4697_v34  ;;  %v9316_v34 = vld [vmem:[#allocation19_spill] sm:$0xff] }
  0xb5   :  { %v370_v11 = vpop.f32.mrf.mxu2  ;;  %724 = vmatpush.msrb.mxu0 %v4695_v33  ;;  %765 = vmatpush.msrb.mxu2 %v4713_v39  ;;  %v9315_v33 = vld [vmem:[#allocation18_spill] sm:$0xff] }
  0xb6   :  { %v475_v12 = vadd.f32 %v370_v11, %v311_v10  ;;  %784 = vmatpush.msrb.mxu3 %v4703_v36  ;;  %745 = vmatpush.msrb.mxu1 %v4709_v38  ;;  %v390_v21 = vpop.f32.mrf.mxu3  ;;  %v9317_v36 = vld [vmem:[#allocation20_spill] sm:$0xff]  ;;  %v9319_v39 = vld [vmem:[#allocation22_spill] sm:$0xff] }
  0xb7   :  { %725 = vmatpush.msrb.mxu0 %v4707_v37  ;;  %766 = vmatpush.msrb.mxu2 %v4725_v43  ;;  %v476_v28 = vadd.f32 %v390_v21, %v312_v23  ;;  %v9318_v37 = vld [vmem:[#allocation21_spill] sm:$0xff]  ;;  %v9321_v43 = vld [vmem:[#allocation24_spill] sm:$0xff]  ;;  %v9324_v21 = vld [vmem:[#allocation27_spill] sm:$0xff] }
  0xb8   :  { %v3527_v14 = vmul.f32 -1.442695, %v475_v12  ;;  %785 = vmatpush.msrb.mxu3 %v4715_v40  ;;  %746 = vmatpush.msrb.mxu1 %v4721_v42  ;;  %v9320_v40 = vld [vmem:[#allocation23_spill] sm:$0xff]  ;;  %v9326_v23 = vld [vmem:[#allocation29_spill] sm:$0xff] }
  0xb9   :  { %v3593_v15 = vpop.eup %3592  ;;  %726 = vmatpush.msrb.mxu0 %v4719_v41  ;;  %767 = vmatpush.msrb.mxu2 %v4740_v48 }
  0xba   :  { %v3595_v16 = vpop.eup %3594  ;;  %v5275_v17 = vadd.f32 1.0, %v3593_v15  ;;  %3596 = vpow2.f32 %v3527_v14  ;;  %786 = vmatpush.msrb.mxu3 %v4727_v44  ;;  %747 = vmatpush.msrb.mxu1 %v4738_v47  ;;  %v9322_v44 = vld [vmem:[#allocation25_spill] sm:$0xff] }
  0xbb   :  { %v5279_v18 = vadd.f32 1.0, %v3595_v16  ;;  %727 = vmatpush.msrb.mxu0 %v4734_v46  ;;  %768 = vmatpush.msrb.mxu2 %v4751_v52 }
  0xbc   :  { %3598 = vrcp.f32 %v5275_v17  ;;  %787 = vmatpush.msrb.mxu3 %v4744_v49  ;;  %748 = vmatpush.msrb.mxu1 %v4749_v51  ;;  %v496_v42 = vand.u32 2147483648, %v5275_v17  ;;  %v494_v48 = vand.u32 2147483647, %v5275_v17  ;;  %v9323_v49 = vld [vmem:[#allocation26_spill] sm:$0xff]  ;;  %vm490_vm2 = vweird.f32 %v5275_v17 }
  0xbd   :  { %3600 = vrcp.f32 %v5279_v18  ;;  %728 = vmatpush.msrb.mxu0 %v4746_v50  ;;  %769 = vmatpush.msrb.mxu2 %v9314_v30  ;;  %v511_v46 = vand.u32 2147483648, %v5279_v18  ;;  %v509_v51 = vand.u32 2147483647, %v5279_v18  ;;  %vm505_vm3 = vweird.f32 %v5279_v18  ;;  %v9333_v30 = vld [vmem:[#allocation36_spill] sm:$0xff] }
  0xbe   :  { %788 = vmatpush.msrb.mxu3 %v9311_v25  ;;  %749 = vmatpush.msrb.mxu1 %v9313_v29  ;;  %v497_v59 = vor.u32 1.1754944e-38, %v496_v42  ;;  %vm495_vm5 = vcmp.eq.f32.partialorder %v494_v48, 8.507059e+37  ;;  %v9327_v25 = vld [vmem:[#allocation30_spill] sm:$0xff]  ;;  %v9332_v29 = vld [vmem:[#allocation35_spill] sm:$0xff]  ;;  %v9345_v42 = vld [vmem:[#allocation48_spill] sm:$0xff] }
  0xbf   :  { %729 = vmatpush.msrb.mxu0 %v9312_v26  ;;  %770 = vmatpush.msrb.mxu2 %v9318_v37  ;;  %v512_v63 = vor.u32 1.1754944e-38, %v511_v46  ;;  %vm510_vm7 = vcmp.eq.f32.partialorder %v509_v51, 8.507059e+37  ;;  %v9329_v26 = vld [vmem:[#allocation32_spill] sm:$0xff]  ;;  %v9340_v37 = vld [vmem:[#allocation43_spill] sm:$0xff]  ;;  %v9350_v48 = vld [vmem:[#allocation53_spill] sm:$0xff] }
  0xc0   :  { %v3597_v22 = vpop.eup %3596  ;;  %789 = vmatpush.msrb.mxu3 %v9315_v33  ;;  %750 = vmatpush.msrb.mxu1 %v9317_v36  ;;  %v9336_v33 = vld [vmem:[#allocation39_spill] sm:$0xff]  ;;  %v9339_v36 = vld [vmem:[#allocation42_spill] sm:$0xff]  ;;  %v9353_v51 = vld [vmem:[#allocation56_spill] sm:$0xff] }
  0xc1   :  { %v522_v24 = vadd.f32 1.0, %v3597_v22  ;;  %730 = vmatpush.msrb.mxu0 %v9316_v34  ;;  %771 = vmatpush.msrb.mxu2 %v9322_v44  ;;  %v9325_v22 = vld [vmem:[#allocation28_spill] sm:$0xff]  ;;  %v9347_v44 = vld [vmem:[#allocation50_spill] sm:$0xff]  ;;  %v9348_v46 = vld [vmem:[#allocation51_spill] sm:$0xff] }
  0xc2   :  { %v3599_v27 = vpop.eup %3598  ;;  %790 = vmatpush.msrb.mxu3 %v9319_v39  ;;  %751 = vmatpush.msrb.mxu1 %v9321_v43  ;;  %v9337_v34 = vld [vmem:[#allocation40_spill] sm:$0xff]  ;;  %v9342_v39 = vld [vmem:[#allocation45_spill] sm:$0xff] }
  0xc3   :  { %v3601_v31 = vpop.eup %3600  ;;  %v486_v32 = vmul.f32 %v3599_v27, %v5275_v17  ;;  %3602 = vrcp.f32 %v522_v24  ;;  %731 = vmatpush.msrb.mxu0 %v9320_v40  ;;  %vm491_vm0 = vweird.f32 %v3599_v27  ;;  %v534_v12 = vand.u32 2147483648, %v522_v24  ;;  %v9343_v40 = vld [vmem:[#allocation46_spill] sm:$0xff]  ;;  %v9346_v43 = vld [vmem:[#allocation49_spill] sm:$0xff] }
  0xc4   :  { %v501_v35 = vmul.f32 %v3601_v31, %v5279_v18  ;;  %3604 = vtanh.f32 %v476_v28  ;;  %791 = vmatpush.msrb.mxu3 %v9323_v49  ;;  %vm506_vm1 = vweird.f32 %v3601_v31  ;;  %vm492_vm4 = vmor %vm490_vm2, %vm491_vm0  ;;  %vm528_vm9 = vweird.f32 %v522_v24  ;;  %v9331_v28 = vld [vmem:[#allocation34_spill] sm:$0xff] }
  0xc5   :  { %v487_v38 = vsub.f32 1.0, %v486_v32  ;;  %vm507_vm6 = vmor %vm505_vm3, %vm506_vm1  ;;  %v532_v14 = vand.u32 2147483647, %v522_v24  ;;  %v535_v16 = vor.u32 1.1754944e-38, %v534_v12  ;;  %v9335_v32 = vld [vmem:[#allocation38_spill] sm:$0xff]  ;;  %v9370_v12 = vld [vmem:[#allocation73_spill] sm:$0xff] }
  0xc6   :  { %v502_v41 = vsub.f32 1.0, %v501_v35  ;;  %v9338_v35 = vld [vmem:[#allocation41_spill] sm:$0xff]  ;;  %v9351_v49 = vld [vmem:[#allocation54_spill] sm:$0xff] }
  0xc7   :  { %v488_v47 = vmul.f32 %v3599_v27, %v487_v38  ;;  %vm533_vm11 = vcmp.eq.f32.partialorder %v532_v14, 8.507059e+37  ;;  %v9341_v38 = vld [vmem:[#allocation44_spill] sm:$0xff]  ;;  %v9371_v14 = vld [vmem:[#allocation74_spill] sm:$0xff] }
  0xc8   :  { %v503_v50 = vmul.f32 %v3601_v31, %v502_v41  ;;  %v9344_v41 = vld [vmem:[#allocation47_spill] sm:$0xff] }
  0xc9   :  { %v3603_v52 = vpop.eup %3602  ;;  %v489_v56 = vadd.f32 %v3599_v27, %v488_v47  ;;  %v9349_v47 = vld [vmem:[#allocation52_spill] sm:$0xff] }
  0xca   :  { %v524_v57 = vmul.f32 %v3603_v52, %v522_v24  ;;  %v504_v61 = vadd.f32 %v3601_v31, %v503_v50  ;;  %v3605_v60 = vpop.eup %3604  ;;  %vm529_vm8 = vweird.f32 %v3603_v52  ;;  %v9328_v24 = vld [vmem:[#allocation31_spill] sm:$0xff] }
  0xcb   :  { %v493_v0 = vsel %vm492_vm4, %v3599_v27, %v489_v56  ;;  %vm530_vm10 = vmor %vm528_vm9, %vm529_vm8  ;;  %v9330_v27 = vld [vmem:[#allocation33_spill] sm:$0xff]  ;;  %v9352_v50 = vld [vmem:[#allocation55_spill] sm:$0xff] }
  0xcc   :  { %v525_v2 = vsub.f32 1.0, %v524_v57  ;;  %v498_v3 = vsel %vm495_vm5, %v497_v59, %v493_v0  ;;  %v508_v4 = vsel %vm507_vm6, %v3601_v31, %v504_v61  ;;  %v9334_v31 = vld [vmem:[#allocation37_spill] sm:$0xff]  ;;  %v9355_v56 = vld [vmem:[#allocation58_spill] sm:$0xff]  ;;  %v9356_v57 = vld [vmem:[#allocation59_spill] sm:$0xff] }
  0xcd   :  { %v513_v5 = vsel %vm510_vm7, %v512_v63, %v508_v4  ;;  %v517_v6 = vmul.f32 %v3605_v60, %v498_v3  ;;  %v9357_v59 = vld [vmem:[#allocation60_spill] sm:$0xff]  ;;  %v9358_v61 = vld [vmem:[#allocation61_spill] sm:$0xff]  ;;  %v9359_v63 = vld [vmem:[#allocation62_spill] sm:$0xff] }
  0xce   :  { %v526_v8 = vmul.f32 %v3603_v52, %v525_v2  ;;  %v516_v9 = vmul.f32 0.0, %v513_v5  ;;  %v9360_v0 = vld [vmem:[#allocation63_spill] sm:$0xff]  ;;  %v9361_v60 = vld [vmem:[#allocation64_spill] sm:$0xff]  ;;  %v9362_v2 = vld [vmem:[#allocation65_spill] sm:$0xff] }
  0xcf   :  { %v9363_v3 = vld [vmem:[#allocation66_spill] sm:$0xff]  ;;  %v9364_v4 = vld [vmem:[#allocation67_spill] sm:$0xff]  ;;  %v9365_v5 = vld [vmem:[#allocation68_spill] sm:$0xff] }
  0xd0   :  { %v5322_v10 = vadd.f32 %v517_v6, %v516_v9  ;;  %v527_v11 = vadd.f32 %v3603_v52, %v526_v8  ;;  %v9366_v6 = vld [vmem:[#allocation69_spill] sm:$0xff]  ;;  %v9367_v8 = vld [vmem:[#allocation70_spill] sm:$0xff]  ;;  %v9368_v9 = vld [vmem:[#allocation71_spill] sm:$0xff] }
  0xd2   :  { %3606 = vtanh.f32 %v5322_v10  ;;  %v531_v15 = vsel %vm530_vm10, %v3603_v52, %v527_v11  ;;  %v9354_v52 = vld [vmem:[#allocation57_spill] sm:$0xff]  ;;  %v9369_v11 = vld [vmem:[#allocation72_spill] sm:$0xff] }
  0xd3   :  { %v536_v18 = vsel %vm533_vm11, %v535_v16, %v531_v15  ;;  %v9372_v15 = vld [vmem:[#allocation75_spill] sm:$0xff]  ;;  %v9373_v16 = vld [vmem:[#allocation76_spill] sm:$0xff] }
  0xd8   :  { %v3607_v17 = vpop.eup %3606 }
  0xd9   :  { %v539_v19 = vmul.f32 %v3607_v17, %v536_v18  ;;  %v9374_v17 = vld [vmem:[#allocation77_spill] sm:$0xff]  ;;  %v9375_v18 = vld [vmem:[#allocation78_spill] sm:$0xff] }
  0xdb   :  { %556 = vmatmul.f32.vlgmr.msra.gmra.mxu0 %v539_v19  ;;  %576 = vmatmul.f32.vlgmr.msra.gmra.mxu1 %v539_v19 }
  0xdc   :  { %596 = vmatmul.f32.vlgmr.msra.gmra.mxu2 %v539_v19  ;;  %616 = vmatmul.f32.vlgmr.msra.gmra.mxu3 %v539_v19 }
  0xdd   :  { %796 = vmatpush.msra.mxu0 %v9324_v21  ;;  %816 = vmatpush.msra.mxu1 %v9325_v22  ;;  %v9377_v21 = vld [vmem:[#allocation80_spill] sm:$0xff]  ;;  %v9378_v22 = vld [vmem:[#allocation81_spill] sm:$0xff] }
  0xde   :  { %836 = vmatpush.msra.mxu2 %v9326_v23  ;;  %856 = vmatpush.msra.mxu3 %v9327_v25  ;;  %v9379_v23 = vld [vmem:[#allocation82_spill] sm:$0xff]  ;;  %v9380_v25 = vld [vmem:[#allocation83_spill] sm:$0xff] }
  0xdf   :  { %797 = vmatpush.msra.mxu0 %v9328_v24  ;;  %817 = vmatpush.msra.mxu1 %v9329_v26  ;;  %v9381_v24 = vld [vmem:[#allocation84_spill] sm:$0xff]  ;;  %v9382_v26 = vld [vmem:[#allocation85_spill] sm:$0xff] }
  0xe0   :  { %837 = vmatpush.msra.mxu2 %v9330_v27  ;;  %857 = vmatpush.msra.mxu3 %v9331_v28  ;;  %v9383_v27 = vld [vmem:[#allocation86_spill] sm:$0xff]  ;;  %v9384_v28 = vld [vmem:[#allocation87_spill] sm:$0xff] }
  0xe1   :  { %798 = vmatpush.msra.mxu0 %v9332_v29  ;;  %818 = vmatpush.msra.mxu1 %v9333_v30  ;;  %v9385_v29 = vld [vmem:[#allocation88_spill] sm:$0xff]  ;;  %v9386_v30 = vld [vmem:[#allocation89_spill] sm:$0xff] }
  0xe2   :  { %838 = vmatpush.msra.mxu2 %v9334_v31  ;;  %858 = vmatpush.msra.mxu3 %v9335_v32  ;;  %v9387_v31 = vld [vmem:[#allocation90_spill] sm:$0xff]  ;;  %v9388_v32 = vld [vmem:[#allocation91_spill] sm:$0xff] }
  0xe3   :  { %732 = vmatmul.f32.vlgmr.msrb.gmra.mxu0 %v539_v19  ;;  %752 = vmatmul.f32.vlgmr.msrb.gmra.mxu1 %v539_v19 }
  0xe4   :  { %772 = vmatmul.f32.vlgmr.msrb.gmra.mxu2 %v539_v19  ;;  %792 = vmatmul.f32.vlgmr.msrb.gmra.mxu3 %v539_v19  ;;  %v9376_v19 = vld [vmem:[#allocation79_spill] sm:$0xff] }
  0xe5   :  { %799 = vmatpush.msra.mxu0 %v9336_v33  ;;  %819 = vmatpush.msra.mxu1 %v9337_v34  ;;  %v9389_v33 = vld [vmem:[#allocation92_spill] sm:$0xff]  ;;  %v9390_v34 = vld [vmem:[#allocation93_spill] sm:$0xff] }
  0xe6   :  { %839 = vmatpush.msra.mxu2 %v9338_v35  ;;  %859 = vmatpush.msra.mxu3 %v9339_v36  ;;  %v9391_v35 = vld [vmem:[#allocation94_spill] sm:$0xff]  ;;  %v9392_v36 = vld [vmem:[#allocation95_spill] sm:$0xff] }
  0xe7   :  { %800 = vmatpush.msra.mxu0 %v9340_v37  ;;  %820 = vmatpush.msra.mxu1 %v9341_v38  ;;  %v9393_v37 = vld [vmem:[#allocation96_spill] sm:$0xff]  ;;  %v9394_v38 = vld [vmem:[#allocation97_spill] sm:$0xff] }
  0xe8   :  { %840 = vmatpush.msra.mxu2 %v9342_v39  ;;  %860 = vmatpush.msra.mxu3 %v9343_v40  ;;  %v9395_v39 = vld [vmem:[#allocation98_spill] sm:$0xff]  ;;  %v9396_v40 = vld [vmem:[#allocation99_spill] sm:$0xff] }
  0xe9   :  { %801 = vmatpush.msra.mxu0 %v9344_v41  ;;  %821 = vmatpush.msra.mxu1 %v9345_v42  ;;  %v9397_v41 = vld [vmem:[#allocation100_spill] sm:$0xff]  ;;  %v9398_v42 = vld [vmem:[#allocation101_spill] sm:$0xff] }
  0xea   :  { %841 = vmatpush.msra.mxu2 %v9346_v43  ;;  %861 = vmatpush.msra.mxu3 %v9347_v44  ;;  %v9399_v43 = vld [vmem:[#allocation102_spill] sm:$0xff]  ;;  %v9400_v44 = vld [vmem:[#allocation103_spill] sm:$0xff] }
  0xeb   :  { %802 = vmatpush.msra.mxu0 %v9348_v46  ;;  %822 = vmatpush.msra.mxu1 %v9349_v47  ;;  %v9401_v46 = vld [vmem:[#allocation104_spill] sm:$0xff]  ;;  %v9402_v47 = vld [vmem:[#allocation105_spill] sm:$0xff] }
  0xec   :  { %842 = vmatpush.msra.mxu2 %v9350_v48  ;;  %862 = vmatpush.msra.mxu3 %v9351_v49  ;;  %v9403_v48 = vld [vmem:[#allocation106_spill] sm:$0xff]  ;;  %v9404_v49 = vld [vmem:[#allocation107_spill] sm:$0xff] }
  0xed   :  { %803 = vmatpush.msra.mxu0 %v9352_v50  ;;  %823 = vmatpush.msra.mxu1 %v9353_v51  ;;  %v9405_v50 = vld [vmem:[#allocation108_spill] sm:$0xff]  ;;  %v9406_v51 = vld [vmem:[#allocation109_spill] sm:$0xff] }
  0xee   :  { %843 = vmatpush.msra.mxu2 %v9354_v52  ;;  %863 = vmatpush.msra.mxu3 %v9355_v56  ;;  %v9407_v52 = vld [vmem:[#allocation110_spill] sm:$0xff]  ;;  %v9408_v56 = vld [vmem:[#allocation111_spill] sm:$0xff] }
  0xef   :  { %804 = vmatpush.msra.mxu0 %v9356_v57  ;;  %824 = vmatpush.msra.mxu1 %v9357_v59  ;;  %v9409_v57 = vld [vmem:[#allocation112_spill] sm:$0xff]  ;;  %v9410_v59 = vld [vmem:[#allocation113_spill] sm:$0xff] }
  0xf0   :  { %844 = vmatpush.msra.mxu2 %v9358_v61  ;;  %864 = vmatpush.msra.mxu3 %v9359_v63  ;;  %v9411_v61 = vld [vmem:[#allocation114_spill] sm:$0xff]  ;;  %v9412_v63 = vld [vmem:[#allocation115_spill] sm:$0xff] }
  0xf1   :  { %805 = vmatpush.msra.mxu0 %v9360_v0  ;;  %825 = vmatpush.msra.mxu1 %v9361_v60  ;;  %v9413_v0 = vld [vmem:[#allocation116_spill] sm:$0xff]  ;;  %v9414_v60 = vld [vmem:[#allocation117_spill] sm:$0xff] }
  0xf2   :  { %845 = vmatpush.msra.mxu2 %v9362_v2  ;;  %865 = vmatpush.msra.mxu3 %v9363_v3  ;;  %v9415_v2 = vld [vmem:[#allocation118_spill] sm:$0xff]  ;;  %v9416_v3 = vld [vmem:[#allocation119_spill] sm:$0xff] }
  0xf3   :  { %806 = vmatpush.msra.mxu0 %v9364_v4  ;;  %826 = vmatpush.msra.mxu1 %v9365_v5  ;;  %v9417_v4 = vld [vmem:[#allocation120_spill] sm:$0xff]  ;;  %v9418_v5 = vld [vmem:[#allocation121_spill] sm:$0xff] }
  0xf4   :  { %846 = vmatpush.msra.mxu2 %v9366_v6  ;;  %866 = vmatpush.msra.mxu3 %v9367_v8  ;;  %v9419_v6 = vld [vmem:[#allocation122_spill] sm:$0xff]  ;;  %v9420_v8 = vld [vmem:[#allocation123_spill] sm:$0xff] }
  0xf5   :  { %807 = vmatpush.msra.mxu0 %v9368_v9  ;;  %827 = vmatpush.msra.mxu1 %v9369_v11  ;;  %v9421_v9 = vld [vmem:[#allocation124_spill] sm:$0xff]  ;;  %v9422_v11 = vld [vmem:[#allocation125_spill] sm:$0xff] }
  0xf6   :  { %847 = vmatpush.msra.mxu2 %v9370_v12  ;;  %867 = vmatpush.msra.mxu3 %v9371_v14  ;;  %v9423_v12 = vld [vmem:[#allocation126_spill] sm:$0xff]  ;;  %v9424_v14 = vld [vmem:[#allocation127_spill] sm:$0xff] }
  0xf7   :  { %808 = vmatpush.msra.mxu0 %v9372_v15  ;;  %828 = vmatpush.msra.mxu1 %v9373_v16  ;;  %v9425_v15 = vld [vmem:[#allocation128_spill] sm:$0xff]  ;;  %v9426_v16 = vld [vmem:[#allocation129_spill] sm:$0xff] }
  0xf8   :  { %848 = vmatpush.msra.mxu2 %v9374_v17  ;;  %868 = vmatpush.msra.mxu3 %v9375_v18  ;;  %v9427_v17 = vld [vmem:[#allocation130_spill] sm:$0xff]  ;;  %v9428_v18 = vld [vmem:[#allocation131_spill] sm:$0xff] }
  0xf9   :  { %809 = vmatpush.msra.mxu0 %v9376_v19  ;;  %829 = vmatpush.msra.mxu1 %v9377_v21  ;;  %v9429_v19 = vld [vmem:[#allocation132_spill] sm:$0xff]  ;;  %v9430_v21 = vld [vmem:[#allocation133_spill] sm:$0xff] }
  0xfa   :  { %849 = vmatpush.msra.mxu2 %v9378_v22  ;;  %869 = vmatpush.msra.mxu3 %v9379_v23  ;;  %v9431_v22 = vld [vmem:[#allocation134_spill] sm:$0xff]  ;;  %v9432_v23 = vld [vmem:[#allocation135_spill] sm:$0xff] }
  0xfb   :  { %810 = vmatpush.msra.mxu0 %v9380_v25  ;;  %830 = vmatpush.msra.mxu1 %v9381_v24  ;;  %v9433_v25 = vld [vmem:[#allocation136_spill] sm:$0xff]  ;;  %v9434_v24 = vld [vmem:[#allocation137_spill] sm:$0xff] }
  0xfc   :  { %850 = vmatpush.msra.mxu2 %v9382_v26  ;;  %870 = vmatpush.msra.mxu3 %v9383_v27  ;;  %v9435_v26 = vld [vmem:[#allocation138_spill] sm:$0xff]  ;;  %v9436_v27 = vld [vmem:[#allocation139_spill] sm:$0xff] }
  0xfd   :  { %811 = vmatpush.msra.mxu0 %v9384_v28  ;;  %831 = vmatpush.msra.mxu1 %v9385_v29  ;;  %v9437_v28 = vld [vmem:[#allocation140_spill] sm:$0xff]  ;;  %v9438_v29 = vld [vmem:[#allocation141_spill] sm:$0xff] }
  0xfe   :  { %851 = vmatpush.msra.mxu2 %v9386_v30  ;;  %871 = vmatpush.msra.mxu3 %v9387_v31  ;;  %v9439_v30 = vld [vmem:[#allocation142_spill] sm:$0xff]  ;;  %v9440_v31 = vld [vmem:[#allocation143_spill] sm:$0xff] }
  0xff   :  { %943 = vmatpush.msrb.mxu0 %v9388_v32  ;;  %963 = vmatpush.msrb.mxu1 %v9389_v33  ;;  %v9441_v32 = vld [vmem:[#allocation144_spill] sm:$0xff]  ;;  %v9442_v33 = vld [vmem:[#allocation145_spill] sm:$0xff] }
 0x100   :  { %983 = vmatpush.msrb.mxu2 %v9390_v34  ;;  %1003 = vmatpush.msrb.mxu3 %v9391_v35  ;;  %v9443_v34 = vld [vmem:[#allocation146_spill] sm:$0xff]  ;;  %v9444_v35 = vld [vmem:[#allocation147_spill] sm:$0xff] }
 0x101   :  { %944 = vmatpush.msrb.mxu0 %v9392_v36  ;;  %964 = vmatpush.msrb.mxu1 %v9393_v37  ;;  %v9445_v36 = vld [vmem:[#allocation148_spill] sm:$0xff]  ;;  %v9446_v37 = vld [vmem:[#allocation149_spill] sm:$0xff] }
 0x102   :  { %984 = vmatpush.msrb.mxu2 %v9394_v38  ;;  %1004 = vmatpush.msrb.mxu3 %v9395_v39  ;;  %v9447_v38 = vld [vmem:[#allocation150_spill] sm:$0xff]  ;;  %v410_v39 = vpop.f32.mrf.mxu0 }
 0x103   :  { %945 = vmatpush.msrb.mxu0 %v9396_v40  ;;  %965 = vmatpush.msrb.mxu1 %v9397_v41  ;;  %v430_v40 = vpop.f32.mrf.mxu1  ;;  %v280_v41 = vld [vmem:[%s8492_s8] sm:$0xf] }
 0x104   :  { %985 = vmatpush.msrb.mxu2 %v9398_v42  ;;  %1005 = vmatpush.msrb.mxu3 %v9399_v43  ;;  %v450_v42 = vpop.f32.mrf.mxu2  ;;  %v5456_v43 = vperm.slane %v280_v41, 0 }
 0x105   :  { %946 = vmatpush.msrb.mxu0 %v9400_v44  ;;  %966 = vmatpush.msrb.mxu1 %v9401_v46  ;;  %v5458_v44 = vperm.slane %v280_v41, 1 }
 0x106   :  { %986 = vmatpush.msrb.mxu2 %v9402_v47  ;;  %1006 = vmatpush.msrb.mxu3 %v9403_v48  ;;  %9448 = vst [vmem:[#allocation14_spill] sm:$0xff] %v5456_v43 }
 0x107   :  { %947 = vmatpush.msrb.mxu0 %v9404_v49  ;;  %967 = vmatpush.msrb.mxu1 %v9405_v50  ;;  %9449 = vst [vmem:[#allocation15_spill] sm:$0xff] %v5458_v44  ;;  %v470_v49 = vpop.f32.mrf.mxu3  ;;  %v9450_v50 = vld [vmem:[#allocation151_spill] sm:$0xff] }
 0x108   :  { %987 = vmatpush.msrb.mxu2 %v9406_v51  ;;  %1007 = vmatpush.msrb.mxu3 %v9407_v52  ;;  %v9451_v52 = vld [vmem:[#allocation152_spill] sm:$0xff] }
 0x109   :  { %948 = vmatpush.msrb.mxu0 %v9408_v56  ;;  %968 = vmatpush.msrb.mxu1 %v9409_v57 }
 0x10a   :  { %988 = vmatpush.msrb.mxu2 %v9410_v59  ;;  %1008 = vmatpush.msrb.mxu3 %v9411_v61  ;;  %v5464_v61 = vperm.slane %v280_v41, 2 }
 0x10b   :  { %949 = vmatpush.msrb.mxu0 %v9412_v63  ;;  %969 = vmatpush.msrb.mxu1 %v9413_v0 }
 0x10c   :  { %989 = vmatpush.msrb.mxu2 %v9414_v60  ;;  %1009 = vmatpush.msrb.mxu3 %v9415_v2  ;;  %9452 = vst [vmem:[#allocation16_spill] sm:$0xff] %v5464_v61 }
 0x10d   :  { %950 = vmatpush.msrb.mxu0 %v9416_v3  ;;  %970 = vmatpush.msrb.mxu1 %v9417_v4 }
 0x10e   :  { %990 = vmatpush.msrb.mxu2 %v9418_v5  ;;  %1010 = vmatpush.msrb.mxu3 %v9419_v6 }
 0x10f   :  { %951 = vmatpush.msrb.mxu0 %v9420_v8  ;;  %971 = vmatpush.msrb.mxu1 %v9421_v9 }
 0x110   :  { %991 = vmatpush.msrb.mxu2 %v9422_v11  ;;  %1011 = vmatpush.msrb.mxu3 %v9423_v12 }
 0x111   :  { %952 = vmatpush.msrb.mxu0 %v9424_v14  ;;  %972 = vmatpush.msrb.mxu1 %v9425_v15 }
 0x112   :  { %992 = vmatpush.msrb.mxu2 %v9426_v16  ;;  %1012 = vmatpush.msrb.mxu3 %v9427_v17 }
 0x113   :  { %953 = vmatpush.msrb.mxu0 %v9428_v18  ;;  %973 = vmatpush.msrb.mxu1 %v9429_v19 }
 0x114   :  { %993 = vmatpush.msrb.mxu2 %v9430_v21  ;;  %1013 = vmatpush.msrb.mxu3 %v9431_v22 }
 0x115   :  { %954 = vmatpush.msrb.mxu0 %v9432_v23  ;;  %974 = vmatpush.msrb.mxu1 %v9433_v25  ;;  %v5471_v25 = vperm.slane %v280_v41, 3 }
 0x116   :  { %994 = vmatpush.msrb.mxu2 %v9434_v24  ;;  %1014 = vmatpush.msrb.mxu3 %v9435_v26 }
 0x117   :  { %955 = vmatpush.msrb.mxu0 %v9436_v27  ;;  %975 = vmatpush.msrb.mxu1 %v9437_v28  ;;  %9453 = vst [vmem:[#allocation17_spill] sm:$0xff] %v5471_v25 }
 0x118   :  { %995 = vmatpush.msrb.mxu2 %v9438_v29  ;;  %1015 = vmatpush.msrb.mxu3 %v9439_v30 }
 0x119   :  { %956 = vmatpush.msrb.mxu0 %v9440_v31  ;;  %976 = vmatpush.msrb.mxu1 %v9441_v32 }
 0x11a   :  { %996 = vmatpush.msrb.mxu2 %v9442_v33  ;;  %1016 = vmatpush.msrb.mxu3 %v9443_v34 }
 0x11b   :  { %957 = vmatpush.msrb.mxu0 %v9444_v35  ;;  %977 = vmatpush.msrb.mxu1 %v9445_v36 }
 0x11c   :  { %997 = vmatpush.msrb.mxu2 %v9446_v37  ;;  %1017 = vmatpush.msrb.mxu3 %v9447_v38 }
 0x11d   :  { %958 = vmatpush.msrb.mxu0 %v5193_v54  ;;  %978 = vmatpush.msrb.mxu1 %v5195_v55  ;;  %v706_v55 = vpop.permute.xlu0 %705 }
 0x11e   :  { %998 = vmatpush.msrb.mxu2 %v5197_v58  ;;  %1018 = vmatpush.msrb.mxu3 %v5206_v62  ;;  %v708_v51 = vmul.f32 %v706_v55, %v9450_v50  ;;  %v709_v56 = vmul.f32 %v706_v55, %v9451_v52  ;;  %v710_v15 = vmul.f32 %v706_v55, %v5236_v1 }
 0x11f   :  { %v711_v26 = vmul.f32 %v706_v55, %v5269_v13 }
 0x120   :  { %v712_v0 = vadd.f32 %v708_v51, %v5217_v53  ;;  %v713_v60 = vadd.f32 %v709_v56, %v5222_v45  ;;  %v714_v22 = vadd.f32 %v710_v15, %v5249_v7 }
 0x121   :  { %v715_v36 = vadd.f32 %v711_v26, %v5287_v20 }
 0x158   :  { %v557_v46 = vpop.f32.mrf.mxu0  ;;  %v577_v47 = vpop.f32.mrf.mxu1 }
 0x159   :  { %v558_v54 = vadd.f32 %v557_v46, %v410_v39  ;;  %v578_v48 = vadd.f32 %v577_v47, %v430_v40 }
 0x15b   :  { %v629_v58 = vadd.f32 %v5456_v43, %v558_v54  ;;  %v630_v62 = vadd.f32 %v5458_v44, %v578_v48 }
 0x15d   :  { %v3528_v57 = vmul.f32 -1.442695, %v629_v58  ;;  %v3529_v59 = vmul.f32 -1.442695, %v630_v62 }
 0x15f   :  { %3608 = vpow2.f32 %v3528_v57  ;;  %v597_v63 = vpop.f32.mrf.mxu2  ;;  %v617_v14 = vpop.f32.mrf.mxu3 }
 0x160   :  { %3610 = vpow2.f32 %v3529_v59  ;;  %v598_v2 = vadd.f32 %v597_v63, %v450_v42  ;;  %v733_v3 = vpop.f32.mrf.mxu0  ;;  %v753_v4 = vpop.f32.mrf.mxu1  ;;  %v618_v23 = vadd.f32 %v617_v14, %v470_v49 }
 0x161   :  { %v876_v5 = vadd.f32 %v733_v3, %v712_v0  ;;  %v877_v6 = vadd.f32 %v753_v4, %v713_v60 }
 0x162   :  { %v631_v8 = vadd.f32 %v5464_v61, %v598_v2  ;;  %v632_v34 = vadd.f32 %v5471_v25, %v618_v23 }
 0x163   :  { %v3532_v9 = vmul.f32 -1.442695, %v876_v5  ;;  %v3533_v11 = vmul.f32 -1.442695, %v877_v6 }
 0x164   :  { %v3530_v12 = vmul.f32 -1.442695, %v631_v8 }
 0x165   :  { %v3609_v16 = vpop.eup %3608  ;;  %3612 = vpow2.f32 %v3532_v9 }
 0x166   :  { %v3611_v17 = vpop.eup %3610  ;;  %v639_v18 = vadd.f32 1.0, %v3609_v16  ;;  %3614 = vpow2.f32 %v3530_v12 }
 0x167   :  { %v640_v19 = vadd.f32 1.0, %v3611_v17  ;;  %3616 = vpow2.f32 %v3533_v11  ;;  %v773_v21 = vpop.f32.mrf.mxu2  ;;  %v793_v37 = vpop.f32.mrf.mxu3 }
 0x168   :  { %3618 = vrcp.f32 %v639_v18  ;;  %v878_v24 = vadd.f32 %v773_v21, %v714_v22  ;;  %v650_v40 = vand.u32 2147483647, %v639_v18  ;;  %v652_v41 = vand.u32 2147483648, %v639_v18 }
 0x169   :  { %3620 = vrcp.f32 %v640_v19  ;;  %v667_v46 = vand.u32 2147483648, %v640_v19  ;;  %v665_v47 = vand.u32 2147483647, %v640_v19  ;;  %v879_v48 = vadd.f32 %v793_v37, %v715_v36 }
 0x16a   :  { %v3534_v32 = vmul.f32 -1.442695, %v878_v24  ;;  %vm661_vm12 = vweird.f32 %v640_v19  ;;  %vm646_vm13 = vweird.f32 %v639_v18  ;;  %vm5485_vm15 = vcmp.eq.f32.partialorder %v650_v40, 8.507059e+37 }
 0x16b   :  { %v3613_v27 = vpop.eup %3612  ;;  %v653_v62 = vor.u32 1.1754944e-38, %v652_v41  ;;  %v668_v57 = vor.u32 1.1754944e-38, %v667_v46  ;;  %vm5489_vm1 = vcmp.eq.f32.partialorder %v665_v47, 8.507059e+37 }
 0x16c   :  { %v3615_v28 = vpop.eup %3614  ;;  %v5474_v29 = vadd.f32 1.0, %v3613_v27 }
 0x16d   :  { %v3617_v30 = vpop.eup %3616  ;;  %v5476_v31 = vadd.f32 1.0, %v3615_v28 }
 0x16e   :  { %v3619_v33 = vpop.eup %3618  ;;  %3622 = vrcp.f32 %v5474_v29  ;;  %v5480_v35 = vadd.f32 1.0, %v3617_v30  ;;  %vm893_vm2 = vweird.f32 %v5474_v29  ;;  %v897_v5 = vand.u32 2147483647, %v5474_v29 }
 0x16f   :  { %v3621_v38 = vpop.eup %3620  ;;  %v642_v39 = vmul.f32 %v3619_v33, %v639_v18  ;;  %3624 = vrcp.f32 %v5476_v31  ;;  %vm647_vm14 = vweird.f32 %v3619_v33  ;;  %v899_v6 = vand.u32 2147483648, %v5474_v29 }
 0x170   :  { %v657_v42 = vmul.f32 %v3621_v38, %v640_v19  ;;  %3626 = vrcp.f32 %v5480_v35  ;;  %vm662_vm0 = vweird.f32 %v3621_v38  ;;  %vm648_vm3 = vmor %vm646_vm13, %vm647_vm14  ;;  %vm684_vm4 = vweird.f32 %v5476_v31 }
 0x171   :  { %v643_v54 = vsub.f32 1.0, %v642_v39  ;;  %3628 = vpow2.f32 %v3534_v32  ;;  %vm663_vm5 = vmor %vm661_vm12, %vm662_vm0  ;;  %v914_v27 = vand.u32 2147483648, %v5480_v35  ;;  %vm908_vm8 = vweird.f32 %v5480_v35 }
 0x172   :  { %v658_v55 = vsub.f32 1.0, %v657_v42  ;;  %3630 = vtanh.f32 %v632_v34  ;;  %vm898_vm10 = vcmp.eq.f32.partialorder %v897_v5, 8.507059e+37  ;;  %v900_v36 = vor.u32 1.1754944e-38, %v899_v6  ;;  %v5558_v5 = vld [vmem:[#allocation4 + $0x1f0] sm:$0xff]  ;;  %v5561_v6 = vld [vmem:[#allocation4 + $0x1f8] sm:$0xff] }
 0x173   :  { %v644_v49 = vmul.f32 %v3619_v33, %v643_v54  ;;  %3632 = vtanh.f32 %v879_v48  ;;  %v690_v40 = vand.u32 2147483648, %v5476_v31  ;;  %v915_v41 = vor.u32 1.1754944e-38, %v914_v27  ;;  %v3538_v48 = vld [vmem:[%s8485_s1 + $0x10] sm:$0xff] }
 0x174   :  { %v3623_v51 = vpop.eup %3622  ;;  %v659_v56 = vmul.f32 %v3621_v38, %v658_v55  ;;  %1099 = vperm.xlu1 %3589, %v3538_v48   ;;  %v5598_v27 = vld [vmem:[#allocation4 + $0x190] sm:$0xff]  ;;  %v5653_v48 = vld [vmem:[#allocation4 + $0x118] sm:$0xff] }
 0x175   :  { %v5493_v63 = vpop.eup %3624  ;;  %v645_v0 = vadd.f32 %v3619_v33, %v644_v49  ;;  %v889_v60 = vmul.f32 %v3623_v51, %v5474_v29  ;;  %vm894_vm6 = vweird.f32 %v3623_v51  ;;  %v688_v29 = vand.u32 2147483647, %v5476_v31  ;;  %9461 = vst [vmem:[#allocation19_spill] sm:$0xff] %v5653_v48 }
 0x176   :  { %v3627_v2 = vpop.eup %3626  ;;  %v680_v3 = vmul.f32 %v5493_v63, %v5476_v31  ;;  %v660_v4 = vadd.f32 %v3621_v38, %v659_v56  ;;  %vm895_vm9 = vmor %vm893_vm2, %vm894_vm6  ;;  %vm685_vm11 = vweird.f32 %v5493_v63 }
 0x177   :  { %v3629_v8 = vpop.eup %3628  ;;  %v649_v9 = vsel %vm648_vm3, %v3619_v33, %v645_v0  ;;  %v890_v11 = vsub.f32 1.0, %v889_v60  ;;  %v904_v12 = vmul.f32 %v3627_v2, %v5480_v35  ;;  %vm909_vm7 = vweird.f32 %v3627_v2  ;;  %vm686_vm14 = vmor %vm684_vm4, %vm685_vm11 }
 0x178   :  { %v3631_v14 = vpop.eup %3630  ;;  %v681_v15 = vsub.f32 1.0, %v680_v3  ;;  %v654_v16 = vsel %vm5485_vm15, %v653_v62, %v649_v9  ;;  %v664_v17 = vsel %vm663_vm5, %v3621_v38, %v660_v4  ;;  %v5509_v18 = vadd.f32 1.0, %v3629_v8  ;;  %vm910_vm12 = vmor %vm908_vm8, %vm909_vm7  ;;  %v5551_v3 = vld [vmem:[#allocation4 + $0x1e8] sm:$0xff]  ;;  %v5566_v9 = vld [vmem:[#allocation4 + $0x1c0] sm:$0xff] }
 0x179   :  { %v669_v21 = vsel %vm5489_vm1, %v668_v57, %v664_v17  ;;  %v673_v22 = vmul.f32 %v3631_v14, %v654_v16  ;;  %v905_v23 = vsub.f32 1.0, %v904_v12  ;;  %v891_v24 = vmul.f32 %v3623_v51, %v890_v11  ;;  %v3633_v28 = vpop.eup %3632  ;;  %v5569_v11 = vld [vmem:[#allocation4 + $0x1c8] sm:$0xff]  ;;  %v5575_v16 = vld [vmem:[#allocation4 + $0x1d8] sm:$0xff]  ;;  %v5578_v17 = vld [vmem:[#allocation4 + $0x1a0] sm:$0xff] }
 0x17a   :  { %v682_v19 = vmul.f32 %v5493_v63, %v681_v15  ;;  %v672_v26 = vmul.f32 0.0, %v669_v21  ;;  %3634 = vrcp.f32 %v5509_v18  ;;  %v912_v33 = vand.u32 2147483647, %v5480_v35  ;;  %v5572_v15 = vld [vmem:[#allocation4 + $0x1d0] sm:$0xff]  ;;  %v5689_v4 = vld [vmem:[#allocation4 + $0xb8] sm:$0xff] }
 0x17b   :  { %v906_v30 = vmul.f32 %v3627_v2, %v905_v23  ;;  %v892_v32 = vadd.f32 %v3623_v51, %v891_v24  ;;  %v691_v62 = vor.u32 1.1754944e-38, %v690_v40  ;;  %vm689_vm15 = vcmp.eq.f32.partialorder %v688_v29, 8.507059e+37  ;;  %v5587_v23 = vld [vmem:[#allocation4 + $0x1b8] sm:$0xff]  ;;  %v5644_v29 = vld [vmem:[#allocation4 + $0x100] sm:$0xff]  ;;  %9473 = vst [vmem:[#allocation31_spill] sm:$0xff] %v5689_v4 }
 0x17c   :  { %v5517_v34 = vadd.f32 %v673_v22, %v672_v26  ;;  %v683_v39 = vadd.f32 %v5493_v63, %v682_v19  ;;  %vm913_vm13 = vcmp.eq.f32.partialorder %v912_v33, 8.507059e+37  ;;  %vm931_vm1 = vweird.f32 %v5509_v18  ;;  %v5584_v22 = vld [vmem:[#allocation4 + $0x1b0] sm:$0xff]  ;;  %v5592_v19 = vld [vmem:[#allocation4 + $0x180] sm:$0xff]  ;;  %v5595_v26 = vld [vmem:[#allocation4 + $0x188] sm:$0xff] }
 0x17d   :  { %v896_v37 = vsel %vm895_vm9, %v3623_v51, %v892_v32  ;;  %v907_v38 = vadd.f32 %v3627_v2, %v906_v30  ;;  %v5608_v30 = vld [vmem:[#allocation4 + $0x160] sm:$0xff]  ;;  %v5611_v32 = vld [vmem:[#allocation4 + $0x168] sm:$0xff]  ;;  %v5614_v33 = vld [vmem:[#allocation4 + $0x170] sm:$0xff] }
 0x17e   :  { %3636 = vtanh.f32 %v5517_v34  ;;  %v901_v42 = vsel %vm898_vm10, %v900_v36, %v896_v37  ;;  %v687_v58 = vsel %vm686_vm14, %v5493_v63, %v683_v39  ;;  %v935_v63 = vand.u32 2147483647, %v5509_v18  ;;  %v5617_v36 = vld [vmem:[#allocation4 + $0x178] sm:$0xff]  ;;  %v5620_v37 = vld [vmem:[#allocation4 + $0x140] sm:$0xff]  ;;  %v5626_v39 = vld [vmem:[#allocation4 + $0x150] sm:$0xff] }
 0x17f   :  { %v911_v35 = vsel %vm910_vm12, %v3627_v2, %v907_v38  ;;  %v920_v46 = vmul.f32 %v3633_v28, %v901_v42  ;;  %v692_v59 = vsel %vm689_vm15, %v691_v62, %v687_v58  ;;  %v5548_v2 = vld [vmem:[#allocation4 + $0x1e0] sm:$0xff]  ;;  %v5601_v28 = vld [vmem:[#allocation4 + $0x198] sm:$0xff]  ;;  %v5623_v38 = vld [vmem:[#allocation4 + $0x148] sm:$0xff] }
 0x180   :  { %v3635_v47 = vpop.eup %3634  ;;  %v916_v54 = vsel %vm913_vm13, %v915_v41, %v911_v35  ;;  %vm936_vm3 = vcmp.eq.f32.partialorder %v935_v63, 8.507059e+37  ;;  %v5629_v40 = vld [vmem:[#allocation4 + $0x158] sm:$0xff]  ;;  %v5632_v41 = vld [vmem:[#allocation4 + $0x120] sm:$0xff]  ;;  %v5635_v42 = vld [vmem:[#allocation4 + $0x128] sm:$0xff] }
 0x181   :  { %v927_v55 = vmul.f32 %v3635_v47, %v5509_v18  ;;  %v919_v49 = vmul.f32 %v916_v54, %v5322_v10  ;;  %vm932_vm0 = vweird.f32 %v3635_v47  ;;  %v937_v10 = vand.u32 2147483648, %v5509_v18  ;;  %v5581_v18 = vld [vmem:[#allocation4 + $0x1a8] sm:$0xff]  ;;  %v5638_v35 = vld [vmem:[#allocation4 + $0x130] sm:$0xff]  ;;  %v5665_v62 = vld [vmem:[#allocation4 + $0xf8] sm:$0xff] }
 0x182   :  { %vm5554_vm2 = vmor %vm931_vm1, %vm932_vm0  ;;  %v5650_v54 = vld [vmem:[#allocation4 + $0x110] sm:$0xff]  ;;  %9465 = vst [vmem:[#allocation23_spill] sm:$0xff] %v5665_v62 }
 0x183   :  { %v928_v51 = vsub.f32 1.0, %v927_v55  ;;  %v5536_v56 = vadd.f32 %v920_v46, %v919_v49  ;;  %v938_v14 = vor.u32 1.1754944e-38, %v937_v10  ;;  %v5641_v46 = vld [vmem:[#allocation4 + $0x138] sm:$0xff]  ;;  %9460 = vst [vmem:[#allocation18_spill] sm:$0xff] %v5650_v54  ;;  %v5656_v55 = vld [vmem:[#allocation4 + $0xe0] sm:$0xff]  ;;  %v5659_v49 = vld [vmem:[#allocation4 + $0xe8] sm:$0xff] }
 0x184   :  { %v3637_v57 = vpop.eup %3636  ;;  %9462 = vst [vmem:[#allocation20_spill] sm:$0xff] %v5656_v55  ;;  %v5662_v58 = vld [vmem:[#allocation4 + $0xf0] sm:$0xff]  ;;  %v5683_v10 = vld [vmem:[#allocation4 + $0xa8] sm:$0xff] }
 0x185   :  { %v929_v31 = vmul.f32 %v3635_v47, %v928_v51  ;;  %v5538_v0 = vmul.f32 %v3637_v57, %v692_v59  ;;  %3638 = vtanh.f32 %v5536_v56  ;;  %9463 = vst [vmem:[#allocation21_spill] sm:$0xff] %v5659_v49  ;;  %v5668_v51 = vld [vmem:[#allocation4 + $0xc0] sm:$0xff]  ;;  %v5671_v57 = vld [vmem:[#allocation4 + $0xc8] sm:$0xff]  ;;  %v5674_v59 = vld [vmem:[#allocation4 + $0xd0] sm:$0xff] }
 0x186   :  { %9464 = vst [vmem:[#allocation22_spill] sm:$0xff] %v5662_v58  ;;  %v5686_v63 = vld [vmem:[#allocation4 + $0xb0] sm:$0xff] }
 0x187   :  { %v930_v60 = vadd.f32 %v3635_v47, %v929_v31  ;;  %812 = vmatmul.f32.vlgmr.msra.gmra.mxu0 %v5538_v0  ;;  %832 = vmatmul.f32.vlgmr.msra.gmra.mxu1 %v5538_v0  ;;  %9466 = vst [vmem:[#allocation24_spill] sm:$0xff] %v5668_v51  ;;  %v5677_v31 = vld [vmem:[#allocation4 + $0xd8] sm:$0xff] }
 0x188   :  { %852 = vmatmul.f32.vlgmr.msra.gmra.mxu2 %v5538_v0  ;;  %872 = vmatmul.f32.vlgmr.msra.gmra.mxu3 %v5538_v0  ;;  %9467 = vst [vmem:[#allocation25_spill] sm:$0xff] %v5671_v57 }
 0x189   :  { %1110 = vmatpush.msra.mxu0 %v5548_v2  ;;  %1130 = vmatpush.msra.mxu1 %v5551_v3  ;;  %v934_v8 = vsel %vm5554_vm2, %v3635_v47, %v930_v60  ;;  %v5647_v47 = vld [vmem:[#allocation4 + $0x108] sm:$0xff]  ;;  %9468 = vst [vmem:[#allocation26_spill] sm:$0xff] %v5674_v59  ;;  %v5680_v60 = vld [vmem:[#allocation4 + $0xa0] sm:$0xff] }
 0x18a   :  { %1150 = vmatpush.msra.mxu2 %v5558_v5  ;;  %1170 = vmatpush.msra.mxu3 %v5561_v6  ;;  %v939_v21 = vsel %vm936_vm3, %v938_v14, %v934_v8  ;;  %9469 = vst [vmem:[#allocation27_spill] sm:$0xff] %v5677_v31  ;;  %v5692_v8 = vld [vmem:[#allocation4 + $0x80] sm:$0xff]  ;;  %v5698_v14 = vld [vmem:[#allocation4 + $0x90] sm:$0xff] }
 0x18b   :  { %1111 = vmatpush.msra.mxu0 %v5566_v9  ;;  %1131 = vmatpush.msra.mxu1 %v5569_v11  ;;  %v3639_v12 = vpop.eup %3638  ;;  %9470 = vst [vmem:[#allocation28_spill] sm:$0xff] %v5680_v60 }
 0x18c   :  { %1151 = vmatpush.msra.mxu2 %v5572_v15  ;;  %1171 = vmatpush.msra.mxu3 %v5575_v16  ;;  %v5590_v24 = vmul.f32 %v3639_v12, %v939_v21  ;;  %9471 = vst [vmem:[#allocation29_spill] sm:$0xff] %v5683_v10  ;;  %v5695_v12 = vld [vmem:[#allocation4 + $0x88] sm:$0xff]  ;;  %v5701_v21 = vld [vmem:[#allocation4 + $0x98] sm:$0xff] }
 0x18d   :  { %1112 = vmatpush.msra.mxu0 %v5578_v17  ;;  %1132 = vmatpush.msra.mxu1 %v5581_v18  ;;  %9472 = vst [vmem:[#allocation30_spill] sm:$0xff] %v5686_v63 }
 0x18e   :  { %1152 = vmatpush.msra.mxu2 %v5584_v22  ;;  %1172 = vmatpush.msra.mxu3 %v5587_v23  ;;  %9474 = vst [vmem:[#allocation32_spill] sm:$0xff] %v5692_v8 }
 0x18f   :  { %1113 = vmatpush.msra.mxu0 %v5592_v19  ;;  %1133 = vmatpush.msra.mxu1 %v5595_v26  ;;  %9475 = vst [vmem:[#allocation33_spill] sm:$0xff] %v5695_v12 }
 0x190   :  { %1153 = vmatpush.msra.mxu2 %v5598_v27  ;;  %1173 = vmatpush.msra.mxu3 %v5601_v28  ;;  %9476 = vst [vmem:[#allocation34_spill] sm:$0xff] %v5698_v14 }
 0x191   :  { %959 = vmatmul.f32.vlgmr.msrb.gmra.mxu0 %v5590_v24  ;;  %979 = vmatmul.f32.vlgmr.msrb.gmra.mxu1 %v5590_v24  ;;  %9477 = vst [vmem:[#allocation35_spill] sm:$0xff] %v5701_v21 }
 0x192   :  { %999 = vmatmul.f32.vlgmr.msrb.gmra.mxu2 %v5590_v24  ;;  %1019 = vmatmul.f32.vlgmr.msrb.gmra.mxu3 %v5590_v24 }
 0x193   :  { %1114 = vmatpush.msra.mxu0 %v5608_v30  ;;  %1134 = vmatpush.msra.mxu1 %v5611_v32 }
 0x194   :  { %1154 = vmatpush.msra.mxu2 %v5614_v33  ;;  %1174 = vmatpush.msra.mxu3 %v5617_v36 }
 0x195   :  { %1115 = vmatpush.msra.mxu0 %v5620_v37  ;;  %1135 = vmatpush.msra.mxu1 %v5623_v38 }
 0x196   :  { %1155 = vmatpush.msra.mxu2 %v5626_v39  ;;  %1175 = vmatpush.msra.mxu3 %v5629_v40 }
 0x197   :  { %1116 = vmatpush.msra.mxu0 %v5632_v41  ;;  %1136 = vmatpush.msra.mxu1 %v5635_v42 }
 0x198   :  { %1156 = vmatpush.msra.mxu2 %v5638_v35  ;;  %1176 = vmatpush.msra.mxu3 %v5641_v46 }
 0x199   :  { %1117 = vmatpush.msra.mxu0 %v5644_v29  ;;  %1137 = vmatpush.msra.mxu1 %v5647_v47 }
 0x19a   :  { %1157 = vmatpush.msra.mxu2 %v5650_v54  ;;  %1177 = vmatpush.msra.mxu3 %v5653_v48 }
 0x19b   :  { %1118 = vmatpush.msra.mxu0 %v5656_v55  ;;  %1138 = vmatpush.msra.mxu1 %v5659_v49 }
 0x19c   :  { %1158 = vmatpush.msra.mxu2 %v5662_v58  ;;  %1178 = vmatpush.msra.mxu3 %v5665_v62 }
 0x19d   :  { %1119 = vmatpush.msra.mxu0 %v5668_v51  ;;  %1139 = vmatpush.msra.mxu1 %v5671_v57 }
 0x19e   :  { %1159 = vmatpush.msra.mxu2 %v5674_v59  ;;  %1179 = vmatpush.msra.mxu3 %v5677_v31 }
 0x19f   :  { %1120 = vmatpush.msra.mxu0 %v5680_v60  ;;  %1140 = vmatpush.msra.mxu1 %v5683_v10  ;;  %v5746_v10 = vld [vmem:[#allocation4 + $0x8] sm:$0xff] }
 0x1a0   :  { %1160 = vmatpush.msra.mxu2 %v5686_v63  ;;  %1180 = vmatpush.msra.mxu3 %v5689_v4  ;;  %v5704_v63 = vld [vmem:[#allocation4 + $0x60] sm:$0xff]  ;;  %v5707_v4 = vld [vmem:[#allocation4 + $0x68] sm:$0xff]  ;;  %9491 = vst [vmem:[#allocation49_spill] sm:$0xff] %v5746_v10 }
 0x1a1   :  { %1121 = vmatpush.msra.mxu0 %v5692_v8  ;;  %1141 = vmatpush.msra.mxu1 %v5695_v12  ;;  %9478 = vst [vmem:[#allocation36_spill] sm:$0xff] %v5704_v63  ;;  %v5710_v8 = vld [vmem:[#allocation4 + $0x70] sm:$0xff]  ;;  %v5713_v12 = vld [vmem:[#allocation4 + $0x78] sm:$0xff] }
 0x1a2   :  { %1161 = vmatpush.msra.mxu2 %v5698_v14  ;;  %1181 = vmatpush.msra.mxu3 %v5701_v21  ;;  %9479 = vst [vmem:[#allocation37_spill] sm:$0xff] %v5707_v4  ;;  %v5716_v14 = vld [vmem:[#allocation4 + $0x40] sm:$0xff]  ;;  %v5719_v21 = vld [vmem:[#allocation4 + $0x48] sm:$0xff] }
 0x1a3   :  { %1122 = vmatpush.msra.mxu0 %v5704_v63  ;;  %1142 = vmatpush.msra.mxu1 %v5707_v4  ;;  %9480 = vst [vmem:[#allocation38_spill] sm:$0xff] %v5710_v8  ;;  %v5722_v63 = vld [vmem:[#allocation4 + $0x50] sm:$0xff]  ;;  %v5725_v4 = vld [vmem:[#allocation4 + $0x58] sm:$0xff] }
 0x1a4   :  { %1162 = vmatpush.msra.mxu2 %v5710_v8  ;;  %9481 = vst [vmem:[#allocation39_spill] sm:$0xff] %v5713_v12  ;;  %1182 = vmatpush.msra.mxu3 %v5713_v12  ;;  %v3545_v12 = vld [vmem:[%s8485_s1 + $0x18] sm:$0xff]  ;;  %v5731_v8 = vld [vmem:[#allocation4 + $0x20] sm:$0xff] }
 0x1a5   :  { %9482 = vst [vmem:[#allocation40_spill] sm:$0xff] %v5716_v14  ;;  %1123 = vmatpush.msra.mxu0 %v5716_v14  ;;  %1143 = vmatpush.msra.mxu1 %v5719_v21  ;;  %v5734_v14 = vld [vmem:[#allocation4 + $0x28] sm:$0xff] }
 0x1a6   :  { %9483 = vst [vmem:[#allocation41_spill] sm:$0xff] %v5719_v21  ;;  %1163 = vmatpush.msra.mxu2 %v5722_v63  ;;  %1183 = vmatpush.msra.mxu3 %v5725_v4  ;;  %v5737_v21 = vld [vmem:[#allocation4 + $0x30] sm:$0xff] }
 0x1a7   :  { %9484 = vst [vmem:[#allocation42_spill] sm:$0xff] %v5722_v63  ;;  %1124 = vmatpush.msra.mxu0 %v5731_v8  ;;  %1144 = vmatpush.msra.mxu1 %v5734_v14  ;;  %v5740_v63 = vld [vmem:[#allocation4 + $0x38] sm:$0xff] }
 0x1a8   :  { %9485 = vst [vmem:[#allocation43_spill] sm:$0xff] %v5725_v4  ;;  %1164 = vmatpush.msra.mxu2 %v5737_v21  ;;  %1184 = vmatpush.msra.mxu3 %v5740_v63  ;;  %v5743_v4 = vld [vmem:[#allocation4] sm:$0xff] }
 0x1a9   :  { %9486 = vst [vmem:[#allocation44_spill] sm:$0xff] %v5731_v8  ;;  %1493 = vperm.xlu1 %3589, %v3545_v12   ;;  %1125 = vmatpush.msra.mxu0 %v5743_v4  ;;  %v5749_v8 = vld [vmem:[#allocation4 + $0x10] sm:$0xff]  ;;  %v5759_v12 = vld [vmem:[#allocation7 + $0x1e0] sm:$0xff] }
 0x1aa   :  { %9487 = vst [vmem:[#allocation45_spill] sm:$0xff] %v5734_v14  ;;  %1145 = vmatpush.msra.mxu1 %v5746_v10  ;;  %1165 = vmatpush.msra.mxu2 %v5749_v8  ;;  %v5752_v14 = vld [vmem:[#allocation4 + $0x18] sm:$0xff]  ;;  %v5765_v10 = vld [vmem:[#allocation7 + $0x1e8] sm:$0xff] }
 0x1ab   :  { %9488 = vst [vmem:[#allocation46_spill] sm:$0xff] %v5737_v21  ;;  %1185 = vmatpush.msra.mxu3 %v5752_v14  ;;  %1126 = vmatmul.f32.vlgmr.msra.gmra.mxu0 %v5590_v24 }
 0x1ac   :  { %9489 = vst [vmem:[#allocation47_spill] sm:$0xff] %v5740_v63  ;;  %1146 = vmatmul.f32.vlgmr.msra.gmra.mxu1 %v5590_v24  ;;  %1166 = vmatmul.f32.vlgmr.msra.gmra.mxu2 %v5590_v24  ;;  %v5780_v63 = vld [vmem:[#allocation7 + $0x1d0] sm:$0xff] }
 0x1ad   :  { %9490 = vst [vmem:[#allocation48_spill] sm:$0xff] %v5743_v4  ;;  %1186 = vmatmul.f32.vlgmr.msra.gmra.mxu3 %v5590_v24  ;;  %1190 = vmatpush.msrb.mxu0 %v5759_v12  ;;  %v5771_v4 = vld [vmem:[#allocation7 + $0x1f8] sm:$0xff]  ;;  %v5774_v24 = vld [vmem:[#allocation7 + $0x1c0] sm:$0xff] }
 0x1ae   :  { %9492 = vst [vmem:[#allocation50_spill] sm:$0xff] %v5749_v8  ;;  %v3573_v8 = vld [vmem:[%s8485_s1 + $0x38] sm:$0xff]  ;;  %1210 = vmatpush.msrb.mxu1 %v5765_v10  ;;  %1250 = vmatpush.msrb.mxu3 %v5771_v4 }
 0x1af   :  { %9493 = vst [vmem:[#allocation51_spill] sm:$0xff] %v5752_v14  ;;  %v5768_v14 = vld [vmem:[#allocation7 + $0x1f0] sm:$0xff]  ;;  %1191 = vmatpush.msrb.mxu0 %v5774_v24 }
 0x1b0   :  { %9494 = vst [vmem:[#allocation52_spill] sm:$0xff] %v5759_v12  ;;  %1230 = vmatpush.msrb.mxu2 %v5768_v14  ;;  %v5777_v12 = vld [vmem:[#allocation7 + $0x1c8] sm:$0xff] }
 0x1b1   :  { %9495 = vst [vmem:[#allocation53_spill] sm:$0xff] %v5765_v10  ;;  %1211 = vmatpush.msrb.mxu1 %v5777_v12  ;;  %3069 = vperm.xlu1 %3589, %v3573_v8   ;;  %v5783_v10 = vld [vmem:[#allocation7 + $0x1d8] sm:$0xff]  ;;  %v5798_v8 = vld [vmem:[#allocation7 + $0x180] sm:$0xff] }
 0x1b2   :  { %9496 = vst [vmem:[#allocation54_spill] sm:$0xff] %v5768_v14  ;;  %1231 = vmatpush.msrb.mxu2 %v5780_v63  ;;  %1251 = vmatpush.msrb.mxu3 %v5783_v10  ;;  %v5786_v14 = vld [vmem:[#allocation7 + $0x1a0] sm:$0xff] }
 0x1b3   :  { %9497 = vst [vmem:[#allocation55_spill] sm:$0xff] %v5771_v4  ;;  %1192 = vmatpush.msrb.mxu0 %v5786_v14  ;;  %v5789_v4 = vld [vmem:[#allocation7 + $0x1a8] sm:$0xff] }
 0x1b4   :  { %9498 = vst [vmem:[#allocation56_spill] sm:$0xff] %v5774_v24  ;;  %1212 = vmatpush.msrb.mxu1 %v5789_v4  ;;  %v5792_v24 = vld [vmem:[#allocation7 + $0x1b0] sm:$0xff] }
 0x1b5   :  { %9499 = vst [vmem:[#allocation57_spill] sm:$0xff] %v5777_v12  ;;  %1232 = vmatpush.msrb.mxu2 %v5792_v24  ;;  %v5795_v12 = vld [vmem:[#allocation7 + $0x1b8] sm:$0xff]  ;;  %1193 = vmatpush.msrb.mxu0 %v5798_v8 }
 0x1b6   :  { %9500 = vst [vmem:[#allocation58_spill] sm:$0xff] %v5780_v63  ;;  %1252 = vmatpush.msrb.mxu3 %v5795_v12 }
 0x1b7   :  { %9501 = vst [vmem:[#allocation59_spill] sm:$0xff] %v5783_v10  ;;  %v5801_v10 = vld [vmem:[#allocation7 + $0x188] sm:$0xff] }
 0x1b8   :  { %9502 = vst [vmem:[#allocation60_spill] sm:$0xff] %v5786_v14  ;;  %1213 = vmatpush.msrb.mxu1 %v5801_v10  ;;  %v5804_v14 = vld [vmem:[#allocation7 + $0x190] sm:$0xff] }
 0x1b9   :  { %9503 = vst [vmem:[#allocation61_spill] sm:$0xff] %v5789_v4  ;;  %1233 = vmatpush.msrb.mxu2 %v5804_v14  ;;  %v5807_v4 = vld [vmem:[#allocation7 + $0x198] sm:$0xff] }
 0x1ba   :  { %9504 = vst [vmem:[#allocation62_spill] sm:$0xff] %v5792_v24  ;;  %1253 = vmatpush.msrb.mxu3 %v5807_v4  ;;  %v5810_v24 = vld [vmem:[#allocation7 + $0x160] sm:$0xff] }
 0x1bb   :  { %9505 = vst [vmem:[#allocation63_spill] sm:$0xff] %v5795_v12  ;;  %1194 = vmatpush.msrb.mxu0 %v5810_v24  ;;  %v5813_v12 = vld [vmem:[#allocation7 + $0x168] sm:$0xff] }
 0x1bc   :  { %9506 = vst [vmem:[#allocation64_spill] sm:$0xff] %v5798_v8  ;;  %1214 = vmatpush.msrb.mxu1 %v5813_v12  ;;  %v5816_v8 = vld [vmem:[#allocation7 + $0x170] sm:$0xff] }
 0x1bd   :  { %9507 = vst [vmem:[#allocation65_spill] sm:$0xff] %v5801_v10  ;;  %1234 = vmatpush.msrb.mxu2 %v5816_v8  ;;  %v5819_v10 = vld [vmem:[#allocation7 + $0x178] sm:$0xff] }
 0x1be   :  { %9508 = vst [vmem:[#allocation66_spill] sm:$0xff] %v5804_v14  ;;  %1254 = vmatpush.msrb.mxu3 %v5819_v10  ;;  %v5822_v14 = vld [vmem:[#allocation7 + $0x140] sm:$0xff] }
 0x1bf   :  { %9509 = vst [vmem:[#allocation67_spill] sm:$0xff] %v5807_v4  ;;  %1195 = vmatpush.msrb.mxu0 %v5822_v14  ;;  %v5825_v4 = vld [vmem:[#allocation7 + $0x148] sm:$0xff] }
 0x1c0   :  { %9510 = vst [vmem:[#allocation68_spill] sm:$0xff] %v5810_v24  ;;  %1215 = vmatpush.msrb.mxu1 %v5825_v4  ;;  %v5828_v24 = vld [vmem:[#allocation7 + $0x150] sm:$0xff] }
 0x1c1   :  { %9511 = vst [vmem:[#allocation69_spill] sm:$0xff] %v5813_v12  ;;  %1235 = vmatpush.msrb.mxu2 %v5828_v24  ;;  %v5831_v12 = vld [vmem:[#allocation7 + $0x158] sm:$0xff] }
 0x1c2   :  { %9512 = vst [vmem:[#allocation70_spill] sm:$0xff] %v5816_v8  ;;  %1255 = vmatpush.msrb.mxu3 %v5831_v12  ;;  %v5834_v8 = vld [vmem:[#allocation7 + $0x120] sm:$0xff] }
 0x1c3   :  { %9513 = vst [vmem:[#allocation71_spill] sm:$0xff] %v5819_v10  ;;  %1196 = vmatpush.msrb.mxu0 %v5834_v8  ;;  %v5837_v10 = vld [vmem:[#allocation7 + $0x128] sm:$0xff] }
 0x1c4   :  { %9514 = vst [vmem:[#allocation72_spill] sm:$0xff] %v5822_v14  ;;  %1216 = vmatpush.msrb.mxu1 %v5837_v10  ;;  %v5840_v14 = vld [vmem:[#allocation7 + $0x130] sm:$0xff] }
 0x1c5   :  { %9515 = vst [vmem:[#allocation73_spill] sm:$0xff] %v5825_v4  ;;  %1236 = vmatpush.msrb.mxu2 %v5840_v14  ;;  %v5843_v4 = vld [vmem:[#allocation7 + $0x138] sm:$0xff] }
 0x1c6   :  { %9516 = vst [vmem:[#allocation74_spill] sm:$0xff] %v5828_v24  ;;  %1256 = vmatpush.msrb.mxu3 %v5843_v4  ;;  %v5846_v24 = vld [vmem:[#allocation7 + $0x100] sm:$0xff] }
 0x1c7   :  { %9517 = vst [vmem:[#allocation75_spill] sm:$0xff] %v5831_v12  ;;  %1197 = vmatpush.msrb.mxu0 %v5846_v24  ;;  %v5849_v12 = vld [vmem:[#allocation7 + $0x108] sm:$0xff] }
 0x1c8   :  { %9518 = vst [vmem:[#allocation76_spill] sm:$0xff] %v5834_v8  ;;  %1217 = vmatpush.msrb.mxu1 %v5849_v12  ;;  %v5852_v8 = vld [vmem:[#allocation7 + $0x110] sm:$0xff] }
 0x1c9   :  { %9519 = vst [vmem:[#allocation77_spill] sm:$0xff] %v5837_v10  ;;  %1237 = vmatpush.msrb.mxu2 %v5852_v8  ;;  %v5855_v10 = vld [vmem:[#allocation7 + $0x118] sm:$0xff] }
 0x1ca   :  { %9520 = vst [vmem:[#allocation78_spill] sm:$0xff] %v5840_v14  ;;  %1257 = vmatpush.msrb.mxu3 %v5855_v10  ;;  %v5858_v14 = vld [vmem:[#allocation7 + $0xe0] sm:$0xff] }
 0x1cb   :  { %9521 = vst [vmem:[#allocation79_spill] sm:$0xff] %v5843_v4  ;;  %1198 = vmatpush.msrb.mxu0 %v5858_v14  ;;  %v5861_v4 = vld [vmem:[#allocation7 + $0xe8] sm:$0xff] }
 0x1cc   :  { %9522 = vst [vmem:[#allocation80_spill] sm:$0xff] %v5846_v24  ;;  %1218 = vmatpush.msrb.mxu1 %v5861_v4  ;;  %v5864_v24 = vld [vmem:[#allocation7 + $0xf0] sm:$0xff] }
 0x1cd   :  { %9523 = vst [vmem:[#allocation81_spill] sm:$0xff] %v5849_v12  ;;  %1238 = vmatpush.msrb.mxu2 %v5864_v24  ;;  %v5867_v12 = vld [vmem:[#allocation7 + $0xf8] sm:$0xff] }
 0x1ce   :  { %9524 = vst [vmem:[#allocation82_spill] sm:$0xff] %v5852_v8  ;;  %1258 = vmatpush.msrb.mxu3 %v5867_v12  ;;  %v5870_v8 = vld [vmem:[#allocation7 + $0xc0] sm:$0xff] }
 0x1cf   :  { %9525 = vst [vmem:[#allocation83_spill] sm:$0xff] %v5855_v10  ;;  %1199 = vmatpush.msrb.mxu0 %v5870_v8  ;;  %v5873_v10 = vld [vmem:[#allocation7 + $0xc8] sm:$0xff] }
 0x1d0   :  { %9526 = vst [vmem:[#allocation84_spill] sm:$0xff] %v5858_v14  ;;  %1219 = vmatpush.msrb.mxu1 %v5873_v10  ;;  %v5876_v14 = vld [vmem:[#allocation7 + $0xd0] sm:$0xff] }
 0x1d1   :  { %9527 = vst [vmem:[#allocation85_spill] sm:$0xff] %v5861_v4  ;;  %1239 = vmatpush.msrb.mxu2 %v5876_v14  ;;  %v5879_v4 = vld [vmem:[#allocation7 + $0xd8] sm:$0xff] }
 0x1d2   :  { %9528 = vst [vmem:[#allocation86_spill] sm:$0xff] %v5864_v24  ;;  %1259 = vmatpush.msrb.mxu3 %v5879_v4  ;;  %v5882_v24 = vld [vmem:[#allocation7 + $0xa0] sm:$0xff] }
 0x1d3   :  { %9529 = vst [vmem:[#allocation87_spill] sm:$0xff] %v5867_v12  ;;  %1200 = vmatpush.msrb.mxu0 %v5882_v24  ;;  %v5885_v12 = vld [vmem:[#allocation7 + $0xa8] sm:$0xff] }
 0x1d4   :  { %9530 = vst [vmem:[#allocation88_spill] sm:$0xff] %v5870_v8  ;;  %1220 = vmatpush.msrb.mxu1 %v5885_v12  ;;  %v5888_v8 = vld [vmem:[#allocation7 + $0xb0] sm:$0xff] }
 0x1d5   :  { %9531 = vst [vmem:[#allocation89_spill] sm:$0xff] %v5873_v10  ;;  %1240 = vmatpush.msrb.mxu2 %v5888_v8  ;;  %v5891_v10 = vld [vmem:[#allocation7 + $0xb8] sm:$0xff] }
 0x1d6   :  { %9532 = vst [vmem:[#allocation90_spill] sm:$0xff] %v5876_v14  ;;  %1260 = vmatpush.msrb.mxu3 %v5891_v10  ;;  %v5894_v14 = vld [vmem:[#allocation7 + $0x80] sm:$0xff] }
 0x1d7   :  { %9533 = vst [vmem:[#allocation91_spill] sm:$0xff] %v5879_v4  ;;  %1201 = vmatpush.msrb.mxu0 %v5894_v14  ;;  %v5897_v4 = vld [vmem:[#allocation7 + $0x88] sm:$0xff] }
 0x1d8   :  { %9534 = vst [vmem:[#allocation92_spill] sm:$0xff] %v5882_v24  ;;  %1221 = vmatpush.msrb.mxu1 %v5897_v4  ;;  %v5900_v24 = vld [vmem:[#allocation7 + $0x90] sm:$0xff] }
 0x1d9   :  { %9535 = vst [vmem:[#allocation93_spill] sm:$0xff] %v5885_v12  ;;  %1241 = vmatpush.msrb.mxu2 %v5900_v24  ;;  %v5903_v12 = vld [vmem:[#allocation7 + $0x98] sm:$0xff] }
 0x1da   :  { %9536 = vst [vmem:[#allocation94_spill] sm:$0xff] %v5888_v8  ;;  %1261 = vmatpush.msrb.mxu3 %v5903_v12  ;;  %v5906_v8 = vld [vmem:[#allocation7 + $0x60] sm:$0xff] }
 0x1db   :  { %9537 = vst [vmem:[#allocation95_spill] sm:$0xff] %v5891_v10  ;;  %1202 = vmatpush.msrb.mxu0 %v5906_v8  ;;  %v5909_v10 = vld [vmem:[#allocation7 + $0x68] sm:$0xff] }
 0x1dc   :  { %9538 = vst [vmem:[#allocation96_spill] sm:$0xff] %v5894_v14  ;;  %1222 = vmatpush.msrb.mxu1 %v5909_v10  ;;  %v5912_v14 = vld [vmem:[#allocation7 + $0x70] sm:$0xff] }
 0x1dd   :  { %9539 = vst [vmem:[#allocation97_spill] sm:$0xff] %v5897_v4  ;;  %1242 = vmatpush.msrb.mxu2 %v5912_v14  ;;  %v5915_v4 = vld [vmem:[#allocation7 + $0x78] sm:$0xff] }
 0x1de   :  { %9540 = vst [vmem:[#allocation98_spill] sm:$0xff] %v5900_v24  ;;  %1262 = vmatpush.msrb.mxu3 %v5915_v4  ;;  %v5918_v24 = vld [vmem:[#allocation7 + $0x40] sm:$0xff] }
 0x1df   :  { %9541 = vst [vmem:[#allocation99_spill] sm:$0xff] %v5903_v12  ;;  %1203 = vmatpush.msrb.mxu0 %v5918_v24  ;;  %v5921_v12 = vld [vmem:[#allocation7 + $0x48] sm:$0xff] }
 0x1e0   :  { %9542 = vst [vmem:[#allocation100_spill] sm:$0xff] %v5906_v8  ;;  %1223 = vmatpush.msrb.mxu1 %v5921_v12  ;;  %v5924_v8 = vld [vmem:[#allocation7 + $0x50] sm:$0xff] }
 0x1e1   :  { %9543 = vst [vmem:[#allocation101_spill] sm:$0xff] %v5909_v10  ;;  %1243 = vmatpush.msrb.mxu2 %v5924_v8  ;;  %v5927_v10 = vld [vmem:[#allocation7 + $0x58] sm:$0xff] }
 0x1e2   :  { %9544 = vst [vmem:[#allocation102_spill] sm:$0xff] %v5912_v14  ;;  %1263 = vmatpush.msrb.mxu3 %v5927_v10  ;;  %v5930_v14 = vld [vmem:[#allocation7 + $0x20] sm:$0xff] }
 0x1e3   :  { %9545 = vst [vmem:[#allocation103_spill] sm:$0xff] %v5915_v4  ;;  %1204 = vmatpush.msrb.mxu0 %v5930_v14  ;;  %v5933_v4 = vld [vmem:[#allocation7 + $0x28] sm:$0xff] }
 0x1e4   :  { %9546 = vst [vmem:[#allocation104_spill] sm:$0xff] %v5918_v24  ;;  %1224 = vmatpush.msrb.mxu1 %v5933_v4  ;;  %v5936_v24 = vld [vmem:[#allocation7 + $0x30] sm:$0xff] }
 0x1e5   :  { %9547 = vst [vmem:[#allocation105_spill] sm:$0xff] %v5921_v12  ;;  %1244 = vmatpush.msrb.mxu2 %v5936_v24  ;;  %v5939_v12 = vld [vmem:[#allocation7 + $0x38] sm:$0xff] }
 0x1e6   :  { %9548 = vst [vmem:[#allocation106_spill] sm:$0xff] %v5924_v8  ;;  %1264 = vmatpush.msrb.mxu3 %v5939_v12  ;;  %v5942_v8 = vld [vmem:[#allocation7] sm:$0xff] }
 0x1e7   :  { %9549 = vst [vmem:[#allocation107_spill] sm:$0xff] %v5927_v10  ;;  %1205 = vmatpush.msrb.mxu0 %v5942_v8  ;;  %v5945_v10 = vld [vmem:[#allocation7 + $0x8] sm:$0xff] }
 0x1e8   :  { %9550 = vst [vmem:[#allocation108_spill] sm:$0xff] %v5930_v14  ;;  %1225 = vmatpush.msrb.mxu1 %v5945_v10  ;;  %v5948_v14 = vld [vmem:[#allocation7 + $0x10] sm:$0xff] }
 0x1e9   :  { %9551 = vst [vmem:[#allocation109_spill] sm:$0xff] %v5933_v4  ;;  %1245 = vmatpush.msrb.mxu2 %v5948_v14  ;;  %v5951_v4 = vld [vmem:[#allocation7 + $0x18] sm:$0xff] }
 0x1ea   :  { %9552 = vst [vmem:[#allocation110_spill] sm:$0xff] %v5936_v24  ;;  %1265 = vmatpush.msrb.mxu3 %v5951_v4  ;;  %v5954_v24 = vld [vmem:[#allocation9 + $0x1e0] sm:$0xff] }
 0x1eb   :  { %9553 = vst [vmem:[#allocation111_spill] sm:$0xff] %v5939_v12  ;;  %1337 = vmatpush.msra.mxu0 %v5954_v24  ;;  %v5957_v12 = vld [vmem:[#allocation9 + $0x1e8] sm:$0xff] }
 0x1ec   :  { %9554 = vst [vmem:[#allocation112_spill] sm:$0xff] %v5942_v8  ;;  %1357 = vmatpush.msra.mxu1 %v5957_v12  ;;  %v5960_v8 = vld [vmem:[#allocation9 + $0x1f0] sm:$0xff] }
 0x1ed   :  { %9555 = vst [vmem:[#allocation113_spill] sm:$0xff] %v5945_v10  ;;  %1377 = vmatpush.msra.mxu2 %v5960_v8  ;;  %v5963_v10 = vld [vmem:[#allocation9 + $0x1f8] sm:$0xff] }
 0x1ee   :  { %9556 = vst [vmem:[#allocation114_spill] sm:$0xff] %v5948_v14  ;;  %1397 = vmatpush.msra.mxu3 %v5963_v10  ;;  %v5966_v14 = vld [vmem:[#allocation9 + $0x1c0] sm:$0xff] }
 0x1ef   :  { %9557 = vst [vmem:[#allocation115_spill] sm:$0xff] %v5951_v4  ;;  %1338 = vmatpush.msra.mxu0 %v5966_v14  ;;  %v5969_v4 = vld [vmem:[#allocation9 + $0x1c8] sm:$0xff] }
 0x1f0   :  { %9558 = vst [vmem:[#allocation116_spill] sm:$0xff] %v5954_v24  ;;  %1358 = vmatpush.msra.mxu1 %v5969_v4  ;;  %v5972_v24 = vld [vmem:[#allocation9 + $0x1d0] sm:$0xff] }
 0x1f1   :  { %9559 = vst [vmem:[#allocation117_spill] sm:$0xff] %v5957_v12  ;;  %1378 = vmatpush.msra.mxu2 %v5972_v24  ;;  %v5975_v12 = vld [vmem:[#allocation9 + $0x1d8] sm:$0xff] }
 0x1f2   :  { %9560 = vst [vmem:[#allocation118_spill] sm:$0xff] %v5960_v8  ;;  %1398 = vmatpush.msra.mxu3 %v5975_v12  ;;  %v5978_v8 = vld [vmem:[#allocation9 + $0x1a0] sm:$0xff] }
 0x1f3   :  { %9561 = vst [vmem:[#allocation119_spill] sm:$0xff] %v5963_v10  ;;  %1339 = vmatpush.msra.mxu0 %v5978_v8  ;;  %v5981_v10 = vld [vmem:[#allocation9 + $0x1a8] sm:$0xff] }
 0x1f4   :  { %9562 = vst [vmem:[#allocation120_spill] sm:$0xff] %v5966_v14  ;;  %1359 = vmatpush.msra.mxu1 %v5981_v10  ;;  %v5984_v14 = vld [vmem:[#allocation9 + $0x1b0] sm:$0xff] }
 0x1f5   :  { %9563 = vst [vmem:[#allocation121_spill] sm:$0xff] %v5969_v4  ;;  %1379 = vmatpush.msra.mxu2 %v5984_v14  ;;  %v5987_v4 = vld [vmem:[#allocation9 + $0x1b8] sm:$0xff] }
 0x1f6   :  { %9564 = vst [vmem:[#allocation122_spill] sm:$0xff] %v5972_v24  ;;  %1399 = vmatpush.msra.mxu3 %v5987_v4  ;;  %v5990_v24 = vld [vmem:[#allocation9 + $0x180] sm:$0xff] }
 0x1f7   :  { %9565 = vst [vmem:[#allocation123_spill] sm:$0xff] %v5975_v12  ;;  %1340 = vmatpush.msra.mxu0 %v5990_v24  ;;  %v5993_v12 = vld [vmem:[#allocation9 + $0x188] sm:$0xff] }
 0x1f8   :  { %9566 = vst [vmem:[#allocation124_spill] sm:$0xff] %v5978_v8  ;;  %1360 = vmatpush.msra.mxu1 %v5993_v12  ;;  %v5996_v8 = vld [vmem:[#allocation9 + $0x190] sm:$0xff] }
 0x1f9   :  { %9567 = vst [vmem:[#allocation125_spill] sm:$0xff] %v5981_v10  ;;  %1380 = vmatpush.msra.mxu2 %v5996_v8  ;;  %v5999_v10 = vld [vmem:[#allocation9 + $0x198] sm:$0xff] }
 0x1fa   :  { %9568 = vst [vmem:[#allocation126_spill] sm:$0xff] %v5984_v14  ;;  %1400 = vmatpush.msra.mxu3 %v5999_v10  ;;  %v6002_v14 = vld [vmem:[#allocation9 + $0x160] sm:$0xff] }
 0x1fb   :  { %9569 = vst [vmem:[#allocation127_spill] sm:$0xff] %v5987_v4  ;;  %1341 = vmatpush.msra.mxu0 %v6002_v14  ;;  %v6005_v4 = vld [vmem:[#allocation9 + $0x168] sm:$0xff] }
 0x1fc   :  { %9570 = vst [vmem:[#allocation128_spill] sm:$0xff] %v5990_v24  ;;  %1361 = vmatpush.msra.mxu1 %v6005_v4  ;;  %v6008_v24 = vld [vmem:[#allocation9 + $0x170] sm:$0xff] }
 0x1fd   :  { %9571 = vst [vmem:[#allocation129_spill] sm:$0xff] %v5993_v12  ;;  %1381 = vmatpush.msra.mxu2 %v6008_v24  ;;  %v6011_v12 = vld [vmem:[#allocation9 + $0x178] sm:$0xff] }
 0x1fe   :  { %9572 = vst [vmem:[#allocation130_spill] sm:$0xff] %v5996_v8  ;;  %1401 = vmatpush.msra.mxu3 %v6011_v12  ;;  %v6014_v8 = vld [vmem:[#allocation9 + $0x140] sm:$0xff] }
 0x1ff   :  { %9573 = vst [vmem:[#allocation131_spill] sm:$0xff] %v5999_v10  ;;  %1342 = vmatpush.msra.mxu0 %v6014_v8  ;;  %v6017_v10 = vld [vmem:[#allocation9 + $0x148] sm:$0xff] }
 0x200   :  { %9574 = vst [vmem:[#allocation132_spill] sm:$0xff] %v6002_v14  ;;  %1362 = vmatpush.msra.mxu1 %v6017_v10  ;;  %v6020_v14 = vld [vmem:[#allocation9 + $0x150] sm:$0xff] }
 0x201   :  { %9575 = vst [vmem:[#allocation133_spill] sm:$0xff] %v6005_v4  ;;  %1382 = vmatpush.msra.mxu2 %v6020_v14  ;;  %v6023_v4 = vld [vmem:[#allocation9 + $0x158] sm:$0xff] }
 0x202   :  { %9576 = vst [vmem:[#allocation134_spill] sm:$0xff] %v6008_v24  ;;  %1402 = vmatpush.msra.mxu3 %v6023_v4  ;;  %v6026_v24 = vld [vmem:[#allocation9 + $0x120] sm:$0xff] }
 0x203   :  { %9577 = vst [vmem:[#allocation135_spill] sm:$0xff] %v6011_v12  ;;  %1343 = vmatpush.msra.mxu0 %v6026_v24  ;;  %v6029_v12 = vld [vmem:[#allocation9 + $0x128] sm:$0xff] }
 0x204   :  { %9578 = vst [vmem:[#allocation136_spill] sm:$0xff] %v6014_v8  ;;  %1363 = vmatpush.msra.mxu1 %v6029_v12  ;;  %v6032_v8 = vld [vmem:[#allocation9 + $0x130] sm:$0xff]  ;;  %v833_v63 = vpop.f32.mrf.mxu1 }
 0x205   :  { %9579 = vst [vmem:[#allocation137_spill] sm:$0xff] %v6017_v10  ;;  %1383 = vmatpush.msra.mxu2 %v6032_v8  ;;  %v6035_v10 = vld [vmem:[#allocation9 + $0x138] sm:$0xff] }
 0x206   :  { %9580 = vst [vmem:[#allocation138_spill] sm:$0xff] %v6020_v14  ;;  %1403 = vmatpush.msra.mxu3 %v6035_v10  ;;  %v6038_v14 = vld [vmem:[#allocation9 + $0x100] sm:$0xff] }
 0x207   :  { %9581 = vst [vmem:[#allocation139_spill] sm:$0xff] %v6023_v4  ;;  %1344 = vmatpush.msra.mxu0 %v6038_v14  ;;  %v6041_v4 = vld [vmem:[#allocation9 + $0x108] sm:$0xff] }
 0x208   :  { %9582 = vst [vmem:[#allocation140_spill] sm:$0xff] %v6026_v24  ;;  %1364 = vmatpush.msra.mxu1 %v6041_v4  ;;  %v6044_v24 = vld [vmem:[#allocation9 + $0x110] sm:$0xff] }
 0x209   :  { %9583 = vst [vmem:[#allocation141_spill] sm:$0xff] %v6029_v12  ;;  %1384 = vmatpush.msra.mxu2 %v6044_v24  ;;  %v6047_v12 = vld [vmem:[#allocation9 + $0x118] sm:$0xff] }
 0x20a   :  { %9584 = vst [vmem:[#allocation142_spill] sm:$0xff] %v6032_v8  ;;  %1404 = vmatpush.msra.mxu3 %v6047_v12  ;;  %v6050_v8 = vld [vmem:[#allocation9 + $0xe0] sm:$0xff] }
 0x20b   :  { %9585 = vst [vmem:[#allocation143_spill] sm:$0xff] %v6035_v10  ;;  %1345 = vmatpush.msra.mxu0 %v6050_v8  ;;  %v6053_v10 = vld [vmem:[#allocation9 + $0xe8] sm:$0xff]  ;;  %v853_v21 = vpop.f32.mrf.mxu2 }
 0x20c   :  { %9586 = vst [vmem:[#allocation144_spill] sm:$0xff] %v6038_v14  ;;  %1365 = vmatpush.msra.mxu1 %v6053_v10  ;;  %v6056_v14 = vld [vmem:[#allocation9 + $0xf0] sm:$0xff] }
 0x20d   :  { %9587 = vst [vmem:[#allocation145_spill] sm:$0xff] %v6041_v4  ;;  %1385 = vmatpush.msra.mxu2 %v6056_v14  ;;  %v6059_v4 = vld [vmem:[#allocation9 + $0xf8] sm:$0xff] }
 0x20e   :  { %9588 = vst [vmem:[#allocation146_spill] sm:$0xff] %v6044_v24  ;;  %1405 = vmatpush.msra.mxu3 %v6059_v4  ;;  %v6062_v24 = vld [vmem:[#allocation9 + $0xc0] sm:$0xff]  ;;  %v980_v60 = vpop.f32.mrf.mxu1 }
 0x20f   :  { %9589 = vst [vmem:[#allocation147_spill] sm:$0xff] %v6047_v12  ;;  %1346 = vmatpush.msra.mxu0 %v6062_v24  ;;  %v6065_v12 = vld [vmem:[#allocation9 + $0xc8] sm:$0xff]  ;;  %v981_v59 = vadd.f32 %v980_v60, %v833_v63 }
 0x210   :  { %9590 = vst [vmem:[#allocation148_spill] sm:$0xff] %v6050_v8  ;;  %1366 = vmatpush.msra.mxu1 %v6065_v12  ;;  %v6068_v8 = vld [vmem:[#allocation9 + $0xd0] sm:$0xff] }
 0x211   :  { %9591 = vst [vmem:[#allocation149_spill] sm:$0xff] %v6053_v10  ;;  %1386 = vmatpush.msra.mxu2 %v6068_v8  ;;  %v6071_v10 = vld [vmem:[#allocation9 + $0xd8] sm:$0xff]  ;;  %v1024_v57 = vadd.f32 %v981_v59, %v5458_v44 }
 0x212   :  { %9592 = vst [vmem:[#allocation150_spill] sm:$0xff] %v6056_v14  ;;  %1406 = vmatpush.msra.mxu3 %v6071_v10  ;;  %v6074_v14 = vld [vmem:[#allocation9 + $0xa0] sm:$0xff] }
 0x213   :  { %9593 = vst [vmem:[#allocation157_spill] sm:$0xff] %v6059_v4  ;;  %1347 = vmatpush.msra.mxu0 %v6074_v14  ;;  %v6077_v4 = vld [vmem:[#allocation9 + $0xa8] sm:$0xff]  ;;  %v3536_v62 = vmul.f32 -1.442695, %v1024_v57 }
 0x214   :  { %9594 = vst [vmem:[#allocation158_spill] sm:$0xff] %v6062_v24  ;;  %1367 = vmatpush.msra.mxu1 %v6077_v4  ;;  %v6080_v24 = vld [vmem:[#allocation9 + $0xb0] sm:$0xff] }
 0x215   :  { %9595 = vst [vmem:[#allocation159_spill] sm:$0xff] %v6065_v12  ;;  %1387 = vmatpush.msra.mxu2 %v6080_v24  ;;  %v6083_v12 = vld [vmem:[#allocation9 + $0xb8] sm:$0xff] }
 0x216   :  { %9596 = vst [vmem:[#allocation160_spill] sm:$0xff] %v6068_v8  ;;  %1407 = vmatpush.msra.mxu3 %v6083_v12  ;;  %v6086_v8 = vld [vmem:[#allocation9 + $0x80] sm:$0xff] }
 0x217   :  { %9597 = vst [vmem:[#allocation161_spill] sm:$0xff] %v6071_v10  ;;  %1348 = vmatpush.msra.mxu0 %v6086_v8  ;;  %v6089_v10 = vld [vmem:[#allocation9 + $0x88] sm:$0xff] }
 0x218   :  { %9598 = vst [vmem:[#allocation162_spill] sm:$0xff] %v6074_v14  ;;  %1368 = vmatpush.msra.mxu1 %v6089_v10  ;;  %v6092_v14 = vld [vmem:[#allocation9 + $0x90] sm:$0xff] }
 0x219   :  { %9599 = vst [vmem:[#allocation163_spill] sm:$0xff] %v6077_v4  ;;  %1388 = vmatpush.msra.mxu2 %v6092_v14  ;;  %v6095_v4 = vld [vmem:[#allocation9 + $0x98] sm:$0xff] }
 0x21a   :  { %9600 = vst [vmem:[#allocation164_spill] sm:$0xff] %v6080_v24  ;;  %1408 = vmatpush.msra.mxu3 %v6095_v4  ;;  %v6098_v24 = vld [vmem:[#allocation9 + $0x60] sm:$0xff] }
 0x21b   :  { %9601 = vst [vmem:[#allocation165_spill] sm:$0xff] %v6083_v12  ;;  %1349 = vmatpush.msra.mxu0 %v6098_v24  ;;  %v6101_v12 = vld [vmem:[#allocation9 + $0x68] sm:$0xff] }
 0x21c   :  { %9602 = vst [vmem:[#allocation166_spill] sm:$0xff] %v6086_v8  ;;  %1369 = vmatpush.msra.mxu1 %v6101_v12  ;;  %v6104_v8 = vld [vmem:[#allocation9 + $0x70] sm:$0xff] }
 0x21d   :  { %9603 = vst [vmem:[#allocation167_spill] sm:$0xff] %v6089_v10  ;;  %1389 = vmatpush.msra.mxu2 %v6104_v8  ;;  %v6107_v10 = vld [vmem:[#allocation9 + $0x78] sm:$0xff] }
 0x21e   :  { %9604 = vst [vmem:[#allocation168_spill] sm:$0xff] %v6092_v14  ;;  %1409 = vmatpush.msra.mxu3 %v6107_v10  ;;  %v6110_v14 = vld [vmem:[#allocation9 + $0x40] sm:$0xff] }
 0x21f   :  { %9605 = vst [vmem:[#allocation169_spill] sm:$0xff] %v6095_v4  ;;  %1350 = vmatpush.msra.mxu0 %v6110_v14  ;;  %v6113_v4 = vld [vmem:[#allocation9 + $0x48] sm:$0xff] }
 0x220   :  { %9606 = vst [vmem:[#allocation170_spill] sm:$0xff] %v6098_v24  ;;  %1370 = vmatpush.msra.mxu1 %v6113_v4  ;;  %v6116_v24 = vld [vmem:[#allocation9 + $0x50] sm:$0xff] }
 0x221   :  { %9607 = vst [vmem:[#allocation171_spill] sm:$0xff] %v6101_v12  ;;  %1390 = vmatpush.msra.mxu2 %v6116_v24  ;;  %v6119_v12 = vld [vmem:[#allocation9 + $0x58] sm:$0xff] }
 0x222   :  { %9608 = vst [vmem:[#allocation172_spill] sm:$0xff] %v6104_v8  ;;  %1410 = vmatpush.msra.mxu3 %v6119_v12  ;;  %v6122_v8 = vld [vmem:[#allocation9 + $0x20] sm:$0xff] }
 0x223   :  { %9609 = vst [vmem:[#allocation173_spill] sm:$0xff] %v6107_v10  ;;  %1351 = vmatpush.msra.mxu0 %v6122_v8  ;;  %v6125_v10 = vld [vmem:[#allocation9 + $0x28] sm:$0xff] }
 0x224   :  { %9610 = vst [vmem:[#allocation174_spill] sm:$0xff] %v6110_v14  ;;  %1371 = vmatpush.msra.mxu1 %v6125_v10  ;;  %v6128_v14 = vld [vmem:[#allocation9 + $0x30] sm:$0xff] }
 0x225   :  { %9611 = vst [vmem:[#allocation175_spill] sm:$0xff] %v6113_v4  ;;  %1391 = vmatpush.msra.mxu2 %v6128_v14  ;;  %v6131_v4 = vld [vmem:[#allocation9 + $0x38] sm:$0xff] }
 0x226   :  { %9612 = vst [vmem:[#allocation176_spill] sm:$0xff] %v6116_v24  ;;  %1411 = vmatpush.msra.mxu3 %v6131_v4  ;;  %v6134_v24 = vld [vmem:[#allocation9] sm:$0xff] }
 0x227   :  { %9613 = vst [vmem:[#allocation177_spill] sm:$0xff] %v6119_v12  ;;  %1352 = vmatpush.msra.mxu0 %v6134_v24  ;;  %v6137_v12 = vld [vmem:[#allocation9 + $0x8] sm:$0xff] }
 0x228   :  { %9614 = vst [vmem:[#allocation178_spill] sm:$0xff] %v6122_v8  ;;  %1372 = vmatpush.msra.mxu1 %v6137_v12  ;;  %v6140_v8 = vld [vmem:[#allocation9 + $0x10] sm:$0xff] }
 0x229   :  { %9615 = vst [vmem:[#allocation179_spill] sm:$0xff] %v6125_v10  ;;  %1392 = vmatpush.msra.mxu2 %v6140_v8  ;;  %v6143_v10 = vld [vmem:[#allocation9 + $0x18] sm:$0xff]  ;;  %v1147_v44 = vpop.f32.mrf.mxu1 }
 0x22a   :  { %9616 = vst [vmem:[#allocation180_spill] sm:$0xff] %v6128_v14  ;;  %1412 = vmatpush.msra.mxu3 %v6143_v10  ;;  %v813_v14 = vpop.f32.mrf.mxu0 }
 0x22b   :  { %9617 = vst [vmem:[#allocation181_spill] sm:$0xff] %v6131_v4 }
 0x22c   :  { %9618 = vst [vmem:[#allocation182_spill] sm:$0xff] %v6134_v24 }
 0x22d   :  { %9619 = vst [vmem:[#allocation183_spill] sm:$0xff] %v6137_v12  ;;  %v873_v12 = vpop.f32.mrf.mxu3 }
 0x22e   :  { %9620 = vst [vmem:[#allocation184_spill] sm:$0xff] %v6140_v8  ;;  %v1000_v8 = vpop.f32.mrf.mxu2 }
 0x22f   :  { %9621 = vst [vmem:[#allocation185_spill] sm:$0xff] %v6143_v10  ;;  %v1001_v58 = vadd.f32 %v1000_v8, %v853_v21 }
 0x231   :  { %v1025_v10 = vadd.f32 %v1001_v58, %v5464_v61 }
 0x232   :  { %v960_v4 = vpop.f32.mrf.mxu0 }
 0x233   :  { %v961_v31 = vadd.f32 %v960_v4, %v813_v14  ;;  %v3537_v49 = vmul.f32 -1.442695, %v1025_v10 }
 0x235   :  { %v1023_v24 = vadd.f32 %v961_v31, %v5456_v43  ;;  %v1020_v60 = vpop.f32.mrf.mxu3  ;;  %v6149_v31 = vpop.permute.xlu1 %1099 }
 0x236   :  { %v1021_v59 = vadd.f32 %v1020_v60, %v873_v12 }
 0x237   :  { %v3535_v51 = vmul.f32 -1.442695, %v1023_v24 }
 0x239   :  { %3640 = vpow2.f32 %v3535_v51  ;;  %v1102_v51 = vmul.f32 %v6149_v31, %v9450_v50 }
 0x23a   :  { %3642 = vpow2.f32 %v3536_v62  ;;  %v1103_v62 = vmul.f32 %v6149_v31, %v9451_v52 }
 0x23b   :  { %3644 = vpow2.f32 %v3537_v49  ;;  %v1106_v14 = vadd.f32 %v1102_v51, %v5217_v53 }
 0x23c   :  { %v1107_v12 = vadd.f32 %v1103_v62, %v5222_v45 }
 0x23e   :  { %v1271_v51 = vadd.f32 %v1147_v44, %v1107_v12 }
 0x23f   :  { %v3641_v55 = vpop.eup %3640 }
 0x240   :  { %v3643_v48 = vpop.eup %3642  ;;  %v1033_v54 = vadd.f32 1.0, %v3641_v55  ;;  %v1104_v55 = vmul.f32 %v6149_v31, %v5236_v1  ;;  %v1127_v1 = vpop.f32.mrf.mxu0 }
 0x241   :  { %v1034_v4 = vadd.f32 1.0, %v3643_v48  ;;  %v3645_v57 = vpop.eup %3644  ;;  %v1026_v48 = vadd.f32 %v1021_v59, %v5471_v25  ;;  %v1270_v25 = vadd.f32 %v1127_v1, %v1106_v14  ;;  %v1167_v14 = vpop.f32.mrf.mxu2 }
 0x242   :  { %3646 = vrcp.f32 %v1033_v54  ;;  %v6155_v58 = vadd.f32 1.0, %v3645_v57  ;;  %v1044_v8 = vand.u32 2147483647, %v1033_v54  ;;  %v1108_v60 = vadd.f32 %v1104_v55, %v5249_v7 }
 0x243   :  { %3648 = vrcp.f32 %v1034_v4  ;;  %v1061_v61 = vand.u32 2147483648, %v1034_v4  ;;  %v1046_v52 = vand.u32 2147483648, %v1033_v54  ;;  %v1059_v59 = vand.u32 2147483647, %v1034_v4 }
 0x244   :  { %3650 = vrcp.f32 %v6155_v58  ;;  %vm1040_vm6 = vweird.f32 %v1033_v54  ;;  %vm1055_vm7 = vweird.f32 %v1034_v4  ;;  %vm1045_vm8 = vcmp.eq.f32.partialorder %v1044_v8, 8.507059e+37 }
 0x245   :  { %3652 = vtanh.f32 %v1026_v48  ;;  %v3540_v7 = vmul.f32 -1.442695, %v1271_v51  ;;  %vm1060_vm11 = vcmp.eq.f32.partialorder %v1059_v59, 8.507059e+37  ;;  %vm1078_vm13 = vweird.f32 %v6155_v58 }
 0x246   :  { %v1105_v51 = vmul.f32 %v6149_v31, %v5269_v13 }
 0x248   :  { %v3647_v49 = vpop.eup %3646 }
 0x249   :  { %v3649_v10 = vpop.eup %3648  ;;  %v1036_v63 = vmul.f32 %v3647_v49, %v1033_v54  ;;  %vm1041_vm4 = vweird.f32 %v3647_v49 }
 0x24a   :  { %v1051_v21 = vmul.f32 %v3649_v10, %v1034_v4  ;;  %vm1056_vm5 = vweird.f32 %v3649_v10  ;;  %v3651_v53 = vpop.eup %3650  ;;  %vm1042_vm9 = vmor %vm1040_vm6, %vm1041_vm4 }
 0x24b   :  { %v1037_v24 = vsub.f32 1.0, %v1036_v63  ;;  %v3539_v63 = vmul.f32 -1.442695, %v1270_v25  ;;  %v1074_v55 = vmul.f32 %v3651_v53, %v6155_v58  ;;  %vm1057_vm10 = vmor %vm1055_vm7, %vm1056_vm5  ;;  %v3653_v1 = vpop.eup %3652  ;;  %vm1079_vm12 = vweird.f32 %v3651_v53 }
 0x24c   :  { %v1052_v57 = vsub.f32 1.0, %v1051_v21  ;;  %v1047_v21 = vor.u32 1.1754944e-38, %v1046_v52  ;;  %vm1080_vm14 = vmor %vm1078_vm13, %vm1079_vm12 }
 0x24d   :  { %v1038_v50 = vmul.f32 %v3647_v49, %v1037_v24  ;;  %v1062_v24 = vor.u32 1.1754944e-38, %v1061_v61  ;;  %3654 = vpow2.f32 %v3539_v63  ;;  %v1075_v44 = vsub.f32 1.0, %v1074_v55 }
 0x24e   :  { %v1053_v43 = vmul.f32 %v3649_v10, %v1052_v57  ;;  %3656 = vpow2.f32 %v3540_v7  ;;  %v1272_v61 = vadd.f32 %v1167_v14, %v1108_v60  ;;  %v1084_v7 = vand.u32 2147483648, %v6155_v58 }
 0x24f   :  { %v1039_v62 = vadd.f32 %v3647_v49, %v1038_v50  ;;  %v698_v60 = vstv %s697_s12  ;;  %v1092_v63 = vstv %s1091_s6  ;;  %s8361_s6 = scalar_select %p3060_p6, 1, 0 }
 0x250   :  { %v1054_v48 = vadd.f32 %v3649_v10, %v1053_v43  ;;  %v1076_v43 = vmul.f32 %v3651_v53, %v1075_v44  ;;  %v3541_v12 = vmul.f32 -1.442695, %v1272_v61  ;;  %v1085_v55 = vor.u32 1.1754944e-38, %v1084_v7 }
 0x251   :  { %v1043_v45 = vsel %vm1042_vm9, %v3647_v49, %v1039_v62  ;;  %vm6186_vm15 = vcmp.eq.s32.totalorder %v698_v60, 1  ;;  %vm1093_vm1 = vcmp.eq.s32.totalorder %v1092_v63, 1  ;;  %v9636_v63 = vld [vmem:[#allocation30_spill] sm:$0xff] }
 0x252   :  { %v1048_v50 = vsel %vm1045_vm8, %v1047_v21, %v1043_v45  ;;  %v1058_v54 = vsel %vm1057_vm10, %v3649_v10, %v1054_v48  ;;  %v1077_v57 = vadd.f32 %v3651_v53, %v1076_v43  ;;  %v1187_v48 = vpop.f32.mrf.mxu3  ;;  %v9638_v21 = vld [vmem:[#allocation32_spill] sm:$0xff] }
 0x253   :  { %v1063_v25 = vsel %vm1060_vm11, %v1062_v24, %v1058_v54  ;;  %v1067_v4 = vmul.f32 %v3653_v1, %v1048_v50  ;;  %v3655_v8 = vpop.eup %3654 }
 0x254   :  { %v1066_v52 = vmul.f32 %v1063_v25, %v5517_v34  ;;  %v3657_v45 = vpop.eup %3656  ;;  %v6176_v10 = vadd.f32 1.0, %v3655_v8  ;;  %v1082_v34 = vand.u32 2147483647, %v6155_v58  ;;  %v1081_v62 = vsel %vm1080_vm14, %v3651_v53, %v1077_v57 }
 0x255   :  { %v6179_v59 = vadd.f32 1.0, %v3657_v45  ;;  %v1109_v58 = vadd.f32 %v1105_v51, %v5287_v20  ;;  %v700_v53 = vsel %vm6186_vm15, %v5538_v0, 0.0  ;;  %v9634_v51 = vld [vmem:[#allocation28_spill] sm:$0xff] }
 0x256   :  { %v6172_v49 = vadd.f32 %v1067_v4, %v1066_v52  ;;  %vm1083_vm0 = vcmp.eq.f32.partialorder %v1082_v34, 8.507059e+37  ;;  %v1291_v45 = vand.u32 2147483647, %v6176_v10  ;;  %vm1287_vm4 = vweird.f32 %v6176_v10 }
 0x257   :  { %v1086_v1 = vsel %vm1083_vm0, %v1085_v55, %v1081_v62  ;;  %v1273_v25 = vadd.f32 %v1187_v48, %v1109_v58  ;;  %v1308_v8 = vand.u32 2147483648, %v6179_v59  ;;  %vm1302_vm5 = vweird.f32 %v6179_v59  ;;  %v9635_v62 = vld [vmem:[#allocation29_spill] sm:$0xff]  ;;  %v9637_v55 = vld [vmem:[#allocation31_spill] sm:$0xff] }
 0x258   :  { %3658 = vtanh.f32 %v6172_v49  ;;  %vm1292_vm8 = vcmp.eq.f32.partialorder %v1291_v45, 8.507059e+37  ;;  %v9639_v48 = vld [vmem:[#allocation33_spill] sm:$0xff]  ;;  %v9641_v58 = vld [vmem:[#allocation35_spill] sm:$0xff] }
 0x259   :  { %3660 = vpow2.f32 %v3541_v12  ;;  %v1293_v12 = vand.u32 2147483648, %v6176_v10  ;;  %v9657_v45 = vld [vmem:[#allocation51_spill] sm:$0xff] }
 0x25a   :  { %3662 = vrcp.f32 %v6176_v10 }
 0x25b   :  { %3664 = vrcp.f32 %v6179_v59 }
 0x25e   :  { %v3659_v24 = vpop.eup %3658 }
 0x25f   :  { %v3661_v44 = vpop.eup %3660  ;;  %v1089_v50 = vmul.f32 %v3659_v24, %v1086_v1  ;;  %v9640_v24 = vld [vmem:[#allocation34_spill] sm:$0xff]  ;;  %v9642_v1 = vld [vmem:[#allocation36_spill] sm:$0xff] }
 0x260   :  { %v3663_v31 = vpop.eup %3662  ;;  %v6194_v54 = vadd.f32 1.0, %v3661_v44  ;;  %v9643_v44 = vld [vmem:[#allocation37_spill] sm:$0xff] }
 0x261   :  { %v3665_v4 = vpop.eup %3664  ;;  %v1283_v14 = vmul.f32 %v3663_v31, %v6176_v10  ;;  %v6197_v43 = vsel %vm1093_vm1, %v1089_v50, %v700_v53  ;;  %1206 = vmatmul.f32.vlgmr.msrb.gmra.mxu0 %v1089_v50  ;;  %1226 = vmatmul.f32.vlgmr.msrb.gmra.mxu1 %v1089_v50  ;;  %vm1288_vm2 = vweird.f32 %v3663_v31  ;;  %v9646_v53 = vld [vmem:[#allocation40_spill] sm:$0xff] }
 0x262   :  { %v1298_v52 = vmul.f32 %v3665_v4, %v6179_v59  ;;  %3666 = vrcp.f32 %v6194_v54  ;;  %1246 = vmatmul.f32.vlgmr.msrb.gmra.mxu2 %v1089_v50  ;;  %1266 = vmatmul.f32.vlgmr.msrb.gmra.mxu3 %v1089_v50  ;;  %vm1303_vm3 = vweird.f32 %v3665_v4  ;;  %vm1289_vm6 = vmor %vm1287_vm4, %vm1288_vm2  ;;  %vm1325_vm11 = vweird.f32 %v6194_v54  ;;  %v9644_v50 = vld [vmem:[#allocation38_spill] sm:$0xff] }
 0x263   :  { %v1284_v61 = vsub.f32 1.0, %v1283_v14  ;;  %1504 = vmatpush.msrb.mxu0 %v5548_v2  ;;  %1524 = vmatpush.msrb.mxu1 %v5551_v3  ;;  %3668 = vtanh.f32 %v1273_v25  ;;  %v1306_v3 = vand.u32 2147483647, %v6179_v59  ;;  %vm1304_vm7 = vmor %vm1302_vm5, %vm1303_vm3  ;;  %v9648_v25 = vld [vmem:[#allocation42_spill] sm:$0xff]  ;;  %v9650_v14 = vld [vmem:[#allocation44_spill] sm:$0xff] }
 0x264   :  { %v1299_v0 = vsub.f32 1.0, %v1298_v52  ;;  %1544 = vmatpush.msrb.mxu2 %v5558_v5  ;;  %1564 = vmatpush.msrb.mxu3 %v5561_v6  ;;  %v9651_v52 = vld [vmem:[#allocation45_spill] sm:$0xff] }
 0x265   :  { %v1285_v57 = vmul.f32 %v3663_v31, %v1284_v61  ;;  %1505 = vmatpush.msrb.mxu0 %v5566_v9  ;;  %1525 = vmatpush.msrb.mxu1 %v5569_v11  ;;  %v1294_v9 = vor.u32 1.1754944e-38, %v1293_v12  ;;  %vm1307_vm9 = vcmp.eq.f32.partialorder %v1306_v3, 8.507059e+37  ;;  %v9652_v61 = vld [vmem:[#allocation46_spill] sm:$0xff]  ;;  %v9654_v12 = vld [vmem:[#allocation48_spill] sm:$0xff]  ;;  %v9659_v3 = vld [vmem:[#allocation53_spill] sm:$0xff] }
 0x266   :  { %v1300_v2 = vmul.f32 %v3665_v4, %v1299_v0  ;;  %1545 = vmatpush.msrb.mxu2 %v5572_v15  ;;  %1565 = vmatpush.msrb.mxu3 %v5575_v16  ;;  %v1309_v15 = vor.u32 1.1754944e-38, %v1308_v8  ;;  %v9653_v0 = vld [vmem:[#allocation47_spill] sm:$0xff]  ;;  %v9655_v8 = vld [vmem:[#allocation49_spill] sm:$0xff] }
 0x267   :  { %v1286_v5 = vadd.f32 %v3663_v31, %v1285_v57  ;;  %1506 = vmatpush.msrb.mxu0 %v5578_v17  ;;  %1526 = vmatpush.msrb.mxu1 %v5581_v18  ;;  %v9656_v57 = vld [vmem:[#allocation50_spill] sm:$0xff] }
 0x268   :  { %v3667_v6 = vpop.eup %3666  ;;  %v1301_v11 = vadd.f32 %v3665_v4, %v1300_v2  ;;  %1546 = vmatpush.msrb.mxu2 %v5584_v22  ;;  %1566 = vmatpush.msrb.mxu3 %v5587_v23  ;;  %v9658_v2 = vld [vmem:[#allocation52_spill] sm:$0xff] }
 0x269   :  { %v1321_v16 = vmul.f32 %v3667_v6, %v6194_v54  ;;  %v1290_v7 = vsel %vm1289_vm6, %v3663_v31, %v1286_v5  ;;  %1507 = vmatpush.msrb.mxu0 %v5592_v19  ;;  %1527 = vmatpush.msrb.mxu1 %v5595_v26  ;;  %v3669_v17 = vpop.eup %3668  ;;  %vm1326_vm10 = vweird.f32 %v3667_v6  ;;  %v9645_v31 = vld [vmem:[#allocation39_spill] sm:$0xff]  ;;  %v9660_v5 = vld [vmem:[#allocation54_spill] sm:$0xff] }
 0x26a   :  { %v1295_v18 = vsel %vm1292_vm8, %v1294_v9, %v1290_v7  ;;  %v1305_v10 = vsel %vm1304_vm7, %v3665_v4, %v1301_v11  ;;  %1547 = vmatpush.msrb.mxu2 %v5598_v27  ;;  %1567 = vmatpush.msrb.mxu3 %v5601_v28  ;;  %v1329_v28 = vand.u32 2147483647, %v6194_v54  ;;  %vm1327_vm12 = vmor %vm1325_vm11, %vm1326_vm10  ;;  %v9649_v4 = vld [vmem:[#allocation43_spill] sm:$0xff]  ;;  %v9662_v9 = vld [vmem:[#allocation56_spill] sm:$0xff] }
 0x26b   :  { %v1322_v22 = vsub.f32 1.0, %v1321_v16  ;;  %v1310_v23 = vsel %vm1307_vm9, %v1309_v15, %v1305_v10  ;;  %v1314_v59 = vmul.f32 %v3669_v17, %v1295_v18  ;;  %1508 = vmatpush.msrb.mxu0 %v5608_v30  ;;  %1528 = vmatpush.msrb.mxu1 %v5611_v32  ;;  %v9624_v30 = vld [vmem:[#allocation18_spill] sm:$0xff]  ;;  %v9625_v32 = vld [vmem:[#allocation19_spill] sm:$0xff]  ;;  %v9663_v11 = vld [vmem:[#allocation57_spill] sm:$0xff] }
 0x26c   :  { %v1313_v34 = vmul.f32 %v1310_v23, %v5536_v56  ;;  %1548 = vmatpush.msrb.mxu2 %v5614_v33  ;;  %1568 = vmatpush.msrb.mxu3 %v5617_v36  ;;  %v1331_v56 = vand.u32 2147483648, %v6194_v54  ;;  %v9626_v36 = vld [vmem:[#allocation20_spill] sm:$0xff]  ;;  %vm1330_vm13 = vcmp.eq.f32.partialorder %v1329_v28, 8.507059e+37  ;;  %v9647_v54 = vld [vmem:[#allocation41_spill] sm:$0xff]  ;;  %v9664_v15 = vld [vmem:[#allocation58_spill] sm:$0xff] }
 0x26d   :  { %v1323_v19 = vmul.f32 %v3667_v6, %v1322_v22  ;;  %1509 = vmatpush.msrb.mxu0 %v5620_v37  ;;  %1529 = vmatpush.msrb.mxu1 %v5623_v38  ;;  %v9627_v37 = vld [vmem:[#allocation21_spill] sm:$0xff]  ;;  %v9665_v16 = vld [vmem:[#allocation59_spill] sm:$0xff]  ;;  %v9666_v7 = vld [vmem:[#allocation60_spill] sm:$0xff] }
 0x26e   :  { %v6233_v26 = vadd.f32 %v1314_v59, %v1313_v34  ;;  %1549 = vmatpush.msrb.mxu2 %v5626_v39  ;;  %1569 = vmatpush.msrb.mxu3 %v5629_v40  ;;  %v1332_v38 = vor.u32 1.1754944e-38, %v1331_v56  ;;  %v9628_v39 = vld [vmem:[#allocation22_spill] sm:$0xff]  ;;  %v9629_v40 = vld [vmem:[#allocation23_spill] sm:$0xff]  ;;  %v9667_v17 = vld [vmem:[#allocation61_spill] sm:$0xff] }
 0x26f   :  { %v1324_v27 = vadd.f32 %v3667_v6, %v1323_v19  ;;  %1510 = vmatpush.msrb.mxu0 %v5632_v41  ;;  %1530 = vmatpush.msrb.mxu1 %v5635_v42  ;;  %v9630_v41 = vld [vmem:[#allocation24_spill] sm:$0xff]  ;;  %v9631_v42 = vld [vmem:[#allocation25_spill] sm:$0xff]  ;;  %v9668_v18 = vld [vmem:[#allocation62_spill] sm:$0xff] }
 0x270   :  { %3670 = vtanh.f32 %v6233_v26  ;;  %1550 = vmatpush.msrb.mxu2 %v5638_v35  ;;  %1570 = vmatpush.msrb.mxu3 %v5641_v46  ;;  %v9669_v10 = vld [vmem:[#allocation63_spill] sm:$0xff]  ;;  %v9670_v22 = vld [vmem:[#allocation64_spill] sm:$0xff]  ;;  %v9671_v23 = vld [vmem:[#allocation65_spill] sm:$0xff] }
 0x271   :  { %1511 = vmatpush.msrb.mxu0 %v5644_v29  ;;  %1531 = vmatpush.msrb.mxu1 %v5647_v47  ;;  %v1328_v33 = vsel %vm1327_vm12, %v3667_v6, %v1324_v27  ;;  %v9632_v29 = vld [vmem:[#allocation26_spill] sm:$0xff]  ;;  %v9633_v47 = vld [vmem:[#allocation27_spill] sm:$0xff]  ;;  %v9674_v19 = vld [vmem:[#allocation68_spill] sm:$0xff] }
 0x272   :  { %1551 = vmatpush.msrb.mxu2 %v9624_v30  ;;  %1571 = vmatpush.msrb.mxu3 %v9625_v32  ;;  %v1333_v46 = vsel %vm1330_vm13, %v1332_v38, %v1328_v33  ;;  %v9661_v6 = vld [vmem:[#allocation55_spill] sm:$0xff]  ;;  %v9672_v59 = vld [vmem:[#allocation66_spill] sm:$0xff]  ;;  %v9675_v27 = vld [vmem:[#allocation69_spill] sm:$0xff] }
 0x273   :  { %1512 = vmatpush.msrb.mxu0 %v9626_v36  ;;  %1532 = vmatpush.msrb.mxu1 %v9627_v37  ;;  %v9673_v34 = vld [vmem:[#allocation67_spill] sm:$0xff]  ;;  %v9676_v56 = vld [vmem:[#allocation70_spill] sm:$0xff]  ;;  %v9678_v30 = vld [vmem:[#allocation72_spill] sm:$0xff] }
 0x274   :  { %1552 = vmatpush.msrb.mxu2 %v9628_v39  ;;  %1572 = vmatpush.msrb.mxu3 %v9629_v40  ;;  %v9677_v28 = vld [vmem:[#allocation71_spill] sm:$0xff]  ;;  %v9679_v32 = vld [vmem:[#allocation73_spill] sm:$0xff]  ;;  %v9680_v33 = vld [vmem:[#allocation74_spill] sm:$0xff] }
 0x275   :  { %1513 = vmatpush.msrb.mxu0 %v9630_v41  ;;  %1533 = vmatpush.msrb.mxu1 %v9631_v42  ;;  %v9681_v36 = vld [vmem:[#allocation75_spill] sm:$0xff]  ;;  %v9682_v37 = vld [vmem:[#allocation76_spill] sm:$0xff]  ;;  %v9683_v38 = vld [vmem:[#allocation77_spill] sm:$0xff] }
 0x276   :  { %v3671_v35 = vpop.eup %3670  ;;  %1553 = vmatpush.msrb.mxu2 %v9632_v29  ;;  %1573 = vmatpush.msrb.mxu3 %v9633_v47  ;;  %v9684_v39 = vld [vmem:[#allocation78_spill] sm:$0xff]  ;;  %v9685_v40 = vld [vmem:[#allocation79_spill] sm:$0xff]  ;;  %v9686_v41 = vld [vmem:[#allocation80_spill] sm:$0xff] }
 0x277   :  { %v1336_v60 = vmul.f32 %v3671_v35, %v1333_v46  ;;  %1514 = vmatpush.msrb.mxu0 %v9634_v51  ;;  %1534 = vmatpush.msrb.mxu1 %v9635_v62  ;;  %v9687_v42 = vld [vmem:[#allocation81_spill] sm:$0xff]  ;;  %v9688_v35 = vld [vmem:[#allocation82_spill] sm:$0xff]  ;;  %v9689_v46 = vld [vmem:[#allocation83_spill] sm:$0xff] }
 0x278   :  { %1554 = vmatpush.msrb.mxu2 %v9636_v63  ;;  %1574 = vmatpush.msrb.mxu3 %v9637_v55  ;;  %v9690_v29 = vld [vmem:[#allocation84_spill] sm:$0xff]  ;;  %v9691_v47 = vld [vmem:[#allocation85_spill] sm:$0xff]  ;;  %v9693_v51 = vld [vmem:[#allocation87_spill] sm:$0xff] }
 0x279   :  { %1353 = vmatmul.f32.vlgmr.msra.gmra.mxu0 %v1336_v60  ;;  %1373 = vmatmul.f32.vlgmr.msra.gmra.mxu1 %v1336_v60  ;;  %v9694_v62 = vld [vmem:[#allocation88_spill] sm:$0xff]  ;;  %v9695_v63 = vld [vmem:[#allocation89_spill] sm:$0xff]  ;;  %v9696_v55 = vld [vmem:[#allocation90_spill] sm:$0xff] }
 0x27a   :  { %1393 = vmatmul.f32.vlgmr.msra.gmra.mxu2 %v1336_v60  ;;  %1413 = vmatmul.f32.vlgmr.msra.gmra.mxu3 %v1336_v60 }
 0x27b   :  { %1515 = vmatpush.msrb.mxu0 %v9638_v21  ;;  %1535 = vmatpush.msrb.mxu1 %v9639_v48  ;;  %v9697_v21 = vld [vmem:[#allocation91_spill] sm:$0xff]  ;;  %v9698_v48 = vld [vmem:[#allocation92_spill] sm:$0xff] }
 0x27c   :  { %1555 = vmatpush.msrb.mxu2 %v9640_v24  ;;  %1575 = vmatpush.msrb.mxu3 %v9641_v58  ;;  %v9699_v24 = vld [vmem:[#allocation93_spill] sm:$0xff]  ;;  %v9700_v58 = vld [vmem:[#allocation94_spill] sm:$0xff] }
 0x27d   :  { %1516 = vmatpush.msrb.mxu0 %v9642_v1  ;;  %1536 = vmatpush.msrb.mxu1 %v9643_v44  ;;  %v9701_v1 = vld [vmem:[#allocation95_spill] sm:$0xff]  ;;  %v9702_v44 = vld [vmem:[#allocation96_spill] sm:$0xff] }
 0x27e   :  { %1556 = vmatpush.msrb.mxu2 %v9644_v50  ;;  %1576 = vmatpush.msrb.mxu3 %v9645_v31  ;;  %v9703_v50 = vld [vmem:[#allocation97_spill] sm:$0xff]  ;;  %v9704_v31 = vld [vmem:[#allocation98_spill] sm:$0xff] }
 0x27f   :  { %1517 = vmatpush.msrb.mxu0 %v9646_v53  ;;  %1537 = vmatpush.msrb.mxu1 %v9647_v54  ;;  %v9705_v53 = vld [vmem:[#allocation99_spill] sm:$0xff]  ;;  %v9706_v54 = vld [vmem:[#allocation100_spill] sm:$0xff] }
 0x280   :  { %1557 = vmatpush.msrb.mxu2 %v9648_v25  ;;  %1577 = vmatpush.msrb.mxu3 %v9649_v4  ;;  %v9707_v25 = vld [vmem:[#allocation101_spill] sm:$0xff]  ;;  %v9708_v4 = vld [vmem:[#allocation102_spill] sm:$0xff] }
 0x281   :  { %1518 = vmatpush.msrb.mxu0 %v9650_v14  ;;  %1538 = vmatpush.msrb.mxu1 %v9651_v52  ;;  %v9709_v14 = vld [vmem:[#allocation103_spill] sm:$0xff]  ;;  %v9710_v52 = vld [vmem:[#allocation104_spill] sm:$0xff] }
 0x282   :  { %1558 = vmatpush.msrb.mxu2 %v9652_v61  ;;  %1578 = vmatpush.msrb.mxu3 %v9653_v0  ;;  %v9711_v61 = vld [vmem:[#allocation105_spill] sm:$0xff]  ;;  %v9712_v0 = vld [vmem:[#allocation106_spill] sm:$0xff] }
 0x283   :  { %1519 = vmatpush.msrb.mxu0 %v9654_v12  ;;  %1539 = vmatpush.msrb.mxu1 %v9655_v8  ;;  %v9713_v12 = vld [vmem:[#allocation107_spill] sm:$0xff]  ;;  %v9714_v8 = vld [vmem:[#allocation108_spill] sm:$0xff] }
 0x284   :  { %1559 = vmatpush.msrb.mxu2 %v9656_v57  ;;  %1579 = vmatpush.msrb.mxu3 %v9657_v45  ;;  %v9715_v57 = vld [vmem:[#allocation109_spill] sm:$0xff]  ;;  %v9716_v45 = vld [vmem:[#allocation110_spill] sm:$0xff] }
 0x285   :  { %1520 = vmatmul.f32.vlgmr.msrb.gmra.mxu0 %v1336_v60  ;;  %1540 = vmatmul.f32.vlgmr.msrb.gmra.mxu1 %v1336_v60 }
 0x286   :  { %1560 = vmatmul.f32.vlgmr.msrb.gmra.mxu2 %v1336_v60  ;;  %1580 = vmatmul.f32.vlgmr.msrb.gmra.mxu3 %v1336_v60  ;;  %v9692_v60 = vld [vmem:[#allocation86_spill] sm:$0xff] }
 0x287   :  { %1584 = vmatpush.msra.mxu0 %v9658_v2  ;;  %1604 = vmatpush.msra.mxu1 %v9659_v3  ;;  %v9717_v2 = vld [vmem:[#allocation111_spill] sm:$0xff]  ;;  %v9718_v3 = vld [vmem:[#allocation112_spill] sm:$0xff] }
 0x288   :  { %1624 = vmatpush.msra.mxu2 %v9660_v5  ;;  %1644 = vmatpush.msra.mxu3 %v9661_v6  ;;  %v9719_v5 = vld [vmem:[#allocation113_spill] sm:$0xff]  ;;  %v9720_v6 = vld [vmem:[#allocation114_spill] sm:$0xff] }
 0x289   :  { %1585 = vmatpush.msra.mxu0 %v9662_v9  ;;  %1605 = vmatpush.msra.mxu1 %v9663_v11  ;;  %v9721_v9 = vld [vmem:[#allocation115_spill] sm:$0xff]  ;;  %v9722_v11 = vld [vmem:[#allocation116_spill] sm:$0xff] }
 0x28a   :  { %1625 = vmatpush.msra.mxu2 %v9664_v15  ;;  %1645 = vmatpush.msra.mxu3 %v9665_v16  ;;  %v9723_v15 = vld [vmem:[#allocation117_spill] sm:$0xff]  ;;  %v9724_v16 = vld [vmem:[#allocation118_spill] sm:$0xff] }
 0x28b   :  { %1586 = vmatpush.msra.mxu0 %v9666_v7  ;;  %1606 = vmatpush.msra.mxu1 %v9667_v17  ;;  %v9725_v7 = vld [vmem:[#allocation119_spill] sm:$0xff]  ;;  %v9726_v17 = vld [vmem:[#allocation120_spill] sm:$0xff] }
 0x28c   :  { %1626 = vmatpush.msra.mxu2 %v9668_v18  ;;  %1646 = vmatpush.msra.mxu3 %v9669_v10  ;;  %v9727_v18 = vld [vmem:[#allocation121_spill] sm:$0xff]  ;;  %v9728_v10 = vld [vmem:[#allocation122_spill] sm:$0xff] }
 0x28d   :  { %1587 = vmatpush.msra.mxu0 %v9670_v22  ;;  %1607 = vmatpush.msra.mxu1 %v9671_v23  ;;  %v9729_v22 = vld [vmem:[#allocation123_spill] sm:$0xff]  ;;  %v9730_v23 = vld [vmem:[#allocation124_spill] sm:$0xff] }
 0x28e   :  { %1627 = vmatpush.msra.mxu2 %v9672_v59  ;;  %1647 = vmatpush.msra.mxu3 %v9673_v34  ;;  %v9731_v59 = vld [vmem:[#allocation125_spill] sm:$0xff]  ;;  %v9732_v34 = vld [vmem:[#allocation126_spill] sm:$0xff] }
 0x28f   :  { %1588 = vmatpush.msra.mxu0 %v9674_v19  ;;  %1608 = vmatpush.msra.mxu1 %v9675_v27  ;;  %v9733_v19 = vld [vmem:[#allocation127_spill] sm:$0xff]  ;;  %v9734_v27 = vld [vmem:[#allocation128_spill] sm:$0xff] }
 0x290   :  { %1628 = vmatpush.msra.mxu2 %v9676_v56  ;;  %1648 = vmatpush.msra.mxu3 %v9677_v28  ;;  %v9735_v56 = vld [vmem:[#allocation129_spill] sm:$0xff]  ;;  %v9736_v28 = vld [vmem:[#allocation130_spill] sm:$0xff] }
 0x291   :  { %1589 = vmatpush.msra.mxu0 %v9678_v30  ;;  %1609 = vmatpush.msra.mxu1 %v9679_v32  ;;  %v9737_v30 = vld [vmem:[#allocation131_spill] sm:$0xff]  ;;  %v9738_v32 = vld [vmem:[#allocation132_spill] sm:$0xff] }
 0x292   :  { %1629 = vmatpush.msra.mxu2 %v9680_v33  ;;  %1649 = vmatpush.msra.mxu3 %v9681_v36  ;;  %v9739_v33 = vld [vmem:[#allocation133_spill] sm:$0xff]  ;;  %v9740_v36 = vld [vmem:[#allocation134_spill] sm:$0xff] }
 0x293   :  { %1590 = vmatpush.msra.mxu0 %v9682_v37  ;;  %1610 = vmatpush.msra.mxu1 %v9683_v38  ;;  %v9741_v37 = vld [vmem:[#allocation135_spill] sm:$0xff]  ;;  %v9742_v38 = vld [vmem:[#allocation136_spill] sm:$0xff] }
 0x294   :  { %1630 = vmatpush.msra.mxu2 %v9684_v39  ;;  %1650 = vmatpush.msra.mxu3 %v9685_v40  ;;  %v9743_v39 = vld [vmem:[#allocation137_spill] sm:$0xff]  ;;  %v9744_v40 = vld [vmem:[#allocation138_spill] sm:$0xff] }
 0x295   :  { %1591 = vmatpush.msra.mxu0 %v9686_v41  ;;  %1611 = vmatpush.msra.mxu1 %v9687_v42  ;;  %v9745_v41 = vld [vmem:[#allocation139_spill] sm:$0xff]  ;;  %v9746_v42 = vld [vmem:[#allocation140_spill] sm:$0xff] }
 0x296   :  { %1631 = vmatpush.msra.mxu2 %v9688_v35  ;;  %1651 = vmatpush.msra.mxu3 %v9689_v46  ;;  %v9747_v35 = vld [vmem:[#allocation141_spill] sm:$0xff]  ;;  %v9748_v46 = vld [vmem:[#allocation142_spill] sm:$0xff] }
 0x297   :  { %1592 = vmatpush.msra.mxu0 %v9690_v29  ;;  %1612 = vmatpush.msra.mxu1 %v9691_v47  ;;  %v9749_v29 = vld [vmem:[#allocation143_spill] sm:$0xff]  ;;  %v9750_v47 = vld [vmem:[#allocation144_spill] sm:$0xff] }
 0x298   :  { %1632 = vmatpush.msra.mxu2 %v9692_v60  ;;  %1652 = vmatpush.msra.mxu3 %v9693_v51  ;;  %v9751_v60 = vld [vmem:[#allocation145_spill] sm:$0xff]  ;;  %v9752_v51 = vld [vmem:[#allocation146_spill] sm:$0xff] }
 0x299   :  { %1593 = vmatpush.msra.mxu0 %v9694_v62  ;;  %1613 = vmatpush.msra.mxu1 %v9695_v63  ;;  %v9753_v62 = vld [vmem:[#allocation147_spill] sm:$0xff]  ;;  %v9754_v63 = vld [vmem:[#allocation148_spill] sm:$0xff] }
 0x29a   :  { %1633 = vmatpush.msra.mxu2 %v9696_v55  ;;  %1653 = vmatpush.msra.mxu3 %v9697_v21  ;;  %v9755_v55 = vld [vmem:[#allocation149_spill] sm:$0xff]  ;;  %v9756_v21 = vld [vmem:[#allocation150_spill] sm:$0xff] }
 0x29b   :  { %1594 = vmatpush.msra.mxu0 %v9698_v48  ;;  %1614 = vmatpush.msra.mxu1 %v9699_v24  ;;  %v9757_v48 = vld [vmem:[#allocation157_spill] sm:$0xff]  ;;  %v9758_v24 = vld [vmem:[#allocation158_spill] sm:$0xff] }
 0x29c   :  { %1634 = vmatpush.msra.mxu2 %v9700_v58  ;;  %1654 = vmatpush.msra.mxu3 %v9701_v1  ;;  %v9759_v58 = vld [vmem:[#allocation159_spill] sm:$0xff]  ;;  %v9760_v1 = vld [vmem:[#allocation160_spill] sm:$0xff] }
 0x29d   :  { %1595 = vmatpush.msra.mxu0 %v9702_v44  ;;  %1615 = vmatpush.msra.mxu1 %v9703_v50  ;;  %v9761_v44 = vld [vmem:[#allocation161_spill] sm:$0xff]  ;;  %v9762_v50 = vld [vmem:[#allocation162_spill] sm:$0xff] }
 0x29e   :  { %1635 = vmatpush.msra.mxu2 %v9704_v31  ;;  %1655 = vmatpush.msra.mxu3 %v9705_v53  ;;  %v9763_v31 = vld [vmem:[#allocation163_spill] sm:$0xff]  ;;  %v9764_v53 = vld [vmem:[#allocation164_spill] sm:$0xff] }
 0x29f   :  { %1596 = vmatpush.msra.mxu0 %v9706_v54  ;;  %1616 = vmatpush.msra.mxu1 %v9707_v25  ;;  %v9765_v54 = vld [vmem:[#allocation165_spill] sm:$0xff]  ;;  %v9766_v25 = vld [vmem:[#allocation166_spill] sm:$0xff] }
 0x2a0   :  { %1636 = vmatpush.msra.mxu2 %v9708_v4  ;;  %1656 = vmatpush.msra.mxu3 %v9709_v14  ;;  %v9767_v4 = vld [vmem:[#allocation167_spill] sm:$0xff]  ;;  %v9768_v14 = vld [vmem:[#allocation168_spill] sm:$0xff] }
 0x2a1   :  { %1597 = vmatpush.msra.mxu0 %v9710_v52  ;;  %1617 = vmatpush.msra.mxu1 %v9711_v61  ;;  %v9769_v52 = vld [vmem:[#allocation169_spill] sm:$0xff]  ;;  %v9770_v61 = vld [vmem:[#allocation170_spill] sm:$0xff] }
 0x2a2   :  { %1637 = vmatpush.msra.mxu2 %v9712_v0  ;;  %1657 = vmatpush.msra.mxu3 %v9713_v12  ;;  %v9771_v0 = vld [vmem:[#allocation171_spill] sm:$0xff]  ;;  %v9772_v12 = vld [vmem:[#allocation172_spill] sm:$0xff] }
 0x2a3   :  { %1598 = vmatpush.msra.mxu0 %v9714_v8  ;;  %1618 = vmatpush.msra.mxu1 %v9715_v57  ;;  %v9773_v8 = vld [vmem:[#allocation173_spill] sm:$0xff]  ;;  %v9774_v57 = vld [vmem:[#allocation174_spill] sm:$0xff] }
 0x2a4   :  { %1638 = vmatpush.msra.mxu2 %v9716_v45  ;;  %1658 = vmatpush.msra.mxu3 %v9717_v2  ;;  %v9775_v45 = vld [vmem:[#allocation175_spill] sm:$0xff]  ;;  %v9776_v2 = vld [vmem:[#allocation176_spill] sm:$0xff] }
 0x2a5   :  { %1599 = vmatpush.msra.mxu0 %v9718_v3  ;;  %1619 = vmatpush.msra.mxu1 %v9719_v5  ;;  %v9777_v3 = vld [vmem:[#allocation177_spill] sm:$0xff]  ;;  %v9778_v5 = vld [vmem:[#allocation178_spill] sm:$0xff] }
 0x2a6   :  { %1639 = vmatpush.msra.mxu2 %v9720_v6  ;;  %1659 = vmatpush.msra.mxu3 %v9721_v9  ;;  %v9779_v6 = vld [vmem:[#allocation179_spill] sm:$0xff]  ;;  %v9780_v9 = vld [vmem:[#allocation180_spill] sm:$0xff] }
 0x2a7   :  { %1731 = vmatpush.msrb.mxu0 %v9722_v11  ;;  %1751 = vmatpush.msrb.mxu1 %v9723_v15  ;;  %v9781_v11 = vld [vmem:[#allocation181_spill] sm:$0xff]  ;;  %v9782_v15 = vld [vmem:[#allocation182_spill] sm:$0xff] }
 0x2a8   :  { %1771 = vmatpush.msrb.mxu2 %v9724_v16  ;;  %1791 = vmatpush.msrb.mxu3 %v9725_v7  ;;  %v9783_v16 = vld [vmem:[#allocation183_spill] sm:$0xff]  ;;  %v9784_v7 = vld [vmem:[#allocation184_spill] sm:$0xff] }
 0x2a9   :  { %1732 = vmatpush.msrb.mxu0 %v9726_v17  ;;  %1752 = vmatpush.msrb.mxu1 %v9727_v18  ;;  %v9785_v17 = vld [vmem:[#allocation185_spill] sm:$0xff] }
 0x2aa   :  { %1772 = vmatpush.msrb.mxu2 %v9728_v10  ;;  %1792 = vmatpush.msrb.mxu3 %v9729_v22 }
 0x2ab   :  { %1733 = vmatpush.msrb.mxu0 %v9730_v23  ;;  %1753 = vmatpush.msrb.mxu1 %v9731_v59 }
 0x2ac   :  { %1773 = vmatpush.msrb.mxu2 %v9732_v34  ;;  %1793 = vmatpush.msrb.mxu3 %v9733_v19 }
 0x2ad   :  { %1734 = vmatpush.msrb.mxu0 %v9734_v27  ;;  %1754 = vmatpush.msrb.mxu1 %v9735_v56  ;;  %v9786_v27 = vld [vmem:[#allocation14_spill] sm:$0xff] }
 0x2ae   :  { %1774 = vmatpush.msrb.mxu2 %v9736_v28  ;;  %1794 = vmatpush.msrb.mxu3 %v9737_v30  ;;  %v9787_v28 = vld [vmem:[#allocation15_spill] sm:$0xff] }
 0x2af   :  { %1735 = vmatpush.msrb.mxu0 %v9738_v32  ;;  %1755 = vmatpush.msrb.mxu1 %v9739_v33 }
 0x2b0   :  { %1775 = vmatpush.msrb.mxu2 %v9740_v36  ;;  %1795 = vmatpush.msrb.mxu3 %v9741_v37  ;;  %v1494_v36 = vpop.permute.xlu1 %1493 }
 0x2b1   :  { %1736 = vmatpush.msrb.mxu0 %v9742_v38  ;;  %1756 = vmatpush.msrb.mxu1 %v9743_v39  ;;  %v9788_v39 = vld [vmem:[#allocation151_spill] sm:$0xff] }
 0x2b2   :  { %1776 = vmatpush.msrb.mxu2 %v9744_v40  ;;  %1796 = vmatpush.msrb.mxu3 %v9745_v41  ;;  %v1496_v40 = vmul.f32 %v1494_v36, %v9788_v39  ;;  %v9789_v41 = vld [vmem:[#allocation152_spill] sm:$0xff] }
 0x2b3   :  { %1737 = vmatpush.msrb.mxu0 %v9746_v42  ;;  %1757 = vmatpush.msrb.mxu1 %v9747_v35  ;;  %v1497_v42 = vmul.f32 %v1494_v36, %v9789_v41 }
 0x2b4   :  { %1777 = vmatpush.msrb.mxu2 %v9748_v46  ;;  %1797 = vmatpush.msrb.mxu3 %v9749_v29  ;;  %v9790_v46 = vld [vmem:[#allocation16_spill] sm:$0xff] }
 0x2b5   :  { %1738 = vmatpush.msrb.mxu0 %v9750_v47  ;;  %1758 = vmatpush.msrb.mxu1 %v9751_v60  ;;  %v9791_v47 = vld [vmem:[#allocation153_spill] sm:$0xff] }
 0x2b6   :  { %1778 = vmatpush.msrb.mxu2 %v9752_v51  ;;  %1798 = vmatpush.msrb.mxu3 %v9753_v62  ;;  %v1500_v60 = vadd.f32 %v1496_v40, %v9791_v47  ;;  %v9792_v51 = vld [vmem:[#allocation154_spill] sm:$0xff] }
 0x2b7   :  { %1739 = vmatpush.msrb.mxu0 %v9754_v63  ;;  %1759 = vmatpush.msrb.mxu1 %v9755_v55  ;;  %v1501_v62 = vadd.f32 %v1497_v42, %v9792_v51 }
 0x2b8   :  { %1779 = vmatpush.msrb.mxu2 %v9756_v21  ;;  %1799 = vmatpush.msrb.mxu3 %v9757_v48 }
 0x2b9   :  { %1740 = vmatpush.msrb.mxu0 %v9758_v24  ;;  %1760 = vmatpush.msrb.mxu1 %v9759_v58 }
 0x2ba   :  { %1780 = vmatpush.msrb.mxu2 %v9760_v1  ;;  %1800 = vmatpush.msrb.mxu3 %v9761_v44 }
 0x2bb   :  { %1741 = vmatpush.msrb.mxu0 %v9762_v50  ;;  %1761 = vmatpush.msrb.mxu1 %v9763_v31  ;;  %v9793_v31 = vld [vmem:[#allocation155_spill] sm:$0xff] }
 0x2bc   :  { %1781 = vmatpush.msrb.mxu2 %v9764_v53  ;;  %1801 = vmatpush.msrb.mxu3 %v9765_v54  ;;  %v1498_v53 = vmul.f32 %v1494_v36, %v9793_v31 }
 0x2bd   :  { %1742 = vmatpush.msrb.mxu0 %v9766_v25  ;;  %1762 = vmatpush.msrb.mxu1 %v9767_v4 }
 0x2be   :  { %1782 = vmatpush.msrb.mxu2 %v9768_v14  ;;  %1802 = vmatpush.msrb.mxu3 %v9769_v52  ;;  %v9794_v52 = vld [vmem:[#allocation156_spill] sm:$0xff] }
 0x2bf   :  { %1743 = vmatpush.msrb.mxu0 %v9770_v61  ;;  %1763 = vmatpush.msrb.mxu1 %v9771_v0  ;;  %v1502_v61 = vadd.f32 %v1498_v53, %v9794_v52 }
 0x2c0   :  { %1783 = vmatpush.msrb.mxu2 %v9772_v12  ;;  %1803 = vmatpush.msrb.mxu3 %v9773_v8 }
 0x2c1   :  { %1744 = vmatpush.msrb.mxu0 %v9774_v57  ;;  %1764 = vmatpush.msrb.mxu1 %v9775_v45  ;;  %v9795_v45 = vld [vmem:[#allocation17_spill] sm:$0xff] }
 0x2c2   :  { %1784 = vmatpush.msrb.mxu2 %v9776_v2  ;;  %1804 = vmatpush.msrb.mxu3 %v9777_v3  ;;  %v1499_v3 = vmul.f32 %v1494_v36, %v5269_v13 }
 0x2c3   :  { %1745 = vmatpush.msrb.mxu0 %v9778_v5  ;;  %1765 = vmatpush.msrb.mxu1 %v9779_v6 }
 0x2c4   :  { %1785 = vmatpush.msrb.mxu2 %v9780_v9  ;;  %1805 = vmatpush.msrb.mxu3 %v9781_v11 }
 0x2c5   :  { %1746 = vmatpush.msrb.mxu0 %v9782_v15  ;;  %1766 = vmatpush.msrb.mxu1 %v9783_v16 }
 0x2c6   :  { %1786 = vmatpush.msrb.mxu2 %v9784_v7  ;;  %1806 = vmatpush.msrb.mxu3 %v9785_v17 }
 0x2de   :  { %v1207_v18 = vpop.f32.mrf.mxu0  ;;  %v1227_v10 = vpop.f32.mrf.mxu1 }
 0x2e5   :  { %v1247_v22 = vpop.f32.mrf.mxu2  ;;  %v1267_v37 = vpop.f32.mrf.mxu3 }
 0x2f6   :  { %v1354_v23 = vpop.f32.mrf.mxu0  ;;  %v1374_v59 = vpop.f32.mrf.mxu1 }
 0x2f7   :  { %v1355_v34 = vadd.f32 %v1354_v23, %v1207_v18  ;;  %v1375_v19 = vadd.f32 %v1374_v59, %v1227_v10  ;;  %v1503_v10 = vadd.f32 %v1499_v3, %v5287_v20 }
 0x2f9   :  { %v1417_v56 = vadd.f32 %v1355_v34, %v9786_v27  ;;  %v1418_v30 = vadd.f32 %v1375_v19, %v9787_v28 }
 0x2fb   :  { %v3542_v32 = vmul.f32 -1.442695, %v1417_v56  ;;  %v3543_v33 = vmul.f32 -1.442695, %v1418_v30 }
 0x2fd   :  { %3672 = vpow2.f32 %v3542_v32  ;;  %v1394_v38 = vpop.f32.mrf.mxu2  ;;  %v1414_v50 = vpop.f32.mrf.mxu3 }
 0x2fe   :  { %3674 = vpow2.f32 %v3543_v33  ;;  %v1395_v35 = vadd.f32 %v1394_v38, %v1247_v22  ;;  %v1415_v14 = vadd.f32 %v1414_v50, %v1267_v37 }
 0x300   :  { %v1419_v29 = vadd.f32 %v1395_v35, %v9790_v46  ;;  %v1420_v2 = vadd.f32 %v1415_v14, %v9795_v45 }
 0x302   :  { %v3544_v63 = vmul.f32 -1.442695, %v1419_v29  ;;  %v1521_v55 = vpop.f32.mrf.mxu0  ;;  %v1541_v21 = vpop.f32.mrf.mxu1 }
 0x303   :  { %v3673_v48 = vpop.eup %3672  ;;  %v1664_v24 = vadd.f32 %v1521_v55, %v1500_v60  ;;  %v1665_v58 = vadd.f32 %v1541_v21, %v1501_v62 }
 0x304   :  { %v3675_v1 = vpop.eup %3674  ;;  %v1427_v44 = vadd.f32 1.0, %v3673_v48  ;;  %3676 = vpow2.f32 %v3544_v63 }
 0x305   :  { %v1428_v54 = vadd.f32 1.0, %v3675_v1  ;;  %v3546_v25 = vmul.f32 -1.442695, %v1664_v24  ;;  %v3547_v4 = vmul.f32 -1.442695, %v1665_v58 }
 0x306   :  { %3678 = vrcp.f32 %v1427_v44  ;;  %v1438_v23 = vand.u32 2147483647, %v1427_v44  ;;  %v1440_v59 = vand.u32 2147483648, %v1427_v44  ;;  %vm1434_vm1 = vweird.f32 %v1427_v44 }
 0x307   :  { %3680 = vrcp.f32 %v1428_v54  ;;  %v1455_v19 = vand.u32 2147483648, %v1428_v54  ;;  %v1453_v33 = vand.u32 2147483647, %v1428_v54  ;;  %vm1449_vm0 = vweird.f32 %v1428_v54 }
 0x308   :  { %3682 = vpow2.f32 %v3546_v25  ;;  %v1441_v42 = vor.u32 1.1754944e-38, %v1440_v59  ;;  %vm1439_vm4 = vcmp.eq.f32.partialorder %v1438_v23, 8.507059e+37  ;;  %v1486_v23 = vstv %s6455_s15 }
 0x309   :  { %3684 = vpow2.f32 %v3547_v4  ;;  %v1561_v0 = vpop.f32.mrf.mxu2  ;;  %v1581_v30 = vpop.f32.mrf.mxu3  ;;  %v1456_v62 = vor.u32 1.1754944e-38, %v1455_v19  ;;  %vm1454_vm5 = vcmp.eq.f32.partialorder %v1453_v33, 8.507059e+37 }
 0x30a   :  { %v3677_v12 = vpop.eup %3676  ;;  %v1666_v8 = vadd.f32 %v1561_v0, %v1502_v61  ;;  %v1667_v29 = vadd.f32 %v1581_v30, %v1503_v10 }
 0x30b   :  { %v6418_v57 = vadd.f32 1.0, %v3677_v12 }
 0x30c   :  { %v3679_v5 = vpop.eup %3678  ;;  %v3548_v6 = vmul.f32 -1.442695, %v1666_v8 }
 0x30d   :  { %v3681_v9 = vpop.eup %3680  ;;  %v1430_v11 = vmul.f32 %v3679_v5, %v1427_v44  ;;  %3686 = vrcp.f32 %v6418_v57  ;;  %vm1435_vm14 = vweird.f32 %v3679_v5  ;;  %vm1472_vm6 = vweird.f32 %v6418_v57 }
 0x30e   :  { %v3683_v15 = vpop.eup %3682  ;;  %v1445_v16 = vmul.f32 %v3681_v9, %v1428_v54  ;;  %3688 = vpow2.f32 %v3548_v6  ;;  %vm1450_vm15 = vweird.f32 %v3681_v9  ;;  %vm1436_vm2 = vmor %vm1434_vm1, %vm1435_vm14  ;;  %v1478_v4 = vand.u32 2147483648, %v6418_v57 }
 0x30f   :  { %v3685_v7 = vpop.eup %3684  ;;  %v1431_v17 = vsub.f32 1.0, %v1430_v11  ;;  %3690 = vtanh.f32 %v1420_v2  ;;  %v6423_v18 = vadd.f32 1.0, %v3683_v15  ;;  %vm1451_vm3 = vmor %vm1449_vm0, %vm1450_vm15  ;;  %v1476_v61 = vand.u32 2147483647, %v6418_v57 }
 0x310   :  { %v1446_v22 = vsub.f32 1.0, %v1445_v16  ;;  %v6426_v34 = vadd.f32 1.0, %v3685_v7  ;;  %v1479_v16 = vor.u32 1.1754944e-38, %v1478_v4 }
 0x311   :  { %v1432_v56 = vmul.f32 %v3679_v5, %v1431_v17  ;;  %3692 = vrcp.f32 %v6423_v18  ;;  %v1685_v2 = vand.u32 2147483647, %v6423_v18  ;;  %v1687_v3 = vand.u32 2147483648, %v6423_v18 }
 0x312   :  { %v1447_v32 = vmul.f32 %v3681_v9, %v1446_v22  ;;  %3694 = vrcp.f32 %v6426_v34  ;;  %v1702_v8 = vand.u32 2147483648, %v6426_v34  ;;  %vm1681_vm10 = vweird.f32 %v6423_v18  ;;  %v6580_v22 = vld [vmem:[#allocation4 + $0x148] sm:$0xff] }
 0x313   :  { %v6430_v36 = vpop.eup %3686  ;;  %v1433_v37 = vadd.f32 %v3679_v5, %v1432_v56  ;;  %vm1696_vm11 = vweird.f32 %v6426_v34  ;;  %vm1686_vm14 = vcmp.eq.f32.partialorder %v1685_v2, 8.507059e+37  ;;  %v1688_v59 = vor.u32 1.1754944e-38, %v1687_v3  ;;  %v6547_v3 = vld [vmem:[#allocation4 + $0x180] sm:$0xff] }
 0x314   :  { %v3689_v38 = vpop.eup %3688  ;;  %v1468_v40 = vmul.f32 %v6430_v36, %v6418_v57  ;;  %v1448_v35 = vadd.f32 %v3681_v9, %v1447_v32  ;;  %vm1473_vm7 = vweird.f32 %v6430_v36  ;;  %vm1477_vm1 = vcmp.eq.f32.partialorder %v1476_v61, 8.507059e+37  ;;  %v6538_v61 = vld [vmem:[#allocation4 + $0x1a8] sm:$0xff] }
 0x315   :  { %v3691_v60 = vpop.eup %3690  ;;  %v1437_v63 = vsel %vm1436_vm2, %v3679_v5, %v1433_v37  ;;  %v6434_v55 = vadd.f32 1.0, %v3689_v38  ;;  %vm6470_vm12 = vmor %vm1472_vm6, %vm1473_vm7  ;;  %vm6478_vm2 = vcmp.eq.s32.totalorder %v1486_v23, 1  ;;  %v6583_v23 = vld [vmem:[#allocation4 + $0x150] sm:$0xff] }
 0x316   :  { %v1469_v21 = vsub.f32 1.0, %v1468_v40  ;;  %v1442_v48 = vsel %vm1439_vm4, %v1441_v42, %v1437_v63  ;;  %v1452_v24 = vsel %vm1451_vm3, %v3681_v9, %v1448_v35  ;;  %v1700_v9 = vand.u32 2147483647, %v6426_v34 }
 0x317   :  { %v3693_v58 = vpop.eup %3692  ;;  %v1457_v1 = vsel %vm1454_vm5, %v1456_v62, %v1452_v24  ;;  %v1461_v44 = vmul.f32 %v3691_v60, %v1442_v48  ;;  %3696 = vrcp.f32 %v6434_v55  ;;  %v6503_v48 = vld [vmem:[#allocation4 + $0x1e8] sm:$0xff]  ;;  %vm1719_vm4 = vweird.f32 %v6434_v55 }
 0x318   :  { %v3695_v50 = vpop.eup %3694  ;;  %v1470_v53 = vmul.f32 %v6430_v36, %v1469_v21  ;;  %v1460_v54 = vmul.f32 %v1457_v1, %v6172_v49  ;;  %v1677_v25 = vmul.f32 %v3693_v58, %v6423_v18  ;;  %3698 = vtanh.f32 %v1667_v29  ;;  %v6500_v21 = vld [vmem:[#allocation4 + $0x1e0] sm:$0xff]  ;;  %v6511_v1 = vld [vmem:[#allocation4 + $0x1f8] sm:$0xff]  ;;  %v6652_v62 = vld [vmem:[#allocation4 + $0x88] sm:$0xff] }
 0x319   :  { %v1692_v14 = vmul.f32 %v3695_v50, %v6426_v34  ;;  %vm1682_vm8 = vweird.f32 %v3693_v58  ;;  %vm1697_vm9 = vweird.f32 %v3695_v50  ;;  %v1703_v34 = vor.u32 1.1754944e-38, %v1702_v8  ;;  %v6544_v8 = vld [vmem:[#allocation4 + $0x1b8] sm:$0xff]  ;;  %9819 = vst [vmem:[#allocation35_spill] sm:$0xff] %v6652_v62 }
 0x31a   :  { %v6447_v0 = vadd.f32 %v1461_v44, %v1460_v54  ;;  %v1678_v12 = vsub.f32 1.0, %v1677_v25  ;;  %v1471_v5 = vadd.f32 %v6430_v36, %v1470_v53  ;;  %vm1683_vm13 = vmor %vm1681_vm10, %vm1682_vm8  ;;  %vm1701_vm0 = vcmp.eq.f32.partialorder %v1700_v9, 8.507059e+37  ;;  %v6523_v53 = vld [vmem:[#allocation4 + $0x1c8] sm:$0xff]  ;;  %v6529_v54 = vld [vmem:[#allocation4 + $0x1d0] sm:$0xff] }
 0x31b   :  { %v1693_v49 = vsub.f32 1.0, %v1692_v14  ;;  %vm1698_vm15 = vmor %vm1696_vm11, %vm1697_vm9  ;;  %v1723_v24 = vand.u32 2147483647, %v6434_v55  ;;  %v6532_v25 = vld [vmem:[#allocation4 + $0x1d8] sm:$0xff]  ;;  %v6535_v14 = vld [vmem:[#allocation4 + $0x1a0] sm:$0xff] }
 0x31c   :  { %3700 = vtanh.f32 %v6447_v0  ;;  %v1679_v6 = vmul.f32 %v3693_v58, %v1678_v12  ;;  %v1475_v18 = vsel %vm6470_vm12, %v6430_v36, %v1471_v5  ;;  %v6541_v12 = vld [vmem:[#allocation4 + $0x1b0] sm:$0xff]  ;;  %v6550_v5 = vld [vmem:[#allocation4 + $0x188] sm:$0xff]  ;;  %v6637_v44 = vld [vmem:[#allocation4 + $0xa0] sm:$0xff] }
 0x31d   :  { %v6462_v11 = vpop.eup %3696  ;;  %v1694_v15 = vmul.f32 %v3695_v50, %v1693_v49  ;;  %v1480_v35 = vsel %vm1477_vm1, %v1479_v16, %v1475_v18  ;;  %vm1724_vm6 = vcmp.eq.f32.partialorder %v1723_v24, 8.507059e+37  ;;  %v6555_v9 = vld [vmem:[#allocation4 + $0x190] sm:$0xff]  ;;  %v6564_v16 = vld [vmem:[#allocation4 + $0x168] sm:$0xff]  ;;  %v6634_v24 = vld [vmem:[#allocation4 + $0xd8] sm:$0xff]  ;;  %9814 = vst [vmem:[#allocation30_spill] sm:$0xff] %v6637_v44 }
 0x31e   :  { %v3699_v7 = vpop.eup %3698  ;;  %v1715_v17 = vmul.f32 %v6462_v11, %v6434_v55  ;;  %v1680_v10 = vadd.f32 %v3693_v58, %v1679_v6  ;;  %vm1720_vm3 = vweird.f32 %v6462_v11  ;;  %v6592_v18 = vld [vmem:[#allocation4 + $0x128] sm:$0xff]  ;;  %9813 = vst [vmem:[#allocation29_spill] sm:$0xff] %v6634_v24 }
 0x31f   :  { %v1695_v19 = vadd.f32 %v3695_v50, %v1694_v15  ;;  %vm6516_vm5 = vmor %vm1719_vm4, %vm1720_vm3  ;;  %v6561_v15 = vld [vmem:[#allocation4 + $0x160] sm:$0xff] }
 0x320   :  { %v1716_v56 = vsub.f32 1.0, %v1715_v17  ;;  %v1684_v30 = vsel %vm1683_vm13, %v3693_v58, %v1680_v10  ;;  %v6508_v58 = vld [vmem:[#allocation4 + $0x1f0] sm:$0xff]  ;;  %v6574_v17 = vld [vmem:[#allocation4 + $0x178] sm:$0xff]  ;;  %v6577_v10 = vld [vmem:[#allocation4 + $0x140] sm:$0xff] }
 0x321   :  { %v1689_v32 = vsel %vm1686_vm14, %v1688_v59, %v1684_v30  ;;  %v1699_v57 = vsel %vm1698_vm15, %v3695_v50, %v1695_v19  ;;  %v6520_v50 = vld [vmem:[#allocation4 + $0x1c0] sm:$0xff]  ;;  %v6586_v59 = vld [vmem:[#allocation4 + $0x158] sm:$0xff] }
 0x322   :  { %v3701_v37 = vpop.eup %3700  ;;  %v1717_v38 = vmul.f32 %v6462_v11, %v1716_v56  ;;  %v1704_v40 = vsel %vm1701_vm0, %v1703_v34, %v1699_v57  ;;  %v1708_v42 = vmul.f32 %v3699_v7, %v1689_v32  ;;  %v6571_v7 = vld [vmem:[#allocation4 + $0x170] sm:$0xff]  ;;  %v6589_v19 = vld [vmem:[#allocation4 + $0x120] sm:$0xff]  ;;  %v6598_v56 = vld [vmem:[#allocation4 + $0x138] sm:$0xff] }
 0x323   :  { %v1707_v36 = vmul.f32 %v1704_v40, %v6233_v26  ;;  %v6484_v29 = vmul.f32 %v3701_v37, %v1480_v35  ;;  %v1725_v26 = vand.u32 2147483648, %v6434_v55  ;;  %v6595_v34 = vld [vmem:[#allocation4 + $0x130] sm:$0xff]  ;;  %v6601_v30 = vld [vmem:[#allocation4 + $0x100] sm:$0xff]  ;;  %v6604_v32 = vld [vmem:[#allocation4 + $0x108] sm:$0xff] }
 0x324   :  { %v1718_v63 = vadd.f32 %v6462_v11, %v1717_v38  ;;  %9802 = vst [vmem:[#allocation18_spill] sm:$0xff] %v6601_v30  ;;  %v6607_v57 = vld [vmem:[#allocation4 + $0x110] sm:$0xff]  ;;  %v6610_v37 = vld [vmem:[#allocation4 + $0x118] sm:$0xff]  ;;  %v6613_v38 = vld [vmem:[#allocation4 + $0xe0] sm:$0xff] }
 0x325   :  { %v6486_v60 = vadd.f32 %v1708_v42, %v1707_v36  ;;  %1600 = vmatmul.f32.vlgmr.msra.gmra.mxu0 %v6484_v29  ;;  %1620 = vmatmul.f32.vlgmr.msra.gmra.mxu1 %v6484_v29  ;;  %v1726_v4 = vor.u32 1.1754944e-38, %v1725_v26  ;;  %9803 = vst [vmem:[#allocation19_spill] sm:$0xff] %v6604_v32  ;;  %v6616_v40 = vld [vmem:[#allocation4 + $0xe8] sm:$0xff]  ;;  %v6619_v42 = vld [vmem:[#allocation4 + $0xf0] sm:$0xff]  ;;  %v6622_v35 = vld [vmem:[#allocation4 + $0xf8] sm:$0xff] }
 0x326   :  { %1640 = vmatmul.f32.vlgmr.msra.gmra.mxu2 %v6484_v29  ;;  %1660 = vmatmul.f32.vlgmr.msra.gmra.mxu3 %v6484_v29  ;;  %v1722_v55 = vsel %vm6516_vm5, %v6462_v11, %v1718_v63  ;;  %v6558_v11 = vld [vmem:[#allocation4 + $0x198] sm:$0xff]  ;;  %9804 = vst [vmem:[#allocation20_spill] sm:$0xff] %v6607_v57  ;;  %v6625_v36 = vld [vmem:[#allocation4 + $0xc0] sm:$0xff]  ;;  %v6628_v63 = vld [vmem:[#allocation4 + $0xc8] sm:$0xff] }
 0x327   :  { %3702 = vtanh.f32 %v6486_v60  ;;  %1898 = vmatpush.msra.mxu0 %v6500_v21  ;;  %1918 = vmatpush.msra.mxu1 %v6503_v48  ;;  %v1727_v49 = vsel %vm1724_vm6, %v1726_v4, %v1722_v55  ;;  %9805 = vst [vmem:[#allocation21_spill] sm:$0xff] %v6610_v37  ;;  %v6631_v26 = vld [vmem:[#allocation4 + $0xd0] sm:$0xff]  ;;  %v6640_v55 = vld [vmem:[#allocation4 + $0xa8] sm:$0xff] }
 0x328   :  { %1938 = vmatpush.msra.mxu2 %v6508_v58  ;;  %1958 = vmatpush.msra.mxu3 %v6511_v1  ;;  %9806 = vst [vmem:[#allocation22_spill] sm:$0xff] %v6613_v38  ;;  %v6643_v4 = vld [vmem:[#allocation4 + $0xb0] sm:$0xff] }
 0x329   :  { %1899 = vmatpush.msra.mxu0 %v6520_v50  ;;  %1919 = vmatpush.msra.mxu1 %v6523_v53  ;;  %9807 = vst [vmem:[#allocation23_spill] sm:$0xff] %v6616_v40 }
 0x32a   :  { %1939 = vmatpush.msra.mxu2 %v6529_v54  ;;  %1959 = vmatpush.msra.mxu3 %v6532_v25  ;;  %9808 = vst [vmem:[#allocation24_spill] sm:$0xff] %v6619_v42 }
 0x32b   :  { %1900 = vmatpush.msra.mxu0 %v6535_v14  ;;  %1920 = vmatpush.msra.mxu1 %v6538_v61  ;;  %9809 = vst [vmem:[#allocation25_spill] sm:$0xff] %v6622_v35 }
 0x32c   :  { %1940 = vmatpush.msra.mxu2 %v6541_v12  ;;  %1960 = vmatpush.msra.mxu3 %v6544_v8  ;;  %9810 = vst [vmem:[#allocation26_spill] sm:$0xff] %v6625_v36 }
 0x32d   :  { %v3703_v2 = vpop.eup %3702  ;;  %1901 = vmatpush.msra.mxu0 %v6547_v3  ;;  %1921 = vmatpush.msra.mxu1 %v6550_v5  ;;  %9811 = vst [vmem:[#allocation27_spill] sm:$0xff] %v6628_v63 }
 0x32e   :  { %v6553_v6 = vmul.f32 %v3703_v2, %v1727_v49  ;;  %1941 = vmatpush.msra.mxu2 %v6555_v9  ;;  %1961 = vmatpush.msra.mxu3 %v6558_v11  ;;  %9812 = vst [vmem:[#allocation28_spill] sm:$0xff] %v6631_v26  ;;  %v6646_v2 = vld [vmem:[#allocation4 + $0xb8] sm:$0xff]  ;;  %v6649_v49 = vld [vmem:[#allocation4 + $0x80] sm:$0xff] }
 0x32f   :  { %1902 = vmatpush.msra.mxu0 %v6561_v15  ;;  %1922 = vmatpush.msra.mxu1 %v6564_v16  ;;  %9815 = vst [vmem:[#allocation31_spill] sm:$0xff] %v6640_v55 }
 0x330   :  { %1747 = vmatmul.f32.vlgmr.msrb.gmra.mxu0 %v6553_v6  ;;  %1767 = vmatmul.f32.vlgmr.msrb.gmra.mxu1 %v6553_v6  ;;  %9816 = vst [vmem:[#allocation32_spill] sm:$0xff] %v6643_v4 }
 0x331   :  { %1787 = vmatmul.f32.vlgmr.msrb.gmra.mxu2 %v6553_v6  ;;  %1807 = vmatmul.f32.vlgmr.msrb.gmra.mxu3 %v6553_v6  ;;  %9817 = vst [vmem:[#allocation33_spill] sm:$0xff] %v6646_v2 }
 0x332   :  { %1942 = vmatpush.msra.mxu2 %v6571_v7  ;;  %1962 = vmatpush.msra.mxu3 %v6574_v17  ;;  %9818 = vst [vmem:[#allocation34_spill] sm:$0xff] %v6649_v49 }
 0x333   :  { %1903 = vmatpush.msra.mxu0 %v6577_v10  ;;  %1923 = vmatpush.msra.mxu1 %v6580_v22 }
 0x334   :  { %1943 = vmatpush.msra.mxu2 %v6583_v23  ;;  %1963 = vmatpush.msra.mxu3 %v6586_v59 }
 0x335   :  { %1904 = vmatpush.msra.mxu0 %v6589_v19  ;;  %1924 = vmatpush.msra.mxu1 %v6592_v18 }
 0x336   :  { %1944 = vmatpush.msra.mxu2 %v6595_v34  ;;  %1964 = vmatpush.msra.mxu3 %v6598_v56 }
 0x337   :  { %1905 = vmatpush.msra.mxu0 %v6601_v30  ;;  %1925 = vmatpush.msra.mxu1 %v6604_v32 }
 0x338   :  { %1945 = vmatpush.msra.mxu2 %v6607_v57  ;;  %1965 = vmatpush.msra.mxu3 %v6610_v37 }
 0x339   :  { %1906 = vmatpush.msra.mxu0 %v6613_v38  ;;  %1926 = vmatpush.msra.mxu1 %v6616_v40 }
 0x33a   :  { %1946 = vmatpush.msra.mxu2 %v6619_v42  ;;  %1966 = vmatpush.msra.mxu3 %v6622_v35 }
 0x33b   :  { %1907 = vmatpush.msra.mxu0 %v6625_v36  ;;  %1927 = vmatpush.msra.mxu1 %v6628_v63 }
 0x33c   :  { %1947 = vmatpush.msra.mxu2 %v6631_v26  ;;  %1967 = vmatpush.msra.mxu3 %v6634_v24 }
 0x33d   :  { %1908 = vmatpush.msra.mxu0 %v6637_v44  ;;  %1928 = vmatpush.msra.mxu1 %v6640_v55  ;;  %v6655_v44 = vld [vmem:[#allocation4 + $0x90] sm:$0xff]  ;;  %v6658_v55 = vld [vmem:[#allocation4 + $0x98] sm:$0xff] }
 0x33e   :  { %1948 = vmatpush.msra.mxu2 %v6643_v4  ;;  %1968 = vmatpush.msra.mxu3 %v6646_v2  ;;  %9820 = vst [vmem:[#allocation36_spill] sm:$0xff] %v6655_v44  ;;  %v6661_v4 = vld [vmem:[#allocation4 + $0x60] sm:$0xff]  ;;  %v6664_v2 = vld [vmem:[#allocation4 + $0x68] sm:$0xff] }
 0x33f   :  { %1909 = vmatpush.msra.mxu0 %v6649_v49  ;;  %1929 = vmatpush.msra.mxu1 %v6652_v62  ;;  %9821 = vst [vmem:[#allocation37_spill] sm:$0xff] %v6658_v55  ;;  %v6667_v49 = vld [vmem:[#allocation4 + $0x70] sm:$0xff]  ;;  %v6670_v62 = vld [vmem:[#allocation4 + $0x78] sm:$0xff] }
 0x340   :  { %1949 = vmatpush.msra.mxu2 %v6655_v44  ;;  %1969 = vmatpush.msra.mxu3 %v6658_v55  ;;  %9822 = vst [vmem:[#allocation38_spill] sm:$0xff] %v6661_v4  ;;  %v6673_v44 = vld [vmem:[#allocation4 + $0x40] sm:$0xff]  ;;  %v6676_v55 = vld [vmem:[#allocation4 + $0x48] sm:$0xff] }
 0x341   :  { %1910 = vmatpush.msra.mxu0 %v6661_v4  ;;  %9823 = vst [vmem:[#allocation39_spill] sm:$0xff] %v6664_v2  ;;  %1930 = vmatpush.msra.mxu1 %v6664_v2  ;;  %v6679_v4 = vld [vmem:[#allocation4 + $0x50] sm:$0xff]  ;;  %v6682_v2 = vld [vmem:[#allocation4 + $0x58] sm:$0xff] }
 0x342   :  { %9824 = vst [vmem:[#allocation40_spill] sm:$0xff] %v6667_v49  ;;  %1950 = vmatpush.msra.mxu2 %v6667_v49  ;;  %1970 = vmatpush.msra.mxu3 %v6670_v62  ;;  %v6685_v49 = vld [vmem:[#allocation4 + $0x20] sm:$0xff] }
 0x343   :  { %9825 = vst [vmem:[#allocation41_spill] sm:$0xff] %v6670_v62  ;;  %1911 = vmatpush.msra.mxu0 %v6673_v44  ;;  %1931 = vmatpush.msra.mxu1 %v6676_v55  ;;  %v6688_v62 = vld [vmem:[#allocation4 + $0x28] sm:$0xff] }
 0x344   :  { %9826 = vst [vmem:[#allocation42_spill] sm:$0xff] %v6673_v44  ;;  %1951 = vmatpush.msra.mxu2 %v6679_v4  ;;  %1971 = vmatpush.msra.mxu3 %v6682_v2  ;;  %v6691_v44 = vld [vmem:[#allocation4 + $0x30] sm:$0xff] }
 0x345   :  { %9827 = vst [vmem:[#allocation43_spill] sm:$0xff] %v6676_v55  ;;  %1912 = vmatpush.msra.mxu0 %v6685_v49  ;;  %1932 = vmatpush.msra.mxu1 %v6688_v62  ;;  %v6694_v55 = vld [vmem:[#allocation4 + $0x38] sm:$0xff] }
 0x346   :  { %9828 = vst [vmem:[#allocation44_spill] sm:$0xff] %v6679_v4  ;;  %1952 = vmatpush.msra.mxu2 %v6691_v44  ;;  %1972 = vmatpush.msra.mxu3 %v6694_v55  ;;  %v6697_v4 = vld [vmem:[#allocation4] sm:$0xff] }
 0x347   :  { %9829 = vst [vmem:[#allocation45_spill] sm:$0xff] %v6682_v2  ;;  %1913 = vmatpush.msra.mxu0 %v6697_v4  ;;  %v6700_v2 = vld [vmem:[#allocation4 + $0x8] sm:$0xff] }
 0x348   :  { %9830 = vst [vmem:[#allocation46_spill] sm:$0xff] %v6685_v49  ;;  %1933 = vmatpush.msra.mxu1 %v6700_v2  ;;  %v6703_v49 = vld [vmem:[#allocation4 + $0x10] sm:$0xff]  ;;  %1914 = vmatmul.f32.vlgmr.msra.gmra.mxu0 %v6553_v6 }
 0x349   :  { %9831 = vst [vmem:[#allocation47_spill] sm:$0xff] %v6688_v62  ;;  %1953 = vmatpush.msra.mxu2 %v6703_v49  ;;  %v6706_v62 = vld [vmem:[#allocation4 + $0x18] sm:$0xff]  ;;  %1934 = vmatmul.f32.vlgmr.msra.gmra.mxu1 %v6553_v6 }
 0x34a   :  { %9832 = vst [vmem:[#allocation48_spill] sm:$0xff] %v6691_v44  ;;  %1973 = vmatpush.msra.mxu3 %v6706_v62  ;;  %1954 = vmatmul.f32.vlgmr.msra.gmra.mxu2 %v6553_v6  ;;  %v6728_v44 = vld [vmem:[#allocation7 + $0x1c0] sm:$0xff] }
 0x34b   :  { %9833 = vst [vmem:[#allocation49_spill] sm:$0xff] %v6694_v55  ;;  %v3552_v55 = vld [vmem:[%s8485_s1 + $0x20] sm:$0xff]  ;;  %1974 = vmatmul.f32.vlgmr.msra.gmra.mxu3 %v6553_v6  ;;  %v6731_v6 = vld [vmem:[#allocation7 + $0x1c8] sm:$0xff] }
 0x34c   :  { %9834 = vst [vmem:[#allocation50_spill] sm:$0xff] %v6697_v4  ;;  %1887 = vperm.xlu2 %3590, %v3552_v55   ;;  %v6725_v4 = vld [vmem:[#allocation7 + $0x1f8] sm:$0xff]  ;;  %v6734_v55 = vld [vmem:[#allocation7 + $0x1d0] sm:$0xff] }
 0x34d   :  { %9835 = vst [vmem:[#allocation51_spill] sm:$0xff] %v6700_v2  ;;  %v6716_v2 = vld [vmem:[#allocation7 + $0x1e0] sm:$0xff]  ;;  %2038 = vmatpush.msrb.mxu3 %v6725_v4 }
 0x34e   :  { %9836 = vst [vmem:[#allocation52_spill] sm:$0xff] %v6703_v49  ;;  %1978 = vmatpush.msrb.mxu0 %v6716_v2  ;;  %v6719_v49 = vld [vmem:[#allocation7 + $0x1e8] sm:$0xff] }
 0x34f   :  { %9837 = vst [vmem:[#allocation53_spill] sm:$0xff] %v6706_v62  ;;  %1998 = vmatpush.msrb.mxu1 %v6719_v49  ;;  %v6722_v62 = vld [vmem:[#allocation7 + $0x1f0] sm:$0xff] }
 0x350   :  { %9838 = vst [vmem:[#allocation54_spill] sm:$0xff] %v6716_v2  ;;  %2018 = vmatpush.msrb.mxu2 %v6722_v62  ;;  %1979 = vmatpush.msrb.mxu0 %v6728_v44  ;;  %v6761_v2 = vld [vmem:[#allocation7 + $0x190] sm:$0xff] }
 0x351   :  { %9839 = vst [vmem:[#allocation55_spill] sm:$0xff] %v6719_v49  ;;  %1999 = vmatpush.msrb.mxu1 %v6731_v6  ;;  %v6737_v49 = vld [vmem:[#allocation7 + $0x1d8] sm:$0xff] }
 0x352   :  { %9840 = vst [vmem:[#allocation56_spill] sm:$0xff] %v6722_v62  ;;  %2019 = vmatpush.msrb.mxu2 %v6734_v55  ;;  %2039 = vmatpush.msrb.mxu3 %v6737_v49  ;;  %v6740_v62 = vld [vmem:[#allocation7 + $0x1a0] sm:$0xff] }
 0x353   :  { %9841 = vst [vmem:[#allocation57_spill] sm:$0xff] %v6725_v4  ;;  %1980 = vmatpush.msrb.mxu0 %v6740_v62  ;;  %v6746_v4 = vld [vmem:[#allocation7 + $0x1a8] sm:$0xff] }
 0x354   :  { %9842 = vst [vmem:[#allocation58_spill] sm:$0xff] %v6728_v44  ;;  %v3559_v44 = vld [vmem:[%s8485_s1 + $0x28] sm:$0xff]  ;;  %2000 = vmatpush.msrb.mxu1 %v6746_v4  ;;  %s3512_s1 = sshll.u32 %s4533_s19, 4  ;;  %s3513_s1 = int_to_ptr.vmem [resolvable:$true] %s3512_s1 }
 0x355   :  { %9843 = vst [vmem:[#allocation59_spill] sm:$0xff] %v6731_v6  ;;  %v6749_v6 = vld [vmem:[#allocation7 + $0x1b0] sm:$0xff]  ;;  %2281 = vperm.xlu2 %3590, %v3559_v44   ;;  %v6779_v44 = vld [vmem:[#allocation7 + $0x140] sm:$0xff] }
 0x356   :  { %9844 = vst [vmem:[#allocation60_spill] sm:$0xff] %v6734_v55  ;;  %2020 = vmatpush.msrb.mxu2 %v6749_v6  ;;  %v6752_v55 = vld [vmem:[#allocation7 + $0x1b8] sm:$0xff] }
 0x357   :  { %9845 = vst [vmem:[#allocation61_spill] sm:$0xff] %v6737_v49  ;;  %2040 = vmatpush.msrb.mxu3 %v6752_v55  ;;  %v6755_v49 = vld [vmem:[#allocation7 + $0x180] sm:$0xff] }
 0x358   :  { %9846 = vst [vmem:[#allocation62_spill] sm:$0xff] %v6740_v62  ;;  %1981 = vmatpush.msrb.mxu0 %v6755_v49  ;;  %v6758_v62 = vld [vmem:[#allocation7 + $0x188] sm:$0xff]  ;;  %2021 = vmatpush.msrb.mxu2 %v6761_v2 }
 0x359   :  { %9847 = vst [vmem:[#allocation63_spill] sm:$0xff] %v6746_v4  ;;  %2001 = vmatpush.msrb.mxu1 %v6758_v62  ;;  %v6764_v4 = vld [vmem:[#allocation7 + $0x198] sm:$0xff] }
 0x35a   :  { %9848 = vst [vmem:[#allocation64_spill] sm:$0xff] %v6749_v6  ;;  %2041 = vmatpush.msrb.mxu3 %v6764_v4  ;;  %v6767_v6 = vld [vmem:[#allocation7 + $0x160] sm:$0xff] }
 0x35b   :  { %9849 = vst [vmem:[#allocation65_spill] sm:$0xff] %v6752_v55  ;;  %1982 = vmatpush.msrb.mxu0 %v6767_v6  ;;  %v6770_v55 = vld [vmem:[#allocation7 + $0x168] sm:$0xff] }
 0x35c   :  { %9850 = vst [vmem:[#allocation66_spill] sm:$0xff] %v6755_v49  ;;  %2002 = vmatpush.msrb.mxu1 %v6770_v55  ;;  %v6773_v49 = vld [vmem:[#allocation7 + $0x170] sm:$0xff] }
 0x35d   :  { %9851 = vst [vmem:[#allocation67_spill] sm:$0xff] %v6758_v62  ;;  %2022 = vmatpush.msrb.mxu2 %v6773_v49  ;;  %v6776_v62 = vld [vmem:[#allocation7 + $0x178] sm:$0xff]  ;;  %1983 = vmatpush.msrb.mxu0 %v6779_v44 }
 0x35e   :  { %9852 = vst [vmem:[#allocation68_spill] sm:$0xff] %v6761_v2  ;;  %2042 = vmatpush.msrb.mxu3 %v6776_v62  ;;  %v6809_v2 = vld [vmem:[#allocation7 + $0x108] sm:$0xff] }
 0x35f   :  { %9853 = vst [vmem:[#allocation69_spill] sm:$0xff] %v6764_v4  ;;  %v6782_v4 = vld [vmem:[#allocation7 + $0x148] sm:$0xff] }
 0x360   :  { %9854 = vst [vmem:[#allocation70_spill] sm:$0xff] %v6767_v6  ;;  %2003 = vmatpush.msrb.mxu1 %v6782_v4  ;;  %v6785_v6 = vld [vmem:[#allocation7 + $0x150] sm:$0xff] }
 0x361   :  { %9855 = vst [vmem:[#allocation71_spill] sm:$0xff] %v6770_v55  ;;  %2023 = vmatpush.msrb.mxu2 %v6785_v6  ;;  %v6788_v55 = vld [vmem:[#allocation7 + $0x158] sm:$0xff] }
 0x362   :  { %9856 = vst [vmem:[#allocation72_spill] sm:$0xff] %v6773_v49  ;;  %2043 = vmatpush.msrb.mxu3 %v6788_v55  ;;  %v6794_v49 = vld [vmem:[#allocation7 + $0x120] sm:$0xff] }
 0x363   :  { %9857 = vst [vmem:[#allocation73_spill] sm:$0xff] %v6776_v62  ;;  %v3459_v62 = vld [vmem:[%s8486_s2] sm:$0xff]  ;;  %1984 = vmatpush.msrb.mxu0 %v6794_v49 }
 0x364   :  { %9858 = vst [vmem:[#allocation74_spill] sm:$0xff] %v6779_v44  ;;  %v6797_v44 = vld [vmem:[#allocation7 + $0x128] sm:$0xff]  ;;  %3462 = vperm.xlu2 %3590, %v3459_v62   ;;  %v6827_v62 = vld [vmem:[#allocation7 + $0xf8] sm:$0xff] }
 0x365   :  { %9859 = vst [vmem:[#allocation75_spill] sm:$0xff] %v6782_v4  ;;  %2004 = vmatpush.msrb.mxu1 %v6797_v44  ;;  %v6800_v4 = vld [vmem:[#allocation7 + $0x130] sm:$0xff] }
 0x366   :  { %9860 = vst [vmem:[#allocation76_spill] sm:$0xff] %v6785_v6  ;;  %2024 = vmatpush.msrb.mxu2 %v6800_v4  ;;  %v6803_v6 = vld [vmem:[#allocation7 + $0x138] sm:$0xff] }
 0x367   :  { %9861 = vst [vmem:[#allocation77_spill] sm:$0xff] %v6788_v55  ;;  %2044 = vmatpush.msrb.mxu3 %v6803_v6  ;;  %v6806_v55 = vld [vmem:[#allocation7 + $0x100] sm:$0xff]  ;;  %2005 = vmatpush.msrb.mxu1 %v6809_v2 }
 0x368   :  { %9862 = vst [vmem:[#allocation78_spill] sm:$0xff] %v6794_v49  ;;  %1985 = vmatpush.msrb.mxu0 %v6806_v55  ;;  %v6812_v49 = vld [vmem:[#allocation7 + $0x110] sm:$0xff] }
 0x369   :  { %9863 = vst [vmem:[#allocation79_spill] sm:$0xff] %v6797_v44  ;;  %2025 = vmatpush.msrb.mxu2 %v6812_v49  ;;  %v6815_v44 = vld [vmem:[#allocation7 + $0x118] sm:$0xff] }
 0x36a   :  { %9864 = vst [vmem:[#allocation80_spill] sm:$0xff] %v6800_v4  ;;  %2045 = vmatpush.msrb.mxu3 %v6815_v44  ;;  %v6818_v4 = vld [vmem:[#allocation7 + $0xe0] sm:$0xff] }
 0x36b   :  { %9865 = vst [vmem:[#allocation81_spill] sm:$0xff] %v6803_v6  ;;  %1986 = vmatpush.msrb.mxu0 %v6818_v4  ;;  %v6821_v6 = vld [vmem:[#allocation7 + $0xe8] sm:$0xff] }
 0x36c   :  { %9866 = vst [vmem:[#allocation82_spill] sm:$0xff] %v6806_v55  ;;  %2006 = vmatpush.msrb.mxu1 %v6821_v6  ;;  %v6824_v55 = vld [vmem:[#allocation7 + $0xf0] sm:$0xff]  ;;  %2046 = vmatpush.msrb.mxu3 %v6827_v62 }
 0x36d   :  { %9867 = vst [vmem:[#allocation83_spill] sm:$0xff] %v6809_v2  ;;  %2026 = vmatpush.msrb.mxu2 %v6824_v55 }
 0x36e   :  { %9868 = vst [vmem:[#allocation84_spill] sm:$0xff] %v6812_v49  ;;  %v6830_v49 = vld [vmem:[#allocation7 + $0xc0] sm:$0xff] }
 0x36f   :  { %9869 = vst [vmem:[#allocation85_spill] sm:$0xff] %v6815_v44  ;;  %1987 = vmatpush.msrb.mxu0 %v6830_v49  ;;  %v6833_v44 = vld [vmem:[#allocation7 + $0xc8] sm:$0xff] }
 0x370   :  { %9870 = vst [vmem:[#allocation86_spill] sm:$0xff] %v6818_v4  ;;  %2007 = vmatpush.msrb.mxu1 %v6833_v44  ;;  %v6836_v4 = vld [vmem:[#allocation7 + $0xd0] sm:$0xff] }
 0x371   :  { %9871 = vst [vmem:[#allocation87_spill] sm:$0xff] %v6821_v6  ;;  %2027 = vmatpush.msrb.mxu2 %v6836_v4  ;;  %v6839_v6 = vld [vmem:[#allocation7 + $0xd8] sm:$0xff] }
 0x372   :  { %9872 = vst [vmem:[#allocation88_spill] sm:$0xff] %v6824_v55  ;;  %2047 = vmatpush.msrb.mxu3 %v6839_v6  ;;  %v6842_v55 = vld [vmem:[#allocation7 + $0xa0] sm:$0xff] }
 0x373   :  { %9873 = vst [vmem:[#allocation89_spill] sm:$0xff] %v6827_v62  ;;  %1988 = vmatpush.msrb.mxu0 %v6842_v55  ;;  %v6845_v62 = vld [vmem:[#allocation7 + $0xa8] sm:$0xff] }
 0x374   :  { %9874 = vst [vmem:[#allocation90_spill] sm:$0xff] %v6830_v49  ;;  %2008 = vmatpush.msrb.mxu1 %v6845_v62  ;;  %v6848_v49 = vld [vmem:[#allocation7 + $0xb0] sm:$0xff] }
 0x375   :  { %9875 = vst [vmem:[#allocation91_spill] sm:$0xff] %v6833_v44  ;;  %2028 = vmatpush.msrb.mxu2 %v6848_v49  ;;  %v6851_v44 = vld [vmem:[#allocation7 + $0xb8] sm:$0xff] }
 0x376   :  { %9876 = vst [vmem:[#allocation92_spill] sm:$0xff] %v6836_v4  ;;  %2048 = vmatpush.msrb.mxu3 %v6851_v44  ;;  %v6854_v4 = vld [vmem:[#allocation7 + $0x80] sm:$0xff] }
 0x377   :  { %9877 = vst [vmem:[#allocation93_spill] sm:$0xff] %v6839_v6  ;;  %1989 = vmatpush.msrb.mxu0 %v6854_v4  ;;  %v6857_v6 = vld [vmem:[#allocation7 + $0x88] sm:$0xff] }
 0x378   :  { %9878 = vst [vmem:[#allocation94_spill] sm:$0xff] %v6842_v55  ;;  %2009 = vmatpush.msrb.mxu1 %v6857_v6  ;;  %v6860_v55 = vld [vmem:[#allocation7 + $0x90] sm:$0xff] }
 0x379   :  { %9879 = vst [vmem:[#allocation95_spill] sm:$0xff] %v6845_v62  ;;  %2029 = vmatpush.msrb.mxu2 %v6860_v55  ;;  %v6863_v62 = vld [vmem:[#allocation7 + $0x98] sm:$0xff] }
 0x37a   :  { %9880 = vst [vmem:[#allocation96_spill] sm:$0xff] %v6848_v49  ;;  %2049 = vmatpush.msrb.mxu3 %v6863_v62  ;;  %v6866_v49 = vld [vmem:[#allocation7 + $0x60] sm:$0xff] }
 0x37b   :  { %9881 = vst [vmem:[#allocation97_spill] sm:$0xff] %v6851_v44  ;;  %1990 = vmatpush.msrb.mxu0 %v6866_v49  ;;  %v6869_v44 = vld [vmem:[#allocation7 + $0x68] sm:$0xff] }
 0x37c   :  { %9882 = vst [vmem:[#allocation98_spill] sm:$0xff] %v6854_v4  ;;  %2010 = vmatpush.msrb.mxu1 %v6869_v44  ;;  %v6872_v4 = vld [vmem:[#allocation7 + $0x70] sm:$0xff] }
 0x37d   :  { %9883 = vst [vmem:[#allocation99_spill] sm:$0xff] %v6857_v6  ;;  %2030 = vmatpush.msrb.mxu2 %v6872_v4  ;;  %v6875_v6 = vld [vmem:[#allocation7 + $0x78] sm:$0xff] }
 0x37e   :  { %9884 = vst [vmem:[#allocation100_spill] sm:$0xff] %v6860_v55  ;;  %2050 = vmatpush.msrb.mxu3 %v6875_v6  ;;  %v6878_v55 = vld [vmem:[#allocation7 + $0x40] sm:$0xff] }
 0x37f   :  { %9885 = vst [vmem:[#allocation101_spill] sm:$0xff] %v6863_v62  ;;  %1991 = vmatpush.msrb.mxu0 %v6878_v55  ;;  %v6881_v62 = vld [vmem:[#allocation7 + $0x48] sm:$0xff] }
 0x380   :  { %9886 = vst [vmem:[#allocation102_spill] sm:$0xff] %v6866_v49  ;;  %2011 = vmatpush.msrb.mxu1 %v6881_v62  ;;  %v6884_v49 = vld [vmem:[#allocation7 + $0x50] sm:$0xff] }
 0x381   :  { %9887 = vst [vmem:[#allocation103_spill] sm:$0xff] %v6869_v44  ;;  %2031 = vmatpush.msrb.mxu2 %v6884_v49  ;;  %v6887_v44 = vld [vmem:[#allocation7 + $0x58] sm:$0xff] }
 0x382   :  { %9888 = vst [vmem:[#allocation104_spill] sm:$0xff] %v6872_v4  ;;  %2051 = vmatpush.msrb.mxu3 %v6887_v44  ;;  %v6890_v4 = vld [vmem:[#allocation7 + $0x20] sm:$0xff] }
 0x383   :  { %9889 = vst [vmem:[#allocation105_spill] sm:$0xff] %v6875_v6  ;;  %1992 = vmatpush.msrb.mxu0 %v6890_v4  ;;  %v6893_v6 = vld [vmem:[#allocation7 + $0x28] sm:$0xff] }
 0x384   :  { %9890 = vst [vmem:[#allocation106_spill] sm:$0xff] %v6878_v55  ;;  %2012 = vmatpush.msrb.mxu1 %v6893_v6  ;;  %v6896_v55 = vld [vmem:[#allocation7 + $0x30] sm:$0xff] }
 0x385   :  { %9891 = vst [vmem:[#allocation107_spill] sm:$0xff] %v6881_v62  ;;  %2032 = vmatpush.msrb.mxu2 %v6896_v55  ;;  %v6899_v62 = vld [vmem:[#allocation7 + $0x38] sm:$0xff] }
 0x386   :  { %9892 = vst [vmem:[#allocation108_spill] sm:$0xff] %v6884_v49  ;;  %2052 = vmatpush.msrb.mxu3 %v6899_v62  ;;  %v6902_v49 = vld [vmem:[#allocation7] sm:$0xff] }
 0x387   :  { %9893 = vst [vmem:[#allocation109_spill] sm:$0xff] %v6887_v44  ;;  %1993 = vmatpush.msrb.mxu0 %v6902_v49  ;;  %v6905_v44 = vld [vmem:[#allocation7 + $0x8] sm:$0xff] }
 0x388   :  { %9894 = vst [vmem:[#allocation110_spill] sm:$0xff] %v6890_v4  ;;  %2013 = vmatpush.msrb.mxu1 %v6905_v44  ;;  %v6908_v4 = vld [vmem:[#allocation7 + $0x10] sm:$0xff] }
 0x389   :  { %9895 = vst [vmem:[#allocation111_spill] sm:$0xff] %v6893_v6  ;;  %2033 = vmatpush.msrb.mxu2 %v6908_v4  ;;  %v6911_v6 = vld [vmem:[#allocation7 + $0x18] sm:$0xff] }
 0x38a   :  { %9896 = vst [vmem:[#allocation112_spill] sm:$0xff] %v6896_v55  ;;  %2053 = vmatpush.msrb.mxu3 %v6911_v6  ;;  %v6914_v55 = vld [vmem:[#allocation9 + $0x1e0] sm:$0xff] }
 0x38b   :  { %9897 = vst [vmem:[#allocation113_spill] sm:$0xff] %v6899_v62  ;;  %2125 = vmatpush.msra.mxu0 %v6914_v55  ;;  %v6917_v62 = vld [vmem:[#allocation9 + $0x1e8] sm:$0xff] }
 0x38c   :  { %9898 = vst [vmem:[#allocation114_spill] sm:$0xff] %v6902_v49  ;;  %2145 = vmatpush.msra.mxu1 %v6917_v62  ;;  %v6920_v49 = vld [vmem:[#allocation9 + $0x1f0] sm:$0xff] }
 0x38d   :  { %9899 = vst [vmem:[#allocation115_spill] sm:$0xff] %v6905_v44  ;;  %2165 = vmatpush.msra.mxu2 %v6920_v49  ;;  %v6923_v44 = vld [vmem:[#allocation9 + $0x1f8] sm:$0xff] }
 0x38e   :  { %9900 = vst [vmem:[#allocation116_spill] sm:$0xff] %v6908_v4  ;;  %2185 = vmatpush.msra.mxu3 %v6923_v44  ;;  %v6926_v4 = vld [vmem:[#allocation9 + $0x1c0] sm:$0xff] }
 0x38f   :  { %9901 = vst [vmem:[#allocation117_spill] sm:$0xff] %v6911_v6  ;;  %2126 = vmatpush.msra.mxu0 %v6926_v4  ;;  %v6929_v6 = vld [vmem:[#allocation9 + $0x1c8] sm:$0xff] }
 0x390   :  { %9902 = vst [vmem:[#allocation118_spill] sm:$0xff] %v6914_v55  ;;  %2146 = vmatpush.msra.mxu1 %v6929_v6  ;;  %v6932_v55 = vld [vmem:[#allocation9 + $0x1d0] sm:$0xff] }
 0x391   :  { %9903 = vst [vmem:[#allocation119_spill] sm:$0xff] %v6917_v62  ;;  %2166 = vmatpush.msra.mxu2 %v6932_v55  ;;  %v6935_v62 = vld [vmem:[#allocation9 + $0x1d8] sm:$0xff] }
 0x392   :  { %9904 = vst [vmem:[#allocation120_spill] sm:$0xff] %v6920_v49  ;;  %2186 = vmatpush.msra.mxu3 %v6935_v62  ;;  %v6938_v49 = vld [vmem:[#allocation9 + $0x1a0] sm:$0xff] }
 0x393   :  { %9905 = vst [vmem:[#allocation121_spill] sm:$0xff] %v6923_v44  ;;  %2127 = vmatpush.msra.mxu0 %v6938_v49  ;;  %v6941_v44 = vld [vmem:[#allocation9 + $0x1a8] sm:$0xff] }
 0x394   :  { %9906 = vst [vmem:[#allocation122_spill] sm:$0xff] %v6926_v4  ;;  %2147 = vmatpush.msra.mxu1 %v6941_v44  ;;  %v6944_v4 = vld [vmem:[#allocation9 + $0x1b0] sm:$0xff] }
 0x395   :  { %9907 = vst [vmem:[#allocation123_spill] sm:$0xff] %v6929_v6  ;;  %2167 = vmatpush.msra.mxu2 %v6944_v4  ;;  %v6947_v6 = vld [vmem:[#allocation9 + $0x1b8] sm:$0xff] }
 0x396   :  { %9908 = vst [vmem:[#allocation124_spill] sm:$0xff] %v6932_v55  ;;  %2187 = vmatpush.msra.mxu3 %v6947_v6  ;;  %v6950_v55 = vld [vmem:[#allocation9 + $0x180] sm:$0xff] }
 0x397   :  { %9909 = vst [vmem:[#allocation125_spill] sm:$0xff] %v6935_v62  ;;  %2128 = vmatpush.msra.mxu0 %v6950_v55  ;;  %v6953_v62 = vld [vmem:[#allocation9 + $0x188] sm:$0xff] }
 0x398   :  { %9910 = vst [vmem:[#allocation126_spill] sm:$0xff] %v6938_v49  ;;  %2148 = vmatpush.msra.mxu1 %v6953_v62  ;;  %v6956_v49 = vld [vmem:[#allocation9 + $0x190] sm:$0xff] }
 0x399   :  { %9911 = vst [vmem:[#allocation127_spill] sm:$0xff] %v6941_v44  ;;  %2168 = vmatpush.msra.mxu2 %v6956_v49  ;;  %v6959_v44 = vld [vmem:[#allocation9 + $0x198] sm:$0xff] }
 0x39a   :  { %9912 = vst [vmem:[#allocation128_spill] sm:$0xff] %v6944_v4  ;;  %2188 = vmatpush.msra.mxu3 %v6959_v44  ;;  %v6962_v4 = vld [vmem:[#allocation9 + $0x160] sm:$0xff] }
 0x39b   :  { %9913 = vst [vmem:[#allocation129_spill] sm:$0xff] %v6947_v6  ;;  %2129 = vmatpush.msra.mxu0 %v6962_v4  ;;  %v6965_v6 = vld [vmem:[#allocation9 + $0x168] sm:$0xff] }
 0x39c   :  { %9914 = vst [vmem:[#allocation130_spill] sm:$0xff] %v6950_v55  ;;  %2149 = vmatpush.msra.mxu1 %v6965_v6  ;;  %v6968_v55 = vld [vmem:[#allocation9 + $0x170] sm:$0xff] }
 0x39d   :  { %9915 = vst [vmem:[#allocation131_spill] sm:$0xff] %v6953_v62  ;;  %2169 = vmatpush.msra.mxu2 %v6968_v55  ;;  %v6971_v62 = vld [vmem:[#allocation9 + $0x178] sm:$0xff] }
 0x39e   :  { %9916 = vst [vmem:[#allocation132_spill] sm:$0xff] %v6956_v49  ;;  %2189 = vmatpush.msra.mxu3 %v6971_v62  ;;  %v6974_v49 = vld [vmem:[#allocation9 + $0x140] sm:$0xff] }
 0x39f   :  { %9917 = vst [vmem:[#allocation133_spill] sm:$0xff] %v6959_v44  ;;  %2130 = vmatpush.msra.mxu0 %v6974_v49  ;;  %v6977_v44 = vld [vmem:[#allocation9 + $0x148] sm:$0xff] }
 0x3a0   :  { %9918 = vst [vmem:[#allocation134_spill] sm:$0xff] %v6962_v4  ;;  %2150 = vmatpush.msra.mxu1 %v6977_v44  ;;  %v6980_v4 = vld [vmem:[#allocation9 + $0x150] sm:$0xff] }
 0x3a1   :  { %9919 = vst [vmem:[#allocation135_spill] sm:$0xff] %v6965_v6  ;;  %2170 = vmatpush.msra.mxu2 %v6980_v4  ;;  %v6983_v6 = vld [vmem:[#allocation9 + $0x158] sm:$0xff] }
 0x3a2   :  { %9920 = vst [vmem:[#allocation136_spill] sm:$0xff] %v6968_v55  ;;  %2190 = vmatpush.msra.mxu3 %v6983_v6  ;;  %v6986_v55 = vld [vmem:[#allocation9 + $0x120] sm:$0xff]  ;;  %v1621_v2 = vpop.f32.mrf.mxu1 }
 0x3a3   :  { %9921 = vst [vmem:[#allocation137_spill] sm:$0xff] %v6971_v62  ;;  %2131 = vmatpush.msra.mxu0 %v6986_v55  ;;  %v6989_v62 = vld [vmem:[#allocation9 + $0x128] sm:$0xff] }
 0x3a4   :  { %9922 = vst [vmem:[#allocation138_spill] sm:$0xff] %v6974_v49  ;;  %2151 = vmatpush.msra.mxu1 %v6989_v62  ;;  %v6992_v49 = vld [vmem:[#allocation9 + $0x130] sm:$0xff] }
 0x3a5   :  { %9923 = vst [vmem:[#allocation139_spill] sm:$0xff] %v6977_v44  ;;  %2171 = vmatpush.msra.mxu2 %v6992_v49  ;;  %v6995_v44 = vld [vmem:[#allocation9 + $0x138] sm:$0xff] }
 0x3a6   :  { %9924 = vst [vmem:[#allocation140_spill] sm:$0xff] %v6980_v4  ;;  %2191 = vmatpush.msra.mxu3 %v6995_v44  ;;  %v6998_v4 = vld [vmem:[#allocation9 + $0x100] sm:$0xff] }
 0x3a7   :  { %9925 = vst [vmem:[#allocation141_spill] sm:$0xff] %v6983_v6  ;;  %2132 = vmatpush.msra.mxu0 %v6998_v4  ;;  %v7001_v6 = vld [vmem:[#allocation9 + $0x108] sm:$0xff] }
 0x3a8   :  { %9926 = vst [vmem:[#allocation142_spill] sm:$0xff] %v6986_v55  ;;  %2152 = vmatpush.msra.mxu1 %v7001_v6  ;;  %v7004_v55 = vld [vmem:[#allocation9 + $0x110] sm:$0xff] }
 0x3a9   :  { %9927 = vst [vmem:[#allocation143_spill] sm:$0xff] %v6989_v62  ;;  %2172 = vmatpush.msra.mxu2 %v7004_v55  ;;  %v7007_v62 = vld [vmem:[#allocation9 + $0x118] sm:$0xff]  ;;  %v1641_v24 = vpop.f32.mrf.mxu2 }
 0x3aa   :  { %9928 = vst [vmem:[#allocation144_spill] sm:$0xff] %v6992_v49  ;;  %2192 = vmatpush.msra.mxu3 %v7007_v62  ;;  %v7010_v49 = vld [vmem:[#allocation9 + $0xe0] sm:$0xff] }
 0x3ab   :  { %9929 = vst [vmem:[#allocation145_spill] sm:$0xff] %v6995_v44  ;;  %2133 = vmatpush.msra.mxu0 %v7010_v49  ;;  %v7013_v44 = vld [vmem:[#allocation9 + $0xe8] sm:$0xff] }
 0x3ac   :  { %9930 = vst [vmem:[#allocation146_spill] sm:$0xff] %v6998_v4  ;;  %2153 = vmatpush.msra.mxu1 %v7013_v44  ;;  %v7016_v4 = vld [vmem:[#allocation9 + $0xf0] sm:$0xff] }
 0x3ad   :  { %9931 = vst [vmem:[#allocation147_spill] sm:$0xff] %v7001_v6  ;;  %2173 = vmatpush.msra.mxu2 %v7016_v4  ;;  %v7019_v6 = vld [vmem:[#allocation9 + $0xf8] sm:$0xff]  ;;  %v1768_v26 = vpop.f32.mrf.mxu1 }
 0x3ae   :  { %9932 = vst [vmem:[#allocation148_spill] sm:$0xff] %v7004_v55  ;;  %2193 = vmatpush.msra.mxu3 %v7019_v6  ;;  %v7022_v55 = vld [vmem:[#allocation9 + $0xc0] sm:$0xff]  ;;  %v1769_v36 = vadd.f32 %v1768_v26, %v1621_v2 }
 0x3af   :  { %9933 = vst [vmem:[#allocation149_spill] sm:$0xff] %v7007_v62  ;;  %2134 = vmatpush.msra.mxu0 %v7022_v55  ;;  %v7025_v62 = vld [vmem:[#allocation9 + $0xc8] sm:$0xff] }
 0x3b0   :  { %9934 = vst [vmem:[#allocation150_spill] sm:$0xff] %v7010_v49  ;;  %2154 = vmatpush.msra.mxu1 %v7025_v62  ;;  %v7028_v49 = vld [vmem:[#allocation9 + $0xd0] sm:$0xff]  ;;  %v1812_v35 = vadd.f32 %v1769_v36, %v9787_v28 }
 0x3b1   :  { %9935 = vst [vmem:[#allocation157_spill] sm:$0xff] %v7013_v44  ;;  %2174 = vmatpush.msra.mxu2 %v7028_v49  ;;  %v7031_v44 = vld [vmem:[#allocation9 + $0xd8] sm:$0xff] }
 0x3b2   :  { %9936 = vst [vmem:[#allocation158_spill] sm:$0xff] %v7016_v4  ;;  %2194 = vmatpush.msra.mxu3 %v7031_v44  ;;  %v7034_v4 = vld [vmem:[#allocation9 + $0xa0] sm:$0xff]  ;;  %v3550_v40 = vmul.f32 -1.442695, %v1812_v35 }
 0x3b3   :  { %9937 = vst [vmem:[#allocation159_spill] sm:$0xff] %v7019_v6  ;;  %2135 = vmatpush.msra.mxu0 %v7034_v4  ;;  %v7037_v6 = vld [vmem:[#allocation9 + $0xa8] sm:$0xff] }
 0x3b4   :  { %9938 = vst [vmem:[#allocation160_spill] sm:$0xff] %v7022_v55  ;;  %2155 = vmatpush.msra.mxu1 %v7037_v6  ;;  %v7040_v55 = vld [vmem:[#allocation9 + $0xb0] sm:$0xff] }
 0x3b5   :  { %9939 = vst [vmem:[#allocation161_spill] sm:$0xff] %v7025_v62  ;;  %2175 = vmatpush.msra.mxu2 %v7040_v55  ;;  %v7043_v62 = vld [vmem:[#allocation9 + $0xb8] sm:$0xff] }
 0x3b6   :  { %9940 = vst [vmem:[#allocation162_spill] sm:$0xff] %v7028_v49  ;;  %2195 = vmatpush.msra.mxu3 %v7043_v62  ;;  %v7046_v49 = vld [vmem:[#allocation9 + $0x80] sm:$0xff] }
 0x3b7   :  { %9941 = vst [vmem:[#allocation163_spill] sm:$0xff] %v7031_v44  ;;  %2136 = vmatpush.msra.mxu0 %v7046_v49  ;;  %v7049_v44 = vld [vmem:[#allocation9 + $0x88] sm:$0xff] }
 0x3b8   :  { %9942 = vst [vmem:[#allocation164_spill] sm:$0xff] %v7034_v4  ;;  %2156 = vmatpush.msra.mxu1 %v7049_v44  ;;  %v7052_v4 = vld [vmem:[#allocation9 + $0x90] sm:$0xff] }
 0x3b9   :  { %9943 = vst [vmem:[#allocation165_spill] sm:$0xff] %v7037_v6  ;;  %2176 = vmatpush.msra.mxu2 %v7052_v4  ;;  %v7055_v6 = vld [vmem:[#allocation9 + $0x98] sm:$0xff] }
 0x3ba   :  { %9944 = vst [vmem:[#allocation166_spill] sm:$0xff] %v7040_v55  ;;  %2196 = vmatpush.msra.mxu3 %v7055_v6  ;;  %v7058_v55 = vld [vmem:[#allocation9 + $0x60] sm:$0xff] }
 0x3bb   :  { %9945 = vst [vmem:[#allocation167_spill] sm:$0xff] %v7043_v62  ;;  %2137 = vmatpush.msra.mxu0 %v7058_v55  ;;  %v7061_v62 = vld [vmem:[#allocation9 + $0x68] sm:$0xff] }
 0x3bc   :  { %9946 = vst [vmem:[#allocation168_spill] sm:$0xff] %v7046_v49  ;;  %2157 = vmatpush.msra.mxu1 %v7061_v62  ;;  %v7064_v49 = vld [vmem:[#allocation9 + $0x70] sm:$0xff] }
 0x3bd   :  { %9947 = vst [vmem:[#allocation169_spill] sm:$0xff] %v7049_v44  ;;  %2177 = vmatpush.msra.mxu2 %v7064_v49  ;;  %v7067_v44 = vld [vmem:[#allocation9 + $0x78] sm:$0xff] }
 0x3be   :  { %9948 = vst [vmem:[#allocation170_spill] sm:$0xff] %v7052_v4  ;;  %2197 = vmatpush.msra.mxu3 %v7067_v44  ;;  %v7070_v4 = vld [vmem:[#allocation9 + $0x40] sm:$0xff] }
 0x3bf   :  { %9949 = vst [vmem:[#allocation171_spill] sm:$0xff] %v7055_v6  ;;  %2138 = vmatpush.msra.mxu0 %v7070_v4  ;;  %v7073_v6 = vld [vmem:[#allocation9 + $0x48] sm:$0xff] }
 0x3c0   :  { %9950 = vst [vmem:[#allocation172_spill] sm:$0xff] %v7058_v55  ;;  %2158 = vmatpush.msra.mxu1 %v7073_v6  ;;  %v7076_v55 = vld [vmem:[#allocation9 + $0x50] sm:$0xff] }
 0x3c1   :  { %9951 = vst [vmem:[#allocation173_spill] sm:$0xff] %v7061_v62  ;;  %2178 = vmatpush.msra.mxu2 %v7076_v55  ;;  %v7079_v62 = vld [vmem:[#allocation9 + $0x58] sm:$0xff] }
 0x3c2   :  { %9952 = vst [vmem:[#allocation174_spill] sm:$0xff] %v7064_v49  ;;  %2198 = vmatpush.msra.mxu3 %v7079_v62  ;;  %v7082_v49 = vld [vmem:[#allocation9 + $0x20] sm:$0xff] }
 0x3c3   :  { %9953 = vst [vmem:[#allocation175_spill] sm:$0xff] %v7067_v44  ;;  %2139 = vmatpush.msra.mxu0 %v7082_v49  ;;  %v7085_v44 = vld [vmem:[#allocation9 + $0x28] sm:$0xff] }
 0x3c4   :  { %9954 = vst [vmem:[#allocation176_spill] sm:$0xff] %v7070_v4  ;;  %2159 = vmatpush.msra.mxu1 %v7085_v44  ;;  %v7088_v4 = vld [vmem:[#allocation9 + $0x30] sm:$0xff] }
 0x3c5   :  { %9955 = vst [vmem:[#allocation177_spill] sm:$0xff] %v7073_v6  ;;  %2179 = vmatpush.msra.mxu2 %v7088_v4  ;;  %v7091_v6 = vld [vmem:[#allocation9 + $0x38] sm:$0xff] }
 0x3c6   :  { %9956 = vst [vmem:[#allocation178_spill] sm:$0xff] %v7076_v55  ;;  %2199 = vmatpush.msra.mxu3 %v7091_v6  ;;  %v7094_v55 = vld [vmem:[#allocation9] sm:$0xff] }
 0x3c7   :  { %9957 = vst [vmem:[#allocation179_spill] sm:$0xff] %v7079_v62  ;;  %2140 = vmatpush.msra.mxu0 %v7094_v55  ;;  %v7097_v62 = vld [vmem:[#allocation9 + $0x8] sm:$0xff] }
 0x3c8   :  { %9958 = vst [vmem:[#allocation180_spill] sm:$0xff] %v7082_v49  ;;  %2160 = vmatpush.msra.mxu1 %v7097_v62  ;;  %v7100_v49 = vld [vmem:[#allocation9 + $0x10] sm:$0xff] }
 0x3c9   :  { %9959 = vst [vmem:[#allocation181_spill] sm:$0xff] %v7085_v44  ;;  %2180 = vmatpush.msra.mxu2 %v7100_v49  ;;  %v7103_v44 = vld [vmem:[#allocation9 + $0x18] sm:$0xff] }
 0x3ca   :  { %9960 = vst [vmem:[#allocation182_spill] sm:$0xff] %v7088_v4  ;;  %2200 = vmatpush.msra.mxu3 %v7103_v44  ;;  %v1601_v4 = vpop.f32.mrf.mxu0 }
 0x3cb   :  { %9961 = vst [vmem:[#allocation183_spill] sm:$0xff] %v7091_v6 }
 0x3cc   :  { %9962 = vst [vmem:[#allocation184_spill] sm:$0xff] %v7094_v55 }
 0x3cd   :  { %9963 = vst [vmem:[#allocation185_spill] sm:$0xff] %v7097_v62  ;;  %v1661_v62 = vpop.f32.mrf.mxu3 }
 0x3ce   :  { %9964 = vst [vmem:[#allocation186_spill] sm:$0xff] %v7100_v49  ;;  %v1788_v49 = vpop.f32.mrf.mxu2 }
 0x3cf   :  { %9965 = vst [vmem:[#allocation187_spill] sm:$0xff] %v7103_v44  ;;  %v1789_v38 = vadd.f32 %v1788_v49, %v1641_v24 }
 0x3d1   :  { %v1813_v44 = vadd.f32 %v1789_v38, %v9790_v46 }
 0x3d2   :  { %v1748_v6 = vpop.f32.mrf.mxu0 }
 0x3d3   :  { %v1749_v63 = vadd.f32 %v1748_v6, %v1601_v4  ;;  %v3551_v37 = vmul.f32 -1.442695, %v1813_v44 }
 0x3d5   :  { %v1811_v55 = vadd.f32 %v1749_v63, %v9786_v27  ;;  %v1808_v4 = vpop.f32.mrf.mxu3  ;;  %v7109_v63 = vpop.permute.xlu2 %1887 }
 0x3d6   :  { %v1809_v36 = vadd.f32 %v1808_v4, %v1661_v62  ;;  %v1935_v4 = vpop.f32.mrf.mxu1 }
 0x3d7   :  { %v3549_v42 = vmul.f32 -1.442695, %v1811_v55 }
 0x3d8   :  { %v1814_v24 = vadd.f32 %v1809_v36, %v9795_v45 }
 0x3d9   :  { %3704 = vpow2.f32 %v3549_v42  ;;  %v1890_v42 = vmul.f32 %v7109_v63, %v9788_v39 }
 0x3da   :  { %3706 = vpow2.f32 %v3550_v40  ;;  %v1891_v40 = vmul.f32 %v7109_v63, %v9789_v41  ;;  %v1915_v62 = vpop.f32.mrf.mxu0 }
 0x3db   :  { %3708 = vpow2.f32 %v3551_v37  ;;  %v1894_v37 = vadd.f32 %v1890_v42, %v9791_v47 }
 0x3dd   :  { %v2058_v45 = vadd.f32 %v1915_v62, %v1894_v37 }
 0x3df   :  { %v3705_v57 = vpop.eup %3704  ;;  %v3553_v39 = vmul.f32 -1.442695, %v2058_v45 }
 0x3e0   :  { %v3707_v32 = vpop.eup %3706  ;;  %v1821_v30 = vadd.f32 1.0, %v3705_v57 }
 0x3e1   :  { %v1822_v26 = vadd.f32 1.0, %v3707_v32  ;;  %v3709_v35 = vpop.eup %3708  ;;  %v1895_v32 = vadd.f32 %v1891_v40, %v9792_v51 }
 0x3e2   :  { %3710 = vrcp.f32 %v1821_v30  ;;  %v7115_v38 = vadd.f32 1.0, %v3709_v35  ;;  %v1832_v44 = vand.u32 2147483647, %v1821_v30  ;;  %v1892_v35 = vmul.f32 %v7109_v63, %v9793_v31 }
 0x3e3   :  { %3712 = vrcp.f32 %v1822_v26  ;;  %v1834_v36 = vand.u32 2147483648, %v1821_v30  ;;  %v2059_v41 = vadd.f32 %v1935_v4, %v1895_v32  ;;  %v1849_v42 = vand.u32 2147483648, %v1822_v26 }
 0x3e4   :  { %3714 = vrcp.f32 %v7115_v38  ;;  %v1847_v40 = vand.u32 2147483647, %v1822_v26  ;;  %vm1843_vm9 = vweird.f32 %v1822_v26  ;;  %vm1828_vm10 = vweird.f32 %v1821_v30 }
 0x3e5   :  { %3716 = vtanh.f32 %v1814_v24  ;;  %v3554_v28 = vmul.f32 -1.442695, %v2059_v41  ;;  %v1896_v27 = vadd.f32 %v1892_v35, %v9794_v52  ;;  %vm1833_vm13 = vcmp.eq.f32.partialorder %v1832_v44, 8.507059e+37 }
 0x3e6   :  { %3718 = vpow2.f32 %v3553_v39  ;;  %vm1848_vm14 = vcmp.eq.f32.partialorder %v1847_v40, 8.507059e+37  ;;  %v1872_v44 = vand.u32 2147483648, %v7115_v38  ;;  %vm1866_vm0 = vweird.f32 %v7115_v38 }
 0x3e7   :  { %3720 = vpow2.f32 %v3554_v28 }
 0x3e8   :  { %v3711_v57 = vpop.eup %3710  ;;  %v1873_v40 = vor.u32 1.1754944e-38, %v1872_v44 }
 0x3e9   :  { %v3713_v2 = vpop.eup %3712  ;;  %v1824_v49 = vmul.f32 %v3711_v57, %v1821_v30  ;;  %vm1829_vm7 = vweird.f32 %v3711_v57 }
 0x3ea   :  { %v1839_v6 = vmul.f32 %v3713_v2, %v1822_v26  ;;  %vm1844_vm8 = vweird.f32 %v3713_v2  ;;  %vm1830_vm11 = vmor %vm1828_vm10, %vm1829_vm7 }
 0x3eb   :  { %v1825_v55 = vsub.f32 1.0, %v1824_v49  ;;  %v3715_v49 = vpop.eup %3714  ;;  %vm1845_vm12 = vmor %vm1843_vm9, %vm1844_vm8 }
 0x3ec   :  { %v1840_v46 = vsub.f32 1.0, %v1839_v6  ;;  %v1862_v31 = vmul.f32 %v3715_v49, %v7115_v38  ;;  %v1835_v6 = vor.u32 1.1754944e-38, %v1834_v36  ;;  %v3717_v32 = vpop.eup %3716  ;;  %vm1867_vm15 = vweird.f32 %v3715_v49 }
 0x3ed   :  { %v1826_v47 = vmul.f32 %v3711_v57, %v1825_v55  ;;  %v1850_v55 = vor.u32 1.1754944e-38, %v1849_v42  ;;  %vm1868_vm1 = vmor %vm1866_vm0, %vm1867_vm15  ;;  %v1975_v42 = vpop.f32.mrf.mxu3 }
 0x3ee   :  { %v1841_v51 = vmul.f32 %v3713_v2, %v1840_v46  ;;  %v1863_v46 = vsub.f32 1.0, %v1862_v31 }
 0x3ef   :  { %v1827_v24 = vadd.f32 %v3711_v57, %v1826_v47  ;;  %v1955_v47 = vpop.f32.mrf.mxu2 }
 0x3f0   :  { %v1842_v37 = vadd.f32 %v3713_v2, %v1841_v51  ;;  %v2060_v4 = vadd.f32 %v1955_v47, %v1896_v27  ;;  %v1864_v35 = vmul.f32 %v3715_v49, %v1863_v46  ;;  %v3719_v51 = vpop.eup %3718 }
 0x3f1   :  { %v1831_v62 = vsel %vm1830_vm11, %v3711_v57, %v1827_v24  ;;  %v3721_v28 = vpop.eup %3720  ;;  %v7131_v31 = vadd.f32 1.0, %v3719_v51  ;;  %v1880_v24 = vstv %s1879_s4 }
 0x3f2   :  { %v1836_v41 = vsel %vm1833_vm13, %v1835_v6, %v1831_v62  ;;  %v1846_v45 = vsel %vm1845_vm12, %v3713_v2, %v1842_v37  ;;  %v3555_v39 = vmul.f32 -1.442695, %v2060_v4  ;;  %v1865_v2 = vadd.f32 %v3715_v49, %v1864_v35 }
 0x3f3   :  { %v1851_v30 = vsel %vm1848_vm14, %v1850_v55, %v1846_v45  ;;  %v1855_v26 = vmul.f32 %v3717_v32, %v1836_v41  ;;  %v7135_v27 = vadd.f32 1.0, %v3721_v28  ;;  %vm1881_vm4 = vcmp.eq.s32.totalorder %v1880_v24, 1  ;;  %v9982_v24 = vld [vmem:[#allocation33_spill] sm:$0xff] }
 0x3f4   :  { %v1854_v52 = vmul.f32 %v1851_v30, %v6447_v0  ;;  %3722 = vpow2.f32 %v3555_v39  ;;  %v1870_v0 = vand.u32 2147483647, %v7115_v38  ;;  %v1869_v36 = vsel %vm1868_vm1, %v3715_v49, %v1865_v2 }
 0x3f5   :  { %v9966_v30 = vsel %vm6478_vm2, %v6484_v29, %v6197_v43  ;;  %v2081_v35 = vand.u32 2147483648, %v7131_v31  ;;  %v2096_v39 = vand.u32 2147483648, %v7135_v27  ;;  %v2079_v28 = vand.u32 2147483647, %v7131_v31 }
 0x3f6   :  { %v7129_v57 = vadd.f32 %v1855_v26, %v1854_v52  ;;  %v1893_v52 = vmul.f32 %v7109_v63, %v5269_v13  ;;  %vm1871_vm3 = vcmp.eq.f32.partialorder %v1870_v0, 8.507059e+37  ;;  %v2094_v33 = vand.u32 2147483647, %v7135_v27  ;;  %v9978_v0 = vld [vmem:[#allocation29_spill] sm:$0xff] }
 0x3f7   :  { %v1874_v62 = vsel %vm1871_vm3, %v1873_v40, %v1869_v36  ;;  %vm2075_vm6 = vweird.f32 %v7131_v31  ;;  %vm2090_vm7 = vweird.f32 %v7135_v27  ;;  %vm2080_vm10 = vcmp.eq.f32.partialorder %v2079_v28, 8.507059e+37  ;;  %v9979_v36 = vld [vmem:[#allocation30_spill] sm:$0xff]  ;;  %v9981_v40 = vld [vmem:[#allocation32_spill] sm:$0xff]  ;;  %v10000_v28 = vld [vmem:[#allocation51_spill] sm:$0xff] }
 0x3f8   :  { %3724 = vtanh.f32 %v7129_v57  ;;  %v1897_v37 = vadd.f32 %v1893_v52, %v5287_v20  ;;  %vm2095_vm11 = vcmp.eq.f32.partialorder %v2094_v33, 8.507059e+37  ;;  %v9977_v52 = vld [vmem:[#allocation28_spill] sm:$0xff]  ;;  %v10002_v33 = vld [vmem:[#allocation53_spill] sm:$0xff] }
 0x3f9   :  { %3726 = vrcp.f32 %v7131_v31 }
 0x3fa   :  { %3728 = vrcp.f32 %v7135_v27  ;;  %v3723_v6 = vpop.eup %3722  ;;  %v2061_v41 = vadd.f32 %v1975_v42, %v1897_v37  ;;  %v9980_v42 = vld [vmem:[#allocation31_spill] sm:$0xff] }
 0x3fb   :  { %v7144_v55 = vadd.f32 1.0, %v3723_v6  ;;  %v9983_v6 = vld [vmem:[#allocation34_spill] sm:$0xff]  ;;  %v9984_v37 = vld [vmem:[#allocation35_spill] sm:$0xff] }
 0x3fd   :  { %3730 = vrcp.f32 %v7144_v55  ;;  %vm2113_vm13 = vweird.f32 %v7144_v55 }
 0x3fe   :  { %v3725_v32 = vpop.eup %3724  ;;  %3732 = vtanh.f32 %v2061_v41  ;;  %v9989_v41 = vld [vmem:[#allocation40_spill] sm:$0xff] }
 0x3ff   :  { %v3727_v46 = vpop.eup %3726  ;;  %v1877_v63 = vmul.f32 %v3725_v32, %v1874_v62  ;;  %v9985_v32 = vld [vmem:[#allocation36_spill] sm:$0xff]  ;;  %v9987_v62 = vld [vmem:[#allocation38_spill] sm:$0xff] }
 0x400   :  { %v3729_v38 = vpop.eup %3728  ;;  %v2071_v45 = vmul.f32 %v3727_v46, %v7131_v31  ;;  %vm2076_vm5 = vweird.f32 %v3727_v46 }
 0x401   :  { %v2086_v49 = vmul.f32 %v3729_v38, %v7135_v27  ;;  %1994 = vmatmul.f32.vlgmr.msrb.gmra.mxu0 %v1877_v63  ;;  %2014 = vmatmul.f32.vlgmr.msrb.gmra.mxu1 %v1877_v63  ;;  %v7154_v26 = vsel %vm1881_vm4, %v1877_v63, %v9966_v30  ;;  %vm2091_vm2 = vweird.f32 %v3729_v38  ;;  %vm2077_vm8 = vmor %vm2075_vm6, %vm2076_vm5  ;;  %v9995_v30 = vld [vmem:[#allocation46_spill] sm:$0xff] }
 0x402   :  { %v2072_v47 = vsub.f32 1.0, %v2071_v45  ;;  %2034 = vmatmul.f32.vlgmr.msrb.gmra.mxu2 %v1877_v63  ;;  %2054 = vmatmul.f32.vlgmr.msrb.gmra.mxu3 %v1877_v63  ;;  %vm2092_vm9 = vmor %vm2090_vm7, %vm2091_vm2  ;;  %v9990_v63 = vld [vmem:[#allocation41_spill] sm:$0xff]  ;;  %v9992_v45 = vld [vmem:[#allocation43_spill] sm:$0xff] }
 0x403   :  { %v2087_v4 = vsub.f32 1.0, %v2086_v49  ;;  %2292 = vmatpush.msrb.mxu0 %v6500_v21  ;;  %2312 = vmatpush.msrb.mxu1 %v6503_v48  ;;  %v7166_v29 = vpop.eup %3730  ;;  %v9993_v49 = vld [vmem:[#allocation44_spill] sm:$0xff] }
 0x404   :  { %v2073_v51 = vmul.f32 %v3727_v46, %v2072_v47  ;;  %2332 = vmatpush.msrb.mxu2 %v6508_v58  ;;  %2352 = vmatpush.msrb.mxu3 %v6511_v1  ;;  %v2109_v48 = vmul.f32 %v7166_v29, %v7144_v55  ;;  %v2082_v58 = vor.u32 1.1754944e-38, %v2081_v35  ;;  %vm2114_vm12 = vweird.f32 %v7166_v29  ;;  %v9994_v47 = vld [vmem:[#allocation45_spill] sm:$0xff]  ;;  %v9997_v35 = vld [vmem:[#allocation48_spill] sm:$0xff] }
 0x405   :  { %v2088_v43 = vmul.f32 %v3729_v38, %v2087_v4  ;;  %2293 = vmatpush.msrb.mxu0 %v6520_v50  ;;  %2313 = vmatpush.msrb.mxu1 %v6523_v53  ;;  %v2097_v50 = vor.u32 1.1754944e-38, %v2096_v39  ;;  %vm2115_vm14 = vmor %vm2113_vm13, %vm2114_vm12  ;;  %v9996_v4 = vld [vmem:[#allocation47_spill] sm:$0xff]  ;;  %v9998_v39 = vld [vmem:[#allocation49_spill] sm:$0xff] }
 0x406   :  { %v2074_v21 = vadd.f32 %v3727_v46, %v2073_v51  ;;  %2333 = vmatpush.msrb.mxu2 %v6529_v54  ;;  %2353 = vmatpush.msrb.mxu3 %v6532_v25  ;;  %v3733_v54 = vpop.eup %3732  ;;  %v2110_v25 = vsub.f32 1.0, %v2109_v48  ;;  %v9999_v51 = vld [vmem:[#allocation50_spill] sm:$0xff]  ;;  %v10005_v48 = vld [vmem:[#allocation56_spill] sm:$0xff] }
 0x407   :  { %v2089_v1 = vadd.f32 %v3729_v38, %v2088_v43  ;;  %2294 = vmatpush.msrb.mxu0 %v6535_v14  ;;  %2314 = vmatpush.msrb.mxu1 %v6538_v61  ;;  %v10001_v43 = vld [vmem:[#allocation52_spill] sm:$0xff] }
 0x408   :  { %v2078_v53 = vsel %vm2077_vm8, %v3727_v46, %v2074_v21  ;;  %2334 = vmatpush.msrb.mxu2 %v6541_v12  ;;  %2354 = vmatpush.msrb.mxu3 %v6544_v8  ;;  %v2111_v44 = vmul.f32 %v7166_v29, %v2110_v25  ;;  %v9988_v46 = vld [vmem:[#allocation39_spill] sm:$0xff]  ;;  %v10011_v25 = vld [vmem:[#allocation62_spill] sm:$0xff] }
 0x409   :  { %v2083_v31 = vsel %vm2080_vm10, %v2082_v58, %v2078_v53  ;;  %v2093_v2 = vsel %vm2092_vm9, %v3729_v38, %v2089_v1  ;;  %2295 = vmatpush.msrb.mxu0 %v6547_v3  ;;  %2315 = vmatpush.msrb.mxu1 %v6550_v5  ;;  %v2117_v5 = vand.u32 2147483647, %v7144_v55  ;;  %v9991_v38 = vld [vmem:[#allocation42_spill] sm:$0xff]  ;;  %v10004_v21 = vld [vmem:[#allocation55_spill] sm:$0xff]  ;;  %v10006_v58 = vld [vmem:[#allocation57_spill] sm:$0xff] }
 0x40a   :  { %v2098_v14 = vsel %vm2095_vm11, %v2097_v50, %v2093_v2  ;;  %v2102_v61 = vmul.f32 %v3733_v54, %v2083_v31  ;;  %2335 = vmatpush.msrb.mxu2 %v6555_v9  ;;  %2355 = vmatpush.msrb.mxu3 %v6558_v11  ;;  %v2112_v3 = vadd.f32 %v7166_v29, %v2111_v44  ;;  %v9967_v9 = vld [vmem:[#allocation18_spill] sm:$0xff]  ;;  %v9968_v11 = vld [vmem:[#allocation19_spill] sm:$0xff]  ;;  %v10009_v53 = vld [vmem:[#allocation60_spill] sm:$0xff] }
 0x40b   :  { %v2101_v12 = vmul.f32 %v2098_v14, %v6486_v60  ;;  %2296 = vmatpush.msrb.mxu0 %v6561_v15  ;;  %2316 = vmatpush.msrb.mxu1 %v6564_v16  ;;  %v2119_v60 = vand.u32 2147483648, %v7144_v55  ;;  %v9969_v16 = vld [vmem:[#allocation20_spill] sm:$0xff]  ;;  %vm2118_vm15 = vcmp.eq.f32.partialorder %v2117_v5, 8.507059e+37  ;;  %v9986_v55 = vld [vmem:[#allocation37_spill] sm:$0xff]  ;;  %v10007_v1 = vld [vmem:[#allocation58_spill] sm:$0xff] }
 0x40c   :  { %2336 = vmatpush.msrb.mxu2 %v6571_v7  ;;  %2356 = vmatpush.msrb.mxu3 %v6574_v17  ;;  %v2116_v15 = vsel %vm2115_vm14, %v7166_v29, %v2112_v3  ;;  %v9970_v7 = vld [vmem:[#allocation21_spill] sm:$0xff]  ;;  %v10003_v29 = vld [vmem:[#allocation54_spill] sm:$0xff]  ;;  %v10008_v50 = vld [vmem:[#allocation59_spill] sm:$0xff] }
 0x40d   :  { %v7190_v8 = vadd.f32 %v2102_v61, %v2101_v12  ;;  %2297 = vmatpush.msrb.mxu0 %v6577_v10  ;;  %2317 = vmatpush.msrb.mxu1 %v6580_v22  ;;  %v2120_v17 = vor.u32 1.1754944e-38, %v2119_v60  ;;  %v9971_v10 = vld [vmem:[#allocation22_spill] sm:$0xff]  ;;  %v9972_v22 = vld [vmem:[#allocation23_spill] sm:$0xff]  ;;  %v10010_v54 = vld [vmem:[#allocation61_spill] sm:$0xff] }
 0x40e   :  { %2337 = vmatpush.msrb.mxu2 %v6583_v23  ;;  %2357 = vmatpush.msrb.mxu3 %v6586_v59  ;;  %v9973_v23 = vld [vmem:[#allocation24_spill] sm:$0xff]  ;;  %v9974_v59 = vld [vmem:[#allocation25_spill] sm:$0xff]  ;;  %v10012_v31 = vld [vmem:[#allocation63_spill] sm:$0xff] }
 0x40f   :  { %3734 = vtanh.f32 %v7190_v8  ;;  %2298 = vmatpush.msrb.mxu0 %v6589_v19  ;;  %2318 = vmatpush.msrb.mxu1 %v6592_v18  ;;  %v2121_v18 = vsel %vm2118_vm15, %v2120_v17, %v2116_v15  ;;  %v10013_v2 = vld [vmem:[#allocation64_spill] sm:$0xff]  ;;  %v10014_v14 = vld [vmem:[#allocation65_spill] sm:$0xff]  ;;  %v10015_v61 = vld [vmem:[#allocation66_spill] sm:$0xff] }
 0x410   :  { %2338 = vmatpush.msrb.mxu2 %v6595_v34  ;;  %2358 = vmatpush.msrb.mxu3 %v6598_v56  ;;  %v9975_v34 = vld [vmem:[#allocation26_spill] sm:$0xff]  ;;  %v9976_v56 = vld [vmem:[#allocation27_spill] sm:$0xff]  ;;  %v10017_v12 = vld [vmem:[#allocation68_spill] sm:$0xff] }
 0x411   :  { %2299 = vmatpush.msrb.mxu0 %v9967_v9  ;;  %2319 = vmatpush.msrb.mxu1 %v9968_v11  ;;  %v10016_v44 = vld [vmem:[#allocation67_spill] sm:$0xff]  ;;  %v10018_v3 = vld [vmem:[#allocation69_spill] sm:$0xff]  ;;  %v10019_v60 = vld [vmem:[#allocation70_spill] sm:$0xff] }
 0x412   :  { %2339 = vmatpush.msrb.mxu2 %v9969_v16  ;;  %2359 = vmatpush.msrb.mxu3 %v9970_v7  ;;  %v10020_v5 = vld [vmem:[#allocation71_spill] sm:$0xff]  ;;  %v10021_v9 = vld [vmem:[#allocation72_spill] sm:$0xff]  ;;  %v10022_v11 = vld [vmem:[#allocation73_spill] sm:$0xff] }
 0x413   :  { %2300 = vmatpush.msrb.mxu0 %v9971_v10  ;;  %2320 = vmatpush.msrb.mxu1 %v9972_v22  ;;  %v10023_v15 = vld [vmem:[#allocation74_spill] sm:$0xff]  ;;  %v10024_v16 = vld [vmem:[#allocation75_spill] sm:$0xff]  ;;  %v10025_v7 = vld [vmem:[#allocation76_spill] sm:$0xff] }
 0x414   :  { %2340 = vmatpush.msrb.mxu2 %v9973_v23  ;;  %2360 = vmatpush.msrb.mxu3 %v9974_v59  ;;  %v10026_v17 = vld [vmem:[#allocation77_spill] sm:$0xff]  ;;  %v10027_v10 = vld [vmem:[#allocation78_spill] sm:$0xff]  ;;  %v10028_v22 = vld [vmem:[#allocation79_spill] sm:$0xff] }
 0x415   :  { %v3735_v19 = vpop.eup %3734  ;;  %2301 = vmatpush.msrb.mxu0 %v9975_v34  ;;  %2321 = vmatpush.msrb.mxu1 %v9976_v56  ;;  %v10029_v23 = vld [vmem:[#allocation80_spill] sm:$0xff]  ;;  %v10030_v59 = vld [vmem:[#allocation81_spill] sm:$0xff] }
 0x416   :  { %v2124_v27 = vmul.f32 %v3735_v19, %v2121_v18  ;;  %2341 = vmatpush.msrb.mxu2 %v9977_v52  ;;  %2361 = vmatpush.msrb.mxu3 %v9978_v0  ;;  %v10031_v19 = vld [vmem:[#allocation82_spill] sm:$0xff]  ;;  %v10032_v18 = vld [vmem:[#allocation83_spill] sm:$0xff]  ;;  %v10033_v34 = vld [vmem:[#allocation84_spill] sm:$0xff] }
 0x417   :  { %2302 = vmatpush.msrb.mxu0 %v9979_v36  ;;  %2322 = vmatpush.msrb.mxu1 %v9980_v42  ;;  %v10034_v56 = vld [vmem:[#allocation85_spill] sm:$0xff]  ;;  %v10036_v52 = vld [vmem:[#allocation87_spill] sm:$0xff]  ;;  %v10037_v0 = vld [vmem:[#allocation88_spill] sm:$0xff] }
 0x418   :  { %2342 = vmatpush.msrb.mxu2 %v9981_v40  ;;  %2362 = vmatpush.msrb.mxu3 %v9982_v24  ;;  %v10038_v36 = vld [vmem:[#allocation89_spill] sm:$0xff]  ;;  %v10039_v42 = vld [vmem:[#allocation90_spill] sm:$0xff]  ;;  %v10040_v40 = vld [vmem:[#allocation91_spill] sm:$0xff] }
 0x419   :  { %2141 = vmatmul.f32.vlgmr.msra.gmra.mxu0 %v2124_v27  ;;  %2161 = vmatmul.f32.vlgmr.msra.gmra.mxu1 %v2124_v27  ;;  %v10041_v24 = vld [vmem:[#allocation92_spill] sm:$0xff] }
 0x41a   :  { %2181 = vmatmul.f32.vlgmr.msra.gmra.mxu2 %v2124_v27  ;;  %2201 = vmatmul.f32.vlgmr.msra.gmra.mxu3 %v2124_v27 }
 0x41b   :  { %2303 = vmatpush.msrb.mxu0 %v9983_v6  ;;  %2323 = vmatpush.msrb.mxu1 %v9984_v37  ;;  %v10042_v6 = vld [vmem:[#allocation93_spill] sm:$0xff]  ;;  %v10043_v37 = vld [vmem:[#allocation94_spill] sm:$0xff] }
 0x41c   :  { %2343 = vmatpush.msrb.mxu2 %v9985_v32  ;;  %2363 = vmatpush.msrb.mxu3 %v9986_v55  ;;  %v10044_v32 = vld [vmem:[#allocation95_spill] sm:$0xff]  ;;  %v10045_v55 = vld [vmem:[#allocation96_spill] sm:$0xff] }
 0x41d   :  { %2304 = vmatpush.msrb.mxu0 %v9987_v62  ;;  %2324 = vmatpush.msrb.mxu1 %v9988_v46  ;;  %v10046_v62 = vld [vmem:[#allocation97_spill] sm:$0xff]  ;;  %v10047_v46 = vld [vmem:[#allocation98_spill] sm:$0xff] }
 0x41e   :  { %2344 = vmatpush.msrb.mxu2 %v9989_v41  ;;  %2364 = vmatpush.msrb.mxu3 %v9990_v63  ;;  %v10048_v41 = vld [vmem:[#allocation99_spill] sm:$0xff]  ;;  %v10049_v63 = vld [vmem:[#allocation100_spill] sm:$0xff] }
 0x41f   :  { %2305 = vmatpush.msrb.mxu0 %v9991_v38  ;;  %2325 = vmatpush.msrb.mxu1 %v9992_v45  ;;  %v10050_v38 = vld [vmem:[#allocation101_spill] sm:$0xff]  ;;  %v10051_v45 = vld [vmem:[#allocation102_spill] sm:$0xff] }
 0x420   :  { %2345 = vmatpush.msrb.mxu2 %v9993_v49  ;;  %2365 = vmatpush.msrb.mxu3 %v9994_v47  ;;  %v10052_v49 = vld [vmem:[#allocation103_spill] sm:$0xff]  ;;  %v10053_v47 = vld [vmem:[#allocation104_spill] sm:$0xff] }
 0x421   :  { %2306 = vmatpush.msrb.mxu0 %v9995_v30  ;;  %2326 = vmatpush.msrb.mxu1 %v9996_v4  ;;  %v10054_v30 = vld [vmem:[#allocation105_spill] sm:$0xff]  ;;  %v10055_v4 = vld [vmem:[#allocation106_spill] sm:$0xff] }
 0x422   :  { %2346 = vmatpush.msrb.mxu2 %v9997_v35  ;;  %2366 = vmatpush.msrb.mxu3 %v9998_v39  ;;  %v10056_v35 = vld [vmem:[#allocation107_spill] sm:$0xff]  ;;  %v10057_v39 = vld [vmem:[#allocation108_spill] sm:$0xff] }
 0x423   :  { %2307 = vmatpush.msrb.mxu0 %v9999_v51  ;;  %2327 = vmatpush.msrb.mxu1 %v10000_v28  ;;  %v10058_v51 = vld [vmem:[#allocation109_spill] sm:$0xff]  ;;  %v10059_v28 = vld [vmem:[#allocation110_spill] sm:$0xff] }
 0x424   :  { %2347 = vmatpush.msrb.mxu2 %v10001_v43  ;;  %2367 = vmatpush.msrb.mxu3 %v10002_v33  ;;  %v10060_v43 = vld [vmem:[#allocation111_spill] sm:$0xff]  ;;  %v10061_v33 = vld [vmem:[#allocation112_spill] sm:$0xff] }
 0x425   :  { %2308 = vmatmul.f32.vlgmr.msrb.gmra.mxu0 %v2124_v27  ;;  %2328 = vmatmul.f32.vlgmr.msrb.gmra.mxu1 %v2124_v27 }
 0x426   :  { %2348 = vmatmul.f32.vlgmr.msrb.gmra.mxu2 %v2124_v27  ;;  %2368 = vmatmul.f32.vlgmr.msrb.gmra.mxu3 %v2124_v27  ;;  %v10035_v27 = vld [vmem:[#allocation86_spill] sm:$0xff] }
 0x427   :  { %2372 = vmatpush.msra.mxu0 %v10003_v29  ;;  %2392 = vmatpush.msra.mxu1 %v10004_v21  ;;  %v10062_v29 = vld [vmem:[#allocation113_spill] sm:$0xff]  ;;  %v10063_v21 = vld [vmem:[#allocation114_spill] sm:$0xff] }
 0x428   :  { %2412 = vmatpush.msra.mxu2 %v10005_v48  ;;  %2432 = vmatpush.msra.mxu3 %v10006_v58  ;;  %v10064_v48 = vld [vmem:[#allocation115_spill] sm:$0xff]  ;;  %v10065_v58 = vld [vmem:[#allocation116_spill] sm:$0xff] }
 0x429   :  { %2373 = vmatpush.msra.mxu0 %v10007_v1  ;;  %2393 = vmatpush.msra.mxu1 %v10008_v50  ;;  %v10066_v1 = vld [vmem:[#allocation117_spill] sm:$0xff]  ;;  %v10067_v50 = vld [vmem:[#allocation118_spill] sm:$0xff] }
 0x42a   :  { %2413 = vmatpush.msra.mxu2 %v10009_v53  ;;  %2433 = vmatpush.msra.mxu3 %v10010_v54  ;;  %v10068_v53 = vld [vmem:[#allocation119_spill] sm:$0xff]  ;;  %v10069_v54 = vld [vmem:[#allocation120_spill] sm:$0xff] }
 0x42b   :  { %2374 = vmatpush.msra.mxu0 %v10011_v25  ;;  %2394 = vmatpush.msra.mxu1 %v10012_v31  ;;  %v10070_v25 = vld [vmem:[#allocation121_spill] sm:$0xff]  ;;  %v10071_v31 = vld [vmem:[#allocation122_spill] sm:$0xff] }
 0x42c   :  { %2414 = vmatpush.msra.mxu2 %v10013_v2  ;;  %2434 = vmatpush.msra.mxu3 %v10014_v14  ;;  %v10072_v2 = vld [vmem:[#allocation123_spill] sm:$0xff]  ;;  %v10073_v14 = vld [vmem:[#allocation124_spill] sm:$0xff] }
 0x42d   :  { %2375 = vmatpush.msra.mxu0 %v10015_v61  ;;  %2395 = vmatpush.msra.mxu1 %v10016_v44  ;;  %v10074_v61 = vld [vmem:[#allocation125_spill] sm:$0xff]  ;;  %v10075_v44 = vld [vmem:[#allocation126_spill] sm:$0xff] }
 0x42e   :  { %2415 = vmatpush.msra.mxu2 %v10017_v12  ;;  %2435 = vmatpush.msra.mxu3 %v10018_v3  ;;  %v10076_v12 = vld [vmem:[#allocation127_spill] sm:$0xff]  ;;  %v10077_v3 = vld [vmem:[#allocation128_spill] sm:$0xff] }
 0x42f   :  { %2376 = vmatpush.msra.mxu0 %v10019_v60  ;;  %2396 = vmatpush.msra.mxu1 %v10020_v5  ;;  %v10078_v60 = vld [vmem:[#allocation129_spill] sm:$0xff]  ;;  %v10079_v5 = vld [vmem:[#allocation130_spill] sm:$0xff] }
 0x430   :  { %2416 = vmatpush.msra.mxu2 %v10021_v9  ;;  %2436 = vmatpush.msra.mxu3 %v10022_v11  ;;  %v10080_v9 = vld [vmem:[#allocation131_spill] sm:$0xff]  ;;  %v10081_v11 = vld [vmem:[#allocation132_spill] sm:$0xff] }
 0x431   :  { %2377 = vmatpush.msra.mxu0 %v10023_v15  ;;  %2397 = vmatpush.msra.mxu1 %v10024_v16  ;;  %v10082_v15 = vld [vmem:[#allocation133_spill] sm:$0xff]  ;;  %v10083_v16 = vld [vmem:[#allocation134_spill] sm:$0xff] }
 0x432   :  { %2417 = vmatpush.msra.mxu2 %v10025_v7  ;;  %2437 = vmatpush.msra.mxu3 %v10026_v17  ;;  %v10084_v7 = vld [vmem:[#allocation135_spill] sm:$0xff]  ;;  %v10085_v17 = vld [vmem:[#allocation136_spill] sm:$0xff] }
 0x433   :  { %2378 = vmatpush.msra.mxu0 %v10027_v10  ;;  %2398 = vmatpush.msra.mxu1 %v10028_v22  ;;  %v10086_v10 = vld [vmem:[#allocation137_spill] sm:$0xff]  ;;  %v10087_v22 = vld [vmem:[#allocation138_spill] sm:$0xff] }
 0x434   :  { %2418 = vmatpush.msra.mxu2 %v10029_v23  ;;  %2438 = vmatpush.msra.mxu3 %v10030_v59  ;;  %v10088_v23 = vld [vmem:[#allocation139_spill] sm:$0xff]  ;;  %v10089_v59 = vld [vmem:[#allocation140_spill] sm:$0xff] }
 0x435   :  { %2379 = vmatpush.msra.mxu0 %v10031_v19  ;;  %2399 = vmatpush.msra.mxu1 %v10032_v18  ;;  %v10090_v19 = vld [vmem:[#allocation141_spill] sm:$0xff]  ;;  %v10091_v18 = vld [vmem:[#allocation142_spill] sm:$0xff] }
 0x436   :  { %2419 = vmatpush.msra.mxu2 %v10033_v34  ;;  %2439 = vmatpush.msra.mxu3 %v10034_v56  ;;  %v10092_v34 = vld [vmem:[#allocation143_spill] sm:$0xff]  ;;  %v10093_v56 = vld [vmem:[#allocation144_spill] sm:$0xff] }
 0x437   :  { %2380 = vmatpush.msra.mxu0 %v10035_v27  ;;  %2400 = vmatpush.msra.mxu1 %v10036_v52  ;;  %v10094_v27 = vld [vmem:[#allocation145_spill] sm:$0xff]  ;;  %v10095_v52 = vld [vmem:[#allocation146_spill] sm:$0xff] }
 0x438   :  { %2420 = vmatpush.msra.mxu2 %v10037_v0  ;;  %2440 = vmatpush.msra.mxu3 %v10038_v36  ;;  %v10096_v0 = vld [vmem:[#allocation147_spill] sm:$0xff]  ;;  %v10097_v36 = vld [vmem:[#allocation148_spill] sm:$0xff] }
 0x439   :  { %2381 = vmatpush.msra.mxu0 %v10039_v42  ;;  %2401 = vmatpush.msra.mxu1 %v10040_v40  ;;  %v10098_v42 = vld [vmem:[#allocation149_spill] sm:$0xff]  ;;  %v10099_v40 = vld [vmem:[#allocation150_spill] sm:$0xff] }
 0x43a   :  { %2421 = vmatpush.msra.mxu2 %v10041_v24  ;;  %2441 = vmatpush.msra.mxu3 %v10042_v6  ;;  %v10100_v24 = vld [vmem:[#allocation157_spill] sm:$0xff]  ;;  %v10101_v6 = vld [vmem:[#allocation158_spill] sm:$0xff] }
 0x43b   :  { %2382 = vmatpush.msra.mxu0 %v10043_v37  ;;  %2402 = vmatpush.msra.mxu1 %v10044_v32  ;;  %v10102_v37 = vld [vmem:[#allocation159_spill] sm:$0xff]  ;;  %v10103_v32 = vld [vmem:[#allocation160_spill] sm:$0xff] }
 0x43c   :  { %2422 = vmatpush.msra.mxu2 %v10045_v55  ;;  %2442 = vmatpush.msra.mxu3 %v10046_v62  ;;  %v10104_v55 = vld [vmem:[#allocation161_spill] sm:$0xff]  ;;  %v10105_v62 = vld [vmem:[#allocation162_spill] sm:$0xff] }
 0x43d   :  { %2383 = vmatpush.msra.mxu0 %v10047_v46  ;;  %2403 = vmatpush.msra.mxu1 %v10048_v41  ;;  %v10106_v46 = vld [vmem:[#allocation163_spill] sm:$0xff]  ;;  %v10107_v41 = vld [vmem:[#allocation164_spill] sm:$0xff] }
 0x43e   :  { %2423 = vmatpush.msra.mxu2 %v10049_v63  ;;  %2443 = vmatpush.msra.mxu3 %v10050_v38  ;;  %v10108_v63 = vld [vmem:[#allocation165_spill] sm:$0xff]  ;;  %v10109_v38 = vld [vmem:[#allocation166_spill] sm:$0xff] }
 0x43f   :  { %2384 = vmatpush.msra.mxu0 %v10051_v45  ;;  %2404 = vmatpush.msra.mxu1 %v10052_v49  ;;  %v10110_v45 = vld [vmem:[#allocation167_spill] sm:$0xff]  ;;  %v10111_v49 = vld [vmem:[#allocation168_spill] sm:$0xff] }
 0x440   :  { %2424 = vmatpush.msra.mxu2 %v10053_v47  ;;  %2444 = vmatpush.msra.mxu3 %v10054_v30  ;;  %v10112_v47 = vld [vmem:[#allocation169_spill] sm:$0xff]  ;;  %v10113_v30 = vld [vmem:[#allocation170_spill] sm:$0xff] }
 0x441   :  { %2385 = vmatpush.msra.mxu0 %v10055_v4  ;;  %2405 = vmatpush.msra.mxu1 %v10056_v35  ;;  %v10114_v4 = vld [vmem:[#allocation171_spill] sm:$0xff]  ;;  %v10115_v35 = vld [vmem:[#allocation172_spill] sm:$0xff] }
 0x442   :  { %2425 = vmatpush.msra.mxu2 %v10057_v39  ;;  %2445 = vmatpush.msra.mxu3 %v10058_v51  ;;  %v10116_v39 = vld [vmem:[#allocation173_spill] sm:$0xff]  ;;  %v10117_v51 = vld [vmem:[#allocation174_spill] sm:$0xff] }
 0x443   :  { %2386 = vmatpush.msra.mxu0 %v10059_v28  ;;  %2406 = vmatpush.msra.mxu1 %v10060_v43  ;;  %v10118_v28 = vld [vmem:[#allocation175_spill] sm:$0xff]  ;;  %v10119_v43 = vld [vmem:[#allocation176_spill] sm:$0xff] }
 0x444   :  { %2426 = vmatpush.msra.mxu2 %v10061_v33  ;;  %2446 = vmatpush.msra.mxu3 %v10062_v29  ;;  %v10120_v33 = vld [vmem:[#allocation177_spill] sm:$0xff]  ;;  %v10121_v29 = vld [vmem:[#allocation178_spill] sm:$0xff] }
 0x445   :  { %2387 = vmatpush.msra.mxu0 %v10063_v21  ;;  %2407 = vmatpush.msra.mxu1 %v10064_v48  ;;  %v10122_v21 = vld [vmem:[#allocation179_spill] sm:$0xff]  ;;  %v10123_v48 = vld [vmem:[#allocation180_spill] sm:$0xff] }
 0x446   :  { %2427 = vmatpush.msra.mxu2 %v10065_v58  ;;  %2447 = vmatpush.msra.mxu3 %v10066_v1  ;;  %v10124_v58 = vld [vmem:[#allocation181_spill] sm:$0xff]  ;;  %v10125_v1 = vld [vmem:[#allocation182_spill] sm:$0xff] }
 0x447   :  { %2519 = vmatpush.msrb.mxu0 %v10067_v50  ;;  %2539 = vmatpush.msrb.mxu1 %v10068_v53  ;;  %v10126_v50 = vld [vmem:[#allocation183_spill] sm:$0xff]  ;;  %v10127_v53 = vld [vmem:[#allocation184_spill] sm:$0xff] }
 0x448   :  { %2559 = vmatpush.msrb.mxu2 %v10069_v54  ;;  %2579 = vmatpush.msrb.mxu3 %v10070_v25  ;;  %v10128_v54 = vld [vmem:[#allocation185_spill] sm:$0xff]  ;;  %v10129_v25 = vld [vmem:[#allocation186_spill] sm:$0xff] }
 0x449   :  { %2520 = vmatpush.msrb.mxu0 %v10071_v31  ;;  %2540 = vmatpush.msrb.mxu1 %v10072_v2  ;;  %v10130_v31 = vld [vmem:[#allocation187_spill] sm:$0xff] }
 0x44a   :  { %2560 = vmatpush.msrb.mxu2 %v10073_v14  ;;  %2580 = vmatpush.msrb.mxu3 %v10074_v61 }
 0x44b   :  { %2521 = vmatpush.msrb.mxu0 %v10075_v44  ;;  %2541 = vmatpush.msrb.mxu1 %v10076_v12 }
 0x44c   :  { %2561 = vmatpush.msrb.mxu2 %v10077_v3  ;;  %2581 = vmatpush.msrb.mxu3 %v10078_v60 }
 0x44d   :  { %2522 = vmatpush.msrb.mxu0 %v10079_v5  ;;  %2542 = vmatpush.msrb.mxu1 %v10080_v9  ;;  %v10131_v5 = vld [vmem:[#allocation14_spill] sm:$0xff] }
 0x44e   :  { %2562 = vmatpush.msrb.mxu2 %v10081_v11  ;;  %2582 = vmatpush.msrb.mxu3 %v10082_v15  ;;  %v10132_v11 = vld [vmem:[#allocation15_spill] sm:$0xff] }
 0x44f   :  { %2523 = vmatpush.msrb.mxu0 %v10083_v16  ;;  %2543 = vmatpush.msrb.mxu1 %v10084_v7 }
 0x450   :  { %2563 = vmatpush.msrb.mxu2 %v10085_v17  ;;  %2583 = vmatpush.msrb.mxu3 %v10086_v10  ;;  %v2282_v17 = vpop.permute.xlu2 %2281 }
 0x451   :  { %2524 = vmatpush.msrb.mxu0 %v10087_v22  ;;  %2544 = vmatpush.msrb.mxu1 %v10088_v23  ;;  %v10133_v23 = vld [vmem:[#allocation151_spill] sm:$0xff] }
 0x452   :  { %2564 = vmatpush.msrb.mxu2 %v10089_v59  ;;  %2584 = vmatpush.msrb.mxu3 %v10090_v19  ;;  %v2284_v59 = vmul.f32 %v2282_v17, %v10133_v23  ;;  %v10134_v19 = vld [vmem:[#allocation152_spill] sm:$0xff] }
 0x453   :  { %2525 = vmatpush.msrb.mxu0 %v10091_v18  ;;  %2545 = vmatpush.msrb.mxu1 %v10092_v34  ;;  %v2285_v18 = vmul.f32 %v2282_v17, %v10134_v19 }
 0x454   :  { %2565 = vmatpush.msrb.mxu2 %v10093_v56  ;;  %2585 = vmatpush.msrb.mxu3 %v10094_v27  ;;  %v10135_v56 = vld [vmem:[#allocation16_spill] sm:$0xff] }
 0x455   :  { %2526 = vmatpush.msrb.mxu0 %v10095_v52  ;;  %2546 = vmatpush.msrb.mxu1 %v10096_v0  ;;  %v10136_v52 = vld [vmem:[#allocation153_spill] sm:$0xff] }
 0x456   :  { %2566 = vmatpush.msrb.mxu2 %v10097_v36  ;;  %2586 = vmatpush.msrb.mxu3 %v10098_v42  ;;  %v2288_v0 = vadd.f32 %v2284_v59, %v10136_v52  ;;  %v10137_v36 = vld [vmem:[#allocation154_spill] sm:$0xff] }
 0x457   :  { %2527 = vmatpush.msrb.mxu0 %v10099_v40  ;;  %2547 = vmatpush.msrb.mxu1 %v10100_v24  ;;  %v2289_v42 = vadd.f32 %v2285_v18, %v10137_v36 }
 0x458   :  { %2567 = vmatpush.msrb.mxu2 %v10101_v6  ;;  %2587 = vmatpush.msrb.mxu3 %v10102_v37 }
 0x459   :  { %2528 = vmatpush.msrb.mxu0 %v10103_v32  ;;  %2548 = vmatpush.msrb.mxu1 %v10104_v55 }
 0x45a   :  { %2568 = vmatpush.msrb.mxu2 %v10105_v62  ;;  %2588 = vmatpush.msrb.mxu3 %v10106_v46 }
 0x45b   :  { %2529 = vmatpush.msrb.mxu0 %v10107_v41  ;;  %2549 = vmatpush.msrb.mxu1 %v10108_v63  ;;  %v10138_v63 = vld [vmem:[#allocation155_spill] sm:$0xff] }
 0x45c   :  { %2569 = vmatpush.msrb.mxu2 %v10109_v38  ;;  %2589 = vmatpush.msrb.mxu3 %v10110_v45  ;;  %v2286_v38 = vmul.f32 %v2282_v17, %v10138_v63 }
 0x45d   :  { %2530 = vmatpush.msrb.mxu0 %v10111_v49  ;;  %2550 = vmatpush.msrb.mxu1 %v10112_v47 }
 0x45e   :  { %2570 = vmatpush.msrb.mxu2 %v10113_v30  ;;  %2590 = vmatpush.msrb.mxu3 %v10114_v4  ;;  %v10139_v4 = vld [vmem:[#allocation156_spill] sm:$0xff] }
 0x45f   :  { %2531 = vmatpush.msrb.mxu0 %v10115_v35  ;;  %2551 = vmatpush.msrb.mxu1 %v10116_v39  ;;  %v2290_v35 = vadd.f32 %v2286_v38, %v10139_v4 }
 0x460   :  { %2571 = vmatpush.msrb.mxu2 %v10117_v51  ;;  %2591 = vmatpush.msrb.mxu3 %v10118_v28 }
 0x461   :  { %2532 = vmatpush.msrb.mxu0 %v10119_v43  ;;  %2552 = vmatpush.msrb.mxu1 %v10120_v33  ;;  %v10140_v33 = vld [vmem:[#allocation17_spill] sm:$0xff] }
 0x462   :  { %2572 = vmatpush.msrb.mxu2 %v10121_v29  ;;  %2592 = vmatpush.msrb.mxu3 %v10122_v21  ;;  %v2287_v21 = vmul.f32 %v2282_v17, %v5269_v13 }
 0x463   :  { %2533 = vmatpush.msrb.mxu0 %v10123_v48  ;;  %2553 = vmatpush.msrb.mxu1 %v10124_v58 }
 0x464   :  { %2573 = vmatpush.msrb.mxu2 %v10125_v1  ;;  %2593 = vmatpush.msrb.mxu3 %v10126_v50 }
 0x465   :  { %2534 = vmatpush.msrb.mxu0 %v10127_v53  ;;  %2554 = vmatpush.msrb.mxu1 %v10128_v54 }
 0x466   :  { %2574 = vmatpush.msrb.mxu2 %v10129_v25  ;;  %2594 = vmatpush.msrb.mxu3 %v10130_v31 }
 0x47e   :  { %v1995_v2 = vpop.f32.mrf.mxu0  ;;  %v2015_v14 = vpop.f32.mrf.mxu1 }
 0x485   :  { %v2035_v61 = vpop.f32.mrf.mxu2  ;;  %v2055_v10 = vpop.f32.mrf.mxu3 }
 0x496   :  { %v2142_v44 = vpop.f32.mrf.mxu0  ;;  %v2162_v12 = vpop.f32.mrf.mxu1 }
 0x497   :  { %v2143_v3 = vadd.f32 %v2142_v44, %v1995_v2  ;;  %v2163_v60 = vadd.f32 %v2162_v12, %v2015_v14  ;;  %v2291_v14 = vadd.f32 %v2287_v21, %v5287_v20 }
 0x499   :  { %v2205_v9 = vadd.f32 %v2143_v3, %v10131_v5  ;;  %v2206_v15 = vadd.f32 %v2163_v60, %v10132_v11 }
 0x49b   :  { %v3556_v16 = vmul.f32 -1.442695, %v2205_v9  ;;  %v3557_v7 = vmul.f32 -1.442695, %v2206_v15 }
 0x49d   :  { %3736 = vpow2.f32 %v3556_v16  ;;  %v2182_v22 = vpop.f32.mrf.mxu2  ;;  %v2202_v41 = vpop.f32.mrf.mxu3 }
 0x49e   :  { %3738 = vpow2.f32 %v3557_v7  ;;  %v2183_v34 = vadd.f32 %v2182_v22, %v2035_v61  ;;  %v2203_v30 = vadd.f32 %v2202_v41, %v2055_v10 }
 0x4a0   :  { %v2207_v27 = vadd.f32 %v2183_v34, %v10135_v56  ;;  %v2208_v29 = vadd.f32 %v2203_v30, %v10140_v33 }
 0x4a2   :  { %v3558_v40 = vmul.f32 -1.442695, %v2207_v27  ;;  %v2309_v24 = vpop.f32.mrf.mxu0  ;;  %v2329_v6 = vpop.f32.mrf.mxu1 }
 0x4a3   :  { %v3737_v37 = vpop.eup %3736  ;;  %v2452_v32 = vadd.f32 %v2309_v24, %v2288_v0  ;;  %v2453_v55 = vadd.f32 %v2329_v6, %v2289_v42 }
 0x4a4   :  { %v3739_v62 = vpop.eup %3738  ;;  %v2215_v46 = vadd.f32 1.0, %v3737_v37  ;;  %3740 = vpow2.f32 %v3558_v40 }
 0x4a5   :  { %v2216_v45 = vadd.f32 1.0, %v3739_v62  ;;  %v3560_v49 = vmul.f32 -1.442695, %v2452_v32  ;;  %v3561_v47 = vmul.f32 -1.442695, %v2453_v55 }
 0x4a6   :  { %3742 = vrcp.f32 %v2215_v46  ;;  %v2226_v44 = vand.u32 2147483647, %v2215_v46  ;;  %v2228_v12 = vand.u32 2147483648, %v2215_v46  ;;  %vm2222_vm4 = vweird.f32 %v2215_v46 }
 0x4a7   :  { %3744 = vrcp.f32 %v2216_v45  ;;  %v2243_v60 = vand.u32 2147483648, %v2216_v45  ;;  %v2241_v7 = vand.u32 2147483647, %v2216_v45  ;;  %vm2237_vm3 = vweird.f32 %v2216_v45 }
 0x4a8   :  { %3746 = vpow2.f32 %v3560_v49  ;;  %v2229_v18 = vor.u32 1.1754944e-38, %v2228_v12  ;;  %vm2227_vm6 = vcmp.eq.f32.partialorder %v2226_v44, 8.507059e+37  ;;  %v2274_v44 = vstv %s7417_s24 }
 0x4a9   :  { %3748 = vpow2.f32 %v3561_v47  ;;  %v2349_v39 = vpop.f32.mrf.mxu2  ;;  %v2369_v15 = vpop.f32.mrf.mxu3  ;;  %v2244_v42 = vor.u32 1.1754944e-38, %v2243_v60  ;;  %vm2242_vm7 = vcmp.eq.f32.partialorder %v2241_v7, 8.507059e+37 }
 0x4aa   :  { %v3741_v51 = vpop.eup %3740  ;;  %v2454_v28 = vadd.f32 %v2349_v39, %v2290_v35  ;;  %v2455_v27 = vadd.f32 %v2369_v15, %v2291_v14 }
 0x4ab   :  { %v7380_v43 = vadd.f32 1.0, %v3741_v51 }
 0x4ac   :  { %v3743_v48 = vpop.eup %3742  ;;  %v3562_v58 = vmul.f32 -1.442695, %v2454_v28 }
 0x4ad   :  { %v3745_v1 = vpop.eup %3744  ;;  %v2218_v50 = vmul.f32 %v3743_v48, %v2215_v46  ;;  %3750 = vrcp.f32 %v7380_v43  ;;  %vm2223_vm0 = vweird.f32 %v3743_v48  ;;  %vm2260_vm8 = vweird.f32 %v7380_v43 }
 0x4ae   :  { %v3747_v53 = vpop.eup %3746  ;;  %v2233_v54 = vmul.f32 %v3745_v1, %v2216_v45  ;;  %3752 = vpow2.f32 %v3562_v58  ;;  %vm2238_vm1 = vweird.f32 %v3745_v1  ;;  %vm2224_vm5 = vmor %vm2222_vm4, %vm2223_vm0  ;;  %v2266_v47 = vand.u32 2147483648, %v7380_v43 }
 0x4af   :  { %v3749_v25 = vpop.eup %3748  ;;  %v2219_v31 = vsub.f32 1.0, %v2218_v50  ;;  %3754 = vtanh.f32 %v2208_v29  ;;  %v7385_v2 = vadd.f32 1.0, %v3747_v53  ;;  %vm2239_vm2 = vmor %vm2237_vm3, %vm2238_vm1  ;;  %v2264_v35 = vand.u32 2147483647, %v7380_v43 }
 0x4b0   :  { %v2234_v61 = vsub.f32 1.0, %v2233_v54  ;;  %v7388_v3 = vadd.f32 1.0, %v3749_v25  ;;  %v2267_v54 = vor.u32 1.1754944e-38, %v2266_v47 }
 0x4b1   :  { %v2220_v9 = vmul.f32 %v3743_v48, %v2219_v31  ;;  %3756 = vrcp.f32 %v7385_v2  ;;  %v2473_v29 = vand.u32 2147483647, %v7385_v2  ;;  %v2475_v21 = vand.u32 2147483648, %v7385_v2 }
 0x4b2   :  { %v2235_v16 = vmul.f32 %v3745_v1, %v2234_v61  ;;  %3758 = vrcp.f32 %v7388_v3  ;;  %v2490_v28 = vand.u32 2147483648, %v7388_v3  ;;  %vm2469_vm12 = vweird.f32 %v7385_v2  ;;  %v7542_v61 = vld [vmem:[#allocation4 + $0x148] sm:$0xff] }
 0x4b3   :  { %v7392_v17 = vpop.eup %3750  ;;  %v2221_v10 = vadd.f32 %v3743_v48, %v2220_v9  ;;  %vm2484_vm13 = vweird.f32 %v7388_v3  ;;  %vm2474_vm0 = vcmp.eq.f32.partialorder %v2473_v29, 8.507059e+37  ;;  %v2476_v12 = vor.u32 1.1754944e-38, %v2475_v21  ;;  %v7509_v21 = vld [vmem:[#allocation4 + $0x180] sm:$0xff] }
 0x4b4   :  { %v3753_v22 = vpop.eup %3752  ;;  %v2256_v59 = vmul.f32 %v7392_v17, %v7380_v43  ;;  %v2236_v34 = vadd.f32 %v3745_v1, %v2235_v16  ;;  %vm2261_vm9 = vweird.f32 %v7392_v17  ;;  %vm2265_vm4 = vcmp.eq.f32.partialorder %v2264_v35, 8.507059e+37  ;;  %v7500_v35 = vld [vmem:[#allocation4 + $0x1a8] sm:$0xff] }
 0x4b5   :  { %v3755_v0 = vpop.eup %3754  ;;  %v2225_v40 = vsel %vm2224_vm5, %v3743_v48, %v2221_v10  ;;  %v7396_v24 = vadd.f32 1.0, %v3753_v22  ;;  %vm7432_vm14 = vmor %vm2260_vm8, %vm2261_vm9  ;;  %vm7440_vm5 = vcmp.eq.s32.totalorder %v2274_v44, 1  ;;  %v7545_v44 = vld [vmem:[#allocation4 + $0x150] sm:$0xff] }
 0x4b6   :  { %v2257_v6 = vsub.f32 1.0, %v2256_v59  ;;  %v2230_v37 = vsel %vm2227_vm6, %v2229_v18, %v2225_v40  ;;  %v2240_v32 = vsel %vm2239_vm2, %v3745_v1, %v2236_v34  ;;  %v2488_v1 = vand.u32 2147483647, %v7388_v3 }
 0x4b7   :  { %v3757_v55 = vpop.eup %3756  ;;  %v2245_v62 = vsel %vm2242_vm7, %v2244_v42, %v2240_v32  ;;  %v2249_v46 = vmul.f32 %v3755_v0, %v2230_v37  ;;  %3760 = vrcp.f32 %v7396_v24  ;;  %v7465_v37 = vld [vmem:[#allocation4 + $0x1e8] sm:$0xff]  ;;  %vm2507_vm6 = vweird.f32 %v7396_v24 }
 0x4b8   :  { %v3759_v41 = vpop.eup %3758  ;;  %v2258_v38 = vmul.f32 %v7392_v17, %v2257_v6  ;;  %v2248_v45 = vmul.f32 %v2245_v62, %v7129_v57  ;;  %v2465_v49 = vmul.f32 %v3757_v55, %v7385_v2  ;;  %3762 = vtanh.f32 %v2455_v27  ;;  %v7462_v6 = vld [vmem:[#allocation4 + $0x1e0] sm:$0xff]  ;;  %v7473_v62 = vld [vmem:[#allocation4 + $0x1f8] sm:$0xff]  ;;  %v7614_v42 = vld [vmem:[#allocation4 + $0x88] sm:$0xff] }
 0x4b9   :  { %v2480_v30 = vmul.f32 %v3759_v41, %v7388_v3  ;;  %vm2470_vm10 = vweird.f32 %v3757_v55  ;;  %vm2485_vm11 = vweird.f32 %v3759_v41  ;;  %v2491_v3 = vor.u32 1.1754944e-38, %v2490_v28  ;;  %v7506_v28 = vld [vmem:[#allocation4 + $0x1b8] sm:$0xff]  ;;  %10165 = vst [vmem:[#allocation36_spill] sm:$0xff] %v7614_v42 }
 0x4ba   :  { %v7409_v39 = vadd.f32 %v2249_v46, %v2248_v45  ;;  %v2466_v51 = vsub.f32 1.0, %v2465_v49  ;;  %v2259_v48 = vadd.f32 %v7392_v17, %v2258_v38  ;;  %vm2471_vm15 = vmor %vm2469_vm12, %vm2470_vm10  ;;  %vm2489_vm3 = vcmp.eq.f32.partialorder %v2488_v1, 8.507059e+37  ;;  %v7485_v38 = vld [vmem:[#allocation4 + $0x1c8] sm:$0xff]  ;;  %v7491_v45 = vld [vmem:[#allocation4 + $0x1d0] sm:$0xff] }
 0x4bb   :  { %v2481_v57 = vsub.f32 1.0, %v2480_v30  ;;  %vm2486_vm1 = vmor %vm2484_vm13, %vm2485_vm11  ;;  %v2511_v32 = vand.u32 2147483647, %v7396_v24  ;;  %v7494_v49 = vld [vmem:[#allocation4 + $0x1d8] sm:$0xff]  ;;  %v7497_v30 = vld [vmem:[#allocation4 + $0x1a0] sm:$0xff] }
 0x4bc   :  { %3764 = vtanh.f32 %v7409_v39  ;;  %v2467_v58 = vmul.f32 %v3757_v55, %v2466_v51  ;;  %v2263_v2 = vsel %vm7432_vm14, %v7392_v17, %v2259_v48  ;;  %v7503_v51 = vld [vmem:[#allocation4 + $0x1b0] sm:$0xff]  ;;  %v7512_v48 = vld [vmem:[#allocation4 + $0x188] sm:$0xff]  ;;  %v7599_v46 = vld [vmem:[#allocation4 + $0xa0] sm:$0xff] }
 0x4bd   :  { %v7424_v50 = vpop.eup %3760  ;;  %v2482_v53 = vmul.f32 %v3759_v41, %v2481_v57  ;;  %v2268_v34 = vsel %vm2265_vm4, %v2267_v54, %v2263_v2  ;;  %vm2512_vm8 = vcmp.eq.f32.partialorder %v2511_v32, 8.507059e+37  ;;  %v7517_v1 = vld [vmem:[#allocation4 + $0x190] sm:$0xff]  ;;  %v7526_v54 = vld [vmem:[#allocation4 + $0x168] sm:$0xff]  ;;  %v7596_v32 = vld [vmem:[#allocation4 + $0xd8] sm:$0xff]  ;;  %10160 = vst [vmem:[#allocation31_spill] sm:$0xff] %v7599_v46 }
 0x4be   :  { %v3763_v25 = vpop.eup %3762  ;;  %v2503_v31 = vmul.f32 %v7424_v50, %v7396_v24  ;;  %v2468_v14 = vadd.f32 %v3757_v55, %v2467_v58  ;;  %vm2508_vm2 = vweird.f32 %v7424_v50  ;;  %v7554_v2 = vld [vmem:[#allocation4 + $0x128] sm:$0xff]  ;;  %10159 = vst [vmem:[#allocation30_spill] sm:$0xff] %v7596_v32 }
 0x4bf   :  { %v2483_v60 = vadd.f32 %v3759_v41, %v2482_v53  ;;  %vm7478_vm7 = vmor %vm2507_vm6, %vm2508_vm2  ;;  %v7523_v53 = vld [vmem:[#allocation4 + $0x160] sm:$0xff] }
 0x4c0   :  { %v2504_v9 = vsub.f32 1.0, %v2503_v31  ;;  %v2472_v15 = vsel %vm2471_vm15, %v3757_v55, %v2468_v14  ;;  %v7470_v55 = vld [vmem:[#allocation4 + $0x1f0] sm:$0xff]  ;;  %v7536_v31 = vld [vmem:[#allocation4 + $0x178] sm:$0xff]  ;;  %v7539_v14 = vld [vmem:[#allocation4 + $0x140] sm:$0xff] }
 0x4c1   :  { %v2477_v16 = vsel %vm2474_vm0, %v2476_v12, %v2472_v15  ;;  %v2487_v43 = vsel %vm2486_vm1, %v3759_v41, %v2483_v60  ;;  %v7482_v41 = vld [vmem:[#allocation4 + $0x1c0] sm:$0xff]  ;;  %v7548_v12 = vld [vmem:[#allocation4 + $0x158] sm:$0xff] }
 0x4c2   :  { %v3765_v10 = vpop.eup %3764  ;;  %v2505_v22 = vmul.f32 %v7424_v50, %v2504_v9  ;;  %v2492_v59 = vsel %vm2489_vm3, %v2491_v3, %v2487_v43  ;;  %v2496_v18 = vmul.f32 %v3763_v25, %v2477_v16  ;;  %v7533_v25 = vld [vmem:[#allocation4 + $0x170] sm:$0xff]  ;;  %v7551_v60 = vld [vmem:[#allocation4 + $0x120] sm:$0xff]  ;;  %v7560_v9 = vld [vmem:[#allocation4 + $0x138] sm:$0xff] }
 0x4c3   :  { %v2495_v17 = vmul.f32 %v2492_v59, %v7190_v8  ;;  %v7446_v27 = vmul.f32 %v3765_v10, %v2268_v34  ;;  %v2513_v8 = vand.u32 2147483648, %v7396_v24  ;;  %v7557_v3 = vld [vmem:[#allocation4 + $0x130] sm:$0xff]  ;;  %10147 = vst [vmem:[#allocation18_spill] sm:$0xff] %v7560_v9  ;;  %v7563_v15 = vld [vmem:[#allocation4 + $0x100] sm:$0xff]  ;;  %v7566_v16 = vld [vmem:[#allocation4 + $0x108] sm:$0xff] }
 0x4c4   :  { %v2506_v40 = vadd.f32 %v7424_v50, %v2505_v22  ;;  %10148 = vst [vmem:[#allocation19_spill] sm:$0xff] %v7563_v15  ;;  %v7569_v43 = vld [vmem:[#allocation4 + $0x110] sm:$0xff]  ;;  %v7572_v10 = vld [vmem:[#allocation4 + $0x118] sm:$0xff]  ;;  %v7575_v22 = vld [vmem:[#allocation4 + $0xe0] sm:$0xff] }
 0x4c5   :  { %v7448_v0 = vadd.f32 %v2496_v18, %v2495_v17  ;;  %2388 = vmatmul.f32.vlgmr.msra.gmra.mxu0 %v7446_v27  ;;  %2408 = vmatmul.f32.vlgmr.msra.gmra.mxu1 %v7446_v27  ;;  %v2514_v47 = vor.u32 1.1754944e-38, %v2513_v8  ;;  %10149 = vst [vmem:[#allocation20_spill] sm:$0xff] %v7566_v16  ;;  %v7578_v59 = vld [vmem:[#allocation4 + $0xe8] sm:$0xff]  ;;  %v7581_v18 = vld [vmem:[#allocation4 + $0xf0] sm:$0xff]  ;;  %v7584_v34 = vld [vmem:[#allocation4 + $0xf8] sm:$0xff] }
 0x4c6   :  { %2428 = vmatmul.f32.vlgmr.msra.gmra.mxu2 %v7446_v27  ;;  %2448 = vmatmul.f32.vlgmr.msra.gmra.mxu3 %v7446_v27  ;;  %v2510_v24 = vsel %vm7478_vm7, %v7424_v50, %v2506_v40  ;;  %v7520_v50 = vld [vmem:[#allocation4 + $0x198] sm:$0xff]  ;;  %10150 = vst [vmem:[#allocation21_spill] sm:$0xff] %v7569_v43  ;;  %v7587_v17 = vld [vmem:[#allocation4 + $0xc0] sm:$0xff]  ;;  %v7590_v40 = vld [vmem:[#allocation4 + $0xc8] sm:$0xff] }
 0x4c7   :  { %3766 = vtanh.f32 %v7448_v0  ;;  %2686 = vmatpush.msra.mxu0 %v7462_v6  ;;  %2706 = vmatpush.msra.mxu1 %v7465_v37  ;;  %v2515_v57 = vsel %vm2512_vm8, %v2514_v47, %v2510_v24  ;;  %10151 = vst [vmem:[#allocation22_spill] sm:$0xff] %v7572_v10  ;;  %v7593_v8 = vld [vmem:[#allocation4 + $0xd0] sm:$0xff]  ;;  %v7602_v24 = vld [vmem:[#allocation4 + $0xa8] sm:$0xff] }
 0x4c8   :  { %2726 = vmatpush.msra.mxu2 %v7470_v55  ;;  %2746 = vmatpush.msra.mxu3 %v7473_v62  ;;  %10152 = vst [vmem:[#allocation23_spill] sm:$0xff] %v7575_v22  ;;  %v7605_v47 = vld [vmem:[#allocation4 + $0xb0] sm:$0xff] }
 0x4c9   :  { %2687 = vmatpush.msra.mxu0 %v7482_v41  ;;  %2707 = vmatpush.msra.mxu1 %v7485_v38  ;;  %10153 = vst [vmem:[#allocation24_spill] sm:$0xff] %v7578_v59 }
 0x4ca   :  { %2727 = vmatpush.msra.mxu2 %v7491_v45  ;;  %2747 = vmatpush.msra.mxu3 %v7494_v49  ;;  %10154 = vst [vmem:[#allocation25_spill] sm:$0xff] %v7581_v18 }
 0x4cb   :  { %2688 = vmatpush.msra.mxu0 %v7497_v30  ;;  %2708 = vmatpush.msra.mxu1 %v7500_v35  ;;  %10155 = vst [vmem:[#allocation26_spill] sm:$0xff] %v7584_v34 }
 0x4cc   :  { %2728 = vmatpush.msra.mxu2 %v7503_v51  ;;  %2748 = vmatpush.msra.mxu3 %v7506_v28  ;;  %10156 = vst [vmem:[#allocation27_spill] sm:$0xff] %v7587_v17 }
 0x4cd   :  { %v3767_v29 = vpop.eup %3766  ;;  %2689 = vmatpush.msra.mxu0 %v7509_v21  ;;  %2709 = vmatpush.msra.mxu1 %v7512_v48  ;;  %10157 = vst [vmem:[#allocation28_spill] sm:$0xff] %v7590_v40 }
 0x4ce   :  { %v7515_v58 = vmul.f32 %v3767_v29, %v2515_v57  ;;  %2729 = vmatpush.msra.mxu2 %v7517_v1  ;;  %2749 = vmatpush.msra.mxu3 %v7520_v50  ;;  %10158 = vst [vmem:[#allocation29_spill] sm:$0xff] %v7593_v8  ;;  %v7608_v29 = vld [vmem:[#allocation4 + $0xb8] sm:$0xff]  ;;  %v7611_v57 = vld [vmem:[#allocation4 + $0x80] sm:$0xff] }
 0x4cf   :  { %2690 = vmatpush.msra.mxu0 %v7523_v53  ;;  %2710 = vmatpush.msra.mxu1 %v7526_v54  ;;  %10161 = vst [vmem:[#allocation32_spill] sm:$0xff] %v7602_v24 }
 0x4d0   :  { %2535 = vmatmul.f32.vlgmr.msrb.gmra.mxu0 %v7515_v58  ;;  %2555 = vmatmul.f32.vlgmr.msrb.gmra.mxu1 %v7515_v58  ;;  %10162 = vst [vmem:[#allocation33_spill] sm:$0xff] %v7605_v47 }
 0x4d1   :  { %2575 = vmatmul.f32.vlgmr.msrb.gmra.mxu2 %v7515_v58  ;;  %2595 = vmatmul.f32.vlgmr.msrb.gmra.mxu3 %v7515_v58  ;;  %10163 = vst [vmem:[#allocation34_spill] sm:$0xff] %v7608_v29 }
 0x4d2   :  { %2730 = vmatpush.msra.mxu2 %v7533_v25  ;;  %2750 = vmatpush.msra.mxu3 %v7536_v31  ;;  %10164 = vst [vmem:[#allocation35_spill] sm:$0xff] %v7611_v57 }
 0x4d3   :  { %2691 = vmatpush.msra.mxu0 %v7539_v14  ;;  %2711 = vmatpush.msra.mxu1 %v7542_v61 }
 0x4d4   :  { %2731 = vmatpush.msra.mxu2 %v7545_v44  ;;  %2751 = vmatpush.msra.mxu3 %v7548_v12 }
 0x4d5   :  { %2692 = vmatpush.msra.mxu0 %v7551_v60  ;;  %2712 = vmatpush.msra.mxu1 %v7554_v2 }
 0x4d6   :  { %2732 = vmatpush.msra.mxu2 %v7557_v3  ;;  %2752 = vmatpush.msra.mxu3 %v7560_v9 }
 0x4d7   :  { %2693 = vmatpush.msra.mxu0 %v7563_v15  ;;  %2713 = vmatpush.msra.mxu1 %v7566_v16 }
 0x4d8   :  { %2733 = vmatpush.msra.mxu2 %v7569_v43  ;;  %2753 = vmatpush.msra.mxu3 %v7572_v10 }
 0x4d9   :  { %2694 = vmatpush.msra.mxu0 %v7575_v22  ;;  %2714 = vmatpush.msra.mxu1 %v7578_v59 }
 0x4da   :  { %2734 = vmatpush.msra.mxu2 %v7581_v18  ;;  %2754 = vmatpush.msra.mxu3 %v7584_v34 }
 0x4db   :  { %2695 = vmatpush.msra.mxu0 %v7587_v17  ;;  %2715 = vmatpush.msra.mxu1 %v7590_v40 }
 0x4dc   :  { %2735 = vmatpush.msra.mxu2 %v7593_v8  ;;  %2755 = vmatpush.msra.mxu3 %v7596_v32 }
 0x4dd   :  { %2696 = vmatpush.msra.mxu0 %v7599_v46  ;;  %2716 = vmatpush.msra.mxu1 %v7602_v24  ;;  %v7617_v46 = vld [vmem:[#allocation4 + $0x90] sm:$0xff]  ;;  %v7620_v24 = vld [vmem:[#allocation4 + $0x98] sm:$0xff] }
 0x4de   :  { %2736 = vmatpush.msra.mxu2 %v7605_v47  ;;  %2756 = vmatpush.msra.mxu3 %v7608_v29  ;;  %10166 = vst [vmem:[#allocation37_spill] sm:$0xff] %v7617_v46  ;;  %v7623_v47 = vld [vmem:[#allocation4 + $0x60] sm:$0xff]  ;;  %v7626_v29 = vld [vmem:[#allocation4 + $0x68] sm:$0xff] }
 0x4df   :  { %2697 = vmatpush.msra.mxu0 %v7611_v57  ;;  %2717 = vmatpush.msra.mxu1 %v7614_v42  ;;  %10167 = vst [vmem:[#allocation38_spill] sm:$0xff] %v7620_v24  ;;  %v7629_v57 = vld [vmem:[#allocation4 + $0x70] sm:$0xff]  ;;  %v7632_v42 = vld [vmem:[#allocation4 + $0x78] sm:$0xff] }
 0x4e0   :  { %2737 = vmatpush.msra.mxu2 %v7617_v46  ;;  %2757 = vmatpush.msra.mxu3 %v7620_v24  ;;  %10168 = vst [vmem:[#allocation39_spill] sm:$0xff] %v7623_v47  ;;  %v7635_v46 = vld [vmem:[#allocation4 + $0x40] sm:$0xff]  ;;  %v7638_v24 = vld [vmem:[#allocation4 + $0x48] sm:$0xff] }
 0x4e1   :  { %2698 = vmatpush.msra.mxu0 %v7623_v47  ;;  %10169 = vst [vmem:[#allocation40_spill] sm:$0xff] %v7626_v29  ;;  %2718 = vmatpush.msra.mxu1 %v7626_v29  ;;  %v7641_v47 = vld [vmem:[#allocation4 + $0x50] sm:$0xff]  ;;  %v7644_v29 = vld [vmem:[#allocation4 + $0x58] sm:$0xff] }
 0x4e2   :  { %10170 = vst [vmem:[#allocation41_spill] sm:$0xff] %v7629_v57  ;;  %2738 = vmatpush.msra.mxu2 %v7629_v57  ;;  %2758 = vmatpush.msra.mxu3 %v7632_v42  ;;  %v7647_v57 = vld [vmem:[#allocation4 + $0x20] sm:$0xff] }
 0x4e3   :  { %10171 = vst [vmem:[#allocation42_spill] sm:$0xff] %v7632_v42  ;;  %2699 = vmatpush.msra.mxu0 %v7635_v46  ;;  %2719 = vmatpush.msra.mxu1 %v7638_v24  ;;  %v7650_v42 = vld [vmem:[#allocation4 + $0x28] sm:$0xff] }
 0x4e4   :  { %10172 = vst [vmem:[#allocation43_spill] sm:$0xff] %v7635_v46  ;;  %2739 = vmatpush.msra.mxu2 %v7641_v47  ;;  %2759 = vmatpush.msra.mxu3 %v7644_v29  ;;  %v7653_v46 = vld [vmem:[#allocation4 + $0x30] sm:$0xff] }
 0x4e5   :  { %10173 = vst [vmem:[#allocation44_spill] sm:$0xff] %v7638_v24  ;;  %2700 = vmatpush.msra.mxu0 %v7647_v57  ;;  %2720 = vmatpush.msra.mxu1 %v7650_v42  ;;  %v7656_v24 = vld [vmem:[#allocation4 + $0x38] sm:$0xff] }
 0x4e6   :  { %10174 = vst [vmem:[#allocation45_spill] sm:$0xff] %v7641_v47  ;;  %2740 = vmatpush.msra.mxu2 %v7653_v46  ;;  %2760 = vmatpush.msra.mxu3 %v7656_v24  ;;  %v7659_v47 = vld [vmem:[#allocation4] sm:$0xff] }
 0x4e7   :  { %10175 = vst [vmem:[#allocation46_spill] sm:$0xff] %v7644_v29  ;;  %2701 = vmatpush.msra.mxu0 %v7659_v47  ;;  %v7662_v29 = vld [vmem:[#allocation4 + $0x8] sm:$0xff] }
 0x4e8   :  { %10176 = vst [vmem:[#allocation47_spill] sm:$0xff] %v7647_v57  ;;  %2721 = vmatpush.msra.mxu1 %v7662_v29  ;;  %v7665_v57 = vld [vmem:[#allocation4 + $0x10] sm:$0xff]  ;;  %2702 = vmatmul.f32.vlgmr.msra.gmra.mxu0 %v7515_v58 }
 0x4e9   :  { %10177 = vst [vmem:[#allocation48_spill] sm:$0xff] %v7650_v42  ;;  %2741 = vmatpush.msra.mxu2 %v7665_v57  ;;  %v7668_v42 = vld [vmem:[#allocation4 + $0x18] sm:$0xff]  ;;  %2722 = vmatmul.f32.vlgmr.msra.gmra.mxu1 %v7515_v58 }
 0x4ea   :  { %10178 = vst [vmem:[#allocation49_spill] sm:$0xff] %v7653_v46  ;;  %2761 = vmatpush.msra.mxu3 %v7668_v42  ;;  %2742 = vmatmul.f32.vlgmr.msra.gmra.mxu2 %v7515_v58 }
 0x4eb   :  { %10179 = vst [vmem:[#allocation50_spill] sm:$0xff] %v7656_v24  ;;  %2762 = vmatmul.f32.vlgmr.msra.gmra.mxu3 %v7515_v58  ;;  %v7687_v24 = vld [vmem:[#allocation7 + $0x1c0] sm:$0xff]  ;;  %v7690_v58 = vld [vmem:[#allocation7 + $0x1c8] sm:$0xff] }
 0x4ec   :  { %10180 = vst [vmem:[#allocation51_spill] sm:$0xff] %v7659_v47  ;;  %v7675_v47 = vld [vmem:[#allocation7 + $0x1e0] sm:$0xff] }
 0x4ed   :  { %10181 = vst [vmem:[#allocation52_spill] sm:$0xff] %v7662_v29  ;;  %2766 = vmatpush.msrb.mxu0 %v7675_v47  ;;  %v7678_v29 = vld [vmem:[#allocation7 + $0x1e8] sm:$0xff] }
 0x4ee   :  { %10182 = vst [vmem:[#allocation53_spill] sm:$0xff] %v7665_v57  ;;  %2786 = vmatpush.msrb.mxu1 %v7678_v29  ;;  %v7681_v57 = vld [vmem:[#allocation7 + $0x1f0] sm:$0xff] }
 0x4ef   :  { %10183 = vst [vmem:[#allocation54_spill] sm:$0xff] %v7668_v42  ;;  %2806 = vmatpush.msrb.mxu2 %v7681_v57  ;;  %v7684_v42 = vld [vmem:[#allocation7 + $0x1f8] sm:$0xff]  ;;  %2767 = vmatpush.msrb.mxu0 %v7687_v24 }
 0x4f0   :  { %10184 = vst [vmem:[#allocation55_spill] sm:$0xff] %v7675_v47  ;;  %2826 = vmatpush.msrb.mxu3 %v7684_v42  ;;  %2787 = vmatpush.msrb.mxu1 %v7690_v58  ;;  %v7693_v47 = vld [vmem:[#allocation7 + $0x1d0] sm:$0xff] }
 0x4f1   :  { %10185 = vst [vmem:[#allocation56_spill] sm:$0xff] %v7678_v29  ;;  %2807 = vmatpush.msrb.mxu2 %v7693_v47  ;;  %v7696_v29 = vld [vmem:[#allocation7 + $0x1d8] sm:$0xff] }
 0x4f2   :  { %10186 = vst [vmem:[#allocation57_spill] sm:$0xff] %v7681_v57  ;;  %2827 = vmatpush.msrb.mxu3 %v7696_v29  ;;  %v7699_v57 = vld [vmem:[#allocation7 + $0x1a0] sm:$0xff] }
 0x4f3   :  { %10187 = vst [vmem:[#allocation58_spill] sm:$0xff] %v7684_v42  ;;  %2768 = vmatpush.msrb.mxu0 %v7699_v57  ;;  %v7702_v42 = vld [vmem:[#allocation7 + $0x1a8] sm:$0xff] }
 0x4f4   :  { %10188 = vst [vmem:[#allocation59_spill] sm:$0xff] %v7687_v24  ;;  %2788 = vmatpush.msrb.mxu1 %v7702_v42  ;;  %v7705_v24 = vld [vmem:[#allocation7 + $0x1b0] sm:$0xff] }
 0x4f5   :  { %10189 = vst [vmem:[#allocation60_spill] sm:$0xff] %v7690_v58  ;;  %2808 = vmatpush.msrb.mxu2 %v7705_v24  ;;  %v7708_v58 = vld [vmem:[#allocation7 + $0x1b8] sm:$0xff] }
 0x4f6   :  { %10190 = vst [vmem:[#allocation61_spill] sm:$0xff] %v7693_v47  ;;  %2828 = vmatpush.msrb.mxu3 %v7708_v58  ;;  %v7711_v47 = vld [vmem:[#allocation7 + $0x180] sm:$0xff] }
 0x4f7   :  { %10191 = vst [vmem:[#allocation62_spill] sm:$0xff] %v7696_v29  ;;  %2769 = vmatpush.msrb.mxu0 %v7711_v47  ;;  %v7714_v29 = vld [vmem:[#allocation7 + $0x188] sm:$0xff] }
 0x4f8   :  { %10192 = vst [vmem:[#allocation63_spill] sm:$0xff] %v7699_v57  ;;  %2789 = vmatpush.msrb.mxu1 %v7714_v29  ;;  %v7717_v57 = vld [vmem:[#allocation7 + $0x190] sm:$0xff] }
 0x4f9   :  { %10193 = vst [vmem:[#allocation64_spill] sm:$0xff] %v7702_v42  ;;  %2809 = vmatpush.msrb.mxu2 %v7717_v57  ;;  %v7720_v42 = vld [vmem:[#allocation7 + $0x198] sm:$0xff] }
 0x4fa   :  { %10194 = vst [vmem:[#allocation65_spill] sm:$0xff] %v7705_v24  ;;  %2829 = vmatpush.msrb.mxu3 %v7720_v42  ;;  %v7723_v24 = vld [vmem:[#allocation7 + $0x160] sm:$0xff] }
 0x4fb   :  { %10195 = vst [vmem:[#allocation66_spill] sm:$0xff] %v7708_v58  ;;  %2770 = vmatpush.msrb.mxu0 %v7723_v24  ;;  %v7726_v58 = vld [vmem:[#allocation7 + $0x168] sm:$0xff] }
 0x4fc   :  { %10196 = vst [vmem:[#allocation67_spill] sm:$0xff] %v7711_v47  ;;  %2790 = vmatpush.msrb.mxu1 %v7726_v58  ;;  %v7729_v47 = vld [vmem:[#allocation7 + $0x170] sm:$0xff] }
 0x4fd   :  { %10197 = vst [vmem:[#allocation68_spill] sm:$0xff] %v7714_v29  ;;  %2810 = vmatpush.msrb.mxu2 %v7729_v47  ;;  %v7732_v29 = vld [vmem:[#allocation7 + $0x178] sm:$0xff] }
 0x4fe   :  { %10198 = vst [vmem:[#allocation69_spill] sm:$0xff] %v7717_v57  ;;  %2830 = vmatpush.msrb.mxu3 %v7732_v29  ;;  %v7735_v57 = vld [vmem:[#allocation7 + $0x140] sm:$0xff] }
 0x4ff   :  { %10199 = vst [vmem:[#allocation70_spill] sm:$0xff] %v7720_v42  ;;  %2771 = vmatpush.msrb.mxu0 %v7735_v57  ;;  %v7738_v42 = vld [vmem:[#allocation7 + $0x148] sm:$0xff] }
 0x500   :  { %10200 = vst [vmem:[#allocation71_spill] sm:$0xff] %v7723_v24  ;;  %2791 = vmatpush.msrb.mxu1 %v7738_v42  ;;  %v7741_v24 = vld [vmem:[#allocation7 + $0x150] sm:$0xff] }
 0x501   :  { %10201 = vst [vmem:[#allocation72_spill] sm:$0xff] %v7726_v58  ;;  %2811 = vmatpush.msrb.mxu2 %v7741_v24  ;;  %v7744_v58 = vld [vmem:[#allocation7 + $0x158] sm:$0xff] }
 0x502   :  { %10202 = vst [vmem:[#allocation73_spill] sm:$0xff] %v7729_v47  ;;  %2831 = vmatpush.msrb.mxu3 %v7744_v58  ;;  %v7747_v47 = vld [vmem:[#allocation7 + $0x120] sm:$0xff] }
 0x503   :  { %10203 = vst [vmem:[#allocation74_spill] sm:$0xff] %v7732_v29  ;;  %2772 = vmatpush.msrb.mxu0 %v7747_v47  ;;  %v7750_v29 = vld [vmem:[#allocation7 + $0x128] sm:$0xff] }
 0x504   :  { %10204 = vst [vmem:[#allocation75_spill] sm:$0xff] %v7735_v57  ;;  %2792 = vmatpush.msrb.mxu1 %v7750_v29  ;;  %v7753_v57 = vld [vmem:[#allocation7 + $0x130] sm:$0xff] }
 0x505   :  { %10205 = vst [vmem:[#allocation76_spill] sm:$0xff] %v7738_v42  ;;  %2812 = vmatpush.msrb.mxu2 %v7753_v57  ;;  %v7756_v42 = vld [vmem:[#allocation7 + $0x138] sm:$0xff] }
 0x506   :  { %10206 = vst [vmem:[#allocation77_spill] sm:$0xff] %v7741_v24  ;;  %2832 = vmatpush.msrb.mxu3 %v7756_v42  ;;  %v7759_v24 = vld [vmem:[#allocation7 + $0x100] sm:$0xff] }
 0x507   :  { %10207 = vst [vmem:[#allocation78_spill] sm:$0xff] %v7744_v58  ;;  %2773 = vmatpush.msrb.mxu0 %v7759_v24  ;;  %v7762_v58 = vld [vmem:[#allocation7 + $0x108] sm:$0xff] }
 0x508   :  { %10208 = vst [vmem:[#allocation79_spill] sm:$0xff] %v7747_v47  ;;  %2793 = vmatpush.msrb.mxu1 %v7762_v58  ;;  %v7765_v47 = vld [vmem:[#allocation7 + $0x110] sm:$0xff] }
 0x509   :  { %10209 = vst [vmem:[#allocation80_spill] sm:$0xff] %v7750_v29  ;;  %2813 = vmatpush.msrb.mxu2 %v7765_v47  ;;  %v7768_v29 = vld [vmem:[#allocation7 + $0x118] sm:$0xff] }
 0x50a   :  { %10210 = vst [vmem:[#allocation81_spill] sm:$0xff] %v7753_v57  ;;  %2833 = vmatpush.msrb.mxu3 %v7768_v29  ;;  %v7771_v57 = vld [vmem:[#allocation7 + $0xe0] sm:$0xff] }
 0x50b   :  { %10211 = vst [vmem:[#allocation82_spill] sm:$0xff] %v7756_v42  ;;  %2774 = vmatpush.msrb.mxu0 %v7771_v57  ;;  %v7774_v42 = vld [vmem:[#allocation7 + $0xe8] sm:$0xff] }
 0x50c   :  { %10212 = vst [vmem:[#allocation83_spill] sm:$0xff] %v7759_v24  ;;  %2794 = vmatpush.msrb.mxu1 %v7774_v42  ;;  %v7777_v24 = vld [vmem:[#allocation7 + $0xf0] sm:$0xff] }
 0x50d   :  { %10213 = vst [vmem:[#allocation84_spill] sm:$0xff] %v7762_v58  ;;  %2814 = vmatpush.msrb.mxu2 %v7777_v24  ;;  %v7780_v58 = vld [vmem:[#allocation7 + $0xf8] sm:$0xff] }
 0x50e   :  { %10214 = vst [vmem:[#allocation85_spill] sm:$0xff] %v7765_v47  ;;  %2834 = vmatpush.msrb.mxu3 %v7780_v58  ;;  %v7783_v47 = vld [vmem:[#allocation7 + $0xc0] sm:$0xff] }
 0x50f   :  { %10215 = vst [vmem:[#allocation86_spill] sm:$0xff] %v7768_v29  ;;  %2775 = vmatpush.msrb.mxu0 %v7783_v47  ;;  %v7786_v29 = vld [vmem:[#allocation7 + $0xc8] sm:$0xff] }
 0x510   :  { %10216 = vst [vmem:[#allocation87_spill] sm:$0xff] %v7771_v57  ;;  %2795 = vmatpush.msrb.mxu1 %v7786_v29  ;;  %v7789_v57 = vld [vmem:[#allocation7 + $0xd0] sm:$0xff] }
 0x511   :  { %10217 = vst [vmem:[#allocation88_spill] sm:$0xff] %v7774_v42  ;;  %2815 = vmatpush.msrb.mxu2 %v7789_v57  ;;  %v7792_v42 = vld [vmem:[#allocation7 + $0xd8] sm:$0xff] }
 0x512   :  { %10218 = vst [vmem:[#allocation89_spill] sm:$0xff] %v7777_v24  ;;  %2835 = vmatpush.msrb.mxu3 %v7792_v42  ;;  %v7795_v24 = vld [vmem:[#allocation7 + $0xa0] sm:$0xff] }
 0x513   :  { %10219 = vst [vmem:[#allocation90_spill] sm:$0xff] %v7780_v58  ;;  %2776 = vmatpush.msrb.mxu0 %v7795_v24  ;;  %v7798_v58 = vld [vmem:[#allocation7 + $0xa8] sm:$0xff] }
 0x514   :  { %10220 = vst [vmem:[#allocation91_spill] sm:$0xff] %v7783_v47  ;;  %2796 = vmatpush.msrb.mxu1 %v7798_v58  ;;  %v7801_v47 = vld [vmem:[#allocation7 + $0xb0] sm:$0xff] }
 0x515   :  { %10221 = vst [vmem:[#allocation92_spill] sm:$0xff] %v7786_v29  ;;  %2816 = vmatpush.msrb.mxu2 %v7801_v47  ;;  %v7804_v29 = vld [vmem:[#allocation7 + $0xb8] sm:$0xff] }
 0x516   :  { %10222 = vst [vmem:[#allocation93_spill] sm:$0xff] %v7789_v57  ;;  %2836 = vmatpush.msrb.mxu3 %v7804_v29  ;;  %v7807_v57 = vld [vmem:[#allocation7 + $0x80] sm:$0xff] }
 0x517   :  { %10223 = vst [vmem:[#allocation94_spill] sm:$0xff] %v7792_v42  ;;  %2777 = vmatpush.msrb.mxu0 %v7807_v57  ;;  %v7810_v42 = vld [vmem:[#allocation7 + $0x88] sm:$0xff] }
 0x518   :  { %10224 = vst [vmem:[#allocation95_spill] sm:$0xff] %v7795_v24  ;;  %2797 = vmatpush.msrb.mxu1 %v7810_v42  ;;  %v7813_v24 = vld [vmem:[#allocation7 + $0x90] sm:$0xff] }
 0x519   :  { %10225 = vst [vmem:[#allocation96_spill] sm:$0xff] %v7798_v58  ;;  %2817 = vmatpush.msrb.mxu2 %v7813_v24  ;;  %v7816_v58 = vld [vmem:[#allocation7 + $0x98] sm:$0xff] }
 0x51a   :  { %10226 = vst [vmem:[#allocation97_spill] sm:$0xff] %v7801_v47  ;;  %2837 = vmatpush.msrb.mxu3 %v7816_v58  ;;  %v7819_v47 = vld [vmem:[#allocation7 + $0x60] sm:$0xff] }
 0x51b   :  { %10227 = vst [vmem:[#allocation98_spill] sm:$0xff] %v7804_v29  ;;  %2778 = vmatpush.msrb.mxu0 %v7819_v47  ;;  %v7822_v29 = vld [vmem:[#allocation7 + $0x68] sm:$0xff] }
 0x51c   :  { %10228 = vst [vmem:[#allocation99_spill] sm:$0xff] %v7807_v57  ;;  %2798 = vmatpush.msrb.mxu1 %v7822_v29  ;;  %v7825_v57 = vld [vmem:[#allocation7 + $0x70] sm:$0xff] }
 0x51d   :  { %10229 = vst [vmem:[#allocation100_spill] sm:$0xff] %v7810_v42  ;;  %2818 = vmatpush.msrb.mxu2 %v7825_v57  ;;  %v7828_v42 = vld [vmem:[#allocation7 + $0x78] sm:$0xff] }
 0x51e   :  { %10230 = vst [vmem:[#allocation101_spill] sm:$0xff] %v7813_v24  ;;  %2838 = vmatpush.msrb.mxu3 %v7828_v42  ;;  %v7831_v24 = vld [vmem:[#allocation7 + $0x40] sm:$0xff] }
 0x51f   :  { %10231 = vst [vmem:[#allocation102_spill] sm:$0xff] %v7816_v58  ;;  %2779 = vmatpush.msrb.mxu0 %v7831_v24  ;;  %v7834_v58 = vld [vmem:[#allocation7 + $0x48] sm:$0xff] }
 0x520   :  { %10232 = vst [vmem:[#allocation103_spill] sm:$0xff] %v7819_v47  ;;  %2799 = vmatpush.msrb.mxu1 %v7834_v58  ;;  %v7837_v47 = vld [vmem:[#allocation7 + $0x50] sm:$0xff] }
 0x521   :  { %10233 = vst [vmem:[#allocation104_spill] sm:$0xff] %v7822_v29  ;;  %2819 = vmatpush.msrb.mxu2 %v7837_v47  ;;  %v7840_v29 = vld [vmem:[#allocation7 + $0x58] sm:$0xff] }
 0x522   :  { %10234 = vst [vmem:[#allocation105_spill] sm:$0xff] %v7825_v57  ;;  %2839 = vmatpush.msrb.mxu3 %v7840_v29  ;;  %v7843_v57 = vld [vmem:[#allocation7 + $0x20] sm:$0xff] }
 0x523   :  { %10235 = vst [vmem:[#allocation106_spill] sm:$0xff] %v7828_v42  ;;  %2780 = vmatpush.msrb.mxu0 %v7843_v57  ;;  %v7846_v42 = vld [vmem:[#allocation7 + $0x28] sm:$0xff] }
 0x524   :  { %10236 = vst [vmem:[#allocation107_spill] sm:$0xff] %v7831_v24  ;;  %2800 = vmatpush.msrb.mxu1 %v7846_v42  ;;  %v7849_v24 = vld [vmem:[#allocation7 + $0x30] sm:$0xff] }
 0x525   :  { %10237 = vst [vmem:[#allocation108_spill] sm:$0xff] %v7834_v58  ;;  %2820 = vmatpush.msrb.mxu2 %v7849_v24  ;;  %v7852_v58 = vld [vmem:[#allocation7 + $0x38] sm:$0xff] }
 0x526   :  { %10238 = vst [vmem:[#allocation109_spill] sm:$0xff] %v7837_v47  ;;  %2840 = vmatpush.msrb.mxu3 %v7852_v58  ;;  %v7855_v47 = vld [vmem:[#allocation7] sm:$0xff] }
 0x527   :  { %10239 = vst [vmem:[#allocation110_spill] sm:$0xff] %v7840_v29  ;;  %2781 = vmatpush.msrb.mxu0 %v7855_v47  ;;  %v7858_v29 = vld [vmem:[#allocation7 + $0x8] sm:$0xff] }
 0x528   :  { %10240 = vst [vmem:[#allocation111_spill] sm:$0xff] %v7843_v57  ;;  %2801 = vmatpush.msrb.mxu1 %v7858_v29  ;;  %v7861_v57 = vld [vmem:[#allocation7 + $0x10] sm:$0xff] }
 0x529   :  { %10241 = vst [vmem:[#allocation112_spill] sm:$0xff] %v7846_v42  ;;  %2821 = vmatpush.msrb.mxu2 %v7861_v57  ;;  %v7864_v42 = vld [vmem:[#allocation7 + $0x18] sm:$0xff] }
 0x52a   :  { %10242 = vst [vmem:[#allocation113_spill] sm:$0xff] %v7849_v24  ;;  %2841 = vmatpush.msrb.mxu3 %v7864_v42  ;;  %v7867_v24 = vld [vmem:[#allocation9 + $0x1e0] sm:$0xff] }
 0x52b   :  { %10243 = vst [vmem:[#allocation114_spill] sm:$0xff] %v7852_v58  ;;  %2913 = vmatpush.msra.mxu0 %v7867_v24  ;;  %v7870_v58 = vld [vmem:[#allocation9 + $0x1e8] sm:$0xff] }
 0x52c   :  { %10244 = vst [vmem:[#allocation115_spill] sm:$0xff] %v7855_v47  ;;  %2933 = vmatpush.msra.mxu1 %v7870_v58  ;;  %v7873_v47 = vld [vmem:[#allocation9 + $0x1f0] sm:$0xff] }
 0x52d   :  { %10245 = vst [vmem:[#allocation116_spill] sm:$0xff] %v7858_v29  ;;  %2953 = vmatpush.msra.mxu2 %v7873_v47  ;;  %v7876_v29 = vld [vmem:[#allocation9 + $0x1f8] sm:$0xff] }
 0x52e   :  { %10246 = vst [vmem:[#allocation117_spill] sm:$0xff] %v7861_v57  ;;  %2973 = vmatpush.msra.mxu3 %v7876_v29  ;;  %v7879_v57 = vld [vmem:[#allocation9 + $0x1c0] sm:$0xff] }
 0x52f   :  { %10247 = vst [vmem:[#allocation118_spill] sm:$0xff] %v7864_v42  ;;  %2914 = vmatpush.msra.mxu0 %v7879_v57  ;;  %v7882_v42 = vld [vmem:[#allocation9 + $0x1c8] sm:$0xff] }
 0x530   :  { %10248 = vst [vmem:[#allocation119_spill] sm:$0xff] %v7867_v24  ;;  %2934 = vmatpush.msra.mxu1 %v7882_v42  ;;  %v7885_v24 = vld [vmem:[#allocation9 + $0x1d0] sm:$0xff] }
 0x531   :  { %10249 = vst [vmem:[#allocation120_spill] sm:$0xff] %v7870_v58  ;;  %2954 = vmatpush.msra.mxu2 %v7885_v24  ;;  %v7888_v58 = vld [vmem:[#allocation9 + $0x1d8] sm:$0xff] }
 0x532   :  { %10250 = vst [vmem:[#allocation121_spill] sm:$0xff] %v7873_v47  ;;  %2974 = vmatpush.msra.mxu3 %v7888_v58  ;;  %v7891_v47 = vld [vmem:[#allocation9 + $0x1a0] sm:$0xff] }
 0x533   :  { %10251 = vst [vmem:[#allocation122_spill] sm:$0xff] %v7876_v29  ;;  %2915 = vmatpush.msra.mxu0 %v7891_v47  ;;  %v7894_v29 = vld [vmem:[#allocation9 + $0x1a8] sm:$0xff] }
 0x534   :  { %10252 = vst [vmem:[#allocation123_spill] sm:$0xff] %v7879_v57  ;;  %2935 = vmatpush.msra.mxu1 %v7894_v29  ;;  %v7897_v57 = vld [vmem:[#allocation9 + $0x1b0] sm:$0xff] }
 0x535   :  { %10253 = vst [vmem:[#allocation124_spill] sm:$0xff] %v7882_v42  ;;  %2955 = vmatpush.msra.mxu2 %v7897_v57  ;;  %v7900_v42 = vld [vmem:[#allocation9 + $0x1b8] sm:$0xff] }
 0x536   :  { %10254 = vst [vmem:[#allocation125_spill] sm:$0xff] %v7885_v24  ;;  %2975 = vmatpush.msra.mxu3 %v7900_v42  ;;  %v7903_v24 = vld [vmem:[#allocation9 + $0x180] sm:$0xff] }
 0x537   :  { %10255 = vst [vmem:[#allocation126_spill] sm:$0xff] %v7888_v58  ;;  %2916 = vmatpush.msra.mxu0 %v7903_v24  ;;  %v7906_v58 = vld [vmem:[#allocation9 + $0x188] sm:$0xff] }
 0x538   :  { %10256 = vst [vmem:[#allocation127_spill] sm:$0xff] %v7891_v47  ;;  %2936 = vmatpush.msra.mxu1 %v7906_v58  ;;  %v7909_v47 = vld [vmem:[#allocation9 + $0x190] sm:$0xff] }
 0x539   :  { %10257 = vst [vmem:[#allocation128_spill] sm:$0xff] %v7894_v29  ;;  %2956 = vmatpush.msra.mxu2 %v7909_v47  ;;  %v7912_v29 = vld [vmem:[#allocation9 + $0x198] sm:$0xff] }
 0x53a   :  { %10258 = vst [vmem:[#allocation129_spill] sm:$0xff] %v7897_v57  ;;  %2976 = vmatpush.msra.mxu3 %v7912_v29  ;;  %v7915_v57 = vld [vmem:[#allocation9 + $0x160] sm:$0xff] }
 0x53b   :  { %10259 = vst [vmem:[#allocation130_spill] sm:$0xff] %v7900_v42  ;;  %2917 = vmatpush.msra.mxu0 %v7915_v57  ;;  %v7918_v42 = vld [vmem:[#allocation9 + $0x168] sm:$0xff] }
 0x53c   :  { %10260 = vst [vmem:[#allocation131_spill] sm:$0xff] %v7903_v24  ;;  %2937 = vmatpush.msra.mxu1 %v7918_v42  ;;  %v7921_v24 = vld [vmem:[#allocation9 + $0x170] sm:$0xff] }
 0x53d   :  { %10261 = vst [vmem:[#allocation132_spill] sm:$0xff] %v7906_v58  ;;  %2957 = vmatpush.msra.mxu2 %v7921_v24  ;;  %v7924_v58 = vld [vmem:[#allocation9 + $0x178] sm:$0xff] }
 0x53e   :  { %10262 = vst [vmem:[#allocation133_spill] sm:$0xff] %v7909_v47  ;;  %2977 = vmatpush.msra.mxu3 %v7924_v58  ;;  %v7927_v47 = vld [vmem:[#allocation9 + $0x140] sm:$0xff] }
 0x53f   :  { %10263 = vst [vmem:[#allocation134_spill] sm:$0xff] %v7912_v29  ;;  %2918 = vmatpush.msra.mxu0 %v7927_v47  ;;  %v7930_v29 = vld [vmem:[#allocation9 + $0x148] sm:$0xff] }
 0x540   :  { %10264 = vst [vmem:[#allocation135_spill] sm:$0xff] %v7915_v57  ;;  %2938 = vmatpush.msra.mxu1 %v7930_v29  ;;  %v7933_v57 = vld [vmem:[#allocation9 + $0x150] sm:$0xff] }
 0x541   :  { %10265 = vst [vmem:[#allocation136_spill] sm:$0xff] %v7918_v42  ;;  %2958 = vmatpush.msra.mxu2 %v7933_v57  ;;  %v7936_v42 = vld [vmem:[#allocation9 + $0x158] sm:$0xff] }
 0x542   :  { %10266 = vst [vmem:[#allocation137_spill] sm:$0xff] %v7921_v24  ;;  %2978 = vmatpush.msra.mxu3 %v7936_v42  ;;  %v7939_v24 = vld [vmem:[#allocation9 + $0x120] sm:$0xff]  ;;  %v2409_v46 = vpop.f32.mrf.mxu1 }
 0x543   :  { %10267 = vst [vmem:[#allocation138_spill] sm:$0xff] %v7924_v58  ;;  %2919 = vmatpush.msra.mxu0 %v7939_v24  ;;  %v7942_v58 = vld [vmem:[#allocation9 + $0x128] sm:$0xff] }
 0x544   :  { %10268 = vst [vmem:[#allocation139_spill] sm:$0xff] %v7927_v47  ;;  %2939 = vmatpush.msra.mxu1 %v7942_v58  ;;  %v7945_v47 = vld [vmem:[#allocation9 + $0x130] sm:$0xff] }
 0x545   :  { %10269 = vst [vmem:[#allocation140_spill] sm:$0xff] %v7930_v29  ;;  %2959 = vmatpush.msra.mxu2 %v7945_v47  ;;  %v7948_v29 = vld [vmem:[#allocation9 + $0x138] sm:$0xff] }
 0x546   :  { %10270 = vst [vmem:[#allocation141_spill] sm:$0xff] %v7933_v57  ;;  %2979 = vmatpush.msra.mxu3 %v7948_v29  ;;  %v7951_v57 = vld [vmem:[#allocation9 + $0x100] sm:$0xff] }
 0x547   :  { %10271 = vst [vmem:[#allocation142_spill] sm:$0xff] %v7936_v42  ;;  %2920 = vmatpush.msra.mxu0 %v7951_v57  ;;  %v7954_v42 = vld [vmem:[#allocation9 + $0x108] sm:$0xff] }
 0x548   :  { %10272 = vst [vmem:[#allocation143_spill] sm:$0xff] %v7939_v24  ;;  %2940 = vmatpush.msra.mxu1 %v7954_v42  ;;  %v7957_v24 = vld [vmem:[#allocation9 + $0x110] sm:$0xff] }
 0x549   :  { %10273 = vst [vmem:[#allocation144_spill] sm:$0xff] %v7942_v58  ;;  %2960 = vmatpush.msra.mxu2 %v7957_v24  ;;  %v7960_v58 = vld [vmem:[#allocation9 + $0x118] sm:$0xff]  ;;  %v2429_v32 = vpop.f32.mrf.mxu2 }
 0x54a   :  { %10274 = vst [vmem:[#allocation145_spill] sm:$0xff] %v7945_v47  ;;  %2980 = vmatpush.msra.mxu3 %v7960_v58  ;;  %v7963_v47 = vld [vmem:[#allocation9 + $0xe0] sm:$0xff] }
 0x54b   :  { %10275 = vst [vmem:[#allocation146_spill] sm:$0xff] %v7948_v29  ;;  %2921 = vmatpush.msra.mxu0 %v7963_v47  ;;  %v7966_v29 = vld [vmem:[#allocation9 + $0xe8] sm:$0xff] }
 0x54c   :  { %10276 = vst [vmem:[#allocation147_spill] sm:$0xff] %v7951_v57  ;;  %2941 = vmatpush.msra.mxu1 %v7966_v29  ;;  %v7969_v57 = vld [vmem:[#allocation9 + $0xf0] sm:$0xff] }
 0x54d   :  { %10277 = vst [vmem:[#allocation148_spill] sm:$0xff] %v7954_v42  ;;  %2961 = vmatpush.msra.mxu2 %v7969_v57  ;;  %v7972_v42 = vld [vmem:[#allocation9 + $0xf8] sm:$0xff]  ;;  %v2556_v8 = vpop.f32.mrf.mxu1 }
 0x54e   :  { %10278 = vst [vmem:[#allocation149_spill] sm:$0xff] %v7957_v24  ;;  %2981 = vmatpush.msra.mxu3 %v7972_v42  ;;  %v7975_v24 = vld [vmem:[#allocation9 + $0xc0] sm:$0xff]  ;;  %v2557_v17 = vadd.f32 %v2556_v8, %v2409_v46 }
 0x54f   :  { %10279 = vst [vmem:[#allocation150_spill] sm:$0xff] %v7960_v58  ;;  %2922 = vmatpush.msra.mxu0 %v7975_v24  ;;  %v7978_v58 = vld [vmem:[#allocation9 + $0xc8] sm:$0xff] }
 0x550   :  { %10280 = vst [vmem:[#allocation157_spill] sm:$0xff] %v7963_v47  ;;  %2942 = vmatpush.msra.mxu1 %v7978_v58  ;;  %v7981_v47 = vld [vmem:[#allocation9 + $0xd0] sm:$0xff]  ;;  %v2600_v34 = vadd.f32 %v2557_v17, %v10132_v11 }
 0x551   :  { %10281 = vst [vmem:[#allocation158_spill] sm:$0xff] %v7966_v29  ;;  %2962 = vmatpush.msra.mxu2 %v7981_v47  ;;  %v7984_v29 = vld [vmem:[#allocation9 + $0xd8] sm:$0xff] }
 0x552   :  { %10282 = vst [vmem:[#allocation159_spill] sm:$0xff] %v7969_v57  ;;  %2982 = vmatpush.msra.mxu3 %v7984_v29  ;;  %v7987_v57 = vld [vmem:[#allocation9 + $0xa0] sm:$0xff]  ;;  %v3564_v59 = vmul.f32 -1.442695, %v2600_v34 }
 0x553   :  { %10283 = vst [vmem:[#allocation160_spill] sm:$0xff] %v7972_v42  ;;  %2923 = vmatpush.msra.mxu0 %v7987_v57  ;;  %v7990_v42 = vld [vmem:[#allocation9 + $0xa8] sm:$0xff] }
 0x554   :  { %10284 = vst [vmem:[#allocation161_spill] sm:$0xff] %v7975_v24  ;;  %2943 = vmatpush.msra.mxu1 %v7990_v42  ;;  %v7993_v24 = vld [vmem:[#allocation9 + $0xb0] sm:$0xff] }
 0x555   :  { %10285 = vst [vmem:[#allocation162_spill] sm:$0xff] %v7978_v58  ;;  %2963 = vmatpush.msra.mxu2 %v7993_v24  ;;  %v7996_v58 = vld [vmem:[#allocation9 + $0xb8] sm:$0xff] }
 0x556   :  { %10286 = vst [vmem:[#allocation163_spill] sm:$0xff] %v7981_v47  ;;  %2983 = vmatpush.msra.mxu3 %v7996_v58  ;;  %v7999_v47 = vld [vmem:[#allocation9 + $0x80] sm:$0xff] }
 0x557   :  { %10287 = vst [vmem:[#allocation164_spill] sm:$0xff] %v7984_v29  ;;  %2924 = vmatpush.msra.mxu0 %v7999_v47  ;;  %v8002_v29 = vld [vmem:[#allocation9 + $0x88] sm:$0xff] }
 0x558   :  { %10288 = vst [vmem:[#allocation165_spill] sm:$0xff] %v7987_v57  ;;  %2944 = vmatpush.msra.mxu1 %v8002_v29  ;;  %v8005_v57 = vld [vmem:[#allocation9 + $0x90] sm:$0xff] }
 0x559   :  { %10289 = vst [vmem:[#allocation166_spill] sm:$0xff] %v7990_v42  ;;  %2964 = vmatpush.msra.mxu2 %v8005_v57  ;;  %v8008_v42 = vld [vmem:[#allocation9 + $0x98] sm:$0xff] }
 0x55a   :  { %10290 = vst [vmem:[#allocation167_spill] sm:$0xff] %v7993_v24  ;;  %2984 = vmatpush.msra.mxu3 %v8008_v42  ;;  %v8011_v24 = vld [vmem:[#allocation9 + $0x60] sm:$0xff] }
 0x55b   :  { %10291 = vst [vmem:[#allocation168_spill] sm:$0xff] %v7996_v58  ;;  %2925 = vmatpush.msra.mxu0 %v8011_v24  ;;  %v8014_v58 = vld [vmem:[#allocation9 + $0x68] sm:$0xff] }
 0x55c   :  { %10292 = vst [vmem:[#allocation169_spill] sm:$0xff] %v7999_v47  ;;  %2945 = vmatpush.msra.mxu1 %v8014_v58  ;;  %v8017_v47 = vld [vmem:[#allocation9 + $0x70] sm:$0xff] }
 0x55d   :  { %10293 = vst [vmem:[#allocation170_spill] sm:$0xff] %v8002_v29  ;;  %2965 = vmatpush.msra.mxu2 %v8017_v47  ;;  %v8020_v29 = vld [vmem:[#allocation9 + $0x78] sm:$0xff] }
 0x55e   :  { %10294 = vst [vmem:[#allocation171_spill] sm:$0xff] %v8005_v57  ;;  %2985 = vmatpush.msra.mxu3 %v8020_v29  ;;  %v8023_v57 = vld [vmem:[#allocation9 + $0x40] sm:$0xff] }
 0x55f   :  { %10295 = vst [vmem:[#allocation172_spill] sm:$0xff] %v8008_v42  ;;  %2926 = vmatpush.msra.mxu0 %v8023_v57  ;;  %v8026_v42 = vld [vmem:[#allocation9 + $0x48] sm:$0xff] }
 0x560   :  { %10296 = vst [vmem:[#allocation173_spill] sm:$0xff] %v8011_v24  ;;  %2946 = vmatpush.msra.mxu1 %v8026_v42  ;;  %v8029_v24 = vld [vmem:[#allocation9 + $0x50] sm:$0xff] }
 0x561   :  { %10297 = vst [vmem:[#allocation174_spill] sm:$0xff] %v8014_v58  ;;  %2966 = vmatpush.msra.mxu2 %v8029_v24  ;;  %v8032_v58 = vld [vmem:[#allocation9 + $0x58] sm:$0xff] }
 0x562   :  { %10298 = vst [vmem:[#allocation175_spill] sm:$0xff] %v8017_v47  ;;  %2986 = vmatpush.msra.mxu3 %v8032_v58  ;;  %v8035_v47 = vld [vmem:[#allocation9 + $0x20] sm:$0xff] }
 0x563   :  { %10299 = vst [vmem:[#allocation176_spill] sm:$0xff] %v8020_v29  ;;  %2927 = vmatpush.msra.mxu0 %v8035_v47  ;;  %v8038_v29 = vld [vmem:[#allocation9 + $0x28] sm:$0xff] }
 0x564   :  { %10300 = vst [vmem:[#allocation177_spill] sm:$0xff] %v8023_v57  ;;  %2947 = vmatpush.msra.mxu1 %v8038_v29  ;;  %v8041_v57 = vld [vmem:[#allocation9 + $0x30] sm:$0xff] }
 0x565   :  { %10301 = vst [vmem:[#allocation178_spill] sm:$0xff] %v8026_v42  ;;  %2967 = vmatpush.msra.mxu2 %v8041_v57  ;;  %v8044_v42 = vld [vmem:[#allocation9 + $0x38] sm:$0xff] }
 0x566   :  { %10302 = vst [vmem:[#allocation179_spill] sm:$0xff] %v8029_v24  ;;  %2987 = vmatpush.msra.mxu3 %v8044_v42  ;;  %v8047_v24 = vld [vmem:[#allocation9] sm:$0xff] }
 0x567   :  { %10303 = vst [vmem:[#allocation180_spill] sm:$0xff] %v8032_v58  ;;  %2928 = vmatpush.msra.mxu0 %v8047_v24  ;;  %v8050_v58 = vld [vmem:[#allocation9 + $0x8] sm:$0xff] }
 0x568   :  { %10304 = vst [vmem:[#allocation181_spill] sm:$0xff] %v8035_v47  ;;  %2948 = vmatpush.msra.mxu1 %v8050_v58  ;;  %v8053_v47 = vld [vmem:[#allocation9 + $0x10] sm:$0xff] }
 0x569   :  { %10305 = vst [vmem:[#allocation182_spill] sm:$0xff] %v8038_v29  ;;  %2968 = vmatpush.msra.mxu2 %v8053_v47  ;;  %v8056_v29 = vld [vmem:[#allocation9 + $0x18] sm:$0xff] }
 0x56a   :  { %10306 = vst [vmem:[#allocation183_spill] sm:$0xff] %v8041_v57  ;;  %2988 = vmatpush.msra.mxu3 %v8056_v29  ;;  %v2389_v57 = vpop.f32.mrf.mxu0 }
 0x56b   :  { %10307 = vst [vmem:[#allocation184_spill] sm:$0xff] %v8044_v42 }
 0x56c   :  { %10308 = vst [vmem:[#allocation185_spill] sm:$0xff] %v8047_v24 }
 0x56d   :  { %10309 = vst [vmem:[#allocation186_spill] sm:$0xff] %v8050_v58  ;;  %v2449_v58 = vpop.f32.mrf.mxu3 }
 0x56e   :  { %10310 = vst [vmem:[#allocation187_spill] sm:$0xff] %v8053_v47  ;;  %v2576_v47 = vpop.f32.mrf.mxu2 }
 0x56f   :  { %10311 = vst [vmem:[#allocation153_spill] sm:$0xff] %v8056_v29  ;;  %v2577_v22 = vadd.f32 %v2576_v47, %v2429_v32 }
 0x571   :  { %v2601_v29 = vadd.f32 %v2577_v22, %v10135_v56 }
 0x572   :  { %v2536_v42 = vpop.f32.mrf.mxu0 }
 0x573   :  { %v2537_v40 = vadd.f32 %v2536_v42, %v2389_v57  ;;  %v3565_v10 = vmul.f32 -1.442695, %v2601_v29 }
 0x575   :  { %v2599_v24 = vadd.f32 %v2537_v40, %v10131_v5  ;;  %v2596_v42 = vpop.f32.mrf.mxu3  ;;  %v8062_v40 = vpop.permute.xlu0 %2675 }
 0x576   :  { %v2597_v17 = vadd.f32 %v2596_v42, %v2449_v58  ;;  %v2680_v29 = vmul.f32 %v8062_v40, %v10138_v63 }
 0x577   :  { %v3563_v18 = vmul.f32 -1.442695, %v2599_v24 }
 0x578   :  { %v2602_v34 = vadd.f32 %v2597_v17, %v10140_v33 }
 0x579   :  { %3768 = vpow2.f32 %v3563_v18  ;;  %v2678_v18 = vmul.f32 %v8062_v40, %v10133_v23 }
 0x57a   :  { %3770 = vpow2.f32 %v3564_v59  ;;  %v2679_v59 = vmul.f32 %v8062_v40, %v10134_v19  ;;  %v2703_v42 = vpop.f32.mrf.mxu0 }
 0x57b   :  { %3772 = vpow2.f32 %v3565_v10  ;;  %v2682_v24 = vadd.f32 %v2678_v18, %v10136_v52 }
 0x57c   :  { %v2683_v47 = vadd.f32 %v2679_v59, %v10137_v36 }
 0x57d   :  { %v2846_v33 = vadd.f32 %v2703_v42, %v2682_v24 }
 0x57f   :  { %v3769_v43 = vpop.eup %3768  ;;  %v3567_v18 = vmul.f32 -1.442695, %v2846_v33 }
 0x580   :  { %v3771_v16 = vpop.eup %3770  ;;  %v2609_v15 = vadd.f32 1.0, %v3769_v43 }
 0x581   :  { %v2610_v8 = vadd.f32 1.0, %v3771_v16  ;;  %v3773_v46 = vpop.eup %3772 }
 0x582   :  { %3774 = vrcp.f32 %v2609_v15  ;;  %v8068_v22 = vadd.f32 1.0, %v3773_v46  ;;  %v2620_v58 = vand.u32 2147483647, %v2609_v15  ;;  %v2723_v46 = vpop.f32.mrf.mxu1  ;;  %v2622_v17 = vand.u32 2147483648, %v2609_v15 }
 0x583   :  { %3776 = vrcp.f32 %v2610_v8  ;;  %v2847_v19 = vadd.f32 %v2723_v46, %v2683_v47  ;;  %v2637_v23 = vand.u32 2147483648, %v2610_v8  ;;  %v2635_v5 = vand.u32 2147483647, %v2610_v8 }
 0x584   :  { %3778 = vrcp.f32 %v8068_v22  ;;  %vm2631_vm11 = vweird.f32 %v2610_v8  ;;  %vm2616_vm12 = vweird.f32 %v2609_v15  ;;  %vm2621_vm15 = vcmp.eq.f32.partialorder %v2620_v58, 8.507059e+37 }
 0x585   :  { %3780 = vtanh.f32 %v2602_v34  ;;  %v3568_v59 = vmul.f32 -1.442695, %v2847_v19  ;;  %v2684_v34 = vadd.f32 %v2680_v29, %v10139_v4  ;;  %vm2636_vm0 = vcmp.eq.f32.partialorder %v2635_v5, 8.507059e+37 }
 0x586   :  { %3782 = vpow2.f32 %v3567_v18  ;;  %vm2654_vm3 = vweird.f32 %v8068_v22 }
 0x587   :  { %3784 = vpow2.f32 %v3568_v59  ;;  %v2763_v59 = vpop.f32.mrf.mxu3 }
 0x588   :  { %v3775_v43 = vpop.eup %3774 }
 0x589   :  { %v3777_v10 = vpop.eup %3776  ;;  %v2612_v32 = vmul.f32 %v3775_v43, %v2609_v15  ;;  %vm2617_vm9 = vweird.f32 %v3775_v43 }
 0x58a   :  { %v2627_v16 = vmul.f32 %v3777_v10, %v2610_v8  ;;  %vm2632_vm10 = vweird.f32 %v3777_v10  ;;  %v3779_v36 = vpop.eup %3778  ;;  %vm2618_vm13 = vmor %vm2616_vm12, %vm2617_vm9 }
 0x58b   :  { %v2613_v57 = vsub.f32 1.0, %v2612_v32  ;;  %v2650_v32 = vmul.f32 %v3779_v36, %v8068_v22  ;;  %v3781_v47 = vpop.eup %3780  ;;  %vm2633_vm14 = vmor %vm2631_vm11, %vm2632_vm10  ;;  %vm2655_vm1 = vweird.f32 %v3779_v36 }
 0x58c   :  { %v2628_v56 = vsub.f32 1.0, %v2627_v16  ;;  %v2623_v16 = vor.u32 1.1754944e-38, %v2622_v17  ;;  %vm2656_vm4 = vmor %vm2654_vm3, %vm2655_vm1 }
 0x58d   :  { %v2614_v11 = vmul.f32 %v3775_v43, %v2613_v57  ;;  %v2638_v57 = vor.u32 1.1754944e-38, %v2637_v23  ;;  %v3783_v23 = vpop.eup %3782 }
 0x58e   :  { %v2629_v9 = vmul.f32 %v3777_v10, %v2628_v56  ;;  %v2651_v56 = vsub.f32 1.0, %v2650_v32  ;;  %v8084_v58 = vadd.f32 1.0, %v3783_v23  ;;  %v2668_v32 = vstv %s2667_s27 }
 0x58f   :  { %v2615_v63 = vadd.f32 %v3775_v43, %v2614_v11  ;;  %v2743_v11 = vpop.f32.mrf.mxu2  ;;  %vm2669_vm6 = vcmp.eq.s32.totalorder %v2668_v32, 1  ;;  %v10327_v32 = vld [vmem:[#allocation32_spill] sm:$0xff] }
 0x590   :  { %v2630_v24 = vadd.f32 %v3777_v10, %v2629_v9  ;;  %v2848_v29 = vadd.f32 %v2743_v11, %v2684_v34  ;;  %v2652_v46 = vmul.f32 %v3779_v36, %v2651_v56  ;;  %vm2863_vm8 = vweird.f32 %v8084_v58 }
 0x591   :  { %v2619_v42 = vsel %vm2618_vm13, %v3775_v43, %v2615_v63  ;;  %v3785_v43 = vpop.eup %3784 }
 0x592   :  { %v2624_v19 = vsel %vm2621_vm15, %v2623_v16, %v2619_v42  ;;  %v2634_v33 = vsel %vm2633_vm14, %v3777_v10, %v2630_v24  ;;  %v3569_v9 = vmul.f32 -1.442695, %v2848_v29  ;;  %v2653_v5 = vadd.f32 %v3779_v36, %v2652_v46 }
 0x593   :  { %v2639_v15 = vsel %vm2636_vm0, %v2638_v57, %v2634_v33  ;;  %v2643_v8 = vmul.f32 %v3781_v47, %v2624_v19  ;;  %v2660_v10 = vand.u32 2147483648, %v8068_v22  ;;  %v8088_v17 = vadd.f32 1.0, %v3785_v43 }
 0x594   :  { %v2642_v4 = vmul.f32 %v2639_v15, %v7409_v39  ;;  %3786 = vpow2.f32 %v3569_v9  ;;  %v2681_v39 = vmul.f32 %v8062_v40, %v5269_v13  ;;  %v2657_v18 = vsel %vm2656_vm4, %v3779_v36, %v2653_v5 }
 0x595   :  { %v2661_v34 = vor.u32 1.1754944e-38, %v2660_v10  ;;  %v10312_v15 = vsel %vm7440_vm5, %v7446_v27, %v7154_v26  ;;  %v2869_v46 = vand.u32 2147483648, %v8084_v58  ;;  %v2884_v9 = vand.u32 2147483648, %v8088_v17 }
 0x596   :  { %v8082_v63 = vadd.f32 %v2643_v8, %v2642_v4  ;;  %v2658_v4 = vand.u32 2147483647, %v8068_v22  ;;  %v2685_v24 = vadd.f32 %v2681_v39, %v5287_v20  ;;  %v2867_v43 = vand.u32 2147483647, %v8084_v58  ;;  %v10323_v39 = vld [vmem:[#allocation28_spill] sm:$0xff] }
 0x597   :  { %v2882_v7 = vand.u32 2147483647, %v8088_v17  ;;  %vm2878_vm9 = vweird.f32 %v8088_v17 }
 0x598   :  { %3788 = vtanh.f32 %v8082_v63  ;;  %vm2659_vm2 = vcmp.eq.f32.partialorder %v2658_v4, 8.507059e+37  ;;  %v2849_v56 = vadd.f32 %v2763_v59, %v2685_v24  ;;  %vm2868_vm12 = vcmp.eq.f32.partialorder %v2867_v43, 8.507059e+37  ;;  %v10325_v59 = vld [vmem:[#allocation30_spill] sm:$0xff] }
 0x599   :  { %3790 = vrcp.f32 %v8084_v58  ;;  %v2662_v40 = vsel %vm2659_vm2, %v2661_v34, %v2657_v18  ;;  %vm2883_vm13 = vcmp.eq.f32.partialorder %v2882_v7, 8.507059e+37  ;;  %v10324_v18 = vld [vmem:[#allocation29_spill] sm:$0xff]  ;;  %v10326_v34 = vld [vmem:[#allocation31_spill] sm:$0xff]  ;;  %v10329_v24 = vld [vmem:[#allocation34_spill] sm:$0xff] }
 0x59a   :  { %3792 = vrcp.f32 %v8088_v17  ;;  %v3787_v16 = vpop.eup %3786  ;;  %v10345_v43 = vld [vmem:[#allocation50_spill] sm:$0xff]  ;;  %v10347_v7 = vld [vmem:[#allocation52_spill] sm:$0xff] }
 0x59b   :  { %v8097_v57 = vadd.f32 1.0, %v3787_v16  ;;  %v10328_v16 = vld [vmem:[#allocation33_spill] sm:$0xff] }
 0x59d   :  { %3794 = vrcp.f32 %v8097_v57  ;;  %vm2901_vm15 = vweird.f32 %v8097_v57 }
 0x59e   :  { %v3789_v47 = vpop.eup %3788  ;;  %3796 = vtanh.f32 %v2849_v56  ;;  %v10334_v56 = vld [vmem:[#allocation39_spill] sm:$0xff] }
 0x59f   :  { %v3791_v42 = vpop.eup %3790  ;;  %v2665_v19 = vmul.f32 %v3789_v47, %v2662_v40  ;;  %v10330_v47 = vld [vmem:[#allocation35_spill] sm:$0xff]  ;;  %v10332_v40 = vld [vmem:[#allocation37_spill] sm:$0xff] }
 0x5a0   :  { %v3793_v22 = vpop.eup %3792  ;;  %v2859_v33 = vmul.f32 %v3791_v42, %v8084_v58  ;;  %vm2864_vm7 = vweird.f32 %v3791_v42 }
 0x5a1   :  { %v2874_v36 = vmul.f32 %v3793_v22, %v8088_v17  ;;  %2782 = vmatmul.f32.vlgmr.msrb.gmra.mxu0 %v2665_v19  ;;  %2802 = vmatmul.f32.vlgmr.msrb.gmra.mxu1 %v2665_v19  ;;  %v8107_v8 = vsel %vm2669_vm6, %v2665_v19, %v10312_v15  ;;  %vm2879_vm5 = vweird.f32 %v3793_v22  ;;  %vm2865_vm10 = vmor %vm2863_vm8, %vm2864_vm7  ;;  %v10322_v17 = vld [vmem:[#allocation27_spill] sm:$0xff]  ;;  %v10340_v15 = vld [vmem:[#allocation45_spill] sm:$0xff] }
 0x5a2   :  { %v2860_v11 = vsub.f32 1.0, %v2859_v33  ;;  %2822 = vmatmul.f32.vlgmr.msrb.gmra.mxu2 %v2665_v19  ;;  %2842 = vmatmul.f32.vlgmr.msrb.gmra.mxu3 %v2665_v19  ;;  %vm2880_vm11 = vmor %vm2878_vm9, %vm2879_vm5  ;;  %v10335_v19 = vld [vmem:[#allocation40_spill] sm:$0xff]  ;;  %v10337_v33 = vld [vmem:[#allocation42_spill] sm:$0xff] }
 0x5a3   :  { %v2875_v29 = vsub.f32 1.0, %v2874_v36  ;;  %3080 = vmatpush.msrb.mxu0 %v7462_v6  ;;  %3100 = vmatpush.msrb.mxu1 %v7465_v37  ;;  %v8119_v27 = vpop.eup %3794  ;;  %v10338_v36 = vld [vmem:[#allocation43_spill] sm:$0xff] }
 0x5a4   :  { %v2861_v23 = vmul.f32 %v3791_v42, %v2860_v11  ;;  %3120 = vmatpush.msrb.mxu2 %v7470_v55  ;;  %3140 = vmatpush.msrb.mxu3 %v7473_v62  ;;  %v2897_v37 = vmul.f32 %v8119_v27, %v8097_v57  ;;  %v2870_v55 = vor.u32 1.1754944e-38, %v2869_v46  ;;  %vm2902_vm14 = vweird.f32 %v8119_v27  ;;  %v10339_v11 = vld [vmem:[#allocation44_spill] sm:$0xff]  ;;  %v10342_v46 = vld [vmem:[#allocation47_spill] sm:$0xff] }
 0x5a5   :  { %v2876_v26 = vmul.f32 %v3793_v22, %v2875_v29  ;;  %3081 = vmatpush.msrb.mxu0 %v7482_v41  ;;  %3101 = vmatpush.msrb.mxu1 %v7485_v38  ;;  %v2885_v41 = vor.u32 1.1754944e-38, %v2884_v9  ;;  %vm2903_vm0 = vmor %vm2901_vm15, %vm2902_vm14  ;;  %v10341_v29 = vld [vmem:[#allocation46_spill] sm:$0xff]  ;;  %v10343_v9 = vld [vmem:[#allocation48_spill] sm:$0xff] }
 0x5a6   :  { %v2862_v6 = vadd.f32 %v3791_v42, %v2861_v23  ;;  %3121 = vmatpush.msrb.mxu2 %v7491_v45  ;;  %3141 = vmatpush.msrb.mxu3 %v7494_v49  ;;  %v3797_v45 = vpop.eup %3796  ;;  %v2898_v49 = vsub.f32 1.0, %v2897_v37  ;;  %v10344_v23 = vld [vmem:[#allocation49_spill] sm:$0xff]  ;;  %v10350_v37 = vld [vmem:[#allocation55_spill] sm:$0xff] }
 0x5a7   :  { %v2877_v62 = vadd.f32 %v3793_v22, %v2876_v26  ;;  %3082 = vmatpush.msrb.mxu0 %v7497_v30  ;;  %3102 = vmatpush.msrb.mxu1 %v7500_v35  ;;  %v10346_v26 = vld [vmem:[#allocation51_spill] sm:$0xff] }
 0x5a8   :  { %v2866_v38 = vsel %vm2865_vm10, %v3791_v42, %v2862_v6  ;;  %3122 = vmatpush.msrb.mxu2 %v7503_v51  ;;  %3142 = vmatpush.msrb.mxu3 %v7506_v28  ;;  %v2899_v10 = vmul.f32 %v8119_v27, %v2898_v49  ;;  %v10333_v42 = vld [vmem:[#allocation38_spill] sm:$0xff]  ;;  %v10356_v49 = vld [vmem:[#allocation61_spill] sm:$0xff] }
 0x5a9   :  { %v2871_v58 = vsel %vm2868_vm12, %v2870_v55, %v2866_v38  ;;  %v2881_v5 = vsel %vm2880_vm11, %v3793_v22, %v2877_v62  ;;  %3083 = vmatpush.msrb.mxu0 %v7509_v21  ;;  %3103 = vmatpush.msrb.mxu1 %v7512_v48  ;;  %v2905_v48 = vand.u32 2147483647, %v8097_v57  ;;  %v10336_v22 = vld [vmem:[#allocation41_spill] sm:$0xff]  ;;  %v10349_v6 = vld [vmem:[#allocation54_spill] sm:$0xff]  ;;  %v10351_v55 = vld [vmem:[#allocation56_spill] sm:$0xff] }
 0x5aa   :  { %v2886_v30 = vsel %vm2883_vm13, %v2885_v41, %v2881_v5  ;;  %v2890_v35 = vmul.f32 %v3797_v45, %v2871_v58  ;;  %3123 = vmatpush.msrb.mxu2 %v7517_v1  ;;  %3143 = vmatpush.msrb.mxu3 %v7520_v50  ;;  %v2900_v21 = vadd.f32 %v8119_v27, %v2899_v10  ;;  %v10313_v1 = vld [vmem:[#allocation18_spill] sm:$0xff]  ;;  %v10314_v50 = vld [vmem:[#allocation19_spill] sm:$0xff]  ;;  %v10352_v62 = vld [vmem:[#allocation57_spill] sm:$0xff] }
 0x5ab   :  { %v2889_v51 = vmul.f32 %v2886_v30, %v7448_v0  ;;  %3084 = vmatpush.msrb.mxu0 %v7523_v53  ;;  %3104 = vmatpush.msrb.mxu1 %v7526_v54  ;;  %v2907_v0 = vand.u32 2147483648, %v8097_v57  ;;  %v10315_v53 = vld [vmem:[#allocation20_spill] sm:$0xff]  ;;  %vm2906_vm1 = vcmp.eq.f32.partialorder %v2905_v48, 8.507059e+37  ;;  %v10353_v41 = vld [vmem:[#allocation58_spill] sm:$0xff]  ;;  %v10354_v38 = vld [vmem:[#allocation59_spill] sm:$0xff] }
 0x5ac   :  { %3124 = vmatpush.msrb.mxu2 %v7533_v25  ;;  %3144 = vmatpush.msrb.mxu3 %v7536_v31  ;;  %v2904_v54 = vsel %vm2903_vm0, %v8119_v27, %v2900_v21  ;;  %v10316_v25 = vld [vmem:[#allocation21_spill] sm:$0xff]  ;;  %v10317_v31 = vld [vmem:[#allocation22_spill] sm:$0xff]  ;;  %v10331_v57 = vld [vmem:[#allocation36_spill] sm:$0xff] }
 0x5ad   :  { %v8143_v28 = vadd.f32 %v2890_v35, %v2889_v51  ;;  %3085 = vmatpush.msrb.mxu0 %v7539_v14  ;;  %3105 = vmatpush.msrb.mxu1 %v7542_v61  ;;  %v2908_v14 = vor.u32 1.1754944e-38, %v2907_v0  ;;  %v10318_v61 = vld [vmem:[#allocation23_spill] sm:$0xff]  ;;  %v10348_v27 = vld [vmem:[#allocation53_spill] sm:$0xff]  ;;  %v10355_v45 = vld [vmem:[#allocation60_spill] sm:$0xff] }
 0x5ae   :  { %3125 = vmatpush.msrb.mxu2 %v7545_v44  ;;  %3145 = vmatpush.msrb.mxu3 %v7548_v12  ;;  %v10319_v44 = vld [vmem:[#allocation24_spill] sm:$0xff]  ;;  %v10320_v12 = vld [vmem:[#allocation25_spill] sm:$0xff]  ;;  %v10357_v58 = vld [vmem:[#allocation62_spill] sm:$0xff] }
 0x5af   :  { %3798 = vtanh.f32 %v8143_v28  ;;  %3086 = vmatpush.msrb.mxu0 %v7551_v60  ;;  %3106 = vmatpush.msrb.mxu1 %v7554_v2  ;;  %v10321_v60 = vld [vmem:[#allocation26_spill] sm:$0xff]  ;;  %v10358_v5 = vld [vmem:[#allocation63_spill] sm:$0xff]  ;;  %v10359_v30 = vld [vmem:[#allocation64_spill] sm:$0xff] }
 0x5b0   :  { %3126 = vmatpush.msrb.mxu2 %v7557_v3  ;;  %3146 = vmatpush.msrb.mxu3 %v10313_v1  ;;  %v2909_v3 = vsel %vm2906_vm1, %v2908_v14, %v2904_v54  ;;  %v10360_v35 = vld [vmem:[#allocation65_spill] sm:$0xff]  ;;  %v10361_v10 = vld [vmem:[#allocation66_spill] sm:$0xff]  ;;  %v10362_v51 = vld [vmem:[#allocation67_spill] sm:$0xff] }
 0x5b1   :  { %3087 = vmatpush.msrb.mxu0 %v10314_v50  ;;  %3107 = vmatpush.msrb.mxu1 %v10315_v53  ;;  %v10363_v21 = vld [vmem:[#allocation68_spill] sm:$0xff]  ;;  %v10364_v0 = vld [vmem:[#allocation69_spill] sm:$0xff]  ;;  %v10365_v48 = vld [vmem:[#allocation70_spill] sm:$0xff] }
 0x5b2   :  { %3127 = vmatpush.msrb.mxu2 %v10316_v25  ;;  %3147 = vmatpush.msrb.mxu3 %v10317_v31  ;;  %v10366_v1 = vld [vmem:[#allocation71_spill] sm:$0xff]  ;;  %v10367_v50 = vld [vmem:[#allocation72_spill] sm:$0xff]  ;;  %v10368_v53 = vld [vmem:[#allocation73_spill] sm:$0xff] }
 0x5b3   :  { %3088 = vmatpush.msrb.mxu0 %v10318_v61  ;;  %3108 = vmatpush.msrb.mxu1 %v10319_v44  ;;  %v10369_v54 = vld [vmem:[#allocation74_spill] sm:$0xff]  ;;  %v10370_v25 = vld [vmem:[#allocation75_spill] sm:$0xff]  ;;  %v10371_v31 = vld [vmem:[#allocation76_spill] sm:$0xff] }
 0x5b4   :  { %3128 = vmatpush.msrb.mxu2 %v10320_v12  ;;  %3148 = vmatpush.msrb.mxu3 %v10321_v60  ;;  %v10372_v14 = vld [vmem:[#allocation77_spill] sm:$0xff]  ;;  %v10373_v61 = vld [vmem:[#allocation78_spill] sm:$0xff]  ;;  %v10374_v44 = vld [vmem:[#allocation79_spill] sm:$0xff] }
 0x5b5   :  { %v3799_v2 = vpop.eup %3798  ;;  %3089 = vmatpush.msrb.mxu0 %v10322_v17  ;;  %3109 = vmatpush.msrb.mxu1 %v10323_v39  ;;  %v10375_v12 = vld [vmem:[#allocation80_spill] sm:$0xff]  ;;  %v10376_v60 = vld [vmem:[#allocation81_spill] sm:$0xff] }
 0x5b6   :  { %v2912_v4 = vmul.f32 %v3799_v2, %v2909_v3  ;;  %3129 = vmatpush.msrb.mxu2 %v10324_v18  ;;  %3149 = vmatpush.msrb.mxu3 %v10325_v59  ;;  %v10377_v2 = vld [vmem:[#allocation82_spill] sm:$0xff]  ;;  %v10378_v3 = vld [vmem:[#allocation83_spill] sm:$0xff]  ;;  %v10379_v17 = vld [vmem:[#allocation84_spill] sm:$0xff] }
 0x5b7   :  { %3090 = vmatpush.msrb.mxu0 %v10326_v34  ;;  %3110 = vmatpush.msrb.mxu1 %v10327_v32  ;;  %v10380_v39 = vld [vmem:[#allocation85_spill] sm:$0xff]  ;;  %v10382_v18 = vld [vmem:[#allocation87_spill] sm:$0xff]  ;;  %v10383_v59 = vld [vmem:[#allocation88_spill] sm:$0xff] }
 0x5b8   :  { %3130 = vmatpush.msrb.mxu2 %v10328_v16  ;;  %3150 = vmatpush.msrb.mxu3 %v10329_v24  ;;  %v10384_v34 = vld [vmem:[#allocation89_spill] sm:$0xff]  ;;  %v10385_v32 = vld [vmem:[#allocation90_spill] sm:$0xff]  ;;  %v10386_v16 = vld [vmem:[#allocation91_spill] sm:$0xff] }
 0x5b9   :  { %2929 = vmatmul.f32.vlgmr.msra.gmra.mxu0 %v2912_v4  ;;  %2949 = vmatmul.f32.vlgmr.msra.gmra.mxu1 %v2912_v4  ;;  %v10387_v24 = vld [vmem:[#allocation92_spill] sm:$0xff] }
 0x5ba   :  { %2969 = vmatmul.f32.vlgmr.msra.gmra.mxu2 %v2912_v4  ;;  %2989 = vmatmul.f32.vlgmr.msra.gmra.mxu3 %v2912_v4 }
 0x5bb   :  { %3091 = vmatpush.msrb.mxu0 %v10330_v47  ;;  %3111 = vmatpush.msrb.mxu1 %v10331_v57  ;;  %v10388_v47 = vld [vmem:[#allocation93_spill] sm:$0xff]  ;;  %v10389_v57 = vld [vmem:[#allocation94_spill] sm:$0xff] }
 0x5bc   :  { %3131 = vmatpush.msrb.mxu2 %v10332_v40  ;;  %3151 = vmatpush.msrb.mxu3 %v10333_v42  ;;  %v10390_v40 = vld [vmem:[#allocation95_spill] sm:$0xff]  ;;  %v10391_v42 = vld [vmem:[#allocation96_spill] sm:$0xff] }
 0x5bd   :  { %3092 = vmatpush.msrb.mxu0 %v10334_v56  ;;  %3112 = vmatpush.msrb.mxu1 %v10335_v19  ;;  %v10392_v56 = vld [vmem:[#allocation97_spill] sm:$0xff]  ;;  %v10393_v19 = vld [vmem:[#allocation98_spill] sm:$0xff] }
 0x5be   :  { %3132 = vmatpush.msrb.mxu2 %v10336_v22  ;;  %3152 = vmatpush.msrb.mxu3 %v10337_v33  ;;  %v10394_v22 = vld [vmem:[#allocation99_spill] sm:$0xff]  ;;  %v10395_v33 = vld [vmem:[#allocation100_spill] sm:$0xff] }
 0x5bf   :  { %3093 = vmatpush.msrb.mxu0 %v10338_v36  ;;  %3113 = vmatpush.msrb.mxu1 %v10339_v11  ;;  %v10396_v36 = vld [vmem:[#allocation101_spill] sm:$0xff]  ;;  %v10397_v11 = vld [vmem:[#allocation102_spill] sm:$0xff] }
 0x5c0   :  { %3133 = vmatpush.msrb.mxu2 %v10340_v15  ;;  %3153 = vmatpush.msrb.mxu3 %v10341_v29  ;;  %v10398_v15 = vld [vmem:[#allocation103_spill] sm:$0xff]  ;;  %v10399_v29 = vld [vmem:[#allocation104_spill] sm:$0xff] }
 0x5c1   :  { %3094 = vmatpush.msrb.mxu0 %v10342_v46  ;;  %3114 = vmatpush.msrb.mxu1 %v10343_v9  ;;  %v10400_v46 = vld [vmem:[#allocation105_spill] sm:$0xff]  ;;  %v10401_v9 = vld [vmem:[#allocation106_spill] sm:$0xff] }
 0x5c2   :  { %3134 = vmatpush.msrb.mxu2 %v10344_v23  ;;  %3154 = vmatpush.msrb.mxu3 %v10345_v43  ;;  %v10402_v23 = vld [vmem:[#allocation107_spill] sm:$0xff]  ;;  %v10403_v43 = vld [vmem:[#allocation108_spill] sm:$0xff] }
 0x5c3   :  { %3095 = vmatpush.msrb.mxu0 %v10346_v26  ;;  %3115 = vmatpush.msrb.mxu1 %v10347_v7  ;;  %v10404_v26 = vld [vmem:[#allocation109_spill] sm:$0xff]  ;;  %v10405_v7 = vld [vmem:[#allocation110_spill] sm:$0xff] }
 0x5c4   :  { %3135 = vmatpush.msrb.mxu2 %v10348_v27  ;;  %3155 = vmatpush.msrb.mxu3 %v10349_v6  ;;  %v10406_v27 = vld [vmem:[#allocation111_spill] sm:$0xff]  ;;  %v10407_v6 = vld [vmem:[#allocation112_spill] sm:$0xff] }
 0x5c5   :  { %3096 = vmatmul.f32.vlgmr.msrb.gmra.mxu0 %v2912_v4  ;;  %3116 = vmatmul.f32.vlgmr.msrb.gmra.mxu1 %v2912_v4 }
 0x5c6   :  { %3136 = vmatmul.f32.vlgmr.msrb.gmra.mxu2 %v2912_v4  ;;  %3156 = vmatmul.f32.vlgmr.msrb.gmra.mxu3 %v2912_v4  ;;  %v10381_v4 = vld [vmem:[#allocation86_spill] sm:$0xff] }
 0x5c7   :  { %3160 = vmatpush.msra.mxu0 %v10350_v37  ;;  %3180 = vmatpush.msra.mxu1 %v10351_v55  ;;  %v10408_v37 = vld [vmem:[#allocation113_spill] sm:$0xff]  ;;  %v10409_v55 = vld [vmem:[#allocation114_spill] sm:$0xff] }
 0x5c8   :  { %3200 = vmatpush.msra.mxu2 %v10352_v62  ;;  %3220 = vmatpush.msra.mxu3 %v10353_v41  ;;  %v10410_v62 = vld [vmem:[#allocation115_spill] sm:$0xff]  ;;  %v10411_v41 = vld [vmem:[#allocation116_spill] sm:$0xff] }
 0x5c9   :  { %3161 = vmatpush.msra.mxu0 %v10354_v38  ;;  %3181 = vmatpush.msra.mxu1 %v10355_v45  ;;  %v10412_v38 = vld [vmem:[#allocation117_spill] sm:$0xff]  ;;  %v10413_v45 = vld [vmem:[#allocation118_spill] sm:$0xff] }
 0x5ca   :  { %3201 = vmatpush.msra.mxu2 %v10356_v49  ;;  %3221 = vmatpush.msra.mxu3 %v10357_v58  ;;  %v10414_v49 = vld [vmem:[#allocation119_spill] sm:$0xff]  ;;  %v10415_v58 = vld [vmem:[#allocation120_spill] sm:$0xff] }
 0x5cb   :  { %3162 = vmatpush.msra.mxu0 %v10358_v5  ;;  %3182 = vmatpush.msra.mxu1 %v10359_v30  ;;  %v10416_v5 = vld [vmem:[#allocation121_spill] sm:$0xff]  ;;  %v10417_v30 = vld [vmem:[#allocation122_spill] sm:$0xff] }
 0x5cc   :  { %3202 = vmatpush.msra.mxu2 %v10360_v35  ;;  %3222 = vmatpush.msra.mxu3 %v10361_v10  ;;  %v10418_v35 = vld [vmem:[#allocation123_spill] sm:$0xff]  ;;  %v10419_v10 = vld [vmem:[#allocation124_spill] sm:$0xff] }
 0x5cd   :  { %3163 = vmatpush.msra.mxu0 %v10362_v51  ;;  %3183 = vmatpush.msra.mxu1 %v10363_v21  ;;  %v10420_v51 = vld [vmem:[#allocation125_spill] sm:$0xff]  ;;  %v10421_v21 = vld [vmem:[#allocation126_spill] sm:$0xff] }
 0x5ce   :  { %3203 = vmatpush.msra.mxu2 %v10364_v0  ;;  %3223 = vmatpush.msra.mxu3 %v10365_v48  ;;  %v10422_v0 = vld [vmem:[#allocation127_spill] sm:$0xff]  ;;  %v10423_v48 = vld [vmem:[#allocation128_spill] sm:$0xff] }
 0x5cf   :  { %3164 = vmatpush.msra.mxu0 %v10366_v1  ;;  %3184 = vmatpush.msra.mxu1 %v10367_v50  ;;  %v10424_v1 = vld [vmem:[#allocation129_spill] sm:$0xff]  ;;  %v10425_v50 = vld [vmem:[#allocation130_spill] sm:$0xff] }
 0x5d0   :  { %3204 = vmatpush.msra.mxu2 %v10368_v53  ;;  %3224 = vmatpush.msra.mxu3 %v10369_v54  ;;  %v10426_v53 = vld [vmem:[#allocation131_spill] sm:$0xff]  ;;  %v10427_v54 = vld [vmem:[#allocation132_spill] sm:$0xff] }
 0x5d1   :  { %3165 = vmatpush.msra.mxu0 %v10370_v25  ;;  %3185 = vmatpush.msra.mxu1 %v10371_v31  ;;  %v10428_v25 = vld [vmem:[#allocation133_spill] sm:$0xff]  ;;  %v10429_v31 = vld [vmem:[#allocation134_spill] sm:$0xff] }
 0x5d2   :  { %3205 = vmatpush.msra.mxu2 %v10372_v14  ;;  %3225 = vmatpush.msra.mxu3 %v10373_v61  ;;  %v10430_v14 = vld [vmem:[#allocation135_spill] sm:$0xff]  ;;  %v10431_v61 = vld [vmem:[#allocation136_spill] sm:$0xff] }
 0x5d3   :  { %3166 = vmatpush.msra.mxu0 %v10374_v44  ;;  %3186 = vmatpush.msra.mxu1 %v10375_v12  ;;  %v10432_v44 = vld [vmem:[#allocation137_spill] sm:$0xff]  ;;  %v10433_v12 = vld [vmem:[#allocation138_spill] sm:$0xff] }
 0x5d4   :  { %3206 = vmatpush.msra.mxu2 %v10376_v60  ;;  %3226 = vmatpush.msra.mxu3 %v10377_v2  ;;  %v10434_v60 = vld [vmem:[#allocation139_spill] sm:$0xff]  ;;  %v10435_v2 = vld [vmem:[#allocation140_spill] sm:$0xff] }
 0x5d5   :  { %3167 = vmatpush.msra.mxu0 %v10378_v3  ;;  %3187 = vmatpush.msra.mxu1 %v10379_v17  ;;  %v10436_v3 = vld [vmem:[#allocation141_spill] sm:$0xff]  ;;  %v10437_v17 = vld [vmem:[#allocation142_spill] sm:$0xff] }
 0x5d6   :  { %3207 = vmatpush.msra.mxu2 %v10380_v39  ;;  %3227 = vmatpush.msra.mxu3 %v10381_v4  ;;  %v10438_v39 = vld [vmem:[#allocation143_spill] sm:$0xff]  ;;  %v10439_v4 = vld [vmem:[#allocation144_spill] sm:$0xff] }
 0x5d7   :  { %3168 = vmatpush.msra.mxu0 %v10382_v18  ;;  %3188 = vmatpush.msra.mxu1 %v10383_v59  ;;  %v10440_v18 = vld [vmem:[#allocation145_spill] sm:$0xff]  ;;  %v10441_v59 = vld [vmem:[#allocation146_spill] sm:$0xff] }
 0x5d8   :  { %3208 = vmatpush.msra.mxu2 %v10384_v34  ;;  %3228 = vmatpush.msra.mxu3 %v10385_v32  ;;  %v10442_v34 = vld [vmem:[#allocation147_spill] sm:$0xff]  ;;  %v10443_v32 = vld [vmem:[#allocation148_spill] sm:$0xff] }
 0x5d9   :  { %3169 = vmatpush.msra.mxu0 %v10386_v16  ;;  %3189 = vmatpush.msra.mxu1 %v10387_v24  ;;  %v10444_v16 = vld [vmem:[#allocation149_spill] sm:$0xff]  ;;  %v10445_v24 = vld [vmem:[#allocation150_spill] sm:$0xff] }
 0x5da   :  { %3209 = vmatpush.msra.mxu2 %v10388_v47  ;;  %3229 = vmatpush.msra.mxu3 %v10389_v57  ;;  %v10446_v47 = vld [vmem:[#allocation157_spill] sm:$0xff]  ;;  %v10447_v57 = vld [vmem:[#allocation158_spill] sm:$0xff] }
 0x5db   :  { %3170 = vmatpush.msra.mxu0 %v10390_v40  ;;  %3190 = vmatpush.msra.mxu1 %v10391_v42  ;;  %v10448_v40 = vld [vmem:[#allocation159_spill] sm:$0xff]  ;;  %v10449_v42 = vld [vmem:[#allocation160_spill] sm:$0xff] }
 0x5dc   :  { %3210 = vmatpush.msra.mxu2 %v10392_v56  ;;  %3230 = vmatpush.msra.mxu3 %v10393_v19  ;;  %v10450_v56 = vld [vmem:[#allocation161_spill] sm:$0xff]  ;;  %v10451_v19 = vld [vmem:[#allocation162_spill] sm:$0xff] }
 0x5dd   :  { %3171 = vmatpush.msra.mxu0 %v10394_v22  ;;  %3191 = vmatpush.msra.mxu1 %v10395_v33  ;;  %v10452_v22 = vld [vmem:[#allocation163_spill] sm:$0xff]  ;;  %v10453_v33 = vld [vmem:[#allocation164_spill] sm:$0xff] }
 0x5de   :  { %3211 = vmatpush.msra.mxu2 %v10396_v36  ;;  %3231 = vmatpush.msra.mxu3 %v10397_v11  ;;  %v10454_v36 = vld [vmem:[#allocation165_spill] sm:$0xff]  ;;  %v10455_v11 = vld [vmem:[#allocation166_spill] sm:$0xff] }
 0x5df   :  { %3172 = vmatpush.msra.mxu0 %v10398_v15  ;;  %3192 = vmatpush.msra.mxu1 %v10399_v29  ;;  %v10456_v15 = vld [vmem:[#allocation167_spill] sm:$0xff]  ;;  %v10457_v29 = vld [vmem:[#allocation168_spill] sm:$0xff] }
 0x5e0   :  { %3212 = vmatpush.msra.mxu2 %v10400_v46  ;;  %3232 = vmatpush.msra.mxu3 %v10401_v9  ;;  %v10458_v46 = vld [vmem:[#allocation169_spill] sm:$0xff]  ;;  %v10459_v9 = vld [vmem:[#allocation170_spill] sm:$0xff] }
 0x5e1   :  { %3173 = vmatpush.msra.mxu0 %v10402_v23  ;;  %3193 = vmatpush.msra.mxu1 %v10403_v43  ;;  %v10460_v23 = vld [vmem:[#allocation171_spill] sm:$0xff]  ;;  %v10461_v43 = vld [vmem:[#allocation172_spill] sm:$0xff] }
 0x5e2   :  { %3213 = vmatpush.msra.mxu2 %v10404_v26  ;;  %3233 = vmatpush.msra.mxu3 %v10405_v7  ;;  %v10462_v26 = vld [vmem:[#allocation173_spill] sm:$0xff]  ;;  %v10463_v7 = vld [vmem:[#allocation174_spill] sm:$0xff] }
 0x5e3   :  { %3174 = vmatpush.msra.mxu0 %v10406_v27  ;;  %3194 = vmatpush.msra.mxu1 %v10407_v6  ;;  %v10464_v27 = vld [vmem:[#allocation175_spill] sm:$0xff]  ;;  %v10465_v6 = vld [vmem:[#allocation176_spill] sm:$0xff] }
 0x5e4   :  { %3214 = vmatpush.msra.mxu2 %v10408_v37  ;;  %3234 = vmatpush.msra.mxu3 %v10409_v55  ;;  %v10466_v37 = vld [vmem:[#allocation177_spill] sm:$0xff]  ;;  %v10467_v55 = vld [vmem:[#allocation178_spill] sm:$0xff] }
 0x5e5   :  { %3175 = vmatpush.msra.mxu0 %v10410_v62  ;;  %3195 = vmatpush.msra.mxu1 %v10411_v41  ;;  %v10468_v62 = vld [vmem:[#allocation179_spill] sm:$0xff]  ;;  %v10469_v41 = vld [vmem:[#allocation180_spill] sm:$0xff] }
 0x5e6   :  { %3215 = vmatpush.msra.mxu2 %v10412_v38  ;;  %3235 = vmatpush.msra.mxu3 %v10413_v45  ;;  %v10470_v38 = vld [vmem:[#allocation181_spill] sm:$0xff]  ;;  %v10471_v45 = vld [vmem:[#allocation182_spill] sm:$0xff] }
 0x5e7   :  { %3307 = vmatpush.msrb.mxu0 %v10414_v49  ;;  %3327 = vmatpush.msrb.mxu1 %v10415_v58  ;;  %v10472_v49 = vld [vmem:[#allocation183_spill] sm:$0xff]  ;;  %v10473_v58 = vld [vmem:[#allocation184_spill] sm:$0xff] }
 0x5e8   :  { %3347 = vmatpush.msrb.mxu2 %v10416_v5  ;;  %3367 = vmatpush.msrb.mxu3 %v10417_v30  ;;  %v10474_v5 = vld [vmem:[#allocation185_spill] sm:$0xff]  ;;  %v10475_v30 = vld [vmem:[#allocation186_spill] sm:$0xff] }
 0x5e9   :  { %3308 = vmatpush.msrb.mxu0 %v10418_v35  ;;  %3328 = vmatpush.msrb.mxu1 %v10419_v10  ;;  %v10476_v35 = vld [vmem:[#allocation187_spill] sm:$0xff]  ;;  %v10477_v10 = vld [vmem:[#allocation153_spill] sm:$0xff] }
 0x5ea   :  { %3348 = vmatpush.msrb.mxu2 %v10420_v51  ;;  %3368 = vmatpush.msrb.mxu3 %v10421_v21 }
 0x5eb   :  { %3309 = vmatpush.msrb.mxu0 %v10422_v0  ;;  %3329 = vmatpush.msrb.mxu1 %v10423_v48 }
 0x5ec   :  { %3349 = vmatpush.msrb.mxu2 %v10424_v1  ;;  %3369 = vmatpush.msrb.mxu3 %v10425_v50 }
 0x5ed   :  { %3310 = vmatpush.msrb.mxu0 %v10426_v53  ;;  %3330 = vmatpush.msrb.mxu1 %v10427_v54  ;;  %v10478_v54 = vld [vmem:[#allocation14_spill] sm:$0xff] }
 0x5ee   :  { %3350 = vmatpush.msrb.mxu2 %v10428_v25  ;;  %3370 = vmatpush.msrb.mxu3 %v10429_v31  ;;  %v10479_v31 = vld [vmem:[#allocation15_spill] sm:$0xff] }
 0x5ef   :  { %3311 = vmatpush.msrb.mxu0 %v10430_v14  ;;  %3331 = vmatpush.msrb.mxu1 %v10431_v61  ;;  %v3070_v61 = vpop.permute.xlu1 %3069 }
 0x5f0   :  { %3351 = vmatpush.msrb.mxu2 %v10432_v44  ;;  %3371 = vmatpush.msrb.mxu3 %v10433_v12 }
 0x5f1   :  { %3312 = vmatpush.msrb.mxu0 %v10434_v60  ;;  %3332 = vmatpush.msrb.mxu1 %v10435_v2  ;;  %v10480_v2 = vld [vmem:[#allocation151_spill] sm:$0xff] }
 0x5f2   :  { %3352 = vmatpush.msrb.mxu2 %v10436_v3  ;;  %3372 = vmatpush.msrb.mxu3 %v10437_v17  ;;  %v3072_v3 = vmul.f32 %v3070_v61, %v10480_v2  ;;  %v10481_v17 = vld [vmem:[#allocation152_spill] sm:$0xff] }
 0x5f3   :  { %3313 = vmatpush.msrb.mxu0 %v10438_v39  ;;  %3333 = vmatpush.msrb.mxu1 %v10439_v4  ;;  %v3073_v39 = vmul.f32 %v3070_v61, %v10481_v17 }
 0x5f4   :  { %3353 = vmatpush.msrb.mxu2 %v10440_v18  ;;  %3373 = vmatpush.msrb.mxu3 %v10441_v59  ;;  %v10482_v59 = vld [vmem:[#allocation16_spill] sm:$0xff] }
 0x5f5   :  { %3314 = vmatpush.msrb.mxu0 %v10442_v34  ;;  %3334 = vmatpush.msrb.mxu1 %v10443_v32  ;;  %v3076_v32 = vadd.f32 %v3072_v3, %v10136_v52 }
 0x5f6   :  { %3354 = vmatpush.msrb.mxu2 %v10444_v16  ;;  %3374 = vmatpush.msrb.mxu3 %v10445_v24  ;;  %v10483_v16 = vld [vmem:[#allocation154_spill] sm:$0xff] }
 0x5f7   :  { %3315 = vmatpush.msrb.mxu0 %v10446_v47  ;;  %3335 = vmatpush.msrb.mxu1 %v10447_v57  ;;  %v3077_v24 = vadd.f32 %v3073_v39, %v10483_v16 }
 0x5f8   :  { %3355 = vmatpush.msrb.mxu2 %v10448_v40  ;;  %3375 = vmatpush.msrb.mxu3 %v10449_v42 }
 0x5f9   :  { %3316 = vmatpush.msrb.mxu0 %v10450_v56  ;;  %3336 = vmatpush.msrb.mxu1 %v10451_v19 }
 0x5fa   :  { %3356 = vmatpush.msrb.mxu2 %v10452_v22  ;;  %3376 = vmatpush.msrb.mxu3 %v10453_v33  ;;  %v10484_v33 = vld [vmem:[#allocation155_spill] sm:$0xff] }
 0x5fb   :  { %3317 = vmatpush.msrb.mxu0 %v10454_v36  ;;  %3337 = vmatpush.msrb.mxu1 %v10455_v11  ;;  %v3074_v36 = vmul.f32 %v3070_v61, %v10484_v33 }
 0x5fc   :  { %3357 = vmatpush.msrb.mxu2 %v10456_v15  ;;  %3377 = vmatpush.msrb.mxu3 %v10457_v29 }
 0x5fd   :  { %3318 = vmatpush.msrb.mxu0 %v10458_v46  ;;  %3338 = vmatpush.msrb.mxu1 %v10459_v9 }
 0x5fe   :  { %3358 = vmatpush.msrb.mxu2 %v10460_v23  ;;  %3378 = vmatpush.msrb.mxu3 %v10461_v43  ;;  %v10485_v23 = vld [vmem:[#allocation156_spill] sm:$0xff] }
 0x5ff   :  { %3319 = vmatpush.msrb.mxu0 %v10462_v26  ;;  %3339 = vmatpush.msrb.mxu1 %v10463_v7  ;;  %v3078_v43 = vadd.f32 %v3074_v36, %v10485_v23 }
 0x600   :  { %3359 = vmatpush.msrb.mxu2 %v10464_v27  ;;  %3379 = vmatpush.msrb.mxu3 %v10465_v6 }
 0x601   :  { %3320 = vmatpush.msrb.mxu0 %v10466_v37  ;;  %3340 = vmatpush.msrb.mxu1 %v10467_v55  ;;  %v10486_v37 = vld [vmem:[#allocation17_spill] sm:$0xff] }
 0x602   :  { %3360 = vmatpush.msrb.mxu2 %v10468_v62  ;;  %3380 = vmatpush.msrb.mxu3 %v10469_v41 }
 0x603   :  { %3321 = vmatpush.msrb.mxu0 %v10470_v38  ;;  %3341 = vmatpush.msrb.mxu1 %v10471_v45 }
 0x604   :  { %3361 = vmatpush.msrb.mxu2 %v10472_v49  ;;  %3381 = vmatpush.msrb.mxu3 %v10473_v58 }
 0x605   :  { %3322 = vmatpush.msrb.mxu0 %v10474_v5  ;;  %3342 = vmatpush.msrb.mxu1 %v10475_v30  ;;  %v3075_v30 = vmul.f32 %v3070_v61, %v5269_v13 }
 0x606   :  { %3362 = vmatpush.msrb.mxu2 %v10476_v35  ;;  %3382 = vmatpush.msrb.mxu3 %v10477_v10 }
 0x61e   :  { %v2783_v51 = vpop.f32.mrf.mxu0  ;;  %v2803_v21 = vpop.f32.mrf.mxu1 }
 0x625   :  { %v2823_v0 = vpop.f32.mrf.mxu2  ;;  %v2843_v60 = vpop.f32.mrf.mxu3 }
 0x636   :  { %v2930_v48 = vpop.f32.mrf.mxu0  ;;  %v2950_v1 = vpop.f32.mrf.mxu1 }
 0x637   :  { %v2931_v50 = vadd.f32 %v2930_v48, %v2783_v51  ;;  %v2951_v53 = vadd.f32 %v2950_v1, %v2803_v21 }
 0x639   :  { %v2993_v25 = vadd.f32 %v2931_v50, %v10478_v54  ;;  %v2994_v14 = vadd.f32 %v2951_v53, %v10479_v31 }
 0x63b   :  { %v3570_v44 = vmul.f32 -1.442695, %v2993_v25  ;;  %v3571_v12 = vmul.f32 -1.442695, %v2994_v14 }
 0x63d   :  { %3800 = vpow2.f32 %v3570_v44  ;;  %v2970_v4 = vpop.f32.mrf.mxu2  ;;  %v2990_v15 = vpop.f32.mrf.mxu3  ;;  %v3079_v44 = vadd.f32 %v3075_v30, %v5287_v20 }
 0x63e   :  { %3802 = vpow2.f32 %v3571_v12  ;;  %v2971_v18 = vadd.f32 %v2970_v4, %v2823_v0  ;;  %v2991_v52 = vadd.f32 %v2990_v15, %v2843_v60 }
 0x640   :  { %v2995_v34 = vadd.f32 %v2971_v18, %v10482_v59  ;;  %v2996_v55 = vadd.f32 %v2991_v52, %v10486_v37 }
 0x642   :  { %v3572_v47 = vmul.f32 -1.442695, %v2995_v34  ;;  %v3097_v57 = vpop.f32.mrf.mxu0  ;;  %v3117_v40 = vpop.f32.mrf.mxu1 }
 0x643   :  { %v3801_v42 = vpop.eup %3800  ;;  %v3240_v56 = vadd.f32 %v3097_v57, %v3076_v32  ;;  %v3241_v19 = vadd.f32 %v3117_v40, %v3077_v24  ;;  %v3062_v40 = vstv %s8361_s6 }
 0x644   :  { %v3803_v22 = vpop.eup %3802  ;;  %v3003_v11 = vadd.f32 1.0, %v3801_v42  ;;  %3804 = vpow2.f32 %v3572_v47  ;;  %vm8380_vm11 = vcmp.eq.s32.totalorder %v3062_v40, 1 }
 0x645   :  { %v8332_v29 = vadd.f32 1.0, %v3803_v22  ;;  %v3574_v46 = vmul.f32 -1.442695, %v3240_v56  ;;  %v3575_v9 = vmul.f32 -1.442695, %v3241_v19 }
 0x646   :  { %3806 = vrcp.f32 %v3003_v11  ;;  %v3014_v21 = vand.u32 2147483647, %v3003_v11  ;;  %v3016_v0 = vand.u32 2147483648, %v3003_v11  ;;  %vm3010_vm6 = vweird.f32 %v3003_v11 }
 0x647   :  { %3808 = vrcp.f32 %v8332_v29  ;;  %v3031_v1 = vand.u32 2147483648, %v8332_v29  ;;  %v3029_v53 = vand.u32 2147483647, %v8332_v29  ;;  %vm3025_vm2 = vweird.f32 %v8332_v29 }
 0x648   :  { %3810 = vpow2.f32 %v3574_v46  ;;  %vm3015_vm5 = vcmp.eq.f32.partialorder %v3014_v21, 8.507059e+37  ;;  %v3017_v2 = vor.u32 1.1754944e-38, %v3016_v0 }
 0x649   :  { %3812 = vpow2.f32 %v3575_v9  ;;  %v3137_v26 = vpop.f32.mrf.mxu2  ;;  %v3157_v25 = vpop.f32.mrf.mxu3  ;;  %v3032_v20 = vor.u32 1.1754944e-38, %v3031_v1  ;;  %vm3030_vm9 = vcmp.eq.f32.partialorder %v3029_v53, 8.507059e+37 }
 0x64a   :  { %v3805_v7 = vpop.eup %3804  ;;  %v3242_v27 = vadd.f32 %v3137_v26, %v3078_v43  ;;  %v3243_v18 = vadd.f32 %v3157_v25, %v3079_v44 }
 0x64b   :  { %v8336_v6 = vadd.f32 1.0, %v3805_v7 }
 0x64c   :  { %v3807_v62 = vpop.eup %3806  ;;  %v3576_v41 = vmul.f32 -1.442695, %v3242_v27 }
 0x64d   :  { %v3809_v38 = vpop.eup %3808  ;;  %v3006_v45 = vmul.f32 %v3807_v62, %v3003_v11  ;;  %3814 = vrcp.f32 %v8336_v6  ;;  %vm3011_vm3 = vweird.f32 %v3807_v62  ;;  %vm3048_vm10 = vweird.f32 %v8336_v6 }
 0x64e   :  { %v3811_v49 = vpop.eup %3810  ;;  %v3021_v58 = vmul.f32 %v3809_v38, %v8332_v29  ;;  %3816 = vpow2.f32 %v3576_v41  ;;  %vm3026_vm4 = vweird.f32 %v3809_v38  ;;  %vm3012_vm7 = vmor %vm3010_vm6, %vm3011_vm3  ;;  %v3054_v36 = vand.u32 2147483648, %v8336_v6 }
 0x64f   :  { %v3813_v5 = vpop.eup %3812  ;;  %v3007_v35 = vsub.f32 1.0, %v3006_v45  ;;  %3818 = vtanh.f32 %v2996_v55  ;;  %v8342_v10 = vadd.f32 1.0, %v3811_v49  ;;  %vm3027_vm8 = vmor %vm3025_vm2, %vm3026_vm4  ;;  %v3052_v55 = vand.u32 2147483647, %v8336_v6 }
 0x650   :  { %v3022_v51 = vsub.f32 1.0, %v3021_v58  ;;  %v8347_v48 = vadd.f32 1.0, %v3813_v5  ;;  %v3055_v45 = vor.u32 1.1754944e-38, %v3054_v36 }
 0x651   :  { %v3008_v50 = vmul.f32 %v3807_v62, %v3007_v35  ;;  %3820 = vrcp.f32 %v8342_v10  ;;  %v3261_v29 = vand.u32 2147483647, %v8342_v10  ;;  %vm3257_vm15 = vweird.f32 %v8342_v10 }
 0x652   :  { %v3023_v13 = vmul.f32 %v3809_v38, %v3022_v51  ;;  %3822 = vrcp.f32 %v8347_v48  ;;  %v3278_v23 = vand.u32 2147483648, %v8347_v48  ;;  %v3276_v27 = vand.u32 2147483647, %v8347_v48 }
 0x653   :  { %v8353_v14 = vpop.eup %3814  ;;  %v3009_v61 = vadd.f32 %v3807_v62, %v3008_v50  ;;  %vm3272_vm1 = vweird.f32 %v8347_v48  ;;  %vm3262_vm2 = vcmp.eq.f32.partialorder %v3261_v29, 8.507059e+37 }
 0x654   :  { %v3817_v12 = vpop.eup %3816  ;;  %v3044_v60 = vmul.f32 %v8353_v14, %v8336_v6  ;;  %v3024_v3 = vadd.f32 %v3809_v38, %v3023_v13  ;;  %vm3049_vm12 = vweird.f32 %v8353_v14  ;;  %v3279_v35 = vor.u32 1.1754944e-38, %v3278_v23  ;;  %v3472_v23 = vld [vmem:[%s8493_s9 + $0x30] sm:$0xff] }
 0x655   :  { %v3819_v17 = vpop.eup %3818  ;;  %v3013_v39 = vsel %vm3012_vm7, %v3807_v62, %v3009_v61  ;;  %v8367_v4 = vadd.f32 1.0, %v3817_v12  ;;  %vm8395_vm0 = vmor %vm3048_vm10, %vm3049_vm12  ;;  %vm3277_vm6 = vcmp.eq.f32.partialorder %v3276_v27, 8.507059e+37  ;;  %vm3053_vm7 = vcmp.eq.f32.partialorder %v3052_v55, 8.507059e+37  ;;  %v3469_v27 = vld [vmem:[%s8493_s9 + $0x18] sm:$0xff] }
 0x656   :  { %v3045_v34 = vsub.f32 1.0, %v3044_v60  ;;  %v3018_v32 = vsel %vm3015_vm5, %v3017_v2, %v3013_v39  ;;  %v3028_v16 = vsel %vm3027_vm8, %v3809_v38, %v3024_v3  ;;  %v3481_v39 = vld [vmem:[%s8493_s9 + $0x78] sm:$0xff] }
 0x657   :  { %v3821_v24 = vpop.eup %3820  ;;  %v3033_v47 = vsel %vm3030_vm9, %v3032_v20, %v3028_v16  ;;  %v3037_v57 = vmul.f32 %v3819_v17, %v3018_v32  ;;  %3824 = vrcp.f32 %v8367_v4  ;;  %vm3295_vm8 = vweird.f32 %v8367_v4  ;;  %v3479_v32 = vld [vmem:[%s8493_s9 + $0x68] sm:$0xff]  ;;  %v3478_v16 = vld [vmem:[%s8493_s9 + $0x60] sm:$0xff] }
 0x658   :  { %v3823_v42 = vpop.eup %3822  ;;  %v3046_v56 = vmul.f32 %v8353_v14, %v3045_v34  ;;  %v3036_v19 = vmul.f32 %v3033_v47, %v8082_v63  ;;  %v3253_v22 = vmul.f32 %v3821_v24, %v8342_v10  ;;  %3826 = vtanh.f32 %v3243_v18  ;;  %v3477_v47 = vld [vmem:[%s8493_s9 + $0x58] sm:$0xff] }
 0x659   :  { %v3268_v33 = vmul.f32 %v3823_v42, %v8347_v48  ;;  %v3263_v63 = vand.u32 2147483648, %v8342_v10  ;;  %vm3258_vm13 = vweird.f32 %v3821_v24  ;;  %vm3273_vm14 = vweird.f32 %v3823_v42 }
 0x65a   :  { %v8377_v11 = vadd.f32 %v3037_v57, %v3036_v19  ;;  %v3254_v15 = vsub.f32 1.0, %v3253_v22  ;;  %v3047_v52 = vadd.f32 %v8353_v14, %v3046_v56  ;;  %vm3259_vm3 = vmor %vm3257_vm15, %vm3258_vm13  ;;  %v3299_v12 = vand.u32 2147483647, %v8367_v4  ;;  %v3476_v57 = vld [vmem:[%s8493_s9 + $0x50] sm:$0xff]  ;;  %v3475_v22 = vld [vmem:[%s8493_s9 + $0x48] sm:$0xff] }
 0x65b   :  { %v3269_v9 = vsub.f32 1.0, %v3268_v33  ;;  %v3264_v58 = vor.u32 1.1754944e-38, %v3263_v63  ;;  %vm3274_vm4 = vmor %vm3272_vm1, %vm3273_vm14 }
 0x65c   :  { %3828 = vtanh.f32 %v8377_v11  ;;  %v3255_v43 = vmul.f32 %v3821_v24, %v3254_v15  ;;  %v3051_v30 = vsel %vm8395_vm0, %v8353_v14, %v3047_v52  ;;  %vm3300_vm10 = vcmp.eq.f32.partialorder %v3299_v12, 8.507059e+37  ;;  %v3474_v15 = vld [vmem:[%s8493_s9 + $0x40] sm:$0xff]  ;;  %v3473_v52 = vld [vmem:[%s8493_s9 + $0x38] sm:$0xff] }
 0x65d   :  { %v3825_v26 = vpop.eup %3824  ;;  %v3270_v7 = vmul.f32 %v3823_v42, %v3269_v9  ;;  %v3056_v48 = vsel %vm3053_vm7, %v3055_v45, %v3051_v30 }
 0x65e   :  { %v3291_v62 = vmul.f32 %v3825_v26, %v8367_v4  ;;  %v3256_v41 = vadd.f32 %v3821_v24, %v3255_v43  ;;  %v3827_v49 = vpop.eup %3826  ;;  %vm3296_vm5 = vweird.f32 %v3825_v26 }
 0x65f   :  { %v3271_v5 = vadd.f32 %v3823_v42, %v3270_v7  ;;  %vm3297_vm9 = vmor %vm3295_vm8, %vm3296_vm5 }
 0x660   :  { %v3292_v10 = vsub.f32 1.0, %v3291_v62  ;;  %v3260_v51 = vsel %vm3259_vm3, %v3821_v24, %v3256_v41  ;;  %v3468_v41 = vld [vmem:[%s8493_s9 + $0x10] sm:$0xff] }
 0x661   :  { %v3265_v6 = vsel %vm3262_vm2, %v3264_v58, %v3260_v51  ;;  %v3275_v21 = vsel %vm3274_vm4, %v3823_v42, %v3271_v5  ;;  %v3466_v5 = vld [vmem:[%s8493_s9] sm:$0xff] }
 0x662   :  { %v3829_v0 = vpop.eup %3828  ;;  %v3280_v1 = vsel %vm3277_vm6, %v3279_v35, %v3275_v21  ;;  %v3284_v50 = vmul.f32 %v3827_v49, %v3265_v6  ;;  %v3293_v13 = vmul.f32 %v3825_v26, %v3292_v10 }
 0x663   :  { %v3283_v53 = vmul.f32 %v3280_v1, %v8143_v28  ;;  %v8404_v25 = vmul.f32 %v3829_v0, %v3056_v48  ;;  %v3301_v28 = vand.u32 2147483648, %v8367_v4  ;;  %v3480_v4 = vld [vmem:[%s8493_s9 + $0x70] sm:$0xff] }
 0x664   :  { %v3294_v44 = vadd.f32 %v3825_v26, %v3293_v13 }
 0x665   :  { %v3285_v61 = vadd.f32 %v3284_v50, %v3283_v53  ;;  %3176 = vmatmul.f32.vlgmr.msra.gmra.mxu0 %v8404_v25  ;;  %3196 = vmatmul.f32.vlgmr.msra.gmra.mxu1 %v8404_v25  ;;  %v3064_v14 = vsel %vm8380_vm11, %v8404_v25, %v8107_v8  ;;  %v3302_v2 = vor.u32 1.1754944e-38, %v3301_v28 }
 0x666   :  { %3216 = vmatmul.f32.vlgmr.msra.gmra.mxu2 %v8404_v25  ;;  %3236 = vmatmul.f32.vlgmr.msra.gmra.mxu3 %v8404_v25  ;;  %v3298_v60 = vsel %vm3297_vm9, %v3825_v26, %v3294_v44  ;;  %v3470_v26 = vld [vmem:[%s8493_s9 + $0x20] sm:$0xff] }
 0x667   :  { %3830 = vtanh.f32 %v3285_v61  ;;  %v3303_v17 = vsel %vm3300_vm10, %v3302_v2, %v3298_v60  ;;  %3486 = vmatpush.msra.mxu0 %v3481_v39 }
 0x669   :  { %3487 = vmatpush.msra.mxu0 %v3480_v4 }
 0x66b   :  { %3488 = vmatpush.msra.mxu0 %v3479_v32 }
 0x66d   :  { %v3831_v3 = vpop.eup %3830  ;;  %3489 = vmatpush.msra.mxu0 %v3478_v16 }
 0x66e   :  { %v3306_v20 = vmul.f32 %v3831_v3, %v3303_v17 }
 0x66f   :  { %3490 = vmatpush.msra.mxu0 %v3477_v47 }
 0x670   :  { %3323 = vmatmul.f32.vlgmr.msrb.gmra.mxu0 %v3306_v20  ;;  %3343 = vmatmul.f32.vlgmr.msrb.gmra.mxu1 %v3306_v20 }
 0x671   :  { %3363 = vmatmul.f32.vlgmr.msrb.gmra.mxu2 %v3306_v20  ;;  %3383 = vmatmul.f32.vlgmr.msrb.gmra.mxu3 %v3306_v20 }
 0x672   :  { %3491 = vmatpush.msra.mxu0 %v3476_v57 }
 0x674   :  { %3492 = vmatpush.msra.mxu0 %v3475_v22 }
 0x676   :  { %3493 = vmatpush.msra.mxu0 %v3474_v15 }
 0x678   :  { %3494 = vmatpush.msra.mxu0 %v3473_v52 }
 0x67a   :  { %3495 = vmatpush.msra.mxu0 %v3472_v23  ;;  %v3591_v23 = vld [vmem:[%s8494_s10] ss:$0 sm:$0xff] }
 0x6e2   :  { %v3177_v18 = vpop.f32.mrf.mxu0  ;;  %v3197_v34 = vpop.f32.mrf.mxu1 }
 0x6e9   :  { %v3217_v24 = vpop.f32.mrf.mxu2  ;;  %v3237_v29 = vpop.f32.mrf.mxu3 }
 0x6ed   :  { %v3324_v40 = vpop.f32.mrf.mxu0  ;;  %v3344_v42 = vpop.f32.mrf.mxu1 }
 0x6ee   :  { %v3325_v56 = vadd.f32 %v3324_v40, %v3177_v18  ;;  %v3345_v19 = vadd.f32 %v3344_v42, %v3197_v34 }
 0x6f0   :  { %v3387_v33 = vadd.f32 %v3325_v56, %v10478_v54  ;;  %v3388_v36 = vadd.f32 %v3345_v19, %v10479_v31  ;;  %v3471_v31 = vld [vmem:[%s8493_s9 + $0x28] sm:$0xff] }
 0x6f1   :  { %3496 = vmatpush.msra.mxu0 %v3471_v31 }
 0x6f2   :  { %v3577_v9 = vmul.f32 -1.442695, %v3387_v33  ;;  %v3578_v63 = vmul.f32 -1.442695, %v3388_v36  ;;  %v3456_v33 = vstv %s3455_s17 }
 0x6f3   :  { %3497 = vmatpush.msra.mxu0 %v3470_v26  ;;  %vm3457_vm8 = vcmp.eq.s32.totalorder %v3456_v33, 1 }
 0x6f4   :  { %3832 = vpow2.f32 %v3577_v9  ;;  %v3364_v54 = vpop.f32.mrf.mxu2  ;;  %v3384_v58 = vpop.f32.mrf.mxu3 }
 0x6f5   :  { %3834 = vpow2.f32 %v3578_v63  ;;  %v3365_v43 = vadd.f32 %v3364_v54, %v3217_v24  ;;  %3498 = vmatpush.msra.mxu0 %v3469_v27  ;;  %v3385_v30 = vadd.f32 %v3384_v58, %v3237_v29  ;;  %v3463_v63 = vpop.permute.xlu2 %3462 }
 0x6f7   :  { %v3389_v7 = vadd.f32 %v3365_v43, %v10482_v59  ;;  %v3467_v59 = vld [vmem:[%s8493_s9 + $0x8] sm:$0xff]  ;;  %3499 = vmatpush.msra.mxu0 %v3468_v41  ;;  %v3390_v6 = vadd.f32 %v3385_v30, %v10486_v37 }
 0x6f9   :  { %v3579_v55 = vmul.f32 -1.442695, %v3389_v7  ;;  %3500 = vmatpush.msra.mxu0 %v3467_v59 }
 0x6fa   :  { %v3833_v62 = vpop.eup %3832 }
 0x6fb   :  { %v3835_v38 = vpop.eup %3834  ;;  %v3397_v45 = vadd.f32 1.0, %v3833_v62  ;;  %3836 = vpow2.f32 %v3579_v55  ;;  %3501 = vmatpush.msra.mxu0 %v3466_v5 }
 0x6fc   :  { %v3398_v49 = vadd.f32 1.0, %v3835_v38 }
 0x6fd   :  { %3838 = vrcp.f32 %v3397_v45  ;;  %v3410_v13 = vand.u32 2147483648, %v3397_v45  ;;  %v3408_v44 = vand.u32 2147483647, %v3397_v45  ;;  %vm3404_vm14 = vweird.f32 %v3397_v45 }
 0x6fe   :  { %3840 = vrcp.f32 %v3398_v49  ;;  %v3425_v53 = vand.u32 2147483648, %v3398_v49  ;;  %v3423_v12 = vand.u32 2147483647, %v3398_v49  ;;  %vm3419_vm15 = vweird.f32 %v3398_v49 }
 0x6ff   :  { %v3411_v3 = vor.u32 1.1754944e-38, %v3410_v13  ;;  %vm3409_vm3 = vcmp.eq.f32.partialorder %v3408_v44, 8.507059e+37 }
 0x700   :  { %v3426_v20 = vor.u32 1.1754944e-38, %v3425_v53  ;;  %vm3424_vm4 = vcmp.eq.f32.partialorder %v3423_v12, 8.507059e+37 }
 0x701   :  { %v3837_v35 = vpop.eup %3836 }
 0x702   :  { %v3436_v10 = vadd.f32 1.0, %v3837_v35 }
 0x703   :  { %v3839_v51 = vpop.eup %3838 }
 0x704   :  { %v3841_v21 = vpop.eup %3840  ;;  %v3400_v0 = vmul.f32 %v3839_v51, %v3397_v45  ;;  %3842 = vrcp.f32 %v3436_v10  ;;  %vm3405_vm12 = vweird.f32 %v3839_v51  ;;  %v3448_v56 = vand.u32 2147483648, %v3436_v10 }
 0x705   :  { %v3415_v1 = vmul.f32 %v3841_v21, %v3398_v49  ;;  %3844 = vtanh.f32 %v3390_v6  ;;  %vm3420_vm13 = vweird.f32 %v3841_v21  ;;  %vm3406_vm0 = vmor %vm3404_vm14, %vm3405_vm12  ;;  %vm3442_vm6 = vweird.f32 %v3436_v10 }
 0x706   :  { %v3401_v50 = vsub.f32 1.0, %v3400_v0  ;;  %vm3421_vm1 = vmor %vm3419_vm15, %vm3420_vm13  ;;  %v3446_v19 = vand.u32 2147483647, %v3436_v10  ;;  %v3449_v36 = vor.u32 1.1754944e-38, %v3448_v56 }
 0x707   :  { %v3416_v48 = vsub.f32 1.0, %v3415_v1 }
 0x708   :  { %v3402_v61 = vmul.f32 %v3839_v51, %v3401_v50  ;;  %vm3447_vm5 = vcmp.eq.f32.partialorder %v3446_v19, 8.507059e+37 }
 0x709   :  { %v3417_v28 = vmul.f32 %v3841_v21, %v3416_v48 }
 0x70a   :  { %v3843_v60 = vpop.eup %3842  ;;  %v3403_v2 = vadd.f32 %v3839_v51, %v3402_v61 }
 0x70b   :  { %v3438_v37 = vmul.f32 %v3843_v60, %v3436_v10  ;;  %v3418_v17 = vadd.f32 %v3841_v21, %v3417_v28  ;;  %v3845_v18 = vpop.eup %3844  ;;  %vm3443_vm2 = vweird.f32 %v3843_v60 }
 0x70c   :  { %v3407_v39 = vsel %vm3406_vm0, %v3839_v51, %v3403_v2  ;;  %vm3444_vm7 = vmor %vm3442_vm6, %vm3443_vm2 }
 0x70d   :  { %v3439_v34 = vsub.f32 1.0, %v3438_v37  ;;  %v3412_v4 = vsel %vm3409_vm3, %v3411_v3, %v3407_v39  ;;  %v3422_v32 = vsel %vm3421_vm1, %v3841_v21, %v3418_v17 }
 0x70e   :  { %v3427_v16 = vsel %vm3424_vm4, %v3426_v20, %v3422_v32  ;;  %v3431_v24 = vmul.f32 %v3845_v18, %v3412_v4 }
 0x70f   :  { %v3440_v47 = vmul.f32 %v3843_v60, %v3439_v34  ;;  %v3430_v57 = vmul.f32 %v3427_v16, %v8377_v11 }
 0x711   :  { %v3432_v40 = vadd.f32 %v3431_v24, %v3430_v57  ;;  %v3441_v42 = vadd.f32 %v3843_v60, %v3440_v47 }
 0x713   :  { %3846 = vtanh.f32 %v3432_v40  ;;  %v3445_v22 = vsel %vm3444_vm7, %v3843_v60, %v3441_v42 }
 0x714   :  { %v3450_v29 = vsel %vm3447_vm5, %v3449_v36, %v3445_v22 }
 0x719   :  { %v3847_v15 = vpop.eup %3846 }
 0x71a   :  { %v3453_v9 = vmul.f32 %v3847_v15, %v3450_v29 }
 0x71c   :  { %v3458_v11 = vsel %vm3457_vm8, %v3453_v9, %v3064_v14 }
 0x71d   :  { %v3465_v52 = vmul.f32 %v3463_v63, %v3458_v11 }
 0x71f   :  { %3502 = vmatmul.f32.vlgmr.msra.gmra.mxu0 %v3465_v52 }
 0x79c   :  { %v3503_v54 = vpop.f32.mrf.mxu0 }
 0x79d   :  { %v3504_v31 = vadd.f32 %v3591_v23, %v3503_v54 }
 0x79f   :  { %3506 = vst [vmem:[#allocation10] sm:$0xff] %v3504_v31 }
 0x7a0   :  { %3517 = dma.vmem_to_hbm [thread:$0]  %s3513_s1, 128, %s3515_s20, [#allocation6]  }
 0x7a1   :  { %4524 = dma.done.wait [#allocation6], 128  }
 0x7a2   :  { %4525 = vsyncadd [#allocation6], 4294967168 }
 0x7a3   :  { %3522 = vsyncpa [#allocation5], 1 }
 0x7a4   :  { %3523 = vsyncpa [#allocation8], 1 }
 0x7a5   :  { %3524 = vsyncpa [#allocation6], 1 }

</bundles_post_ra>
